<compile_context>
chip_gen: v7x
topology: tpu7x:2x2x1
jax: 0.10.0
libtpu: 0.0.40
codegen_flags: <defaults>
</compile_context>

<pallas_src>
import functools
import math

import numpy as np
import jax
import jax.numpy as jnp
from jax.experimental import pallas as pl
from jax.experimental.pallas import tpu as pltpu

# ----------------------------- model config (small, consistent with module) ---
DIM = 32               # model dim
DEPTH = 2              # performer depth (enc and dec)
HEADS = 2
DIM_HEAD = 16
INNER = HEADS * DIM_HEAD
FF_MULT = 4
N_ENC = 16             # encoder max_seq_len / sequence length
N_DEC = 8              # decoder max_seq_len / sequence length
TRANSLATOR_DEPTH = 2
VOCAB = 85500          # nn.Embedding(85500, dim, padding_idx=0)
NB_FEATURES = int(DIM_HEAD * math.log(DIM_HEAD))   # performer default nb_features (=44)
LN_EPS = 1e-5
FEAT_EPS = 1e-4

_PNAMES = ("ln1g", "ln1b", "wqkv", "bqkv", "wo", "bo", "projbd",
           "ln2g", "ln2b", "w1", "b1", "w2", "b2")


# ----------------------------- in-kernel math helpers --------------------------
def _layernorm(x, g, b):
    mu = jnp.mean(x, axis=-1, keepdims=True)
    var = jnp.mean((x - mu) ** 2, axis=-1, keepdims=True)   # biased var, eps=1e-5 (torch)
    return (x - mu) * jax.lax.rsqrt(var + LN_EPS) * g + b


def _erf_poly(x):
    # TODO(synk): exact lax.erf lowering in Mosaic is uncertain, so exact-erf GELU uses the
    # Abramowitz-Stegun 7.1.26 rational approximation (|abs err| < 1.5e-7, i.e. it matches
    # exact erf to f32 precision) built only from exp/div/mul/add/select.
    p = 0.3275911
    a1, a2, a3, a4, a5 = 0.254829592, -0.284496736, 1.421413741, -1.453152027, 1.061405429
    s = jnp.where(x >= 0.0, 1.0, -1.0)
    z = jnp.abs(x)
    t = 1.0 / (1.0 + p * z)
    poly = ((((a5 * t + a4) * t + a3) * t + a2) * t + a1) * t
    return s * (1.0 - poly * jnp.exp(-z * z))


def _gelu_exact(x):
    return x * 0.5 * (1.0 + _erf_poly(x * (1.0 / math.sqrt(2.0))))


# ----------------------------- fused whole-model kernel ------------------------
def _encdec_kernel(x0_ref, posdec_ref, slab_ref, encw_ref, decw_ref, e2d_ref, *, index):
    """Entire scPerformerEncDec forward (minus HBM embedding gathers) in one kernel."""

    def get(name):                              # static slice of the parameter slab
        off, (r, c) = index[name]
        return slab_ref[off:off + r, 0:c]

    two_nb = HEADS * NB_FEATURES
    # Cross-head mask for the (features x head_dim) context matrix: zeroing the
    # off-diagonal head blocks lets one (n,88)@(88,32) dot produce per-head outputs
    # already concatenated in the '(h d)' layout expected by to_out.
    f_idx = jax.lax.broadcasted_iota(jnp.int32, (two_nb, INNER), 0)
    d_idx = jax.lax.broadcasted_iota(jnp.int32, (two_nb, INNER), 1)
    ctx_same_head = (f_idx < NB_FEATURES) == (d_idx < DIM_HEAD)

    def lm_stack(x, prefix):
        """SequentialSequence(output_attentions=True) over DEPTH layers, batch=1."""
        n = x.shape[0]
        h0_feat = jax.lax.broadcasted_iota(jnp.int32, (n, two_nb), 1) < NB_FEATURES
        h0_dim = jax.lax.broadcasted_iota(jnp.int32, (n, INNER), 1) < DIM_HEAD
        c = DIM_HEAD ** -0.25
        ratio = NB_FEATURES ** -0.5
        neg = jnp.float32(-1e30)

        def features(xn, lp, need_v):
            # Fused QKV matmul + performer softmax_kernel feature maps (both heads at once).
            qkv = jnp.dot(xn, lp["wqkv"], preferred_element_type=jnp.float32) + lp["bqkv"]
            q = qkv[:, 0:INNER]
            k = qkv[:, INNER:2 * INNER]
            v = qkv[:, 2 * INNER:3 * INNER] if need_v else None
            dd_q = jnp.dot(q * c, lp["projbd"], preferred_element_type=jnp.float32)  # (n, 88)
            dd_k = jnp.dot(k * c, lp["projbd"], preferred_element_type=jnp.float32)
            half = 0.5 * c * c
            q2, k2 = q * q, k * k
            diag_q = jnp.where(
                h0_feat,
                jnp.sum(jnp.where(h0_dim, q2, 0.0), axis=-1, keepdims=True),
                jnp.sum(jnp.where(h0_dim, 0.0, q2), axis=-1, keepdims=True)) * half
            diag_k = jnp.where(
                h0_feat,
                jnp.sum(jnp.where(h0_dim, k2, 0.0), axis=-1, keepdims=True),
                jnp.sum(jnp.where(h0_dim, 0.0, k2), axis=-1, keepdims=True)) * half
            # query stabiliser: per-row max over each head's own 44 features
            q_stab = jnp.where(
                h0_feat,
                jnp.max(jnp.where(h0_feat, dd_q, neg), axis=-1, keepdims=True),
                jnp.max(jnp.where(h0_feat, neg, dd_q), axis=-1, keepdims=True))
            # key stabiliser: global max over all heads/positions (torch.max(data_dash), batch=1)
            k_stab = jnp.max(jnp.max(dd_k, axis=-1, keepdims=True), axis=0, keepdims=True)
            q_f = ratio * (jnp.exp(dd_q - diag_q - q_stab) + FEAT_EPS)
            k_f = ratio * (jnp.exp(dd_k - diag_k - k_stab) + FEAT_EPS)
            return q_f, k_f, v

        def d_inv_expanded(q_f, k_f):
            # per-head denominator 1 / (q_f . sum_n k_f), broadcast back over each head block
            s = q_f * jnp.sum(k_f, axis=0, keepdims=True)
            d0 = jnp.sum(jnp.where(h0_feat, s, 0.0), axis=-1, keepdims=True)
            d1 = jnp.sum(jnp.where(h0_feat, 0.0, s), axis=-1, keepdims=True)
            # q_f / k_f are strictly positive (exp + 1e-4), so no epsilon is needed here.
            return jnp.where(h0_feat, 1.0 / d0, 1.0 / d1)

        def attn_out(x, lp):
            xn = _layernorm(x, lp["ln1g"], lp["ln1b"])
            q_f, k_f, v = features(xn, lp, need_v=True)
            d_inv = d_inv_expanded(q_f, k_f)
            ctx = jax.lax.dot_general(k_f, v, (((0,), (0,)), ((), ())),
                                      preferred_element_type=jnp.float32)       # (88, 32)
            ctx = jnp.where(ctx_same_head, ctx, 0.0)                             # block-diag
            o = jnp.dot(q_f * d_inv, ctx, preferred_element_type=jnp.float32)    # (n, 32)
            return jnp.dot(o, lp["wo"], preferred_element_type=jnp.float32) + lp["bo"]

        def attn_weights(x, lp):
            # FastAttention(output_attentions): mean_h d_inv * (q_f @ k_f^T); the blocked
            # contraction over 88 features is exactly the sum over the two heads.
            xn = _layernorm(x, lp["ln1g"], lp["ln1b"])
            q_f, k_f, _ = features(xn, lp, need_v=False)
            d_inv = d_inv_expanded(q_f, k_f)
            aw = jax.lax.dot_general(q_f * d_inv, k_f, (((1,), (1,)), ((), ())),
                                     preferred_element_type=jnp.float32)          # (n, n)
            return aw * (1.0 / HEADS)

        def ff(x, lp):
            xn = _layernorm(x, lp["ln2g"], lp["ln2b"])
            h = _gelu_exact(jnp.dot(xn, lp["w1"], preferred_element_type=jnp.float32) + lp["b1"])
            return jnp.dot(h, lp["w2"], preferred_element_type=jnp.float32) + lp["b2"]

        aw_acc = jnp.zeros((n, n), jnp.float32)
        for layer in range(DEPTH):
            lp = {p: get(f"{prefix}_l{layer}_{p}") for p in _PNAMES}
            x = x + attn_out(x, lp)                 # x = x + f(x)[0]
            aw_acc = aw_acc + attn_weights(x, lp)   # reference re-runs f on the UPDATED x
            x = x + ff(x, lp)                       # x = x + g(x)
        return x, aw_acc * (1.0 / DEPTH)

    # ---------------- encoder -------------------------------------------------
    enc_x, enc_w = lm_stack(x0_ref[...], "enc")
    encw_ref[...] = enc_w

    # ---------------- sequence translator (transposed form, no transposes) ----
    # TODO(synk): MLPTranslator source not provided; reconstructed as
    #   Dropout -> Linear(n_enc, n_dec) -> ReLU -> [Linear(n_dec, n_dec) -> ReLU]*(depth-1).
    y = jnp.maximum(jnp.dot(get("tr_w1t"), enc_x, preferred_element_type=jnp.float32)
                    + get("tr_b1c"), 0.0)                                        # (n_dec, dim)
    seq_out = jnp.maximum(jnp.dot(get("tr_w2t"), y, preferred_element_type=jnp.float32)
                          + get("tr_b2c"), 0.0)                                  # (n_dec, dim)

    # ---------------- decoder (pos-emb residual fused in-kernel) --------------
    # NOTE: the decoder's to_out(x) is discarded by scPerformerEncDec, so it is not computed.
    _, dec_w = lm_stack(seq_out + posdec_ref[...], "dec")
    decw_ref[...] = dec_w

    # ---------------- enc2dec = translator(enc_w) @ dec_w (fused) -------------
    h = jnp.maximum(jnp.dot(enc_w, get("tr_w1"), preferred_element_type=jnp.float32)
                    + get("tr_b1r"), 0.0)
    h = jnp.maximum(jnp.dot(h, get("tr_w2"), preferred_element_type=jnp.float32)
                    + get("tr_b2r"), 0.0)
    e2d_ref[...] = jnp.dot(h, dec_w, preferred_element_type=jnp.float32)


# ----------------------------- parameter slab ----------------------------------
class _SlabBuilder:
    """Packs all parameters into one lane-dense (rows, 128) f32 slab, 8-row aligned."""

    def __init__(self):
        self._items = []

    def add(self, name, arr):
        a = np.asarray(arr, np.float32)
        if a.ndim == 1:
            a = a.reshape(1, -1)
        assert a.ndim == 2 and a.shape[1] <= 128, (name, a.shape)
        self._items.append((name, a))

    def build(self):
        index, off = {}, 0
        for name, a in self._items:
            index[name] = (off, tuple(a.shape))
            off += ((a.shape[0] + 7) // 8) * 8
        total = max(((off + 7) // 8) * 8, 8)
        slab = np.zeros((total, 128), np.float32)
        for name, a in self._items:
            o, _ = index[name]
            slab[o:o + a.shape[0], 0:a.shape[1]] = a
        return jnp.asarray(slab), index


# ----------------------------- deterministic parameter init --------------------
def _init_linear(key, fan_in, fan_out):
    kw, kb = jax.random.split(key)
    bound = 1.0 / math.sqrt(fan_in)
    w = jax.random.uniform(kw, (fan_in, fan_out), jnp.float32, -bound, bound)
    b = jax.random.uniform(kb, (fan_out,), jnp.float32, -bound, bound)
    return np.asarray(w), np.asarray(b)


def _gaussian_orthogonal_random_matrix(key, nb_rows, nb_cols):
    """performer_pytorch gaussian_orthogonal_random_matrix (scaling=0)."""
    nb_full_blocks = nb_rows // nb_cols
    keys = jax.random.split(key, nb_full_blocks + 2)
    blocks = []
    for i in range(nb_full_blocks):
        g = jax.random.normal(keys[i], (nb_cols, nb_cols), jnp.float32)
        q, _ = jnp.linalg.qr(g)
        blocks.append(q.T)
    rem = nb_rows - nb_full_blocks * nb_cols
    if rem > 0:
        g = jax.random.normal(keys[nb_full_blocks], (nb_cols, nb_cols), jnp.float32)
        q, _ = jnp.linalg.qr(g)
        blocks.append(q.T[:rem])
    mat = jnp.concatenate(blocks, axis=0)
    multiplier = jnp.linalg.norm(
        jax.random.normal(keys[-1], (nb_rows, nb_cols), jnp.float32), axis=1)
    return np.asarray(mat * multiplier[:, None])


def _add_lm_to_slab(key, prefix, sb):
    """scPerformerLM params (Performer stack).  Returns (to_vector_w, to_vector_b, pos_emb)."""
    ks = iter(jax.random.split(key, DEPTH * 7 + 2))
    tv_w, tv_b = _init_linear(next(ks), 1, DIM)                   # to_vector = Linear(1, dim)
    pos_emb = jax.random.normal(next(ks), (VOCAB, DIM), jnp.float32)
    pos_emb = pos_emb.at[0].set(0.0)                              # padding_idx=0
    for layer in range(DEPTH):
        wq, bq = _init_linear(next(ks), DIM, INNER)               # qkv_bias=True
        wk, bk = _init_linear(next(ks), DIM, INNER)
        wv, bv = _init_linear(next(ks), DIM, INNER)
        wo, bo = _init_linear(next(ks), INNER, DIM)
        proj = _gaussian_orthogonal_random_matrix(next(ks), NB_FEATURES, DIM_HEAD)
        w1, b1 = _init_linear(next(ks), DIM, DIM * FF_MULT)
        w2, b2 = _init_linear(next(ks), DIM * FF_MULT, DIM)
        # Block-diagonal projection (both heads share the same projection buffer).
        projbd = np.zeros((INNER, HEADS * NB_FEATURES), np.float32)
        projbd[0:DIM_HEAD, 0:NB_FEATURES] = proj.T
        projbd[DIM_HEAD:2 * DIM_HEAD, NB_FEATURES:2 * NB_FEATURES] = proj.T
        pre = f"{prefix}_l{layer}_"
        sb.add(pre + "ln1g", np.ones((1, DIM), np.float32))
        sb.add(pre + "ln1b", np.zeros((1, DIM), np.float32))
        sb.add(pre + "wqkv", np.concatenate([wq, wk, wv], axis=1))
        sb.add(pre + "bqkv", np.concatenate([bq, bk, bv]).reshape(1, -1))
        sb.add(pre + "wo", wo)
        sb.add(pre + "bo", bo.reshape(1, -1))
        sb.add(pre + "projbd", projbd)
        sb.add(pre + "ln2g", np.ones((1, DIM), np.float32))
        sb.add(pre + "ln2b", np.zeros((1, DIM), np.float32))
        sb.add(pre + "w1", w1)
        sb.add(pre + "b1", b1.reshape(1, -1))
        sb.add(pre + "w2", w2)
        sb.add(pre + "b2", b2.reshape(1, -1))
    # to_out params omitted: its output is discarded by scPerformerEncDec.forward.
    return tv_w.reshape(1, DIM), tv_b.reshape(1, DIM), pos_emb


def _add_translator_to_slab(key, sb):
    k1, k2 = jax.random.split(key)
    w1, b1 = _init_linear(k1, N_ENC, N_DEC)
    w2, b2 = _init_linear(k2, N_DEC, N_DEC)
    sb.add("tr_w1", w1);  sb.add("tr_w1t", w1.T)
    sb.add("tr_b1r", b1.reshape(1, -1));  sb.add("tr_b1c", b1.reshape(-1, 1))
    sb.add("tr_w2", w2);  sb.add("tr_w2t", w2.T)
    sb.add("tr_b2r", b2.reshape(1, -1));  sb.add("tr_b2c", b2.reshape(-1, 1))


def init_model(key):
    k_enc, k_dec, k_tr = jax.random.split(key, 3)
    sb = _SlabBuilder()
    enc_tv_w, enc_tv_b, enc_pos = _add_lm_to_slab(k_enc, "enc", sb)
    _, _, dec_pos = _add_lm_to_slab(k_dec, "dec", sb)     # dec to_vector unused (3-D input)
    _add_translator_to_slab(k_tr, sb)
    slab, index = sb.build()
    params = dict(slab=slab,
                  enc_tv_w=jnp.asarray(enc_tv_w), enc_tv_b=jnp.asarray(enc_tv_b),
                  enc_pos_emb=enc_pos, dec_pos_emb=dec_pos)
    return params, index


# ----------------------------- forward wrapper ---------------------------------
def build_forward(slab_index):
    vmem = pl.BlockSpec(memory_space=pltpu.MemorySpace.VMEM)     # whole array in VMEM, no grid
    pcall = pl.pallas_call(
        functools.partial(_encdec_kernel, index=slab_index),
        out_shape=(jax.ShapeDtypeStruct((N_ENC, N_ENC), jnp.float32),
                   jax.ShapeDtypeStruct((N_DEC, N_DEC), jnp.float32),
                   jax.ShapeDtypeStruct((N_ENC, N_DEC), jnp.float32)),
        in_specs=[vmem, vmem, vmem],
        out_specs=(vmem, vmem, vmem),
    )

    def forward(seq_in, seq_in_id, seq_out_id, params):
        # Embedding gathers stay in HBM/XLA (the 85500x32 tables must NOT be pulled into VMEM);
        # to_vector (Linear(1, dim)) is an exact broadcast outer product fused with the gather.
        x0_enc = (seq_in[:, None] * params["enc_tv_w"] + params["enc_tv_b"]
                  + jnp.take(params["enc_pos_emb"], seq_in_id, axis=0))       # (n_enc, dim)
        posemb_dec = jnp.take(params["dec_pos_emb"], seq_out_id, axis=0)      # (n_dec, dim)
        return pcall(x0_enc, posemb_dec, params["slab"])

    return forward


# ----------------------------- main --------------------------------------------
if __name__ == "__main__":
    root = jax.random.PRNGKey(0)
    k_model, k_in, k_id1, k_id2 = jax.random.split(root, 4)

    params, slab_index = init_model(k_model)
    fwd = jax.jit(build_forward(slab_index))

    # batch=1 (squeezed): seq_in is the expression-value vector, IDs index pos_emb.
    seq_in = jax.random.normal(k_in, (N_ENC,), jnp.float32)
    seq_in_id = jax.random.randint(k_id1, (N_ENC,), 1, 1000)
    seq_out_id = jax.random.randint(k_id2, (N_DEC,), 1, 1000)

    enc_w, dec_w, enc2dec_w = fwd(seq_in, seq_in_id, seq_out_id, params)
    jax.block_until_ready((enc_w, dec_w, enc2dec_w))

    assert enc_w.shape == (N_ENC, N_ENC)
    assert dec_w.shape == (N_DEC, N_DEC)
    assert enc2dec_w.shape == (N_ENC, N_DEC)
    assert bool(jnp.all(jnp.isfinite(enc_w)))
    assert bool(jnp.all(jnp.isfinite(dec_w)))
    assert bool(jnp.all(jnp.isfinite(enc2dec_w)))
    print("KERNEL_OK")
</pallas_src>

<mosaic_0001>
module attributes {stable_mosaic.version = 11 : i64} {
  func.func @_encdec_kernel(%arg0: memref<16x32xf32, #tpu.memory_space<vmem>>, %arg1: memref<8x32xf32, #tpu.memory_space<vmem>>, %arg2: memref<1352x128xf32, #tpu.memory_space<vmem>>, %arg3: memref<16x16xf32, #tpu.memory_space<vmem>>, %arg4: memref<8x8xf32, #tpu.memory_space<vmem>>, %arg5: memref<16x8xf32, #tpu.memory_space<vmem>>) attributes {dimension_semantics = [], scalar_prefetch = 0 : i64, scratch_operands = 0 : i64, tpu.core_type = #tpu.core_type<tc>} {
    %0 = tpu.iota {dimensions = array<i32: 0>} : vector<88x32xi32>
    %1 = tpu.iota {dimensions = array<i32: 1>} : vector<88x32xi32>
    %c44_i32 = arith.constant 44 : i32
    %2 = vector.broadcast %c44_i32 : i32 to vector<88x32xi32>
    %3 = arith.cmpi slt, %0, %2 : vector<88x32xi32>
    %c16_i32 = arith.constant 16 : i32
    %4 = vector.broadcast %c16_i32 : i32 to vector<88x32xi32>
    %5 = arith.cmpi slt, %1, %4 : vector<88x32xi32>
    %6 = arith.xori %3, %5 : vector<88x32xi1>
    %cst = arith.constant dense<true> : vector<88x32xi1>
    %7 = arith.xori %6, %cst : vector<88x32xi1>
    %c0 = arith.constant 0 : index
    %c0_0 = arith.constant 0 : index
    %8 = vector.load %arg0[%c0, %c0_0] : memref<16x32xf32, #tpu.memory_space<vmem>>, vector<16x32xf32>
    %9 = tpu.iota {dimensions = array<i32: 1>} : vector<16x88xi32>
    %c44_i32_1 = arith.constant 44 : i32
    %10 = vector.broadcast %c44_i32_1 : i32 to vector<16x88xi32>
    %11 = arith.cmpi slt, %9, %10 : vector<16x88xi32>
    %12 = tpu.iota {dimensions = array<i32: 1>} : vector<16x32xi32>
    %c16_i32_2 = arith.constant 16 : i32
    %13 = vector.broadcast %c16_i32_2 : i32 to vector<16x32xi32>
    %14 = arith.cmpi slt, %12, %13 : vector<16x32xi32>
    %cst_3 = arith.constant 0.000000e+00 : f32
    %15 = vector.broadcast %cst_3 : f32 to vector<16x16xf32>
    %c0_4 = arith.constant 0 : index
    %c0_5 = arith.constant 0 : index
    %16 = vector.load %arg2[%c0_4, %c0_5] : memref<1352x128xf32, #tpu.memory_space<vmem>>, vector<1x32xf32>
    %c8 = arith.constant 8 : index
    %c0_6 = arith.constant 0 : index
    %17 = vector.load %arg2[%c8, %c0_6] : memref<1352x128xf32, #tpu.memory_space<vmem>>, vector<1x32xf32>
    %c16 = arith.constant 16 : index
    %c0_7 = arith.constant 0 : index
    %18 = vector.load %arg2[%c16, %c0_7] : memref<1352x128xf32, #tpu.memory_space<vmem>>, vector<32x96xf32>
    %c48 = arith.constant 48 : index
    %c0_8 = arith.constant 0 : index
    %19 = vector.load %arg2[%c48, %c0_8] : memref<1352x128xf32, #tpu.memory_space<vmem>>, vector<1x96xf32>
    %c56 = arith.constant 56 : index
    %c0_9 = arith.constant 0 : index
    %20 = vector.load %arg2[%c56, %c0_9] : memref<1352x128xf32, #tpu.memory_space<vmem>>, vector<32x32xf32>
    %c88 = arith.constant 88 : index
    %c0_10 = arith.constant 0 : index
    %21 = vector.load %arg2[%c88, %c0_10] : memref<1352x128xf32, #tpu.memory_space<vmem>>, vector<1x32xf32>
    %c96 = arith.constant 96 : index
    %c0_11 = arith.constant 0 : index
    %22 = vector.load %arg2[%c96, %c0_11] : memref<1352x128xf32, #tpu.memory_space<vmem>>, vector<32x88xf32>
    %c128 = arith.constant 128 : index
    %c0_12 = arith.constant 0 : index
    %23 = vector.load %arg2[%c128, %c0_12] : memref<1352x128xf32, #tpu.memory_space<vmem>>, vector<1x32xf32>
    %c136 = arith.constant 136 : index
    %c0_13 = arith.constant 0 : index
    %24 = vector.load %arg2[%c136, %c0_13] : memref<1352x128xf32, #tpu.memory_space<vmem>>, vector<1x32xf32>
    %c144 = arith.constant 144 : index
    %c0_14 = arith.constant 0 : index
    %25 = vector.load %arg2[%c144, %c0_14] : memref<1352x128xf32, #tpu.memory_space<vmem>>, vector<32x128xf32>
    %c176 = arith.constant 176 : index
    %c0_15 = arith.constant 0 : index
    %26 = vector.load %arg2[%c176, %c0_15] : memref<1352x128xf32, #tpu.memory_space<vmem>>, vector<1x128xf32>
    %c184 = arith.constant 184 : index
    %c0_16 = arith.constant 0 : index
    %27 = vector.load %arg2[%c184, %c0_16] : memref<1352x128xf32, #tpu.memory_space<vmem>>, vector<128x32xf32>
    %c312 = arith.constant 312 : index
    %c0_17 = arith.constant 0 : index
    %28 = vector.load %arg2[%c312, %c0_17] : memref<1352x128xf32, #tpu.memory_space<vmem>>, vector<1x32xf32>
    %cst_18 = arith.constant dense<0.000000e+00> : vector<16xf32>
    %29 = vector.multi_reduction <add>, %8, %cst_18 [1] : vector<16x32xf32> to vector<16xf32>
    %30 = vector.shape_cast %29 : vector<16xf32> to vector<16x1xf32>
    %cst_19 = arith.constant 3.200000e+01 : f32
    %31 = vector.broadcast %cst_19 : f32 to vector<16x1xf32>
    %32 = arith.divf %30, %31 : vector<16x1xf32>
    %33 = vector.broadcast %32 : vector<16x1xf32> to vector<16x32xf32>
    %34 = arith.subf %8, %33 : vector<16x32xf32>
    %35 = arith.mulf %34, %34 : vector<16x32xf32>
    %cst_20 = arith.constant dense<0.000000e+00> : vector<16xf32>
    %36 = vector.multi_reduction <add>, %35, %cst_20 [1] : vector<16x32xf32> to vector<16xf32>
    %37 = vector.shape_cast %36 : vector<16xf32> to vector<16x1xf32>
    %cst_21 = arith.constant 3.200000e+01 : f32
    %38 = vector.broadcast %cst_21 : f32 to vector<16x1xf32>
    %39 = arith.divf %37, %38 : vector<16x1xf32>
    %40 = vector.broadcast %32 : vector<16x1xf32> to vector<16x32xf32>
    %41 = arith.subf %8, %40 : vector<16x32xf32>
    %cst_22 = arith.constant 9.99999974E-6 : f32
    %42 = vector.broadcast %cst_22 : f32 to vector<16x1xf32>
    %43 = arith.addf %39, %42 : vector<16x1xf32>
    %44 = math.rsqrt %43 : vector<16x1xf32>
    %45 = vector.broadcast %44 : vector<16x1xf32> to vector<16x32xf32>
    %46 = arith.mulf %41, %45 : vector<16x32xf32>
    %47 = vector.broadcast %16 : vector<1x32xf32> to vector<16x32xf32>
    %48 = arith.mulf %46, %47 : vector<16x32xf32>
    %49 = vector.broadcast %17 : vector<1x32xf32> to vector<16x32xf32>
    %50 = arith.addf %48, %49 : vector<16x32xf32>
    %cst_23 = arith.constant dense<0.000000e+00> : vector<16x96xf32>
    %51 = tpu.matmul %50, %18, %cst_23 {dimension_numbers = #tpu.dot_dimension_numbers<[1], [0], [0], [1], [0, 0, 1, 1], [], []>} : vector<16x32xf32>, vector<32x96xf32>, vector<16x96xf32> -> vector<16x96xf32>
    %52 = vector.broadcast %19 : vector<1x96xf32> to vector<16x96xf32>
    %53 = arith.addf %51, %52 : vector<16x96xf32>
    %54 = vector.extract_strided_slice %53 {offsets = [0, 0], sizes = [16, 32], strides = [1, 1]} : vector<16x96xf32> to vector<16x32xf32>
    %55 = vector.extract_strided_slice %53 {offsets = [0, 32], sizes = [16, 32], strides = [1, 1]} : vector<16x96xf32> to vector<16x32xf32>
    %56 = vector.extract_strided_slice %53 {offsets = [0, 64], sizes = [16, 32], strides = [1, 1]} : vector<16x96xf32> to vector<16x32xf32>
    %cst_24 = arith.constant 5.000000e-01 : f32
    %57 = vector.broadcast %cst_24 : f32 to vector<16x32xf32>
    %58 = arith.mulf %54, %57 : vector<16x32xf32>
    %cst_25 = arith.constant dense<0.000000e+00> : vector<16x88xf32>
    %59 = tpu.matmul %58, %22, %cst_25 {dimension_numbers = #tpu.dot_dimension_numbers<[1], [0], [0], [1], [0, 0, 1, 1], [], []>} : vector<16x32xf32>, vector<32x88xf32>, vector<16x88xf32> -> vector<16x88xf32>
    %cst_26 = arith.constant 5.000000e-01 : f32
    %60 = vector.broadcast %cst_26 : f32 to vector<16x32xf32>
    %61 = arith.mulf %55, %60 : vector<16x32xf32>
    %cst_27 = arith.constant dense<0.000000e+00> : vector<16x88xf32>
    %62 = tpu.matmul %61, %22, %cst_27 {dimension_numbers = #tpu.dot_dimension_numbers<[1], [0], [0], [1], [0, 0, 1, 1], [], []>} : vector<16x32xf32>, vector<32x88xf32>, vector<16x88xf32> -> vector<16x88xf32>
    %63 = arith.mulf %54, %54 : vector<16x32xf32>
    %64 = arith.mulf %55, %55 : vector<16x32xf32>
    %cst_28 = arith.constant 0.000000e+00 : f32
    %65 = vector.broadcast %cst_28 : f32 to vector<16x32xf32>
    %66 = arith.select %14, %63, %65 : vector<16x32xi1>, vector<16x32xf32>
    %cst_29 = arith.constant dense<0.000000e+00> : vector<16xf32>
    %67 = vector.multi_reduction <add>, %66, %cst_29 [1] : vector<16x32xf32> to vector<16xf32>
    %68 = vector.shape_cast %67 : vector<16xf32> to vector<16x1xf32>
    %cst_30 = arith.constant 0.000000e+00 : f32
    %69 = vector.broadcast %cst_30 : f32 to vector<16x32xf32>
    %70 = arith.select %14, %69, %63 : vector<16x32xi1>, vector<16x32xf32>
    %cst_31 = arith.constant dense<0.000000e+00> : vector<16xf32>
    %71 = vector.multi_reduction <add>, %70, %cst_31 [1] : vector<16x32xf32> to vector<16xf32>
    %72 = vector.shape_cast %71 : vector<16xf32> to vector<16x1xf32>
    %73 = vector.shape_cast %68 : vector<16x1xf32> to vector<16x1xf32>
    %74 = vector.broadcast %73 : vector<16x1xf32> to vector<16x88xf32>
    %75 = vector.shape_cast %72 : vector<16x1xf32> to vector<16x1xf32>
    %76 = vector.broadcast %75 : vector<16x1xf32> to vector<16x88xf32>
    %77 = arith.select %11, %74, %76 : vector<16x88xi1>, vector<16x88xf32>
    %cst_32 = arith.constant 1.250000e-01 : f32
    %78 = vector.broadcast %cst_32 : f32 to vector<16x88xf32>
    %79 = arith.mulf %77, %78 : vector<16x88xf32>
    %cst_33 = arith.constant 0.000000e+00 : f32
    %80 = vector.broadcast %cst_33 : f32 to vector<16x32xf32>
    %81 = arith.select %14, %64, %80 : vector<16x32xi1>, vector<16x32xf32>
    %cst_34 = arith.constant dense<0.000000e+00> : vector<16xf32>
    %82 = vector.multi_reduction <add>, %81, %cst_34 [1] : vector<16x32xf32> to vector<16xf32>
    %83 = vector.shape_cast %82 : vector<16xf32> to vector<16x1xf32>
    %cst_35 = arith.constant 0.000000e+00 : f32
    %84 = vector.broadcast %cst_35 : f32 to vector<16x32xf32>
    %85 = arith.select %14, %84, %64 : vector<16x32xi1>, vector<16x32xf32>
    %cst_36 = arith.constant dense<0.000000e+00> : vector<16xf32>
    %86 = vector.multi_reduction <add>, %85, %cst_36 [1] : vector<16x32xf32> to vector<16xf32>
    %87 = vector.shape_cast %86 : vector<16xf32> to vector<16x1xf32>
    %88 = vector.shape_cast %83 : vector<16x1xf32> to vector<16x1xf32>
    %89 = vector.broadcast %88 : vector<16x1xf32> to vector<16x88xf32>
    %90 = vector.shape_cast %87 : vector<16x1xf32> to vector<16x1xf32>
    %91 = vector.broadcast %90 : vector<16x1xf32> to vector<16x88xf32>
    %92 = arith.select %11, %89, %91 : vector<16x88xi1>, vector<16x88xf32>
    %cst_37 = arith.constant 1.250000e-01 : f32
    %93 = vector.broadcast %cst_37 : f32 to vector<16x88xf32>
    %94 = arith.mulf %92, %93 : vector<16x88xf32>
    %cst_38 = arith.constant -1.000000e+30 : f32
    %95 = vector.broadcast %cst_38 : f32 to vector<16x88xf32>
    %96 = arith.select %11, %59, %95 : vector<16x88xi1>, vector<16x88xf32>
    %cst_39 = arith.constant dense<0xFF800000> : vector<16xf32>
    %97 = vector.multi_reduction <maximumf>, %96, %cst_39 [1] : vector<16x88xf32> to vector<16xf32>
    %98 = vector.shape_cast %97 : vector<16xf32> to vector<16x1xf32>
    %cst_40 = arith.constant -1.000000e+30 : f32
    %99 = vector.broadcast %cst_40 : f32 to vector<16x88xf32>
    %100 = arith.select %11, %99, %59 : vector<16x88xi1>, vector<16x88xf32>
    %cst_41 = arith.constant dense<0xFF800000> : vector<16xf32>
    %101 = vector.multi_reduction <maximumf>, %100, %cst_41 [1] : vector<16x88xf32> to vector<16xf32>
    %102 = vector.shape_cast %101 : vector<16xf32> to vector<16x1xf32>
    %103 = vector.shape_cast %98 : vector<16x1xf32> to vector<16x1xf32>
    %104 = vector.broadcast %103 : vector<16x1xf32> to vector<16x88xf32>
    %105 = vector.shape_cast %102 : vector<16x1xf32> to vector<16x1xf32>
    %106 = vector.broadcast %105 : vector<16x1xf32> to vector<16x88xf32>
    %107 = arith.select %11, %104, %106 : vector<16x88xi1>, vector<16x88xf32>
    %cst_42 = arith.constant dense<0xFF800000> : vector<16xf32>
    %108 = vector.multi_reduction <maximumf>, %62, %cst_42 [1] : vector<16x88xf32> to vector<16xf32>
    %109 = vector.shape_cast %108 : vector<16xf32> to vector<16x1xf32>
    %cst_43 = arith.constant dense<0xFF800000> : vector<1xf32>
    %110 = vector.multi_reduction <maximumf>, %109, %cst_43 [0] : vector<16x1xf32> to vector<1xf32>
    %111 = vector.shape_cast %110 : vector<1xf32> to vector<1x1xf32>
    %112 = arith.subf %59, %79 : vector<16x88xf32>
    %113 = arith.subf %112, %107 : vector<16x88xf32>
    %114 = math.exp %113 : vector<16x88xf32>
    %cst_44 = arith.constant 9.99999974E-5 : f32
    %115 = vector.broadcast %cst_44 : f32 to vector<16x88xf32>
    %116 = arith.addf %114, %115 : vector<16x88xf32>
    %cst_45 = arith.constant 0.150755674 : f32
    %117 = vector.broadcast %cst_45 : f32 to vector<16x88xf32>
    %118 = arith.mulf %117, %116 : vector<16x88xf32>
    %119 = arith.subf %62, %94 : vector<16x88xf32>
    %120 = vector.broadcast %111 : vector<1x1xf32> to vector<16x88xf32>
    %121 = arith.subf %119, %120 : vector<16x88xf32>
    %122 = math.exp %121 : vector<16x88xf32>
    %cst_46 = arith.constant 9.99999974E-5 : f32
    %123 = vector.broadcast %cst_46 : f32 to vector<16x88xf32>
    %124 = arith.addf %122, %123 : vector<16x88xf32>
    %cst_47 = arith.constant 0.150755674 : f32
    %125 = vector.broadcast %cst_47 : f32 to vector<16x88xf32>
    %126 = arith.mulf %125, %124 : vector<16x88xf32>
    %cst_48 = arith.constant dense<0.000000e+00> : vector<88xf32>
    %127 = vector.multi_reduction <add>, %126, %cst_48 [0] : vector<16x88xf32> to vector<88xf32>
    %128 = vector.shape_cast %127 : vector<88xf32> to vector<1x88xf32>
    %129 = vector.broadcast %128 : vector<1x88xf32> to vector<16x88xf32>
    %130 = arith.mulf %118, %129 : vector<16x88xf32>
    %cst_49 = arith.constant 0.000000e+00 : f32
    %131 = vector.broadcast %cst_49 : f32 to vector<16x88xf32>
    %132 = arith.select %11, %130, %131 : vector<16x88xi1>, vector<16x88xf32>
    %cst_50 = arith.constant dense<0.000000e+00> : vector<16xf32>
    %133 = vector.multi_reduction <add>, %132, %cst_50 [1] : vector<16x88xf32> to vector<16xf32>
    %134 = vector.shape_cast %133 : vector<16xf32> to vector<16x1xf32>
    %cst_51 = arith.constant 0.000000e+00 : f32
    %135 = vector.broadcast %cst_51 : f32 to vector<16x88xf32>
    %136 = arith.select %11, %135, %130 : vector<16x88xi1>, vector<16x88xf32>
    %cst_52 = arith.constant dense<0.000000e+00> : vector<16xf32>
    %137 = vector.multi_reduction <add>, %136, %cst_52 [1] : vector<16x88xf32> to vector<16xf32>
    %138 = vector.shape_cast %137 : vector<16xf32> to vector<16x1xf32>
    %cst_53 = arith.constant 1.000000e+00 : f32
    %139 = vector.broadcast %cst_53 : f32 to vector<16x1xf32>
    %140 = arith.divf %139, %134 : vector<16x1xf32>
    %cst_54 = arith.constant 1.000000e+00 : f32
    %141 = vector.broadcast %cst_54 : f32 to vector<16x1xf32>
    %142 = arith.divf %141, %138 : vector<16x1xf32>
    %143 = vector.shape_cast %140 : vector<16x1xf32> to vector<16x1xf32>
    %144 = vector.broadcast %143 : vector<16x1xf32> to vector<16x88xf32>
    %145 = vector.shape_cast %142 : vector<16x1xf32> to vector<16x1xf32>
    %146 = vector.broadcast %145 : vector<16x1xf32> to vector<16x88xf32>
    %147 = arith.select %11, %144, %146 : vector<16x88xi1>, vector<16x88xf32>
    %cst_55 = arith.constant dense<0.000000e+00> : vector<88x32xf32>
    %148 = tpu.matmul %126, %56, %cst_55 {dimension_numbers = #tpu.dot_dimension_numbers<[0], [0], [1], [1], [0, 1, 1, 1], [], []>} : vector<16x88xf32>, vector<16x32xf32>, vector<88x32xf32> -> vector<88x32xf32>
    %cst_56 = arith.constant 0.000000e+00 : f32
    %149 = vector.broadcast %cst_56 : f32 to vector<88x32xf32>
    %150 = arith.select %7, %148, %149 : vector<88x32xi1>, vector<88x32xf32>
    %151 = arith.mulf %118, %147 : vector<16x88xf32>
    %cst_57 = arith.constant dense<0.000000e+00> : vector<16x32xf32>
    %152 = tpu.matmul %151, %150, %cst_57 {dimension_numbers = #tpu.dot_dimension_numbers<[1], [0], [0], [1], [0, 0, 1, 1], [], []>} : vector<16x88xf32>, vector<88x32xf32>, vector<16x32xf32> -> vector<16x32xf32>
    %cst_58 = arith.constant dense<0.000000e+00> : vector<16x32xf32>
    %153 = tpu.matmul %152, %20, %cst_58 {dimension_numbers = #tpu.dot_dimension_numbers<[1], [0], [0], [1], [0, 0, 1, 1], [], []>} : vector<16x32xf32>, vector<32x32xf32>, vector<16x32xf32> -> vector<16x32xf32>
    %154 = vector.broadcast %21 : vector<1x32xf32> to vector<16x32xf32>
    %155 = arith.addf %153, %154 : vector<16x32xf32>
    %156 = arith.addf %8, %155 : vector<16x32xf32>
    %cst_59 = arith.constant dense<0.000000e+00> : vector<16xf32>
    %157 = vector.multi_reduction <add>, %156, %cst_59 [1] : vector<16x32xf32> to vector<16xf32>
    %158 = vector.shape_cast %157 : vector<16xf32> to vector<16x1xf32>
    %cst_60 = arith.constant 3.200000e+01 : f32
    %159 = vector.broadcast %cst_60 : f32 to vector<16x1xf32>
    %160 = arith.divf %158, %159 : vector<16x1xf32>
    %161 = vector.broadcast %160 : vector<16x1xf32> to vector<16x32xf32>
    %162 = arith.subf %156, %161 : vector<16x32xf32>
    %163 = arith.mulf %162, %162 : vector<16x32xf32>
    %cst_61 = arith.constant dense<0.000000e+00> : vector<16xf32>
    %164 = vector.multi_reduction <add>, %163, %cst_61 [1] : vector<16x32xf32> to vector<16xf32>
    %165 = vector.shape_cast %164 : vector<16xf32> to vector<16x1xf32>
    %cst_62 = arith.constant 3.200000e+01 : f32
    %166 = vector.broadcast %cst_62 : f32 to vector<16x1xf32>
    %167 = arith.divf %165, %166 : vector<16x1xf32>
    %168 = vector.broadcast %160 : vector<16x1xf32> to vector<16x32xf32>
    %169 = arith.subf %156, %168 : vector<16x32xf32>
    %cst_63 = arith.constant 9.99999974E-6 : f32
    %170 = vector.broadcast %cst_63 : f32 to vector<16x1xf32>
    %171 = arith.addf %167, %170 : vector<16x1xf32>
    %172 = math.rsqrt %171 : vector<16x1xf32>
    %173 = vector.broadcast %172 : vector<16x1xf32> to vector<16x32xf32>
    %174 = arith.mulf %169, %173 : vector<16x32xf32>
    %175 = vector.broadcast %16 : vector<1x32xf32> to vector<16x32xf32>
    %176 = arith.mulf %174, %175 : vector<16x32xf32>
    %177 = vector.broadcast %17 : vector<1x32xf32> to vector<16x32xf32>
    %178 = arith.addf %176, %177 : vector<16x32xf32>
    %cst_64 = arith.constant dense<0.000000e+00> : vector<16x96xf32>
    %179 = tpu.matmul %178, %18, %cst_64 {dimension_numbers = #tpu.dot_dimension_numbers<[1], [0], [0], [1], [0, 0, 1, 1], [], []>} : vector<16x32xf32>, vector<32x96xf32>, vector<16x96xf32> -> vector<16x96xf32>
    %180 = vector.broadcast %19 : vector<1x96xf32> to vector<16x96xf32>
    %181 = arith.addf %179, %180 : vector<16x96xf32>
    %182 = vector.extract_strided_slice %181 {offsets = [0, 0], sizes = [16, 32], strides = [1, 1]} : vector<16x96xf32> to vector<16x32xf32>
    %183 = vector.extract_strided_slice %181 {offsets = [0, 32], sizes = [16, 32], strides = [1, 1]} : vector<16x96xf32> to vector<16x32xf32>
    %cst_65 = arith.constant 5.000000e-01 : f32
    %184 = vector.broadcast %cst_65 : f32 to vector<16x32xf32>
    %185 = arith.mulf %182, %184 : vector<16x32xf32>
    %cst_66 = arith.constant dense<0.000000e+00> : vector<16x88xf32>
    %186 = tpu.matmul %185, %22, %cst_66 {dimension_numbers = #tpu.dot_dimension_numbers<[1], [0], [0], [1], [0, 0, 1, 1], [], []>} : vector<16x32xf32>, vector<32x88xf32>, vector<16x88xf32> -> vector<16x88xf32>
    %cst_67 = arith.constant 5.000000e-01 : f32
    %187 = vector.broadcast %cst_67 : f32 to vector<16x32xf32>
    %188 = arith.mulf %183, %187 : vector<16x32xf32>
    %cst_68 = arith.constant dense<0.000000e+00> : vector<16x88xf32>
    %189 = tpu.matmul %188, %22, %cst_68 {dimension_numbers = #tpu.dot_dimension_numbers<[1], [0], [0], [1], [0, 0, 1, 1], [], []>} : vector<16x32xf32>, vector<32x88xf32>, vector<16x88xf32> -> vector<16x88xf32>
    %190 = arith.mulf %182, %182 : vector<16x32xf32>
    %191 = arith.mulf %183, %183 : vector<16x32xf32>
    %cst_69 = arith.constant 0.000000e+00 : f32
    %192 = vector.broadcast %cst_69 : f32 to vector<16x32xf32>
    %193 = arith.select %14, %190, %192 : vector<16x32xi1>, vector<16x32xf32>
    %cst_70 = arith.constant dense<0.000000e+00> : vector<16xf32>
    %194 = vector.multi_reduction <add>, %193, %cst_70 [1] : vector<16x32xf32> to vector<16xf32>
    %195 = vector.shape_cast %194 : vector<16xf32> to vector<16x1xf32>
    %cst_71 = arith.constant 0.000000e+00 : f32
    %196 = vector.broadcast %cst_71 : f32 to vector<16x32xf32>
    %197 = arith.select %14, %196, %190 : vector<16x32xi1>, vector<16x32xf32>
    %cst_72 = arith.constant dense<0.000000e+00> : vector<16xf32>
    %198 = vector.multi_reduction <add>, %197, %cst_72 [1] : vector<16x32xf32> to vector<16xf32>
    %199 = vector.shape_cast %198 : vector<16xf32> to vector<16x1xf32>
    %200 = vector.shape_cast %195 : vector<16x1xf32> to vector<16x1xf32>
    %201 = vector.broadcast %200 : vector<16x1xf32> to vector<16x88xf32>
    %202 = vector.shape_cast %199 : vector<16x1xf32> to vector<16x1xf32>
    %203 = vector.broadcast %202 : vector<16x1xf32> to vector<16x88xf32>
    %204 = arith.select %11, %201, %203 : vector<16x88xi1>, vector<16x88xf32>
    %cst_73 = arith.constant 1.250000e-01 : f32
    %205 = vector.broadcast %cst_73 : f32 to vector<16x88xf32>
    %206 = arith.mulf %204, %205 : vector<16x88xf32>
    %cst_74 = arith.constant 0.000000e+00 : f32
    %207 = vector.broadcast %cst_74 : f32 to vector<16x32xf32>
    %208 = arith.select %14, %191, %207 : vector<16x32xi1>, vector<16x32xf32>
    %cst_75 = arith.constant dense<0.000000e+00> : vector<16xf32>
    %209 = vector.multi_reduction <add>, %208, %cst_75 [1] : vector<16x32xf32> to vector<16xf32>
    %210 = vector.shape_cast %209 : vector<16xf32> to vector<16x1xf32>
    %cst_76 = arith.constant 0.000000e+00 : f32
    %211 = vector.broadcast %cst_76 : f32 to vector<16x32xf32>
    %212 = arith.select %14, %211, %191 : vector<16x32xi1>, vector<16x32xf32>
    %cst_77 = arith.constant dense<0.000000e+00> : vector<16xf32>
    %213 = vector.multi_reduction <add>, %212, %cst_77 [1] : vector<16x32xf32> to vector<16xf32>
    %214 = vector.shape_cast %213 : vector<16xf32> to vector<16x1xf32>
    %215 = vector.shape_cast %210 : vector<16x1xf32> to vector<16x1xf32>
    %216 = vector.broadcast %215 : vector<16x1xf32> to vector<16x88xf32>
    %217 = vector.shape_cast %214 : vector<16x1xf32> to vector<16x1xf32>
    %218 = vector.broadcast %217 : vector<16x1xf32> to vector<16x88xf32>
    %219 = arith.select %11, %216, %218 : vector<16x88xi1>, vector<16x88xf32>
    %cst_78 = arith.constant 1.250000e-01 : f32
    %220 = vector.broadcast %cst_78 : f32 to vector<16x88xf32>
    %221 = arith.mulf %219, %220 : vector<16x88xf32>
    %cst_79 = arith.constant -1.000000e+30 : f32
    %222 = vector.broadcast %cst_79 : f32 to vector<16x88xf32>
    %223 = arith.select %11, %186, %222 : vector<16x88xi1>, vector<16x88xf32>
    %cst_80 = arith.constant dense<0xFF800000> : vector<16xf32>
    %224 = vector.multi_reduction <maximumf>, %223, %cst_80 [1] : vector<16x88xf32> to vector<16xf32>
    %225 = vector.shape_cast %224 : vector<16xf32> to vector<16x1xf32>
    %cst_81 = arith.constant -1.000000e+30 : f32
    %226 = vector.broadcast %cst_81 : f32 to vector<16x88xf32>
    %227 = arith.select %11, %226, %186 : vector<16x88xi1>, vector<16x88xf32>
    %cst_82 = arith.constant dense<0xFF800000> : vector<16xf32>
    %228 = vector.multi_reduction <maximumf>, %227, %cst_82 [1] : vector<16x88xf32> to vector<16xf32>
    %229 = vector.shape_cast %228 : vector<16xf32> to vector<16x1xf32>
    %230 = vector.shape_cast %225 : vector<16x1xf32> to vector<16x1xf32>
    %231 = vector.broadcast %230 : vector<16x1xf32> to vector<16x88xf32>
    %232 = vector.shape_cast %229 : vector<16x1xf32> to vector<16x1xf32>
    %233 = vector.broadcast %232 : vector<16x1xf32> to vector<16x88xf32>
    %234 = arith.select %11, %231, %233 : vector<16x88xi1>, vector<16x88xf32>
    %cst_83 = arith.constant dense<0xFF800000> : vector<16xf32>
    %235 = vector.multi_reduction <maximumf>, %189, %cst_83 [1] : vector<16x88xf32> to vector<16xf32>
    %236 = vector.shape_cast %235 : vector<16xf32> to vector<16x1xf32>
    %cst_84 = arith.constant dense<0xFF800000> : vector<1xf32>
    %237 = vector.multi_reduction <maximumf>, %236, %cst_84 [0] : vector<16x1xf32> to vector<1xf32>
    %238 = vector.shape_cast %237 : vector<1xf32> to vector<1x1xf32>
    %239 = arith.subf %186, %206 : vector<16x88xf32>
    %240 = arith.subf %239, %234 : vector<16x88xf32>
    %241 = math.exp %240 : vector<16x88xf32>
    %cst_85 = arith.constant 9.99999974E-5 : f32
    %242 = vector.broadcast %cst_85 : f32 to vector<16x88xf32>
    %243 = arith.addf %241, %242 : vector<16x88xf32>
    %cst_86 = arith.constant 0.150755674 : f32
    %244 = vector.broadcast %cst_86 : f32 to vector<16x88xf32>
    %245 = arith.mulf %244, %243 : vector<16x88xf32>
    %246 = arith.subf %189, %221 : vector<16x88xf32>
    %247 = vector.broadcast %238 : vector<1x1xf32> to vector<16x88xf32>
    %248 = arith.subf %246, %247 : vector<16x88xf32>
    %249 = math.exp %248 : vector<16x88xf32>
    %cst_87 = arith.constant 9.99999974E-5 : f32
    %250 = vector.broadcast %cst_87 : f32 to vector<16x88xf32>
    %251 = arith.addf %249, %250 : vector<16x88xf32>
    %cst_88 = arith.constant 0.150755674 : f32
    %252 = vector.broadcast %cst_88 : f32 to vector<16x88xf32>
    %253 = arith.mulf %252, %251 : vector<16x88xf32>
    %cst_89 = arith.constant dense<0.000000e+00> : vector<88xf32>
    %254 = vector.multi_reduction <add>, %253, %cst_89 [0] : vector<16x88xf32> to vector<88xf32>
    %255 = vector.shape_cast %254 : vector<88xf32> to vector<1x88xf32>
    %256 = vector.broadcast %255 : vector<1x88xf32> to vector<16x88xf32>
    %257 = arith.mulf %245, %256 : vector<16x88xf32>
    %cst_90 = arith.constant 0.000000e+00 : f32
    %258 = vector.broadcast %cst_90 : f32 to vector<16x88xf32>
    %259 = arith.select %11, %257, %258 : vector<16x88xi1>, vector<16x88xf32>
    %cst_91 = arith.constant dense<0.000000e+00> : vector<16xf32>
    %260 = vector.multi_reduction <add>, %259, %cst_91 [1] : vector<16x88xf32> to vector<16xf32>
    %261 = vector.shape_cast %260 : vector<16xf32> to vector<16x1xf32>
    %cst_92 = arith.constant 0.000000e+00 : f32
    %262 = vector.broadcast %cst_92 : f32 to vector<16x88xf32>
    %263 = arith.select %11, %262, %257 : vector<16x88xi1>, vector<16x88xf32>
    %cst_93 = arith.constant dense<0.000000e+00> : vector<16xf32>
    %264 = vector.multi_reduction <add>, %263, %cst_93 [1] : vector<16x88xf32> to vector<16xf32>
    %265 = vector.shape_cast %264 : vector<16xf32> to vector<16x1xf32>
    %cst_94 = arith.constant 1.000000e+00 : f32
    %266 = vector.broadcast %cst_94 : f32 to vector<16x1xf32>
    %267 = arith.divf %266, %261 : vector<16x1xf32>
    %cst_95 = arith.constant 1.000000e+00 : f32
    %268 = vector.broadcast %cst_95 : f32 to vector<16x1xf32>
    %269 = arith.divf %268, %265 : vector<16x1xf32>
    %270 = vector.shape_cast %267 : vector<16x1xf32> to vector<16x1xf32>
    %271 = vector.broadcast %270 : vector<16x1xf32> to vector<16x88xf32>
    %272 = vector.shape_cast %269 : vector<16x1xf32> to vector<16x1xf32>
    %273 = vector.broadcast %272 : vector<16x1xf32> to vector<16x88xf32>
    %274 = arith.select %11, %271, %273 : vector<16x88xi1>, vector<16x88xf32>
    %275 = arith.mulf %245, %274 : vector<16x88xf32>
    %cst_96 = arith.constant dense<0.000000e+00> : vector<16x16xf32>
    %276 = tpu.matmul %275, %253, %cst_96 {dimension_numbers = #tpu.dot_dimension_numbers<[1], [1], [0], [0], [0, 0, 1, 0], [], []>} : vector<16x88xf32>, vector<16x88xf32>, vector<16x16xf32> -> vector<16x16xf32>
    %cst_97 = arith.constant 5.000000e-01 : f32
    %277 = vector.broadcast %cst_97 : f32 to vector<16x16xf32>
    %278 = arith.mulf %276, %277 : vector<16x16xf32>
    %279 = arith.addf %15, %278 : vector<16x16xf32>
    %cst_98 = arith.constant dense<0.000000e+00> : vector<16xf32>
    %280 = vector.multi_reduction <add>, %156, %cst_98 [1] : vector<16x32xf32> to vector<16xf32>
    %281 = vector.shape_cast %280 : vector<16xf32> to vector<16x1xf32>
    %cst_99 = arith.constant 3.200000e+01 : f32
    %282 = vector.broadcast %cst_99 : f32 to vector<16x1xf32>
    %283 = arith.divf %281, %282 : vector<16x1xf32>
    %284 = vector.broadcast %283 : vector<16x1xf32> to vector<16x32xf32>
    %285 = arith.subf %156, %284 : vector<16x32xf32>
    %286 = arith.mulf %285, %285 : vector<16x32xf32>
    %cst_100 = arith.constant dense<0.000000e+00> : vector<16xf32>
    %287 = vector.multi_reduction <add>, %286, %cst_100 [1] : vector<16x32xf32> to vector<16xf32>
    %288 = vector.shape_cast %287 : vector<16xf32> to vector<16x1xf32>
    %cst_101 = arith.constant 3.200000e+01 : f32
    %289 = vector.broadcast %cst_101 : f32 to vector<16x1xf32>
    %290 = arith.divf %288, %289 : vector<16x1xf32>
    %291 = vector.broadcast %283 : vector<16x1xf32> to vector<16x32xf32>
    %292 = arith.subf %156, %291 : vector<16x32xf32>
    %cst_102 = arith.constant 9.99999974E-6 : f32
    %293 = vector.broadcast %cst_102 : f32 to vector<16x1xf32>
    %294 = arith.addf %290, %293 : vector<16x1xf32>
    %295 = math.rsqrt %294 : vector<16x1xf32>
    %296 = vector.broadcast %295 : vector<16x1xf32> to vector<16x32xf32>
    %297 = arith.mulf %292, %296 : vector<16x32xf32>
    %298 = vector.broadcast %23 : vector<1x32xf32> to vector<16x32xf32>
    %299 = arith.mulf %297, %298 : vector<16x32xf32>
    %300 = vector.broadcast %24 : vector<1x32xf32> to vector<16x32xf32>
    %301 = arith.addf %299, %300 : vector<16x32xf32>
    %cst_103 = arith.constant dense<0.000000e+00> : vector<16x128xf32>
    %302 = tpu.matmul %301, %25, %cst_103 {dimension_numbers = #tpu.dot_dimension_numbers<[1], [0], [0], [1], [0, 0, 1, 1], [], []>} : vector<16x32xf32>, vector<32x128xf32>, vector<16x128xf32> -> vector<16x128xf32>
    %303 = vector.broadcast %26 : vector<1x128xf32> to vector<16x128xf32>
    %304 = arith.addf %302, %303 : vector<16x128xf32>
    %cst_104 = arith.constant 5.000000e-01 : f32
    %305 = vector.broadcast %cst_104 : f32 to vector<16x128xf32>
    %306 = arith.mulf %304, %305 : vector<16x128xf32>
    %cst_105 = arith.constant 0.707106769 : f32
    %307 = vector.broadcast %cst_105 : f32 to vector<16x128xf32>
    %308 = arith.mulf %304, %307 : vector<16x128xf32>
    %cst_106 = arith.constant 0.000000e+00 : f32
    %309 = vector.broadcast %cst_106 : f32 to vector<16x128xf32>
    %310 = arith.cmpf oge, %308, %309 : vector<16x128xf32>
    %cst_107 = arith.constant 1.000000e+00 : f32
    %cst_108 = arith.constant -1.000000e+00 : f32
    %311 = vector.broadcast %cst_107 : f32 to vector<16x128xf32>
    %312 = vector.broadcast %cst_108 : f32 to vector<16x128xf32>
    %313 = arith.select %310, %311, %312 : vector<16x128xi1>, vector<16x128xf32>
    %314 = math.absf %308 : vector<16x128xf32>
    %cst_109 = arith.constant 0.327591091 : f32
    %315 = vector.broadcast %cst_109 : f32 to vector<16x128xf32>
    %316 = arith.mulf %315, %314 : vector<16x128xf32>
    %cst_110 = arith.constant 1.000000e+00 : f32
    %317 = vector.broadcast %cst_110 : f32 to vector<16x128xf32>
    %318 = arith.addf %317, %316 : vector<16x128xf32>
    %cst_111 = arith.constant 1.000000e+00 : f32
    %319 = vector.broadcast %cst_111 : f32 to vector<16x128xf32>
    %320 = arith.divf %319, %318 : vector<16x128xf32>
    %cst_112 = arith.constant 1.06140542 : f32
    %321 = vector.broadcast %cst_112 : f32 to vector<16x128xf32>
    %322 = arith.mulf %321, %320 : vector<16x128xf32>
    %cst_113 = arith.constant -1.45315206 : f32
    %323 = vector.broadcast %cst_113 : f32 to vector<16x128xf32>
    %324 = arith.addf %322, %323 : vector<16x128xf32>
    %325 = arith.mulf %324, %320 : vector<16x128xf32>
    %cst_114 = arith.constant 1.42141378 : f32
    %326 = vector.broadcast %cst_114 : f32 to vector<16x128xf32>
    %327 = arith.addf %325, %326 : vector<16x128xf32>
    %328 = arith.mulf %327, %320 : vector<16x128xf32>
    %cst_115 = arith.constant -0.284496725 : f32
    %329 = vector.broadcast %cst_115 : f32 to vector<16x128xf32>
    %330 = arith.addf %328, %329 : vector<16x128xf32>
    %331 = arith.mulf %330, %320 : vector<16x128xf32>
    %cst_116 = arith.constant 0.254829586 : f32
    %332 = vector.broadcast %cst_116 : f32 to vector<16x128xf32>
    %333 = arith.addf %331, %332 : vector<16x128xf32>
    %334 = arith.mulf %333, %320 : vector<16x128xf32>
    %cst_117 = arith.constant 0.000000e+00 : f32
    %335 = vector.broadcast %cst_117 : f32 to vector<16x128xf32>
    %336 = arith.subf %335, %314 : vector<16x128xf32>
    %337 = arith.mulf %336, %314 : vector<16x128xf32>
    %338 = math.exp %337 : vector<16x128xf32>
    %339 = arith.mulf %334, %338 : vector<16x128xf32>
    %cst_118 = arith.constant 1.000000e+00 : f32
    %340 = vector.broadcast %cst_118 : f32 to vector<16x128xf32>
    %341 = arith.subf %340, %339 : vector<16x128xf32>
    %342 = arith.mulf %313, %341 : vector<16x128xf32>
    %cst_119 = arith.constant 1.000000e+00 : f32
    %343 = vector.broadcast %cst_119 : f32 to vector<16x128xf32>
    %344 = arith.addf %343, %342 : vector<16x128xf32>
    %345 = arith.mulf %306, %344 : vector<16x128xf32>
    %cst_120 = arith.constant dense<0.000000e+00> : vector<16x32xf32>
    %346 = tpu.matmul %345, %27, %cst_120 {dimension_numbers = #tpu.dot_dimension_numbers<[1], [0], [0], [1], [0, 0, 1, 1], [], []>} : vector<16x128xf32>, vector<128x32xf32>, vector<16x32xf32> -> vector<16x32xf32>
    %347 = vector.broadcast %28 : vector<1x32xf32> to vector<16x32xf32>
    %348 = arith.addf %346, %347 : vector<16x32xf32>
    %349 = arith.addf %156, %348 : vector<16x32xf32>
    %c320 = arith.constant 320 : index
    %c0_121 = arith.constant 0 : index
    %350 = vector.load %arg2[%c320, %c0_121] : memref<1352x128xf32, #tpu.memory_space<vmem>>, vector<1x32xf32>
    %c328 = arith.constant 328 : index
    %c0_122 = arith.constant 0 : index
    %351 = vector.load %arg2[%c328, %c0_122] : memref<1352x128xf32, #tpu.memory_space<vmem>>, vector<1x32xf32>
    %c336 = arith.constant 336 : index
    %c0_123 = arith.constant 0 : index
    %352 = vector.load %arg2[%c336, %c0_123] : memref<1352x128xf32, #tpu.memory_space<vmem>>, vector<32x96xf32>
    %c368 = arith.constant 368 : index
    %c0_124 = arith.constant 0 : index
    %353 = vector.load %arg2[%c368, %c0_124] : memref<1352x128xf32, #tpu.memory_space<vmem>>, vector<1x96xf32>
    %c376 = arith.constant 376 : index
    %c0_125 = arith.constant 0 : index
    %354 = vector.load %arg2[%c376, %c0_125] : memref<1352x128xf32, #tpu.memory_space<vmem>>, vector<32x32xf32>
    %c408 = arith.constant 408 : index
    %c0_126 = arith.constant 0 : index
    %355 = vector.load %arg2[%c408, %c0_126] : memref<1352x128xf32, #tpu.memory_space<vmem>>, vector<1x32xf32>
    %c416 = arith.constant 416 : index
    %c0_127 = arith.constant 0 : index
    %356 = vector.load %arg2[%c416, %c0_127] : memref<1352x128xf32, #tpu.memory_space<vmem>>, vector<32x88xf32>
    %c448 = arith.constant 448 : index
    %c0_128 = arith.constant 0 : index
    %357 = vector.load %arg2[%c448, %c0_128] : memref<1352x128xf32, #tpu.memory_space<vmem>>, vector<1x32xf32>
    %c456 = arith.constant 456 : index
    %c0_129 = arith.constant 0 : index
    %358 = vector.load %arg2[%c456, %c0_129] : memref<1352x128xf32, #tpu.memory_space<vmem>>, vector<1x32xf32>
    %c464 = arith.constant 464 : index
    %c0_130 = arith.constant 0 : index
    %359 = vector.load %arg2[%c464, %c0_130] : memref<1352x128xf32, #tpu.memory_space<vmem>>, vector<32x128xf32>
    %c496 = arith.constant 496 : index
    %c0_131 = arith.constant 0 : index
    %360 = vector.load %arg2[%c496, %c0_131] : memref<1352x128xf32, #tpu.memory_space<vmem>>, vector<1x128xf32>
    %c504 = arith.constant 504 : index
    %c0_132 = arith.constant 0 : index
    %361 = vector.load %arg2[%c504, %c0_132] : memref<1352x128xf32, #tpu.memory_space<vmem>>, vector<128x32xf32>
    %c632 = arith.constant 632 : index
    %c0_133 = arith.constant 0 : index
    %362 = vector.load %arg2[%c632, %c0_133] : memref<1352x128xf32, #tpu.memory_space<vmem>>, vector<1x32xf32>
    %cst_134 = arith.constant dense<0.000000e+00> : vector<16xf32>
    %363 = vector.multi_reduction <add>, %349, %cst_134 [1] : vector<16x32xf32> to vector<16xf32>
    %364 = vector.shape_cast %363 : vector<16xf32> to vector<16x1xf32>
    %cst_135 = arith.constant 3.200000e+01 : f32
    %365 = vector.broadcast %cst_135 : f32 to vector<16x1xf32>
    %366 = arith.divf %364, %365 : vector<16x1xf32>
    %367 = vector.broadcast %366 : vector<16x1xf32> to vector<16x32xf32>
    %368 = arith.subf %349, %367 : vector<16x32xf32>
    %369 = arith.mulf %368, %368 : vector<16x32xf32>
    %cst_136 = arith.constant dense<0.000000e+00> : vector<16xf32>
    %370 = vector.multi_reduction <add>, %369, %cst_136 [1] : vector<16x32xf32> to vector<16xf32>
    %371 = vector.shape_cast %370 : vector<16xf32> to vector<16x1xf32>
    %cst_137 = arith.constant 3.200000e+01 : f32
    %372 = vector.broadcast %cst_137 : f32 to vector<16x1xf32>
    %373 = arith.divf %371, %372 : vector<16x1xf32>
    %374 = vector.broadcast %366 : vector<16x1xf32> to vector<16x32xf32>
    %375 = arith.subf %349, %374 : vector<16x32xf32>
    %cst_138 = arith.constant 9.99999974E-6 : f32
    %376 = vector.broadcast %cst_138 : f32 to vector<16x1xf32>
    %377 = arith.addf %373, %376 : vector<16x1xf32>
    %378 = math.rsqrt %377 : vector<16x1xf32>
    %379 = vector.broadcast %378 : vector<16x1xf32> to vector<16x32xf32>
    %380 = arith.mulf %375, %379 : vector<16x32xf32>
    %381 = vector.broadcast %350 : vector<1x32xf32> to vector<16x32xf32>
    %382 = arith.mulf %380, %381 : vector<16x32xf32>
    %383 = vector.broadcast %351 : vector<1x32xf32> to vector<16x32xf32>
    %384 = arith.addf %382, %383 : vector<16x32xf32>
    %cst_139 = arith.constant dense<0.000000e+00> : vector<16x96xf32>
    %385 = tpu.matmul %384, %352, %cst_139 {dimension_numbers = #tpu.dot_dimension_numbers<[1], [0], [0], [1], [0, 0, 1, 1], [], []>} : vector<16x32xf32>, vector<32x96xf32>, vector<16x96xf32> -> vector<16x96xf32>
    %386 = vector.broadcast %353 : vector<1x96xf32> to vector<16x96xf32>
    %387 = arith.addf %385, %386 : vector<16x96xf32>
    %388 = vector.extract_strided_slice %387 {offsets = [0, 0], sizes = [16, 32], strides = [1, 1]} : vector<16x96xf32> to vector<16x32xf32>
    %389 = vector.extract_strided_slice %387 {offsets = [0, 32], sizes = [16, 32], strides = [1, 1]} : vector<16x96xf32> to vector<16x32xf32>
    %390 = vector.extract_strided_slice %387 {offsets = [0, 64], sizes = [16, 32], strides = [1, 1]} : vector<16x96xf32> to vector<16x32xf32>
    %cst_140 = arith.constant 5.000000e-01 : f32
    %391 = vector.broadcast %cst_140 : f32 to vector<16x32xf32>
    %392 = arith.mulf %388, %391 : vector<16x32xf32>
    %cst_141 = arith.constant dense<0.000000e+00> : vector<16x88xf32>
    %393 = tpu.matmul %392, %356, %cst_141 {dimension_numbers = #tpu.dot_dimension_numbers<[1], [0], [0], [1], [0, 0, 1, 1], [], []>} : vector<16x32xf32>, vector<32x88xf32>, vector<16x88xf32> -> vector<16x88xf32>
    %cst_142 = arith.constant 5.000000e-01 : f32
    %394 = vector.broadcast %cst_142 : f32 to vector<16x32xf32>
    %395 = arith.mulf %389, %394 : vector<16x32xf32>
    %cst_143 = arith.constant dense<0.000000e+00> : vector<16x88xf32>
    %396 = tpu.matmul %395, %356, %cst_143 {dimension_numbers = #tpu.dot_dimension_numbers<[1], [0], [0], [1], [0, 0, 1, 1], [], []>} : vector<16x32xf32>, vector<32x88xf32>, vector<16x88xf32> -> vector<16x88xf32>
    %397 = arith.mulf %388, %388 : vector<16x32xf32>
    %398 = arith.mulf %389, %389 : vector<16x32xf32>
    %cst_144 = arith.constant 0.000000e+00 : f32
    %399 = vector.broadcast %cst_144 : f32 to vector<16x32xf32>
    %400 = arith.select %14, %397, %399 : vector<16x32xi1>, vector<16x32xf32>
    %cst_145 = arith.constant dense<0.000000e+00> : vector<16xf32>
    %401 = vector.multi_reduction <add>, %400, %cst_145 [1] : vector<16x32xf32> to vector<16xf32>
    %402 = vector.shape_cast %401 : vector<16xf32> to vector<16x1xf32>
    %cst_146 = arith.constant 0.000000e+00 : f32
    %403 = vector.broadcast %cst_146 : f32 to vector<16x32xf32>
    %404 = arith.select %14, %403, %397 : vector<16x32xi1>, vector<16x32xf32>
    %cst_147 = arith.constant dense<0.000000e+00> : vector<16xf32>
    %405 = vector.multi_reduction <add>, %404, %cst_147 [1] : vector<16x32xf32> to vector<16xf32>
    %406 = vector.shape_cast %405 : vector<16xf32> to vector<16x1xf32>
    %407 = vector.shape_cast %402 : vector<16x1xf32> to vector<16x1xf32>
    %408 = vector.broadcast %407 : vector<16x1xf32> to vector<16x88xf32>
    %409 = vector.shape_cast %406 : vector<16x1xf32> to vector<16x1xf32>
    %410 = vector.broadcast %409 : vector<16x1xf32> to vector<16x88xf32>
    %411 = arith.select %11, %408, %410 : vector<16x88xi1>, vector<16x88xf32>
    %cst_148 = arith.constant 1.250000e-01 : f32
    %412 = vector.broadcast %cst_148 : f32 to vector<16x88xf32>
    %413 = arith.mulf %411, %412 : vector<16x88xf32>
    %cst_149 = arith.constant 0.000000e+00 : f32
    %414 = vector.broadcast %cst_149 : f32 to vector<16x32xf32>
    %415 = arith.select %14, %398, %414 : vector<16x32xi1>, vector<16x32xf32>
    %cst_150 = arith.constant dense<0.000000e+00> : vector<16xf32>
    %416 = vector.multi_reduction <add>, %415, %cst_150 [1] : vector<16x32xf32> to vector<16xf32>
    %417 = vector.shape_cast %416 : vector<16xf32> to vector<16x1xf32>
    %cst_151 = arith.constant 0.000000e+00 : f32
    %418 = vector.broadcast %cst_151 : f32 to vector<16x32xf32>
    %419 = arith.select %14, %418, %398 : vector<16x32xi1>, vector<16x32xf32>
    %cst_152 = arith.constant dense<0.000000e+00> : vector<16xf32>
    %420 = vector.multi_reduction <add>, %419, %cst_152 [1] : vector<16x32xf32> to vector<16xf32>
    %421 = vector.shape_cast %420 : vector<16xf32> to vector<16x1xf32>
    %422 = vector.shape_cast %417 : vector<16x1xf32> to vector<16x1xf32>
    %423 = vector.broadcast %422 : vector<16x1xf32> to vector<16x88xf32>
    %424 = vector.shape_cast %421 : vector<16x1xf32> to vector<16x1xf32>
    %425 = vector.broadcast %424 : vector<16x1xf32> to vector<16x88xf32>
    %426 = arith.select %11, %423, %425 : vector<16x88xi1>, vector<16x88xf32>
    %cst_153 = arith.constant 1.250000e-01 : f32
    %427 = vector.broadcast %cst_153 : f32 to vector<16x88xf32>
    %428 = arith.mulf %426, %427 : vector<16x88xf32>
    %cst_154 = arith.constant -1.000000e+30 : f32
    %429 = vector.broadcast %cst_154 : f32 to vector<16x88xf32>
    %430 = arith.select %11, %393, %429 : vector<16x88xi1>, vector<16x88xf32>
    %cst_155 = arith.constant dense<0xFF800000> : vector<16xf32>
    %431 = vector.multi_reduction <maximumf>, %430, %cst_155 [1] : vector<16x88xf32> to vector<16xf32>
    %432 = vector.shape_cast %431 : vector<16xf32> to vector<16x1xf32>
    %cst_156 = arith.constant -1.000000e+30 : f32
    %433 = vector.broadcast %cst_156 : f32 to vector<16x88xf32>
    %434 = arith.select %11, %433, %393 : vector<16x88xi1>, vector<16x88xf32>
    %cst_157 = arith.constant dense<0xFF800000> : vector<16xf32>
    %435 = vector.multi_reduction <maximumf>, %434, %cst_157 [1] : vector<16x88xf32> to vector<16xf32>
    %436 = vector.shape_cast %435 : vector<16xf32> to vector<16x1xf32>
    %437 = vector.shape_cast %432 : vector<16x1xf32> to vector<16x1xf32>
    %438 = vector.broadcast %437 : vector<16x1xf32> to vector<16x88xf32>
    %439 = vector.shape_cast %436 : vector<16x1xf32> to vector<16x1xf32>
    %440 = vector.broadcast %439 : vector<16x1xf32> to vector<16x88xf32>
    %441 = arith.select %11, %438, %440 : vector<16x88xi1>, vector<16x88xf32>
    %cst_158 = arith.constant dense<0xFF800000> : vector<16xf32>
    %442 = vector.multi_reduction <maximumf>, %396, %cst_158 [1] : vector<16x88xf32> to vector<16xf32>
    %443 = vector.shape_cast %442 : vector<16xf32> to vector<16x1xf32>
    %cst_159 = arith.constant dense<0xFF800000> : vector<1xf32>
    %444 = vector.multi_reduction <maximumf>, %443, %cst_159 [0] : vector<16x1xf32> to vector<1xf32>
    %445 = vector.shape_cast %444 : vector<1xf32> to vector<1x1xf32>
    %446 = arith.subf %393, %413 : vector<16x88xf32>
    %447 = arith.subf %446, %441 : vector<16x88xf32>
    %448 = math.exp %447 : vector<16x88xf32>
    %cst_160 = arith.constant 9.99999974E-5 : f32
    %449 = vector.broadcast %cst_160 : f32 to vector<16x88xf32>
    %450 = arith.addf %448, %449 : vector<16x88xf32>
    %cst_161 = arith.constant 0.150755674 : f32
    %451 = vector.broadcast %cst_161 : f32 to vector<16x88xf32>
    %452 = arith.mulf %451, %450 : vector<16x88xf32>
    %453 = arith.subf %396, %428 : vector<16x88xf32>
    %454 = vector.broadcast %445 : vector<1x1xf32> to vector<16x88xf32>
    %455 = arith.subf %453, %454 : vector<16x88xf32>
    %456 = math.exp %455 : vector<16x88xf32>
    %cst_162 = arith.constant 9.99999974E-5 : f32
    %457 = vector.broadcast %cst_162 : f32 to vector<16x88xf32>
    %458 = arith.addf %456, %457 : vector<16x88xf32>
    %cst_163 = arith.constant 0.150755674 : f32
    %459 = vector.broadcast %cst_163 : f32 to vector<16x88xf32>
    %460 = arith.mulf %459, %458 : vector<16x88xf32>
    %cst_164 = arith.constant dense<0.000000e+00> : vector<88xf32>
    %461 = vector.multi_reduction <add>, %460, %cst_164 [0] : vector<16x88xf32> to vector<88xf32>
    %462 = vector.shape_cast %461 : vector<88xf32> to vector<1x88xf32>
    %463 = vector.broadcast %462 : vector<1x88xf32> to vector<16x88xf32>
    %464 = arith.mulf %452, %463 : vector<16x88xf32>
    %cst_165 = arith.constant 0.000000e+00 : f32
    %465 = vector.broadcast %cst_165 : f32 to vector<16x88xf32>
    %466 = arith.select %11, %464, %465 : vector<16x88xi1>, vector<16x88xf32>
    %cst_166 = arith.constant dense<0.000000e+00> : vector<16xf32>
    %467 = vector.multi_reduction <add>, %466, %cst_166 [1] : vector<16x88xf32> to vector<16xf32>
    %468 = vector.shape_cast %467 : vector<16xf32> to vector<16x1xf32>
    %cst_167 = arith.constant 0.000000e+00 : f32
    %469 = vector.broadcast %cst_167 : f32 to vector<16x88xf32>
    %470 = arith.select %11, %469, %464 : vector<16x88xi1>, vector<16x88xf32>
    %cst_168 = arith.constant dense<0.000000e+00> : vector<16xf32>
    %471 = vector.multi_reduction <add>, %470, %cst_168 [1] : vector<16x88xf32> to vector<16xf32>
    %472 = vector.shape_cast %471 : vector<16xf32> to vector<16x1xf32>
    %cst_169 = arith.constant 1.000000e+00 : f32
    %473 = vector.broadcast %cst_169 : f32 to vector<16x1xf32>
    %474 = arith.divf %473, %468 : vector<16x1xf32>
    %cst_170 = arith.constant 1.000000e+00 : f32
    %475 = vector.broadcast %cst_170 : f32 to vector<16x1xf32>
    %476 = arith.divf %475, %472 : vector<16x1xf32>
    %477 = vector.shape_cast %474 : vector<16x1xf32> to vector<16x1xf32>
    %478 = vector.broadcast %477 : vector<16x1xf32> to vector<16x88xf32>
    %479 = vector.shape_cast %476 : vector<16x1xf32> to vector<16x1xf32>
    %480 = vector.broadcast %479 : vector<16x1xf32> to vector<16x88xf32>
    %481 = arith.select %11, %478, %480 : vector<16x88xi1>, vector<16x88xf32>
    %cst_171 = arith.constant dense<0.000000e+00> : vector<88x32xf32>
    %482 = tpu.matmul %460, %390, %cst_171 {dimension_numbers = #tpu.dot_dimension_numbers<[0], [0], [1], [1], [0, 1, 1, 1], [], []>} : vector<16x88xf32>, vector<16x32xf32>, vector<88x32xf32> -> vector<88x32xf32>
    %cst_172 = arith.constant 0.000000e+00 : f32
    %483 = vector.broadcast %cst_172 : f32 to vector<88x32xf32>
    %484 = arith.select %7, %482, %483 : vector<88x32xi1>, vector<88x32xf32>
    %485 = arith.mulf %452, %481 : vector<16x88xf32>
    %cst_173 = arith.constant dense<0.000000e+00> : vector<16x32xf32>
    %486 = tpu.matmul %485, %484, %cst_173 {dimension_numbers = #tpu.dot_dimension_numbers<[1], [0], [0], [1], [0, 0, 1, 1], [], []>} : vector<16x88xf32>, vector<88x32xf32>, vector<16x32xf32> -> vector<16x32xf32>
    %cst_174 = arith.constant dense<0.000000e+00> : vector<16x32xf32>
    %487 = tpu.matmul %486, %354, %cst_174 {dimension_numbers = #tpu.dot_dimension_numbers<[1], [0], [0], [1], [0, 0, 1, 1], [], []>} : vector<16x32xf32>, vector<32x32xf32>, vector<16x32xf32> -> vector<16x32xf32>
    %488 = vector.broadcast %355 : vector<1x32xf32> to vector<16x32xf32>
    %489 = arith.addf %487, %488 : vector<16x32xf32>
    %490 = arith.addf %349, %489 : vector<16x32xf32>
    %cst_175 = arith.constant dense<0.000000e+00> : vector<16xf32>
    %491 = vector.multi_reduction <add>, %490, %cst_175 [1] : vector<16x32xf32> to vector<16xf32>
    %492 = vector.shape_cast %491 : vector<16xf32> to vector<16x1xf32>
    %cst_176 = arith.constant 3.200000e+01 : f32
    %493 = vector.broadcast %cst_176 : f32 to vector<16x1xf32>
    %494 = arith.divf %492, %493 : vector<16x1xf32>
    %495 = vector.broadcast %494 : vector<16x1xf32> to vector<16x32xf32>
    %496 = arith.subf %490, %495 : vector<16x32xf32>
    %497 = arith.mulf %496, %496 : vector<16x32xf32>
    %cst_177 = arith.constant dense<0.000000e+00> : vector<16xf32>
    %498 = vector.multi_reduction <add>, %497, %cst_177 [1] : vector<16x32xf32> to vector<16xf32>
    %499 = vector.shape_cast %498 : vector<16xf32> to vector<16x1xf32>
    %cst_178 = arith.constant 3.200000e+01 : f32
    %500 = vector.broadcast %cst_178 : f32 to vector<16x1xf32>
    %501 = arith.divf %499, %500 : vector<16x1xf32>
    %502 = vector.broadcast %494 : vector<16x1xf32> to vector<16x32xf32>
    %503 = arith.subf %490, %502 : vector<16x32xf32>
    %cst_179 = arith.constant 9.99999974E-6 : f32
    %504 = vector.broadcast %cst_179 : f32 to vector<16x1xf32>
    %505 = arith.addf %501, %504 : vector<16x1xf32>
    %506 = math.rsqrt %505 : vector<16x1xf32>
    %507 = vector.broadcast %506 : vector<16x1xf32> to vector<16x32xf32>
    %508 = arith.mulf %503, %507 : vector<16x32xf32>
    %509 = vector.broadcast %350 : vector<1x32xf32> to vector<16x32xf32>
    %510 = arith.mulf %508, %509 : vector<16x32xf32>
    %511 = vector.broadcast %351 : vector<1x32xf32> to vector<16x32xf32>
    %512 = arith.addf %510, %511 : vector<16x32xf32>
    %cst_180 = arith.constant dense<0.000000e+00> : vector<16x96xf32>
    %513 = tpu.matmul %512, %352, %cst_180 {dimension_numbers = #tpu.dot_dimension_numbers<[1], [0], [0], [1], [0, 0, 1, 1], [], []>} : vector<16x32xf32>, vector<32x96xf32>, vector<16x96xf32> -> vector<16x96xf32>
    %514 = vector.broadcast %353 : vector<1x96xf32> to vector<16x96xf32>
    %515 = arith.addf %513, %514 : vector<16x96xf32>
    %516 = vector.extract_strided_slice %515 {offsets = [0, 0], sizes = [16, 32], strides = [1, 1]} : vector<16x96xf32> to vector<16x32xf32>
    %517 = vector.extract_strided_slice %515 {offsets = [0, 32], sizes = [16, 32], strides = [1, 1]} : vector<16x96xf32> to vector<16x32xf32>
    %cst_181 = arith.constant 5.000000e-01 : f32
    %518 = vector.broadcast %cst_181 : f32 to vector<16x32xf32>
    %519 = arith.mulf %516, %518 : vector<16x32xf32>
    %cst_182 = arith.constant dense<0.000000e+00> : vector<16x88xf32>
    %520 = tpu.matmul %519, %356, %cst_182 {dimension_numbers = #tpu.dot_dimension_numbers<[1], [0], [0], [1], [0, 0, 1, 1], [], []>} : vector<16x32xf32>, vector<32x88xf32>, vector<16x88xf32> -> vector<16x88xf32>
    %cst_183 = arith.constant 5.000000e-01 : f32
    %521 = vector.broadcast %cst_183 : f32 to vector<16x32xf32>
    %522 = arith.mulf %517, %521 : vector<16x32xf32>
    %cst_184 = arith.constant dense<0.000000e+00> : vector<16x88xf32>
    %523 = tpu.matmul %522, %356, %cst_184 {dimension_numbers = #tpu.dot_dimension_numbers<[1], [0], [0], [1], [0, 0, 1, 1], [], []>} : vector<16x32xf32>, vector<32x88xf32>, vector<16x88xf32> -> vector<16x88xf32>
    %524 = arith.mulf %516, %516 : vector<16x32xf32>
    %525 = arith.mulf %517, %517 : vector<16x32xf32>
    %cst_185 = arith.constant 0.000000e+00 : f32
    %526 = vector.broadcast %cst_185 : f32 to vector<16x32xf32>
    %527 = arith.select %14, %524, %526 : vector<16x32xi1>, vector<16x32xf32>
    %cst_186 = arith.constant dense<0.000000e+00> : vector<16xf32>
    %528 = vector.multi_reduction <add>, %527, %cst_186 [1] : vector<16x32xf32> to vector<16xf32>
    %529 = vector.shape_cast %528 : vector<16xf32> to vector<16x1xf32>
    %cst_187 = arith.constant 0.000000e+00 : f32
    %530 = vector.broadcast %cst_187 : f32 to vector<16x32xf32>
    %531 = arith.select %14, %530, %524 : vector<16x32xi1>, vector<16x32xf32>
    %cst_188 = arith.constant dense<0.000000e+00> : vector<16xf32>
    %532 = vector.multi_reduction <add>, %531, %cst_188 [1] : vector<16x32xf32> to vector<16xf32>
    %533 = vector.shape_cast %532 : vector<16xf32> to vector<16x1xf32>
    %534 = vector.shape_cast %529 : vector<16x1xf32> to vector<16x1xf32>
    %535 = vector.broadcast %534 : vector<16x1xf32> to vector<16x88xf32>
    %536 = vector.shape_cast %533 : vector<16x1xf32> to vector<16x1xf32>
    %537 = vector.broadcast %536 : vector<16x1xf32> to vector<16x88xf32>
    %538 = arith.select %11, %535, %537 : vector<16x88xi1>, vector<16x88xf32>
    %cst_189 = arith.constant 1.250000e-01 : f32
    %539 = vector.broadcast %cst_189 : f32 to vector<16x88xf32>
    %540 = arith.mulf %538, %539 : vector<16x88xf32>
    %cst_190 = arith.constant 0.000000e+00 : f32
    %541 = vector.broadcast %cst_190 : f32 to vector<16x32xf32>
    %542 = arith.select %14, %525, %541 : vector<16x32xi1>, vector<16x32xf32>
    %cst_191 = arith.constant dense<0.000000e+00> : vector<16xf32>
    %543 = vector.multi_reduction <add>, %542, %cst_191 [1] : vector<16x32xf32> to vector<16xf32>
    %544 = vector.shape_cast %543 : vector<16xf32> to vector<16x1xf32>
    %cst_192 = arith.constant 0.000000e+00 : f32
    %545 = vector.broadcast %cst_192 : f32 to vector<16x32xf32>
    %546 = arith.select %14, %545, %525 : vector<16x32xi1>, vector<16x32xf32>
    %cst_193 = arith.constant dense<0.000000e+00> : vector<16xf32>
    %547 = vector.multi_reduction <add>, %546, %cst_193 [1] : vector<16x32xf32> to vector<16xf32>
    %548 = vector.shape_cast %547 : vector<16xf32> to vector<16x1xf32>
    %549 = vector.shape_cast %544 : vector<16x1xf32> to vector<16x1xf32>
    %550 = vector.broadcast %549 : vector<16x1xf32> to vector<16x88xf32>
    %551 = vector.shape_cast %548 : vector<16x1xf32> to vector<16x1xf32>
    %552 = vector.broadcast %551 : vector<16x1xf32> to vector<16x88xf32>
    %553 = arith.select %11, %550, %552 : vector<16x88xi1>, vector<16x88xf32>
    %cst_194 = arith.constant 1.250000e-01 : f32
    %554 = vector.broadcast %cst_194 : f32 to vector<16x88xf32>
    %555 = arith.mulf %553, %554 : vector<16x88xf32>
    %cst_195 = arith.constant -1.000000e+30 : f32
    %556 = vector.broadcast %cst_195 : f32 to vector<16x88xf32>
    %557 = arith.select %11, %520, %556 : vector<16x88xi1>, vector<16x88xf32>
    %cst_196 = arith.constant dense<0xFF800000> : vector<16xf32>
    %558 = vector.multi_reduction <maximumf>, %557, %cst_196 [1] : vector<16x88xf32> to vector<16xf32>
    %559 = vector.shape_cast %558 : vector<16xf32> to vector<16x1xf32>
    %cst_197 = arith.constant -1.000000e+30 : f32
    %560 = vector.broadcast %cst_197 : f32 to vector<16x88xf32>
    %561 = arith.select %11, %560, %520 : vector<16x88xi1>, vector<16x88xf32>
    %cst_198 = arith.constant dense<0xFF800000> : vector<16xf32>
    %562 = vector.multi_reduction <maximumf>, %561, %cst_198 [1] : vector<16x88xf32> to vector<16xf32>
    %563 = vector.shape_cast %562 : vector<16xf32> to vector<16x1xf32>
    %564 = vector.shape_cast %559 : vector<16x1xf32> to vector<16x1xf32>
    %565 = vector.broadcast %564 : vector<16x1xf32> to vector<16x88xf32>
    %566 = vector.shape_cast %563 : vector<16x1xf32> to vector<16x1xf32>
    %567 = vector.broadcast %566 : vector<16x1xf32> to vector<16x88xf32>
    %568 = arith.select %11, %565, %567 : vector<16x88xi1>, vector<16x88xf32>
    %cst_199 = arith.constant dense<0xFF800000> : vector<16xf32>
    %569 = vector.multi_reduction <maximumf>, %523, %cst_199 [1] : vector<16x88xf32> to vector<16xf32>
    %570 = vector.shape_cast %569 : vector<16xf32> to vector<16x1xf32>
    %cst_200 = arith.constant dense<0xFF800000> : vector<1xf32>
    %571 = vector.multi_reduction <maximumf>, %570, %cst_200 [0] : vector<16x1xf32> to vector<1xf32>
    %572 = vector.shape_cast %571 : vector<1xf32> to vector<1x1xf32>
    %573 = arith.subf %520, %540 : vector<16x88xf32>
    %574 = arith.subf %573, %568 : vector<16x88xf32>
    %575 = math.exp %574 : vector<16x88xf32>
    %cst_201 = arith.constant 9.99999974E-5 : f32
    %576 = vector.broadcast %cst_201 : f32 to vector<16x88xf32>
    %577 = arith.addf %575, %576 : vector<16x88xf32>
    %cst_202 = arith.constant 0.150755674 : f32
    %578 = vector.broadcast %cst_202 : f32 to vector<16x88xf32>
    %579 = arith.mulf %578, %577 : vector<16x88xf32>
    %580 = arith.subf %523, %555 : vector<16x88xf32>
    %581 = vector.broadcast %572 : vector<1x1xf32> to vector<16x88xf32>
    %582 = arith.subf %580, %581 : vector<16x88xf32>
    %583 = math.exp %582 : vector<16x88xf32>
    %cst_203 = arith.constant 9.99999974E-5 : f32
    %584 = vector.broadcast %cst_203 : f32 to vector<16x88xf32>
    %585 = arith.addf %583, %584 : vector<16x88xf32>
    %cst_204 = arith.constant 0.150755674 : f32
    %586 = vector.broadcast %cst_204 : f32 to vector<16x88xf32>
    %587 = arith.mulf %586, %585 : vector<16x88xf32>
    %cst_205 = arith.constant dense<0.000000e+00> : vector<88xf32>
    %588 = vector.multi_reduction <add>, %587, %cst_205 [0] : vector<16x88xf32> to vector<88xf32>
    %589 = vector.shape_cast %588 : vector<88xf32> to vector<1x88xf32>
    %590 = vector.broadcast %589 : vector<1x88xf32> to vector<16x88xf32>
    %591 = arith.mulf %579, %590 : vector<16x88xf32>
    %cst_206 = arith.constant 0.000000e+00 : f32
    %592 = vector.broadcast %cst_206 : f32 to vector<16x88xf32>
    %593 = arith.select %11, %591, %592 : vector<16x88xi1>, vector<16x88xf32>
    %cst_207 = arith.constant dense<0.000000e+00> : vector<16xf32>
    %594 = vector.multi_reduction <add>, %593, %cst_207 [1] : vector<16x88xf32> to vector<16xf32>
    %595 = vector.shape_cast %594 : vector<16xf32> to vector<16x1xf32>
    %cst_208 = arith.constant 0.000000e+00 : f32
    %596 = vector.broadcast %cst_208 : f32 to vector<16x88xf32>
    %597 = arith.select %11, %596, %591 : vector<16x88xi1>, vector<16x88xf32>
    %cst_209 = arith.constant dense<0.000000e+00> : vector<16xf32>
    %598 = vector.multi_reduction <add>, %597, %cst_209 [1] : vector<16x88xf32> to vector<16xf32>
    %599 = vector.shape_cast %598 : vector<16xf32> to vector<16x1xf32>
    %cst_210 = arith.constant 1.000000e+00 : f32
    %600 = vector.broadcast %cst_210 : f32 to vector<16x1xf32>
    %601 = arith.divf %600, %595 : vector<16x1xf32>
    %cst_211 = arith.constant 1.000000e+00 : f32
    %602 = vector.broadcast %cst_211 : f32 to vector<16x1xf32>
    %603 = arith.divf %602, %599 : vector<16x1xf32>
    %604 = vector.shape_cast %601 : vector<16x1xf32> to vector<16x1xf32>
    %605 = vector.broadcast %604 : vector<16x1xf32> to vector<16x88xf32>
    %606 = vector.shape_cast %603 : vector<16x1xf32> to vector<16x1xf32>
    %607 = vector.broadcast %606 : vector<16x1xf32> to vector<16x88xf32>
    %608 = arith.select %11, %605, %607 : vector<16x88xi1>, vector<16x88xf32>
    %609 = arith.mulf %579, %608 : vector<16x88xf32>
    %cst_212 = arith.constant dense<0.000000e+00> : vector<16x16xf32>
    %610 = tpu.matmul %609, %587, %cst_212 {dimension_numbers = #tpu.dot_dimension_numbers<[1], [1], [0], [0], [0, 0, 1, 0], [], []>} : vector<16x88xf32>, vector<16x88xf32>, vector<16x16xf32> -> vector<16x16xf32>
    %cst_213 = arith.constant 5.000000e-01 : f32
    %611 = vector.broadcast %cst_213 : f32 to vector<16x16xf32>
    %612 = arith.mulf %610, %611 : vector<16x16xf32>
    %613 = arith.addf %279, %612 : vector<16x16xf32>
    %cst_214 = arith.constant dense<0.000000e+00> : vector<16xf32>
    %614 = vector.multi_reduction <add>, %490, %cst_214 [1] : vector<16x32xf32> to vector<16xf32>
    %615 = vector.shape_cast %614 : vector<16xf32> to vector<16x1xf32>
    %cst_215 = arith.constant 3.200000e+01 : f32
    %616 = vector.broadcast %cst_215 : f32 to vector<16x1xf32>
    %617 = arith.divf %615, %616 : vector<16x1xf32>
    %618 = vector.broadcast %617 : vector<16x1xf32> to vector<16x32xf32>
    %619 = arith.subf %490, %618 : vector<16x32xf32>
    %620 = arith.mulf %619, %619 : vector<16x32xf32>
    %cst_216 = arith.constant dense<0.000000e+00> : vector<16xf32>
    %621 = vector.multi_reduction <add>, %620, %cst_216 [1] : vector<16x32xf32> to vector<16xf32>
    %622 = vector.shape_cast %621 : vector<16xf32> to vector<16x1xf32>
    %cst_217 = arith.constant 3.200000e+01 : f32
    %623 = vector.broadcast %cst_217 : f32 to vector<16x1xf32>
    %624 = arith.divf %622, %623 : vector<16x1xf32>
    %625 = vector.broadcast %617 : vector<16x1xf32> to vector<16x32xf32>
    %626 = arith.subf %490, %625 : vector<16x32xf32>
    %cst_218 = arith.constant 9.99999974E-6 : f32
    %627 = vector.broadcast %cst_218 : f32 to vector<16x1xf32>
    %628 = arith.addf %624, %627 : vector<16x1xf32>
    %629 = math.rsqrt %628 : vector<16x1xf32>
    %630 = vector.broadcast %629 : vector<16x1xf32> to vector<16x32xf32>
    %631 = arith.mulf %626, %630 : vector<16x32xf32>
    %632 = vector.broadcast %357 : vector<1x32xf32> to vector<16x32xf32>
    %633 = arith.mulf %631, %632 : vector<16x32xf32>
    %634 = vector.broadcast %358 : vector<1x32xf32> to vector<16x32xf32>
    %635 = arith.addf %633, %634 : vector<16x32xf32>
    %cst_219 = arith.constant dense<0.000000e+00> : vector<16x128xf32>
    %636 = tpu.matmul %635, %359, %cst_219 {dimension_numbers = #tpu.dot_dimension_numbers<[1], [0], [0], [1], [0, 0, 1, 1], [], []>} : vector<16x32xf32>, vector<32x128xf32>, vector<16x128xf32> -> vector<16x128xf32>
    %637 = vector.broadcast %360 : vector<1x128xf32> to vector<16x128xf32>
    %638 = arith.addf %636, %637 : vector<16x128xf32>
    %cst_220 = arith.constant 5.000000e-01 : f32
    %639 = vector.broadcast %cst_220 : f32 to vector<16x128xf32>
    %640 = arith.mulf %638, %639 : vector<16x128xf32>
    %cst_221 = arith.constant 0.707106769 : f32
    %641 = vector.broadcast %cst_221 : f32 to vector<16x128xf32>
    %642 = arith.mulf %638, %641 : vector<16x128xf32>
    %cst_222 = arith.constant 0.000000e+00 : f32
    %643 = vector.broadcast %cst_222 : f32 to vector<16x128xf32>
    %644 = arith.cmpf oge, %642, %643 : vector<16x128xf32>
    %cst_223 = arith.constant 1.000000e+00 : f32
    %cst_224 = arith.constant -1.000000e+00 : f32
    %645 = vector.broadcast %cst_223 : f32 to vector<16x128xf32>
    %646 = vector.broadcast %cst_224 : f32 to vector<16x128xf32>
    %647 = arith.select %644, %645, %646 : vector<16x128xi1>, vector<16x128xf32>
    %648 = math.absf %642 : vector<16x128xf32>
    %cst_225 = arith.constant 0.327591091 : f32
    %649 = vector.broadcast %cst_225 : f32 to vector<16x128xf32>
    %650 = arith.mulf %649, %648 : vector<16x128xf32>
    %cst_226 = arith.constant 1.000000e+00 : f32
    %651 = vector.broadcast %cst_226 : f32 to vector<16x128xf32>
    %652 = arith.addf %651, %650 : vector<16x128xf32>
    %cst_227 = arith.constant 1.000000e+00 : f32
    %653 = vector.broadcast %cst_227 : f32 to vector<16x128xf32>
    %654 = arith.divf %653, %652 : vector<16x128xf32>
    %cst_228 = arith.constant 1.06140542 : f32
    %655 = vector.broadcast %cst_228 : f32 to vector<16x128xf32>
    %656 = arith.mulf %655, %654 : vector<16x128xf32>
    %cst_229 = arith.constant -1.45315206 : f32
    %657 = vector.broadcast %cst_229 : f32 to vector<16x128xf32>
    %658 = arith.addf %656, %657 : vector<16x128xf32>
    %659 = arith.mulf %658, %654 : vector<16x128xf32>
    %cst_230 = arith.constant 1.42141378 : f32
    %660 = vector.broadcast %cst_230 : f32 to vector<16x128xf32>
    %661 = arith.addf %659, %660 : vector<16x128xf32>
    %662 = arith.mulf %661, %654 : vector<16x128xf32>
    %cst_231 = arith.constant -0.284496725 : f32
    %663 = vector.broadcast %cst_231 : f32 to vector<16x128xf32>
    %664 = arith.addf %662, %663 : vector<16x128xf32>
    %665 = arith.mulf %664, %654 : vector<16x128xf32>
    %cst_232 = arith.constant 0.254829586 : f32
    %666 = vector.broadcast %cst_232 : f32 to vector<16x128xf32>
    %667 = arith.addf %665, %666 : vector<16x128xf32>
    %668 = arith.mulf %667, %654 : vector<16x128xf32>
    %cst_233 = arith.constant 0.000000e+00 : f32
    %669 = vector.broadcast %cst_233 : f32 to vector<16x128xf32>
    %670 = arith.subf %669, %648 : vector<16x128xf32>
    %671 = arith.mulf %670, %648 : vector<16x128xf32>
    %672 = math.exp %671 : vector<16x128xf32>
    %673 = arith.mulf %668, %672 : vector<16x128xf32>
    %cst_234 = arith.constant 1.000000e+00 : f32
    %674 = vector.broadcast %cst_234 : f32 to vector<16x128xf32>
    %675 = arith.subf %674, %673 : vector<16x128xf32>
    %676 = arith.mulf %647, %675 : vector<16x128xf32>
    %cst_235 = arith.constant 1.000000e+00 : f32
    %677 = vector.broadcast %cst_235 : f32 to vector<16x128xf32>
    %678 = arith.addf %677, %676 : vector<16x128xf32>
    %679 = arith.mulf %640, %678 : vector<16x128xf32>
    %cst_236 = arith.constant dense<0.000000e+00> : vector<16x32xf32>
    %680 = tpu.matmul %679, %361, %cst_236 {dimension_numbers = #tpu.dot_dimension_numbers<[1], [0], [0], [1], [0, 0, 1, 1], [], []>} : vector<16x128xf32>, vector<128x32xf32>, vector<16x32xf32> -> vector<16x32xf32>
    %681 = vector.broadcast %362 : vector<1x32xf32> to vector<16x32xf32>
    %682 = arith.addf %680, %681 : vector<16x32xf32>
    %683 = arith.addf %490, %682 : vector<16x32xf32>
    %cst_237 = arith.constant 5.000000e-01 : f32
    %684 = vector.broadcast %cst_237 : f32 to vector<16x16xf32>
    %685 = arith.mulf %613, %684 : vector<16x16xf32>
    %c0_238 = arith.constant 0 : index
    %c0_239 = arith.constant 0 : index
    %686 = vector.load %arg3[%c0_238, %c0_239] : memref<16x16xf32, #tpu.memory_space<vmem>>, vector<16x16xf32>
    tpu.vector_store %arg3[%c0_238, %c0_239], %685 {strides = array<i32>} : memref<16x16xf32, #tpu.memory_space<vmem>>, vector<16x16xf32>,
    %c1296 = arith.constant 1296 : index
    %c0_240 = arith.constant 0 : index
    %687 = vector.load %arg2[%c1296, %c0_240] : memref<1352x128xf32, #tpu.memory_space<vmem>>, vector<8x16xf32>
    %cst_241 = arith.constant dense<0.000000e+00> : vector<8x32xf32>
    %688 = tpu.matmul %687, %683, %cst_241 {dimension_numbers = #tpu.dot_dimension_numbers<[1], [0], [0], [1], [0, 0, 1, 1], [], []>} : vector<8x16xf32>, vector<16x32xf32>, vector<8x32xf32> -> vector<8x32xf32>
    %c1312 = arith.constant 1312 : index
    %c0_242 = arith.constant 0 : index
    %689 = vector.load %arg2[%c1312, %c0_242] : memref<1352x128xf32, #tpu.memory_space<vmem>>, vector<8x1xf32>
    %690 = vector.broadcast %689 : vector<8x1xf32> to vector<8x32xf32>
    %691 = arith.addf %688, %690 : vector<8x32xf32>
    %cst_243 = arith.constant 0.000000e+00 : f32
    %692 = vector.broadcast %cst_243 : f32 to vector<8x32xf32>
    %693 = arith.maximumf %691, %692 : vector<8x32xf32>
    %c1328 = arith.constant 1328 : index
    %c0_244 = arith.constant 0 : index
    %694 = vector.load %arg2[%c1328, %c0_244] : memref<1352x128xf32, #tpu.memory_space<vmem>>, vector<8x8xf32>
    %cst_245 = arith.constant dense<0.000000e+00> : vector<8x32xf32>
    %695 = tpu.matmul %694, %693, %cst_245 {dimension_numbers = #tpu.dot_dimension_numbers<[1], [0], [0], [1], [0, 0, 1, 1], [], []>} : vector<8x8xf32>, vector<8x32xf32>, vector<8x32xf32> -> vector<8x32xf32>
    %c1344 = arith.constant 1344 : index
    %c0_246 = arith.constant 0 : index
    %696 = vector.load %arg2[%c1344, %c0_246] : memref<1352x128xf32, #tpu.memory_space<vmem>>, vector<8x1xf32>
    %697 = vector.broadcast %696 : vector<8x1xf32> to vector<8x32xf32>
    %698 = arith.addf %695, %697 : vector<8x32xf32>
    %cst_247 = arith.constant 0.000000e+00 : f32
    %699 = vector.broadcast %cst_247 : f32 to vector<8x32xf32>
    %700 = arith.maximumf %698, %699 : vector<8x32xf32>
    %c0_248 = arith.constant 0 : index
    %c0_249 = arith.constant 0 : index
    %701 = vector.load %arg1[%c0_248, %c0_249] : memref<8x32xf32, #tpu.memory_space<vmem>>, vector<8x32xf32>
    %702 = arith.addf %700, %701 : vector<8x32xf32>
    %703 = tpu.iota {dimensions = array<i32: 1>} : vector<8x88xi32>
    %c44_i32_250 = arith.constant 44 : i32
    %704 = vector.broadcast %c44_i32_250 : i32 to vector<8x88xi32>
    %705 = arith.cmpi slt, %703, %704 : vector<8x88xi32>
    %706 = tpu.iota {dimensions = array<i32: 1>} : vector<8x32xi32>
    %c16_i32_251 = arith.constant 16 : i32
    %707 = vector.broadcast %c16_i32_251 : i32 to vector<8x32xi32>
    %708 = arith.cmpi slt, %706, %707 : vector<8x32xi32>
    %cst_252 = arith.constant 0.000000e+00 : f32
    %709 = vector.broadcast %cst_252 : f32 to vector<8x8xf32>
    %c640 = arith.constant 640 : index
    %c0_253 = arith.constant 0 : index
    %710 = vector.load %arg2[%c640, %c0_253] : memref<1352x128xf32, #tpu.memory_space<vmem>>, vector<1x32xf32>
    %c648 = arith.constant 648 : index
    %c0_254 = arith.constant 0 : index
    %711 = vector.load %arg2[%c648, %c0_254] : memref<1352x128xf32, #tpu.memory_space<vmem>>, vector<1x32xf32>
    %c656 = arith.constant 656 : index
    %c0_255 = arith.constant 0 : index
    %712 = vector.load %arg2[%c656, %c0_255] : memref<1352x128xf32, #tpu.memory_space<vmem>>, vector<32x96xf32>
    %c688 = arith.constant 688 : index
    %c0_256 = arith.constant 0 : index
    %713 = vector.load %arg2[%c688, %c0_256] : memref<1352x128xf32, #tpu.memory_space<vmem>>, vector<1x96xf32>
    %c696 = arith.constant 696 : index
    %c0_257 = arith.constant 0 : index
    %714 = vector.load %arg2[%c696, %c0_257] : memref<1352x128xf32, #tpu.memory_space<vmem>>, vector<32x32xf32>
    %c728 = arith.constant 728 : index
    %c0_258 = arith.constant 0 : index
    %715 = vector.load %arg2[%c728, %c0_258] : memref<1352x128xf32, #tpu.memory_space<vmem>>, vector<1x32xf32>
    %c736 = arith.constant 736 : index
    %c0_259 = arith.constant 0 : index
    %716 = vector.load %arg2[%c736, %c0_259] : memref<1352x128xf32, #tpu.memory_space<vmem>>, vector<32x88xf32>
    %c768 = arith.constant 768 : index
    %c0_260 = arith.constant 0 : index
    %717 = vector.load %arg2[%c768, %c0_260] : memref<1352x128xf32, #tpu.memory_space<vmem>>, vector<1x32xf32>
    %c776 = arith.constant 776 : index
    %c0_261 = arith.constant 0 : index
    %718 = vector.load %arg2[%c776, %c0_261] : memref<1352x128xf32, #tpu.memory_space<vmem>>, vector<1x32xf32>
    %c784 = arith.constant 784 : index
    %c0_262 = arith.constant 0 : index
    %719 = vector.load %arg2[%c784, %c0_262] : memref<1352x128xf32, #tpu.memory_space<vmem>>, vector<32x128xf32>
    %c816 = arith.constant 816 : index
    %c0_263 = arith.constant 0 : index
    %720 = vector.load %arg2[%c816, %c0_263] : memref<1352x128xf32, #tpu.memory_space<vmem>>, vector<1x128xf32>
    %c824 = arith.constant 824 : index
    %c0_264 = arith.constant 0 : index
    %721 = vector.load %arg2[%c824, %c0_264] : memref<1352x128xf32, #tpu.memory_space<vmem>>, vector<128x32xf32>
    %c952 = arith.constant 952 : index
    %c0_265 = arith.constant 0 : index
    %722 = vector.load %arg2[%c952, %c0_265] : memref<1352x128xf32, #tpu.memory_space<vmem>>, vector<1x32xf32>
    %cst_266 = arith.constant dense<0.000000e+00> : vector<8xf32>
    %723 = vector.multi_reduction <add>, %702, %cst_266 [1] : vector<8x32xf32> to vector<8xf32>
    %724 = vector.shape_cast %723 : vector<8xf32> to vector<8x1xf32>
    %cst_267 = arith.constant 3.200000e+01 : f32
    %725 = vector.broadcast %cst_267 : f32 to vector<8x1xf32>
    %726 = arith.divf %724, %725 : vector<8x1xf32>
    %727 = vector.broadcast %726 : vector<8x1xf32> to vector<8x32xf32>
    %728 = arith.subf %702, %727 : vector<8x32xf32>
    %729 = arith.mulf %728, %728 : vector<8x32xf32>
    %cst_268 = arith.constant dense<0.000000e+00> : vector<8xf32>
    %730 = vector.multi_reduction <add>, %729, %cst_268 [1] : vector<8x32xf32> to vector<8xf32>
    %731 = vector.shape_cast %730 : vector<8xf32> to vector<8x1xf32>
    %cst_269 = arith.constant 3.200000e+01 : f32
    %732 = vector.broadcast %cst_269 : f32 to vector<8x1xf32>
    %733 = arith.divf %731, %732 : vector<8x1xf32>
    %734 = vector.broadcast %726 : vector<8x1xf32> to vector<8x32xf32>
    %735 = arith.subf %702, %734 : vector<8x32xf32>
    %cst_270 = arith.constant 9.99999974E-6 : f32
    %736 = vector.broadcast %cst_270 : f32 to vector<8x1xf32>
    %737 = arith.addf %733, %736 : vector<8x1xf32>
    %738 = math.rsqrt %737 : vector<8x1xf32>
    %739 = vector.broadcast %738 : vector<8x1xf32> to vector<8x32xf32>
    %740 = arith.mulf %735, %739 : vector<8x32xf32>
    %741 = vector.broadcast %710 : vector<1x32xf32> to vector<8x32xf32>
    %742 = arith.mulf %740, %741 : vector<8x32xf32>
    %743 = vector.broadcast %711 : vector<1x32xf32> to vector<8x32xf32>
    %744 = arith.addf %742, %743 : vector<8x32xf32>
    %cst_271 = arith.constant dense<0.000000e+00> : vector<8x96xf32>
    %745 = tpu.matmul %744, %712, %cst_271 {dimension_numbers = #tpu.dot_dimension_numbers<[1], [0], [0], [1], [0, 0, 1, 1], [], []>} : vector<8x32xf32>, vector<32x96xf32>, vector<8x96xf32> -> vector<8x96xf32>
    %746 = vector.broadcast %713 : vector<1x96xf32> to vector<8x96xf32>
    %747 = arith.addf %745, %746 : vector<8x96xf32>
    %748 = vector.extract_strided_slice %747 {offsets = [0, 0], sizes = [8, 32], strides = [1, 1]} : vector<8x96xf32> to vector<8x32xf32>
    %749 = vector.extract_strided_slice %747 {offsets = [0, 32], sizes = [8, 32], strides = [1, 1]} : vector<8x96xf32> to vector<8x32xf32>
    %750 = vector.extract_strided_slice %747 {offsets = [0, 64], sizes = [8, 32], strides = [1, 1]} : vector<8x96xf32> to vector<8x32xf32>
    %cst_272 = arith.constant 5.000000e-01 : f32
    %751 = vector.broadcast %cst_272 : f32 to vector<8x32xf32>
    %752 = arith.mulf %748, %751 : vector<8x32xf32>
    %cst_273 = arith.constant dense<0.000000e+00> : vector<8x88xf32>
    %753 = tpu.matmul %752, %716, %cst_273 {dimension_numbers = #tpu.dot_dimension_numbers<[1], [0], [0], [1], [0, 0, 1, 1], [], []>} : vector<8x32xf32>, vector<32x88xf32>, vector<8x88xf32> -> vector<8x88xf32>
    %cst_274 = arith.constant 5.000000e-01 : f32
    %754 = vector.broadcast %cst_274 : f32 to vector<8x32xf32>
    %755 = arith.mulf %749, %754 : vector<8x32xf32>
    %cst_275 = arith.constant dense<0.000000e+00> : vector<8x88xf32>
    %756 = tpu.matmul %755, %716, %cst_275 {dimension_numbers = #tpu.dot_dimension_numbers<[1], [0], [0], [1], [0, 0, 1, 1], [], []>} : vector<8x32xf32>, vector<32x88xf32>, vector<8x88xf32> -> vector<8x88xf32>
    %757 = arith.mulf %748, %748 : vector<8x32xf32>
    %758 = arith.mulf %749, %749 : vector<8x32xf32>
    %cst_276 = arith.constant 0.000000e+00 : f32
    %759 = vector.broadcast %cst_276 : f32 to vector<8x32xf32>
    %760 = arith.select %708, %757, %759 : vector<8x32xi1>, vector<8x32xf32>
    %cst_277 = arith.constant dense<0.000000e+00> : vector<8xf32>
    %761 = vector.multi_reduction <add>, %760, %cst_277 [1] : vector<8x32xf32> to vector<8xf32>
    %762 = vector.shape_cast %761 : vector<8xf32> to vector<8x1xf32>
    %cst_278 = arith.constant 0.000000e+00 : f32
    %763 = vector.broadcast %cst_278 : f32 to vector<8x32xf32>
    %764 = arith.select %708, %763, %757 : vector<8x32xi1>, vector<8x32xf32>
    %cst_279 = arith.constant dense<0.000000e+00> : vector<8xf32>
    %765 = vector.multi_reduction <add>, %764, %cst_279 [1] : vector<8x32xf32> to vector<8xf32>
    %766 = vector.shape_cast %765 : vector<8xf32> to vector<8x1xf32>
    %767 = vector.shape_cast %762 : vector<8x1xf32> to vector<8x1xf32>
    %768 = vector.broadcast %767 : vector<8x1xf32> to vector<8x88xf32>
    %769 = vector.shape_cast %766 : vector<8x1xf32> to vector<8x1xf32>
    %770 = vector.broadcast %769 : vector<8x1xf32> to vector<8x88xf32>
    %771 = arith.select %705, %768, %770 : vector<8x88xi1>, vector<8x88xf32>
    %cst_280 = arith.constant 1.250000e-01 : f32
    %772 = vector.broadcast %cst_280 : f32 to vector<8x88xf32>
    %773 = arith.mulf %771, %772 : vector<8x88xf32>
    %cst_281 = arith.constant 0.000000e+00 : f32
    %774 = vector.broadcast %cst_281 : f32 to vector<8x32xf32>
    %775 = arith.select %708, %758, %774 : vector<8x32xi1>, vector<8x32xf32>
    %cst_282 = arith.constant dense<0.000000e+00> : vector<8xf32>
    %776 = vector.multi_reduction <add>, %775, %cst_282 [1] : vector<8x32xf32> to vector<8xf32>
    %777 = vector.shape_cast %776 : vector<8xf32> to vector<8x1xf32>
    %cst_283 = arith.constant 0.000000e+00 : f32
    %778 = vector.broadcast %cst_283 : f32 to vector<8x32xf32>
    %779 = arith.select %708, %778, %758 : vector<8x32xi1>, vector<8x32xf32>
    %cst_284 = arith.constant dense<0.000000e+00> : vector<8xf32>
    %780 = vector.multi_reduction <add>, %779, %cst_284 [1] : vector<8x32xf32> to vector<8xf32>
    %781 = vector.shape_cast %780 : vector<8xf32> to vector<8x1xf32>
    %782 = vector.shape_cast %777 : vector<8x1xf32> to vector<8x1xf32>
    %783 = vector.broadcast %782 : vector<8x1xf32> to vector<8x88xf32>
    %784 = vector.shape_cast %781 : vector<8x1xf32> to vector<8x1xf32>
    %785 = vector.broadcast %784 : vector<8x1xf32> to vector<8x88xf32>
    %786 = arith.select %705, %783, %785 : vector<8x88xi1>, vector<8x88xf32>
    %cst_285 = arith.constant 1.250000e-01 : f32
    %787 = vector.broadcast %cst_285 : f32 to vector<8x88xf32>
    %788 = arith.mulf %786, %787 : vector<8x88xf32>
    %cst_286 = arith.constant -1.000000e+30 : f32
    %789 = vector.broadcast %cst_286 : f32 to vector<8x88xf32>
    %790 = arith.select %705, %753, %789 : vector<8x88xi1>, vector<8x88xf32>
    %cst_287 = arith.constant dense<0xFF800000> : vector<8xf32>
    %791 = vector.multi_reduction <maximumf>, %790, %cst_287 [1] : vector<8x88xf32> to vector<8xf32>
    %792 = vector.shape_cast %791 : vector<8xf32> to vector<8x1xf32>
    %cst_288 = arith.constant -1.000000e+30 : f32
    %793 = vector.broadcast %cst_288 : f32 to vector<8x88xf32>
    %794 = arith.select %705, %793, %753 : vector<8x88xi1>, vector<8x88xf32>
    %cst_289 = arith.constant dense<0xFF800000> : vector<8xf32>
    %795 = vector.multi_reduction <maximumf>, %794, %cst_289 [1] : vector<8x88xf32> to vector<8xf32>
    %796 = vector.shape_cast %795 : vector<8xf32> to vector<8x1xf32>
    %797 = vector.shape_cast %792 : vector<8x1xf32> to vector<8x1xf32>
    %798 = vector.broadcast %797 : vector<8x1xf32> to vector<8x88xf32>
    %799 = vector.shape_cast %796 : vector<8x1xf32> to vector<8x1xf32>
    %800 = vector.broadcast %799 : vector<8x1xf32> to vector<8x88xf32>
    %801 = arith.select %705, %798, %800 : vector<8x88xi1>, vector<8x88xf32>
    %cst_290 = arith.constant dense<0xFF800000> : vector<8xf32>
    %802 = vector.multi_reduction <maximumf>, %756, %cst_290 [1] : vector<8x88xf32> to vector<8xf32>
    %803 = vector.shape_cast %802 : vector<8xf32> to vector<8x1xf32>
    %cst_291 = arith.constant dense<0xFF800000> : vector<1xf32>
    %804 = vector.multi_reduction <maximumf>, %803, %cst_291 [0] : vector<8x1xf32> to vector<1xf32>
    %805 = vector.shape_cast %804 : vector<1xf32> to vector<1x1xf32>
    %806 = arith.subf %753, %773 : vector<8x88xf32>
    %807 = arith.subf %806, %801 : vector<8x88xf32>
    %808 = math.exp %807 : vector<8x88xf32>
    %cst_292 = arith.constant 9.99999974E-5 : f32
    %809 = vector.broadcast %cst_292 : f32 to vector<8x88xf32>
    %810 = arith.addf %808, %809 : vector<8x88xf32>
    %cst_293 = arith.constant 0.150755674 : f32
    %811 = vector.broadcast %cst_293 : f32 to vector<8x88xf32>
    %812 = arith.mulf %811, %810 : vector<8x88xf32>
    %813 = arith.subf %756, %788 : vector<8x88xf32>
    %814 = vector.broadcast %805 : vector<1x1xf32> to vector<8x88xf32>
    %815 = arith.subf %813, %814 : vector<8x88xf32>
    %816 = math.exp %815 : vector<8x88xf32>
    %cst_294 = arith.constant 9.99999974E-5 : f32
    %817 = vector.broadcast %cst_294 : f32 to vector<8x88xf32>
    %818 = arith.addf %816, %817 : vector<8x88xf32>
    %cst_295 = arith.constant 0.150755674 : f32
    %819 = vector.broadcast %cst_295 : f32 to vector<8x88xf32>
    %820 = arith.mulf %819, %818 : vector<8x88xf32>
    %cst_296 = arith.constant dense<0.000000e+00> : vector<88xf32>
    %821 = vector.multi_reduction <add>, %820, %cst_296 [0] : vector<8x88xf32> to vector<88xf32>
    %822 = vector.shape_cast %821 : vector<88xf32> to vector<1x88xf32>
    %823 = vector.broadcast %822 : vector<1x88xf32> to vector<8x88xf32>
    %824 = arith.mulf %812, %823 : vector<8x88xf32>
    %cst_297 = arith.constant 0.000000e+00 : f32
    %825 = vector.broadcast %cst_297 : f32 to vector<8x88xf32>
    %826 = arith.select %705, %824, %825 : vector<8x88xi1>, vector<8x88xf32>
    %cst_298 = arith.constant dense<0.000000e+00> : vector<8xf32>
    %827 = vector.multi_reduction <add>, %826, %cst_298 [1] : vector<8x88xf32> to vector<8xf32>
    %828 = vector.shape_cast %827 : vector<8xf32> to vector<8x1xf32>
    %cst_299 = arith.constant 0.000000e+00 : f32
    %829 = vector.broadcast %cst_299 : f32 to vector<8x88xf32>
    %830 = arith.select %705, %829, %824 : vector<8x88xi1>, vector<8x88xf32>
    %cst_300 = arith.constant dense<0.000000e+00> : vector<8xf32>
    %831 = vector.multi_reduction <add>, %830, %cst_300 [1] : vector<8x88xf32> to vector<8xf32>
    %832 = vector.shape_cast %831 : vector<8xf32> to vector<8x1xf32>
    %cst_301 = arith.constant 1.000000e+00 : f32
    %833 = vector.broadcast %cst_301 : f32 to vector<8x1xf32>
    %834 = arith.divf %833, %828 : vector<8x1xf32>
    %cst_302 = arith.constant 1.000000e+00 : f32
    %835 = vector.broadcast %cst_302 : f32 to vector<8x1xf32>
    %836 = arith.divf %835, %832 : vector<8x1xf32>
    %837 = vector.shape_cast %834 : vector<8x1xf32> to vector<8x1xf32>
    %838 = vector.broadcast %837 : vector<8x1xf32> to vector<8x88xf32>
    %839 = vector.shape_cast %836 : vector<8x1xf32> to vector<8x1xf32>
    %840 = vector.broadcast %839 : vector<8x1xf32> to vector<8x88xf32>
    %841 = arith.select %705, %838, %840 : vector<8x88xi1>, vector<8x88xf32>
    %cst_303 = arith.constant dense<0.000000e+00> : vector<88x32xf32>
    %842 = tpu.matmul %820, %750, %cst_303 {dimension_numbers = #tpu.dot_dimension_numbers<[0], [0], [1], [1], [0, 1, 1, 1], [], []>} : vector<8x88xf32>, vector<8x32xf32>, vector<88x32xf32> -> vector<88x32xf32>
    %cst_304 = arith.constant 0.000000e+00 : f32
    %843 = vector.broadcast %cst_304 : f32 to vector<88x32xf32>
    %844 = arith.select %7, %842, %843 : vector<88x32xi1>, vector<88x32xf32>
    %845 = arith.mulf %812, %841 : vector<8x88xf32>
    %cst_305 = arith.constant dense<0.000000e+00> : vector<8x32xf32>
    %846 = tpu.matmul %845, %844, %cst_305 {dimension_numbers = #tpu.dot_dimension_numbers<[1], [0], [0], [1], [0, 0, 1, 1], [], []>} : vector<8x88xf32>, vector<88x32xf32>, vector<8x32xf32> -> vector<8x32xf32>
    %cst_306 = arith.constant dense<0.000000e+00> : vector<8x32xf32>
    %847 = tpu.matmul %846, %714, %cst_306 {dimension_numbers = #tpu.dot_dimension_numbers<[1], [0], [0], [1], [0, 0, 1, 1], [], []>} : vector<8x32xf32>, vector<32x32xf32>, vector<8x32xf32> -> vector<8x32xf32>
    %848 = vector.broadcast %715 : vector<1x32xf32> to vector<8x32xf32>
    %849 = arith.addf %847, %848 : vector<8x32xf32>
    %850 = arith.addf %702, %849 : vector<8x32xf32>
    %cst_307 = arith.constant dense<0.000000e+00> : vector<8xf32>
    %851 = vector.multi_reduction <add>, %850, %cst_307 [1] : vector<8x32xf32> to vector<8xf32>
    %852 = vector.shape_cast %851 : vector<8xf32> to vector<8x1xf32>
    %cst_308 = arith.constant 3.200000e+01 : f32
    %853 = vector.broadcast %cst_308 : f32 to vector<8x1xf32>
    %854 = arith.divf %852, %853 : vector<8x1xf32>
    %855 = vector.broadcast %854 : vector<8x1xf32> to vector<8x32xf32>
    %856 = arith.subf %850, %855 : vector<8x32xf32>
    %857 = arith.mulf %856, %856 : vector<8x32xf32>
    %cst_309 = arith.constant dense<0.000000e+00> : vector<8xf32>
    %858 = vector.multi_reduction <add>, %857, %cst_309 [1] : vector<8x32xf32> to vector<8xf32>
    %859 = vector.shape_cast %858 : vector<8xf32> to vector<8x1xf32>
    %cst_310 = arith.constant 3.200000e+01 : f32
    %860 = vector.broadcast %cst_310 : f32 to vector<8x1xf32>
    %861 = arith.divf %859, %860 : vector<8x1xf32>
    %862 = vector.broadcast %854 : vector<8x1xf32> to vector<8x32xf32>
    %863 = arith.subf %850, %862 : vector<8x32xf32>
    %cst_311 = arith.constant 9.99999974E-6 : f32
    %864 = vector.broadcast %cst_311 : f32 to vector<8x1xf32>
    %865 = arith.addf %861, %864 : vector<8x1xf32>
    %866 = math.rsqrt %865 : vector<8x1xf32>
    %867 = vector.broadcast %866 : vector<8x1xf32> to vector<8x32xf32>
    %868 = arith.mulf %863, %867 : vector<8x32xf32>
    %869 = vector.broadcast %710 : vector<1x32xf32> to vector<8x32xf32>
    %870 = arith.mulf %868, %869 : vector<8x32xf32>
    %871 = vector.broadcast %711 : vector<1x32xf32> to vector<8x32xf32>
    %872 = arith.addf %870, %871 : vector<8x32xf32>
    %cst_312 = arith.constant dense<0.000000e+00> : vector<8x96xf32>
    %873 = tpu.matmul %872, %712, %cst_312 {dimension_numbers = #tpu.dot_dimension_numbers<[1], [0], [0], [1], [0, 0, 1, 1], [], []>} : vector<8x32xf32>, vector<32x96xf32>, vector<8x96xf32> -> vector<8x96xf32>
    %874 = vector.broadcast %713 : vector<1x96xf32> to vector<8x96xf32>
    %875 = arith.addf %873, %874 : vector<8x96xf32>
    %876 = vector.extract_strided_slice %875 {offsets = [0, 0], sizes = [8, 32], strides = [1, 1]} : vector<8x96xf32> to vector<8x32xf32>
    %877 = vector.extract_strided_slice %875 {offsets = [0, 32], sizes = [8, 32], strides = [1, 1]} : vector<8x96xf32> to vector<8x32xf32>
    %cst_313 = arith.constant 5.000000e-01 : f32
    %878 = vector.broadcast %cst_313 : f32 to vector<8x32xf32>
    %879 = arith.mulf %876, %878 : vector<8x32xf32>
    %cst_314 = arith.constant dense<0.000000e+00> : vector<8x88xf32>
    %880 = tpu.matmul %879, %716, %cst_314 {dimension_numbers = #tpu.dot_dimension_numbers<[1], [0], [0], [1], [0, 0, 1, 1], [], []>} : vector<8x32xf32>, vector<32x88xf32>, vector<8x88xf32> -> vector<8x88xf32>
    %cst_315 = arith.constant 5.000000e-01 : f32
    %881 = vector.broadcast %cst_315 : f32 to vector<8x32xf32>
    %882 = arith.mulf %877, %881 : vector<8x32xf32>
    %cst_316 = arith.constant dense<0.000000e+00> : vector<8x88xf32>
    %883 = tpu.matmul %882, %716, %cst_316 {dimension_numbers = #tpu.dot_dimension_numbers<[1], [0], [0], [1], [0, 0, 1, 1], [], []>} : vector<8x32xf32>, vector<32x88xf32>, vector<8x88xf32> -> vector<8x88xf32>
    %884 = arith.mulf %876, %876 : vector<8x32xf32>
    %885 = arith.mulf %877, %877 : vector<8x32xf32>
    %cst_317 = arith.constant 0.000000e+00 : f32
    %886 = vector.broadcast %cst_317 : f32 to vector<8x32xf32>
    %887 = arith.select %708, %884, %886 : vector<8x32xi1>, vector<8x32xf32>
    %cst_318 = arith.constant dense<0.000000e+00> : vector<8xf32>
    %888 = vector.multi_reduction <add>, %887, %cst_318 [1] : vector<8x32xf32> to vector<8xf32>
    %889 = vector.shape_cast %888 : vector<8xf32> to vector<8x1xf32>
    %cst_319 = arith.constant 0.000000e+00 : f32
    %890 = vector.broadcast %cst_319 : f32 to vector<8x32xf32>
    %891 = arith.select %708, %890, %884 : vector<8x32xi1>, vector<8x32xf32>
    %cst_320 = arith.constant dense<0.000000e+00> : vector<8xf32>
    %892 = vector.multi_reduction <add>, %891, %cst_320 [1] : vector<8x32xf32> to vector<8xf32>
    %893 = vector.shape_cast %892 : vector<8xf32> to vector<8x1xf32>
    %894 = vector.shape_cast %889 : vector<8x1xf32> to vector<8x1xf32>
    %895 = vector.broadcast %894 : vector<8x1xf32> to vector<8x88xf32>
    %896 = vector.shape_cast %893 : vector<8x1xf32> to vector<8x1xf32>
    %897 = vector.broadcast %896 : vector<8x1xf32> to vector<8x88xf32>
    %898 = arith.select %705, %895, %897 : vector<8x88xi1>, vector<8x88xf32>
    %cst_321 = arith.constant 1.250000e-01 : f32
    %899 = vector.broadcast %cst_321 : f32 to vector<8x88xf32>
    %900 = arith.mulf %898, %899 : vector<8x88xf32>
    %cst_322 = arith.constant 0.000000e+00 : f32
    %901 = vector.broadcast %cst_322 : f32 to vector<8x32xf32>
    %902 = arith.select %708, %885, %901 : vector<8x32xi1>, vector<8x32xf32>
    %cst_323 = arith.constant dense<0.000000e+00> : vector<8xf32>
    %903 = vector.multi_reduction <add>, %902, %cst_323 [1] : vector<8x32xf32> to vector<8xf32>
    %904 = vector.shape_cast %903 : vector<8xf32> to vector<8x1xf32>
    %cst_324 = arith.constant 0.000000e+00 : f32
    %905 = vector.broadcast %cst_324 : f32 to vector<8x32xf32>
    %906 = arith.select %708, %905, %885 : vector<8x32xi1>, vector<8x32xf32>
    %cst_325 = arith.constant dense<0.000000e+00> : vector<8xf32>
    %907 = vector.multi_reduction <add>, %906, %cst_325 [1] : vector<8x32xf32> to vector<8xf32>
    %908 = vector.shape_cast %907 : vector<8xf32> to vector<8x1xf32>
    %909 = vector.shape_cast %904 : vector<8x1xf32> to vector<8x1xf32>
    %910 = vector.broadcast %909 : vector<8x1xf32> to vector<8x88xf32>
    %911 = vector.shape_cast %908 : vector<8x1xf32> to vector<8x1xf32>
    %912 = vector.broadcast %911 : vector<8x1xf32> to vector<8x88xf32>
    %913 = arith.select %705, %910, %912 : vector<8x88xi1>, vector<8x88xf32>
    %cst_326 = arith.constant 1.250000e-01 : f32
    %914 = vector.broadcast %cst_326 : f32 to vector<8x88xf32>
    %915 = arith.mulf %913, %914 : vector<8x88xf32>
    %cst_327 = arith.constant -1.000000e+30 : f32
    %916 = vector.broadcast %cst_327 : f32 to vector<8x88xf32>
    %917 = arith.select %705, %880, %916 : vector<8x88xi1>, vector<8x88xf32>
    %cst_328 = arith.constant dense<0xFF800000> : vector<8xf32>
    %918 = vector.multi_reduction <maximumf>, %917, %cst_328 [1] : vector<8x88xf32> to vector<8xf32>
    %919 = vector.shape_cast %918 : vector<8xf32> to vector<8x1xf32>
    %cst_329 = arith.constant -1.000000e+30 : f32
    %920 = vector.broadcast %cst_329 : f32 to vector<8x88xf32>
    %921 = arith.select %705, %920, %880 : vector<8x88xi1>, vector<8x88xf32>
    %cst_330 = arith.constant dense<0xFF800000> : vector<8xf32>
    %922 = vector.multi_reduction <maximumf>, %921, %cst_330 [1] : vector<8x88xf32> to vector<8xf32>
    %923 = vector.shape_cast %922 : vector<8xf32> to vector<8x1xf32>
    %924 = vector.shape_cast %919 : vector<8x1xf32> to vector<8x1xf32>
    %925 = vector.broadcast %924 : vector<8x1xf32> to vector<8x88xf32>
    %926 = vector.shape_cast %923 : vector<8x1xf32> to vector<8x1xf32>
    %927 = vector.broadcast %926 : vector<8x1xf32> to vector<8x88xf32>
    %928 = arith.select %705, %925, %927 : vector<8x88xi1>, vector<8x88xf32>
    %cst_331 = arith.constant dense<0xFF800000> : vector<8xf32>
    %929 = vector.multi_reduction <maximumf>, %883, %cst_331 [1] : vector<8x88xf32> to vector<8xf32>
    %930 = vector.shape_cast %929 : vector<8xf32> to vector<8x1xf32>
    %cst_332 = arith.constant dense<0xFF800000> : vector<1xf32>
    %931 = vector.multi_reduction <maximumf>, %930, %cst_332 [0] : vector<8x1xf32> to vector<1xf32>
    %932 = vector.shape_cast %931 : vector<1xf32> to vector<1x1xf32>
    %933 = arith.subf %880, %900 : vector<8x88xf32>
    %934 = arith.subf %933, %928 : vector<8x88xf32>
    %935 = math.exp %934 : vector<8x88xf32>
    %cst_333 = arith.constant 9.99999974E-5 : f32
    %936 = vector.broadcast %cst_333 : f32 to vector<8x88xf32>
    %937 = arith.addf %935, %936 : vector<8x88xf32>
    %cst_334 = arith.constant 0.150755674 : f32
    %938 = vector.broadcast %cst_334 : f32 to vector<8x88xf32>
    %939 = arith.mulf %938, %937 : vector<8x88xf32>
    %940 = arith.subf %883, %915 : vector<8x88xf32>
    %941 = vector.broadcast %932 : vector<1x1xf32> to vector<8x88xf32>
    %942 = arith.subf %940, %941 : vector<8x88xf32>
    %943 = math.exp %942 : vector<8x88xf32>
    %cst_335 = arith.constant 9.99999974E-5 : f32
    %944 = vector.broadcast %cst_335 : f32 to vector<8x88xf32>
    %945 = arith.addf %943, %944 : vector<8x88xf32>
    %cst_336 = arith.constant 0.150755674 : f32
    %946 = vector.broadcast %cst_336 : f32 to vector<8x88xf32>
    %947 = arith.mulf %946, %945 : vector<8x88xf32>
    %cst_337 = arith.constant dense<0.000000e+00> : vector<88xf32>
    %948 = vector.multi_reduction <add>, %947, %cst_337 [0] : vector<8x88xf32> to vector<88xf32>
    %949 = vector.shape_cast %948 : vector<88xf32> to vector<1x88xf32>
    %950 = vector.broadcast %949 : vector<1x88xf32> to vector<8x88xf32>
    %951 = arith.mulf %939, %950 : vector<8x88xf32>
    %cst_338 = arith.constant 0.000000e+00 : f32
    %952 = vector.broadcast %cst_338 : f32 to vector<8x88xf32>
    %953 = arith.select %705, %951, %952 : vector<8x88xi1>, vector<8x88xf32>
    %cst_339 = arith.constant dense<0.000000e+00> : vector<8xf32>
    %954 = vector.multi_reduction <add>, %953, %cst_339 [1] : vector<8x88xf32> to vector<8xf32>
    %955 = vector.shape_cast %954 : vector<8xf32> to vector<8x1xf32>
    %cst_340 = arith.constant 0.000000e+00 : f32
    %956 = vector.broadcast %cst_340 : f32 to vector<8x88xf32>
    %957 = arith.select %705, %956, %951 : vector<8x88xi1>, vector<8x88xf32>
    %cst_341 = arith.constant dense<0.000000e+00> : vector<8xf32>
    %958 = vector.multi_reduction <add>, %957, %cst_341 [1] : vector<8x88xf32> to vector<8xf32>
    %959 = vector.shape_cast %958 : vector<8xf32> to vector<8x1xf32>
    %cst_342 = arith.constant 1.000000e+00 : f32
    %960 = vector.broadcast %cst_342 : f32 to vector<8x1xf32>
    %961 = arith.divf %960, %955 : vector<8x1xf32>
    %cst_343 = arith.constant 1.000000e+00 : f32
    %962 = vector.broadcast %cst_343 : f32 to vector<8x1xf32>
    %963 = arith.divf %962, %959 : vector<8x1xf32>
    %964 = vector.shape_cast %961 : vector<8x1xf32> to vector<8x1xf32>
    %965 = vector.broadcast %964 : vector<8x1xf32> to vector<8x88xf32>
    %966 = vector.shape_cast %963 : vector<8x1xf32> to vector<8x1xf32>
    %967 = vector.broadcast %966 : vector<8x1xf32> to vector<8x88xf32>
    %968 = arith.select %705, %965, %967 : vector<8x88xi1>, vector<8x88xf32>
    %969 = arith.mulf %939, %968 : vector<8x88xf32>
    %cst_344 = arith.constant dense<0.000000e+00> : vector<8x8xf32>
    %970 = tpu.matmul %969, %947, %cst_344 {dimension_numbers = #tpu.dot_dimension_numbers<[1], [1], [0], [0], [0, 0, 1, 0], [], []>} : vector<8x88xf32>, vector<8x88xf32>, vector<8x8xf32> -> vector<8x8xf32>
    %cst_345 = arith.constant 5.000000e-01 : f32
    %971 = vector.broadcast %cst_345 : f32 to vector<8x8xf32>
    %972 = arith.mulf %970, %971 : vector<8x8xf32>
    %973 = arith.addf %709, %972 : vector<8x8xf32>
    %cst_346 = arith.constant dense<0.000000e+00> : vector<8xf32>
    %974 = vector.multi_reduction <add>, %850, %cst_346 [1] : vector<8x32xf32> to vector<8xf32>
    %975 = vector.shape_cast %974 : vector<8xf32> to vector<8x1xf32>
    %cst_347 = arith.constant 3.200000e+01 : f32
    %976 = vector.broadcast %cst_347 : f32 to vector<8x1xf32>
    %977 = arith.divf %975, %976 : vector<8x1xf32>
    %978 = vector.broadcast %977 : vector<8x1xf32> to vector<8x32xf32>
    %979 = arith.subf %850, %978 : vector<8x32xf32>
    %980 = arith.mulf %979, %979 : vector<8x32xf32>
    %cst_348 = arith.constant dense<0.000000e+00> : vector<8xf32>
    %981 = vector.multi_reduction <add>, %980, %cst_348 [1] : vector<8x32xf32> to vector<8xf32>
    %982 = vector.shape_cast %981 : vector<8xf32> to vector<8x1xf32>
    %cst_349 = arith.constant 3.200000e+01 : f32
    %983 = vector.broadcast %cst_349 : f32 to vector<8x1xf32>
    %984 = arith.divf %982, %983 : vector<8x1xf32>
    %985 = vector.broadcast %977 : vector<8x1xf32> to vector<8x32xf32>
    %986 = arith.subf %850, %985 : vector<8x32xf32>
    %cst_350 = arith.constant 9.99999974E-6 : f32
    %987 = vector.broadcast %cst_350 : f32 to vector<8x1xf32>
    %988 = arith.addf %984, %987 : vector<8x1xf32>
    %989 = math.rsqrt %988 : vector<8x1xf32>
    %990 = vector.broadcast %989 : vector<8x1xf32> to vector<8x32xf32>
    %991 = arith.mulf %986, %990 : vector<8x32xf32>
    %992 = vector.broadcast %717 : vector<1x32xf32> to vector<8x32xf32>
    %993 = arith.mulf %991, %992 : vector<8x32xf32>
    %994 = vector.broadcast %718 : vector<1x32xf32> to vector<8x32xf32>
    %995 = arith.addf %993, %994 : vector<8x32xf32>
    %cst_351 = arith.constant dense<0.000000e+00> : vector<8x128xf32>
    %996 = tpu.matmul %995, %719, %cst_351 {dimension_numbers = #tpu.dot_dimension_numbers<[1], [0], [0], [1], [0, 0, 1, 1], [], []>} : vector<8x32xf32>, vector<32x128xf32>, vector<8x128xf32> -> vector<8x128xf32>
    %997 = vector.broadcast %720 : vector<1x128xf32> to vector<8x128xf32>
    %998 = arith.addf %996, %997 : vector<8x128xf32>
    %cst_352 = arith.constant 5.000000e-01 : f32
    %999 = vector.broadcast %cst_352 : f32 to vector<8x128xf32>
    %1000 = arith.mulf %998, %999 : vector<8x128xf32>
    %cst_353 = arith.constant 0.707106769 : f32
    %1001 = vector.broadcast %cst_353 : f32 to vector<8x128xf32>
    %1002 = arith.mulf %998, %1001 : vector<8x128xf32>
    %cst_354 = arith.constant 0.000000e+00 : f32
    %1003 = vector.broadcast %cst_354 : f32 to vector<8x128xf32>
    %1004 = arith.cmpf oge, %1002, %1003 : vector<8x128xf32>
    %cst_355 = arith.constant 1.000000e+00 : f32
    %cst_356 = arith.constant -1.000000e+00 : f32
    %1005 = vector.broadcast %cst_355 : f32 to vector<8x128xf32>
    %1006 = vector.broadcast %cst_356 : f32 to vector<8x128xf32>
    %1007 = arith.select %1004, %1005, %1006 : vector<8x128xi1>, vector<8x128xf32>
    %1008 = math.absf %1002 : vector<8x128xf32>
    %cst_357 = arith.constant 0.327591091 : f32
    %1009 = vector.broadcast %cst_357 : f32 to vector<8x128xf32>
    %1010 = arith.mulf %1009, %1008 : vector<8x128xf32>
    %cst_358 = arith.constant 1.000000e+00 : f32
    %1011 = vector.broadcast %cst_358 : f32 to vector<8x128xf32>
    %1012 = arith.addf %1011, %1010 : vector<8x128xf32>
    %cst_359 = arith.constant 1.000000e+00 : f32
    %1013 = vector.broadcast %cst_359 : f32 to vector<8x128xf32>
    %1014 = arith.divf %1013, %1012 : vector<8x128xf32>
    %cst_360 = arith.constant 1.06140542 : f32
    %1015 = vector.broadcast %cst_360 : f32 to vector<8x128xf32>
    %1016 = arith.mulf %1015, %1014 : vector<8x128xf32>
    %cst_361 = arith.constant -1.45315206 : f32
    %1017 = vector.broadcast %cst_361 : f32 to vector<8x128xf32>
    %1018 = arith.addf %1016, %1017 : vector<8x128xf32>
    %1019 = arith.mulf %1018, %1014 : vector<8x128xf32>
    %cst_362 = arith.constant 1.42141378 : f32
    %1020 = vector.broadcast %cst_362 : f32 to vector<8x128xf32>
    %1021 = arith.addf %1019, %1020 : vector<8x128xf32>
    %1022 = arith.mulf %1021, %1014 : vector<8x128xf32>
    %cst_363 = arith.constant -0.284496725 : f32
    %1023 = vector.broadcast %cst_363 : f32 to vector<8x128xf32>
    %1024 = arith.addf %1022, %1023 : vector<8x128xf32>
    %1025 = arith.mulf %1024, %1014 : vector<8x128xf32>
    %cst_364 = arith.constant 0.254829586 : f32
    %1026 = vector.broadcast %cst_364 : f32 to vector<8x128xf32>
    %1027 = arith.addf %1025, %1026 : vector<8x128xf32>
    %1028 = arith.mulf %1027, %1014 : vector<8x128xf32>
    %cst_365 = arith.constant 0.000000e+00 : f32
    %1029 = vector.broadcast %cst_365 : f32 to vector<8x128xf32>
    %1030 = arith.subf %1029, %1008 : vector<8x128xf32>
    %1031 = arith.mulf %1030, %1008 : vector<8x128xf32>
    %1032 = math.exp %1031 : vector<8x128xf32>
    %1033 = arith.mulf %1028, %1032 : vector<8x128xf32>
    %cst_366 = arith.constant 1.000000e+00 : f32
    %1034 = vector.broadcast %cst_366 : f32 to vector<8x128xf32>
    %1035 = arith.subf %1034, %1033 : vector<8x128xf32>
    %1036 = arith.mulf %1007, %1035 : vector<8x128xf32>
    %cst_367 = arith.constant 1.000000e+00 : f32
    %1037 = vector.broadcast %cst_367 : f32 to vector<8x128xf32>
    %1038 = arith.addf %1037, %1036 : vector<8x128xf32>
    %1039 = arith.mulf %1000, %1038 : vector<8x128xf32>
    %cst_368 = arith.constant dense<0.000000e+00> : vector<8x32xf32>
    %1040 = tpu.matmul %1039, %721, %cst_368 {dimension_numbers = #tpu.dot_dimension_numbers<[1], [0], [0], [1], [0, 0, 1, 1], [], []>} : vector<8x128xf32>, vector<128x32xf32>, vector<8x32xf32> -> vector<8x32xf32>
    %1041 = vector.broadcast %722 : vector<1x32xf32> to vector<8x32xf32>
    %1042 = arith.addf %1040, %1041 : vector<8x32xf32>
    %1043 = arith.addf %850, %1042 : vector<8x32xf32>
    %c960 = arith.constant 960 : index
    %c0_369 = arith.constant 0 : index
    %1044 = vector.load %arg2[%c960, %c0_369] : memref<1352x128xf32, #tpu.memory_space<vmem>>, vector<1x32xf32>
    %c968 = arith.constant 968 : index
    %c0_370 = arith.constant 0 : index
    %1045 = vector.load %arg2[%c968, %c0_370] : memref<1352x128xf32, #tpu.memory_space<vmem>>, vector<1x32xf32>
    %c976 = arith.constant 976 : index
    %c0_371 = arith.constant 0 : index
    %1046 = vector.load %arg2[%c976, %c0_371] : memref<1352x128xf32, #tpu.memory_space<vmem>>, vector<32x96xf32>
    %c1008 = arith.constant 1008 : index
    %c0_372 = arith.constant 0 : index
    %1047 = vector.load %arg2[%c1008, %c0_372] : memref<1352x128xf32, #tpu.memory_space<vmem>>, vector<1x96xf32>
    %c1016 = arith.constant 1016 : index
    %c0_373 = arith.constant 0 : index
    %1048 = vector.load %arg2[%c1016, %c0_373] : memref<1352x128xf32, #tpu.memory_space<vmem>>, vector<32x32xf32>
    %c1048 = arith.constant 1048 : index
    %c0_374 = arith.constant 0 : index
    %1049 = vector.load %arg2[%c1048, %c0_374] : memref<1352x128xf32, #tpu.memory_space<vmem>>, vector<1x32xf32>
    %c1056 = arith.constant 1056 : index
    %c0_375 = arith.constant 0 : index
    %1050 = vector.load %arg2[%c1056, %c0_375] : memref<1352x128xf32, #tpu.memory_space<vmem>>, vector<32x88xf32>
    %cst_376 = arith.constant dense<0.000000e+00> : vector<8xf32>
    %1051 = vector.multi_reduction <add>, %1043, %cst_376 [1] : vector<8x32xf32> to vector<8xf32>
    %1052 = vector.shape_cast %1051 : vector<8xf32> to vector<8x1xf32>
    %cst_377 = arith.constant 3.200000e+01 : f32
    %1053 = vector.broadcast %cst_377 : f32 to vector<8x1xf32>
    %1054 = arith.divf %1052, %1053 : vector<8x1xf32>
    %1055 = vector.broadcast %1054 : vector<8x1xf32> to vector<8x32xf32>
    %1056 = arith.subf %1043, %1055 : vector<8x32xf32>
    %1057 = arith.mulf %1056, %1056 : vector<8x32xf32>
    %cst_378 = arith.constant dense<0.000000e+00> : vector<8xf32>
    %1058 = vector.multi_reduction <add>, %1057, %cst_378 [1] : vector<8x32xf32> to vector<8xf32>
    %1059 = vector.shape_cast %1058 : vector<8xf32> to vector<8x1xf32>
    %cst_379 = arith.constant 3.200000e+01 : f32
    %1060 = vector.broadcast %cst_379 : f32 to vector<8x1xf32>
    %1061 = arith.divf %1059, %1060 : vector<8x1xf32>
    %1062 = vector.broadcast %1054 : vector<8x1xf32> to vector<8x32xf32>
    %1063 = arith.subf %1043, %1062 : vector<8x32xf32>
    %cst_380 = arith.constant 9.99999974E-6 : f32
    %1064 = vector.broadcast %cst_380 : f32 to vector<8x1xf32>
    %1065 = arith.addf %1061, %1064 : vector<8x1xf32>
    %1066 = math.rsqrt %1065 : vector<8x1xf32>
    %1067 = vector.broadcast %1066 : vector<8x1xf32> to vector<8x32xf32>
    %1068 = arith.mulf %1063, %1067 : vector<8x32xf32>
    %1069 = vector.broadcast %1044 : vector<1x32xf32> to vector<8x32xf32>
    %1070 = arith.mulf %1068, %1069 : vector<8x32xf32>
    %1071 = vector.broadcast %1045 : vector<1x32xf32> to vector<8x32xf32>
    %1072 = arith.addf %1070, %1071 : vector<8x32xf32>
    %cst_381 = arith.constant dense<0.000000e+00> : vector<8x96xf32>
    %1073 = tpu.matmul %1072, %1046, %cst_381 {dimension_numbers = #tpu.dot_dimension_numbers<[1], [0], [0], [1], [0, 0, 1, 1], [], []>} : vector<8x32xf32>, vector<32x96xf32>, vector<8x96xf32> -> vector<8x96xf32>
    %1074 = vector.broadcast %1047 : vector<1x96xf32> to vector<8x96xf32>
    %1075 = arith.addf %1073, %1074 : vector<8x96xf32>
    %1076 = vector.extract_strided_slice %1075 {offsets = [0, 0], sizes = [8, 32], strides = [1, 1]} : vector<8x96xf32> to vector<8x32xf32>
    %1077 = vector.extract_strided_slice %1075 {offsets = [0, 32], sizes = [8, 32], strides = [1, 1]} : vector<8x96xf32> to vector<8x32xf32>
    %1078 = vector.extract_strided_slice %1075 {offsets = [0, 64], sizes = [8, 32], strides = [1, 1]} : vector<8x96xf32> to vector<8x32xf32>
    %cst_382 = arith.constant 5.000000e-01 : f32
    %1079 = vector.broadcast %cst_382 : f32 to vector<8x32xf32>
    %1080 = arith.mulf %1076, %1079 : vector<8x32xf32>
    %cst_383 = arith.constant dense<0.000000e+00> : vector<8x88xf32>
    %1081 = tpu.matmul %1080, %1050, %cst_383 {dimension_numbers = #tpu.dot_dimension_numbers<[1], [0], [0], [1], [0, 0, 1, 1], [], []>} : vector<8x32xf32>, vector<32x88xf32>, vector<8x88xf32> -> vector<8x88xf32>
    %cst_384 = arith.constant 5.000000e-01 : f32
    %1082 = vector.broadcast %cst_384 : f32 to vector<8x32xf32>
    %1083 = arith.mulf %1077, %1082 : vector<8x32xf32>
    %cst_385 = arith.constant dense<0.000000e+00> : vector<8x88xf32>
    %1084 = tpu.matmul %1083, %1050, %cst_385 {dimension_numbers = #tpu.dot_dimension_numbers<[1], [0], [0], [1], [0, 0, 1, 1], [], []>} : vector<8x32xf32>, vector<32x88xf32>, vector<8x88xf32> -> vector<8x88xf32>
    %1085 = arith.mulf %1076, %1076 : vector<8x32xf32>
    %1086 = arith.mulf %1077, %1077 : vector<8x32xf32>
    %cst_386 = arith.constant 0.000000e+00 : f32
    %1087 = vector.broadcast %cst_386 : f32 to vector<8x32xf32>
    %1088 = arith.select %708, %1085, %1087 : vector<8x32xi1>, vector<8x32xf32>
    %cst_387 = arith.constant dense<0.000000e+00> : vector<8xf32>
    %1089 = vector.multi_reduction <add>, %1088, %cst_387 [1] : vector<8x32xf32> to vector<8xf32>
    %1090 = vector.shape_cast %1089 : vector<8xf32> to vector<8x1xf32>
    %cst_388 = arith.constant 0.000000e+00 : f32
    %1091 = vector.broadcast %cst_388 : f32 to vector<8x32xf32>
    %1092 = arith.select %708, %1091, %1085 : vector<8x32xi1>, vector<8x32xf32>
    %cst_389 = arith.constant dense<0.000000e+00> : vector<8xf32>
    %1093 = vector.multi_reduction <add>, %1092, %cst_389 [1] : vector<8x32xf32> to vector<8xf32>
    %1094 = vector.shape_cast %1093 : vector<8xf32> to vector<8x1xf32>
    %1095 = vector.shape_cast %1090 : vector<8x1xf32> to vector<8x1xf32>
    %1096 = vector.broadcast %1095 : vector<8x1xf32> to vector<8x88xf32>
    %1097 = vector.shape_cast %1094 : vector<8x1xf32> to vector<8x1xf32>
    %1098 = vector.broadcast %1097 : vector<8x1xf32> to vector<8x88xf32>
    %1099 = arith.select %705, %1096, %1098 : vector<8x88xi1>, vector<8x88xf32>
    %cst_390 = arith.constant 1.250000e-01 : f32
    %1100 = vector.broadcast %cst_390 : f32 to vector<8x88xf32>
    %1101 = arith.mulf %1099, %1100 : vector<8x88xf32>
    %cst_391 = arith.constant 0.000000e+00 : f32
    %1102 = vector.broadcast %cst_391 : f32 to vector<8x32xf32>
    %1103 = arith.select %708, %1086, %1102 : vector<8x32xi1>, vector<8x32xf32>
    %cst_392 = arith.constant dense<0.000000e+00> : vector<8xf32>
    %1104 = vector.multi_reduction <add>, %1103, %cst_392 [1] : vector<8x32xf32> to vector<8xf32>
    %1105 = vector.shape_cast %1104 : vector<8xf32> to vector<8x1xf32>
    %cst_393 = arith.constant 0.000000e+00 : f32
    %1106 = vector.broadcast %cst_393 : f32 to vector<8x32xf32>
    %1107 = arith.select %708, %1106, %1086 : vector<8x32xi1>, vector<8x32xf32>
    %cst_394 = arith.constant dense<0.000000e+00> : vector<8xf32>
    %1108 = vector.multi_reduction <add>, %1107, %cst_394 [1] : vector<8x32xf32> to vector<8xf32>
    %1109 = vector.shape_cast %1108 : vector<8xf32> to vector<8x1xf32>
    %1110 = vector.shape_cast %1105 : vector<8x1xf32> to vector<8x1xf32>
    %1111 = vector.broadcast %1110 : vector<8x1xf32> to vector<8x88xf32>
    %1112 = vector.shape_cast %1109 : vector<8x1xf32> to vector<8x1xf32>
    %1113 = vector.broadcast %1112 : vector<8x1xf32> to vector<8x88xf32>
    %1114 = arith.select %705, %1111, %1113 : vector<8x88xi1>, vector<8x88xf32>
    %cst_395 = arith.constant 1.250000e-01 : f32
    %1115 = vector.broadcast %cst_395 : f32 to vector<8x88xf32>
    %1116 = arith.mulf %1114, %1115 : vector<8x88xf32>
    %cst_396 = arith.constant -1.000000e+30 : f32
    %1117 = vector.broadcast %cst_396 : f32 to vector<8x88xf32>
    %1118 = arith.select %705, %1081, %1117 : vector<8x88xi1>, vector<8x88xf32>
    %cst_397 = arith.constant dense<0xFF800000> : vector<8xf32>
    %1119 = vector.multi_reduction <maximumf>, %1118, %cst_397 [1] : vector<8x88xf32> to vector<8xf32>
    %1120 = vector.shape_cast %1119 : vector<8xf32> to vector<8x1xf32>
    %cst_398 = arith.constant -1.000000e+30 : f32
    %1121 = vector.broadcast %cst_398 : f32 to vector<8x88xf32>
    %1122 = arith.select %705, %1121, %1081 : vector<8x88xi1>, vector<8x88xf32>
    %cst_399 = arith.constant dense<0xFF800000> : vector<8xf32>
    %1123 = vector.multi_reduction <maximumf>, %1122, %cst_399 [1] : vector<8x88xf32> to vector<8xf32>
    %1124 = vector.shape_cast %1123 : vector<8xf32> to vector<8x1xf32>
    %1125 = vector.shape_cast %1120 : vector<8x1xf32> to vector<8x1xf32>
    %1126 = vector.broadcast %1125 : vector<8x1xf32> to vector<8x88xf32>
    %1127 = vector.shape_cast %1124 : vector<8x1xf32> to vector<8x1xf32>
    %1128 = vector.broadcast %1127 : vector<8x1xf32> to vector<8x88xf32>
    %1129 = arith.select %705, %1126, %1128 : vector<8x88xi1>, vector<8x88xf32>
    %cst_400 = arith.constant dense<0xFF800000> : vector<8xf32>
    %1130 = vector.multi_reduction <maximumf>, %1084, %cst_400 [1] : vector<8x88xf32> to vector<8xf32>
    %1131 = vector.shape_cast %1130 : vector<8xf32> to vector<8x1xf32>
    %cst_401 = arith.constant dense<0xFF800000> : vector<1xf32>
    %1132 = vector.multi_reduction <maximumf>, %1131, %cst_401 [0] : vector<8x1xf32> to vector<1xf32>
    %1133 = vector.shape_cast %1132 : vector<1xf32> to vector<1x1xf32>
    %1134 = arith.subf %1081, %1101 : vector<8x88xf32>
    %1135 = arith.subf %1134, %1129 : vector<8x88xf32>
    %1136 = math.exp %1135 : vector<8x88xf32>
    %cst_402 = arith.constant 9.99999974E-5 : f32
    %1137 = vector.broadcast %cst_402 : f32 to vector<8x88xf32>
    %1138 = arith.addf %1136, %1137 : vector<8x88xf32>
    %cst_403 = arith.constant 0.150755674 : f32
    %1139 = vector.broadcast %cst_403 : f32 to vector<8x88xf32>
    %1140 = arith.mulf %1139, %1138 : vector<8x88xf32>
    %1141 = arith.subf %1084, %1116 : vector<8x88xf32>
    %1142 = vector.broadcast %1133 : vector<1x1xf32> to vector<8x88xf32>
    %1143 = arith.subf %1141, %1142 : vector<8x88xf32>
    %1144 = math.exp %1143 : vector<8x88xf32>
    %cst_404 = arith.constant 9.99999974E-5 : f32
    %1145 = vector.broadcast %cst_404 : f32 to vector<8x88xf32>
    %1146 = arith.addf %1144, %1145 : vector<8x88xf32>
    %cst_405 = arith.constant 0.150755674 : f32
    %1147 = vector.broadcast %cst_405 : f32 to vector<8x88xf32>
    %1148 = arith.mulf %1147, %1146 : vector<8x88xf32>
    %cst_406 = arith.constant dense<0.000000e+00> : vector<88xf32>
    %1149 = vector.multi_reduction <add>, %1148, %cst_406 [0] : vector<8x88xf32> to vector<88xf32>
    %1150 = vector.shape_cast %1149 : vector<88xf32> to vector<1x88xf32>
    %1151 = vector.broadcast %1150 : vector<1x88xf32> to vector<8x88xf32>
    %1152 = arith.mulf %1140, %1151 : vector<8x88xf32>
    %cst_407 = arith.constant 0.000000e+00 : f32
    %1153 = vector.broadcast %cst_407 : f32 to vector<8x88xf32>
    %1154 = arith.select %705, %1152, %1153 : vector<8x88xi1>, vector<8x88xf32>
    %cst_408 = arith.constant dense<0.000000e+00> : vector<8xf32>
    %1155 = vector.multi_reduction <add>, %1154, %cst_408 [1] : vector<8x88xf32> to vector<8xf32>
    %1156 = vector.shape_cast %1155 : vector<8xf32> to vector<8x1xf32>
    %cst_409 = arith.constant 0.000000e+00 : f32
    %1157 = vector.broadcast %cst_409 : f32 to vector<8x88xf32>
    %1158 = arith.select %705, %1157, %1152 : vector<8x88xi1>, vector<8x88xf32>
    %cst_410 = arith.constant dense<0.000000e+00> : vector<8xf32>
    %1159 = vector.multi_reduction <add>, %1158, %cst_410 [1] : vector<8x88xf32> to vector<8xf32>
    %1160 = vector.shape_cast %1159 : vector<8xf32> to vector<8x1xf32>
    %cst_411 = arith.constant 1.000000e+00 : f32
    %1161 = vector.broadcast %cst_411 : f32 to vector<8x1xf32>
    %1162 = arith.divf %1161, %1156 : vector<8x1xf32>
    %cst_412 = arith.constant 1.000000e+00 : f32
    %1163 = vector.broadcast %cst_412 : f32 to vector<8x1xf32>
    %1164 = arith.divf %1163, %1160 : vector<8x1xf32>
    %1165 = vector.shape_cast %1162 : vector<8x1xf32> to vector<8x1xf32>
    %1166 = vector.broadcast %1165 : vector<8x1xf32> to vector<8x88xf32>
    %1167 = vector.shape_cast %1164 : vector<8x1xf32> to vector<8x1xf32>
    %1168 = vector.broadcast %1167 : vector<8x1xf32> to vector<8x88xf32>
    %1169 = arith.select %705, %1166, %1168 : vector<8x88xi1>, vector<8x88xf32>
    %cst_413 = arith.constant dense<0.000000e+00> : vector<88x32xf32>
    %1170 = tpu.matmul %1148, %1078, %cst_413 {dimension_numbers = #tpu.dot_dimension_numbers<[0], [0], [1], [1], [0, 1, 1, 1], [], []>} : vector<8x88xf32>, vector<8x32xf32>, vector<88x32xf32> -> vector<88x32xf32>
    %cst_414 = arith.constant 0.000000e+00 : f32
    %1171 = vector.broadcast %cst_414 : f32 to vector<88x32xf32>
    %1172 = arith.select %7, %1170, %1171 : vector<88x32xi1>, vector<88x32xf32>
    %1173 = arith.mulf %1140, %1169 : vector<8x88xf32>
    %cst_415 = arith.constant dense<0.000000e+00> : vector<8x32xf32>
    %1174 = tpu.matmul %1173, %1172, %cst_415 {dimension_numbers = #tpu.dot_dimension_numbers<[1], [0], [0], [1], [0, 0, 1, 1], [], []>} : vector<8x88xf32>, vector<88x32xf32>, vector<8x32xf32> -> vector<8x32xf32>
    %cst_416 = arith.constant dense<0.000000e+00> : vector<8x32xf32>
    %1175 = tpu.matmul %1174, %1048, %cst_416 {dimension_numbers = #tpu.dot_dimension_numbers<[1], [0], [0], [1], [0, 0, 1, 1], [], []>} : vector<8x32xf32>, vector<32x32xf32>, vector<8x32xf32> -> vector<8x32xf32>
    %1176 = vector.broadcast %1049 : vector<1x32xf32> to vector<8x32xf32>
    %1177 = arith.addf %1175, %1176 : vector<8x32xf32>
    %1178 = arith.addf %1043, %1177 : vector<8x32xf32>
    %cst_417 = arith.constant dense<0.000000e+00> : vector<8xf32>
    %1179 = vector.multi_reduction <add>, %1178, %cst_417 [1] : vector<8x32xf32> to vector<8xf32>
    %1180 = vector.shape_cast %1179 : vector<8xf32> to vector<8x1xf32>
    %cst_418 = arith.constant 3.200000e+01 : f32
    %1181 = vector.broadcast %cst_418 : f32 to vector<8x1xf32>
    %1182 = arith.divf %1180, %1181 : vector<8x1xf32>
    %1183 = vector.broadcast %1182 : vector<8x1xf32> to vector<8x32xf32>
    %1184 = arith.subf %1178, %1183 : vector<8x32xf32>
    %1185 = arith.mulf %1184, %1184 : vector<8x32xf32>
    %cst_419 = arith.constant dense<0.000000e+00> : vector<8xf32>
    %1186 = vector.multi_reduction <add>, %1185, %cst_419 [1] : vector<8x32xf32> to vector<8xf32>
    %1187 = vector.shape_cast %1186 : vector<8xf32> to vector<8x1xf32>
    %cst_420 = arith.constant 3.200000e+01 : f32
    %1188 = vector.broadcast %cst_420 : f32 to vector<8x1xf32>
    %1189 = arith.divf %1187, %1188 : vector<8x1xf32>
    %1190 = vector.broadcast %1182 : vector<8x1xf32> to vector<8x32xf32>
    %1191 = arith.subf %1178, %1190 : vector<8x32xf32>
    %cst_421 = arith.constant 9.99999974E-6 : f32
    %1192 = vector.broadcast %cst_421 : f32 to vector<8x1xf32>
    %1193 = arith.addf %1189, %1192 : vector<8x1xf32>
    %1194 = math.rsqrt %1193 : vector<8x1xf32>
    %1195 = vector.broadcast %1194 : vector<8x1xf32> to vector<8x32xf32>
    %1196 = arith.mulf %1191, %1195 : vector<8x32xf32>
    %1197 = vector.broadcast %1044 : vector<1x32xf32> to vector<8x32xf32>
    %1198 = arith.mulf %1196, %1197 : vector<8x32xf32>
    %1199 = vector.broadcast %1045 : vector<1x32xf32> to vector<8x32xf32>
    %1200 = arith.addf %1198, %1199 : vector<8x32xf32>
    %cst_422 = arith.constant dense<0.000000e+00> : vector<8x96xf32>
    %1201 = tpu.matmul %1200, %1046, %cst_422 {dimension_numbers = #tpu.dot_dimension_numbers<[1], [0], [0], [1], [0, 0, 1, 1], [], []>} : vector<8x32xf32>, vector<32x96xf32>, vector<8x96xf32> -> vector<8x96xf32>
    %1202 = vector.broadcast %1047 : vector<1x96xf32> to vector<8x96xf32>
    %1203 = arith.addf %1201, %1202 : vector<8x96xf32>
    %1204 = vector.extract_strided_slice %1203 {offsets = [0, 0], sizes = [8, 32], strides = [1, 1]} : vector<8x96xf32> to vector<8x32xf32>
    %1205 = vector.extract_strided_slice %1203 {offsets = [0, 32], sizes = [8, 32], strides = [1, 1]} : vector<8x96xf32> to vector<8x32xf32>
    %cst_423 = arith.constant 5.000000e-01 : f32
    %1206 = vector.broadcast %cst_423 : f32 to vector<8x32xf32>
    %1207 = arith.mulf %1204, %1206 : vector<8x32xf32>
    %cst_424 = arith.constant dense<0.000000e+00> : vector<8x88xf32>
    %1208 = tpu.matmul %1207, %1050, %cst_424 {dimension_numbers = #tpu.dot_dimension_numbers<[1], [0], [0], [1], [0, 0, 1, 1], [], []>} : vector<8x32xf32>, vector<32x88xf32>, vector<8x88xf32> -> vector<8x88xf32>
    %cst_425 = arith.constant 5.000000e-01 : f32
    %1209 = vector.broadcast %cst_425 : f32 to vector<8x32xf32>
    %1210 = arith.mulf %1205, %1209 : vector<8x32xf32>
    %cst_426 = arith.constant dense<0.000000e+00> : vector<8x88xf32>
    %1211 = tpu.matmul %1210, %1050, %cst_426 {dimension_numbers = #tpu.dot_dimension_numbers<[1], [0], [0], [1], [0, 0, 1, 1], [], []>} : vector<8x32xf32>, vector<32x88xf32>, vector<8x88xf32> -> vector<8x88xf32>
    %1212 = arith.mulf %1204, %1204 : vector<8x32xf32>
    %1213 = arith.mulf %1205, %1205 : vector<8x32xf32>
    %cst_427 = arith.constant 0.000000e+00 : f32
    %1214 = vector.broadcast %cst_427 : f32 to vector<8x32xf32>
    %1215 = arith.select %708, %1212, %1214 : vector<8x32xi1>, vector<8x32xf32>
    %cst_428 = arith.constant dense<0.000000e+00> : vector<8xf32>
    %1216 = vector.multi_reduction <add>, %1215, %cst_428 [1] : vector<8x32xf32> to vector<8xf32>
    %1217 = vector.shape_cast %1216 : vector<8xf32> to vector<8x1xf32>
    %cst_429 = arith.constant 0.000000e+00 : f32
    %1218 = vector.broadcast %cst_429 : f32 to vector<8x32xf32>
    %1219 = arith.select %708, %1218, %1212 : vector<8x32xi1>, vector<8x32xf32>
    %cst_430 = arith.constant dense<0.000000e+00> : vector<8xf32>
    %1220 = vector.multi_reduction <add>, %1219, %cst_430 [1] : vector<8x32xf32> to vector<8xf32>
    %1221 = vector.shape_cast %1220 : vector<8xf32> to vector<8x1xf32>
    %1222 = vector.shape_cast %1217 : vector<8x1xf32> to vector<8x1xf32>
    %1223 = vector.broadcast %1222 : vector<8x1xf32> to vector<8x88xf32>
    %1224 = vector.shape_cast %1221 : vector<8x1xf32> to vector<8x1xf32>
    %1225 = vector.broadcast %1224 : vector<8x1xf32> to vector<8x88xf32>
    %1226 = arith.select %705, %1223, %1225 : vector<8x88xi1>, vector<8x88xf32>
    %cst_431 = arith.constant 1.250000e-01 : f32
    %1227 = vector.broadcast %cst_431 : f32 to vector<8x88xf32>
    %1228 = arith.mulf %1226, %1227 : vector<8x88xf32>
    %cst_432 = arith.constant 0.000000e+00 : f32
    %1229 = vector.broadcast %cst_432 : f32 to vector<8x32xf32>
    %1230 = arith.select %708, %1213, %1229 : vector<8x32xi1>, vector<8x32xf32>
    %cst_433 = arith.constant dense<0.000000e+00> : vector<8xf32>
    %1231 = vector.multi_reduction <add>, %1230, %cst_433 [1] : vector<8x32xf32> to vector<8xf32>
    %1232 = vector.shape_cast %1231 : vector<8xf32> to vector<8x1xf32>
    %cst_434 = arith.constant 0.000000e+00 : f32
    %1233 = vector.broadcast %cst_434 : f32 to vector<8x32xf32>
    %1234 = arith.select %708, %1233, %1213 : vector<8x32xi1>, vector<8x32xf32>
    %cst_435 = arith.constant dense<0.000000e+00> : vector<8xf32>
    %1235 = vector.multi_reduction <add>, %1234, %cst_435 [1] : vector<8x32xf32> to vector<8xf32>
    %1236 = vector.shape_cast %1235 : vector<8xf32> to vector<8x1xf32>
    %1237 = vector.shape_cast %1232 : vector<8x1xf32> to vector<8x1xf32>
    %1238 = vector.broadcast %1237 : vector<8x1xf32> to vector<8x88xf32>
    %1239 = vector.shape_cast %1236 : vector<8x1xf32> to vector<8x1xf32>
    %1240 = vector.broadcast %1239 : vector<8x1xf32> to vector<8x88xf32>
    %1241 = arith.select %705, %1238, %1240 : vector<8x88xi1>, vector<8x88xf32>
    %cst_436 = arith.constant 1.250000e-01 : f32
    %1242 = vector.broadcast %cst_436 : f32 to vector<8x88xf32>
    %1243 = arith.mulf %1241, %1242 : vector<8x88xf32>
    %cst_437 = arith.constant -1.000000e+30 : f32
    %1244 = vector.broadcast %cst_437 : f32 to vector<8x88xf32>
    %1245 = arith.select %705, %1208, %1244 : vector<8x88xi1>, vector<8x88xf32>
    %cst_438 = arith.constant dense<0xFF800000> : vector<8xf32>
    %1246 = vector.multi_reduction <maximumf>, %1245, %cst_438 [1] : vector<8x88xf32> to vector<8xf32>
    %1247 = vector.shape_cast %1246 : vector<8xf32> to vector<8x1xf32>
    %cst_439 = arith.constant -1.000000e+30 : f32
    %1248 = vector.broadcast %cst_439 : f32 to vector<8x88xf32>
    %1249 = arith.select %705, %1248, %1208 : vector<8x88xi1>, vector<8x88xf32>
    %cst_440 = arith.constant dense<0xFF800000> : vector<8xf32>
    %1250 = vector.multi_reduction <maximumf>, %1249, %cst_440 [1] : vector<8x88xf32> to vector<8xf32>
    %1251 = vector.shape_cast %1250 : vector<8xf32> to vector<8x1xf32>
    %1252 = vector.shape_cast %1247 : vector<8x1xf32> to vector<8x1xf32>
    %1253 = vector.broadcast %1252 : vector<8x1xf32> to vector<8x88xf32>
    %1254 = vector.shape_cast %1251 : vector<8x1xf32> to vector<8x1xf32>
    %1255 = vector.broadcast %1254 : vector<8x1xf32> to vector<8x88xf32>
    %1256 = arith.select %705, %1253, %1255 : vector<8x88xi1>, vector<8x88xf32>
    %cst_441 = arith.constant dense<0xFF800000> : vector<8xf32>
    %1257 = vector.multi_reduction <maximumf>, %1211, %cst_441 [1] : vector<8x88xf32> to vector<8xf32>
    %1258 = vector.shape_cast %1257 : vector<8xf32> to vector<8x1xf32>
    %cst_442 = arith.constant dense<0xFF800000> : vector<1xf32>
    %1259 = vector.multi_reduction <maximumf>, %1258, %cst_442 [0] : vector<8x1xf32> to vector<1xf32>
    %1260 = vector.shape_cast %1259 : vector<1xf32> to vector<1x1xf32>
    %1261 = arith.subf %1208, %1228 : vector<8x88xf32>
    %1262 = arith.subf %1261, %1256 : vector<8x88xf32>
    %1263 = math.exp %1262 : vector<8x88xf32>
    %cst_443 = arith.constant 9.99999974E-5 : f32
    %1264 = vector.broadcast %cst_443 : f32 to vector<8x88xf32>
    %1265 = arith.addf %1263, %1264 : vector<8x88xf32>
    %cst_444 = arith.constant 0.150755674 : f32
    %1266 = vector.broadcast %cst_444 : f32 to vector<8x88xf32>
    %1267 = arith.mulf %1266, %1265 : vector<8x88xf32>
    %1268 = arith.subf %1211, %1243 : vector<8x88xf32>
    %1269 = vector.broadcast %1260 : vector<1x1xf32> to vector<8x88xf32>
    %1270 = arith.subf %1268, %1269 : vector<8x88xf32>
    %1271 = math.exp %1270 : vector<8x88xf32>
    %cst_445 = arith.constant 9.99999974E-5 : f32
    %1272 = vector.broadcast %cst_445 : f32 to vector<8x88xf32>
    %1273 = arith.addf %1271, %1272 : vector<8x88xf32>
    %cst_446 = arith.constant 0.150755674 : f32
    %1274 = vector.broadcast %cst_446 : f32 to vector<8x88xf32>
    %1275 = arith.mulf %1274, %1273 : vector<8x88xf32>
    %cst_447 = arith.constant dense<0.000000e+00> : vector<88xf32>
    %1276 = vector.multi_reduction <add>, %1275, %cst_447 [0] : vector<8x88xf32> to vector<88xf32>
    %1277 = vector.shape_cast %1276 : vector<88xf32> to vector<1x88xf32>
    %1278 = vector.broadcast %1277 : vector<1x88xf32> to vector<8x88xf32>
    %1279 = arith.mulf %1267, %1278 : vector<8x88xf32>
    %cst_448 = arith.constant 0.000000e+00 : f32
    %1280 = vector.broadcast %cst_448 : f32 to vector<8x88xf32>
    %1281 = arith.select %705, %1279, %1280 : vector<8x88xi1>, vector<8x88xf32>
    %cst_449 = arith.constant dense<0.000000e+00> : vector<8xf32>
    %1282 = vector.multi_reduction <add>, %1281, %cst_449 [1] : vector<8x88xf32> to vector<8xf32>
    %1283 = vector.shape_cast %1282 : vector<8xf32> to vector<8x1xf32>
    %cst_450 = arith.constant 0.000000e+00 : f32
    %1284 = vector.broadcast %cst_450 : f32 to vector<8x88xf32>
    %1285 = arith.select %705, %1284, %1279 : vector<8x88xi1>, vector<8x88xf32>
    %cst_451 = arith.constant dense<0.000000e+00> : vector<8xf32>
    %1286 = vector.multi_reduction <add>, %1285, %cst_451 [1] : vector<8x88xf32> to vector<8xf32>
    %1287 = vector.shape_cast %1286 : vector<8xf32> to vector<8x1xf32>
    %cst_452 = arith.constant 1.000000e+00 : f32
    %1288 = vector.broadcast %cst_452 : f32 to vector<8x1xf32>
    %1289 = arith.divf %1288, %1283 : vector<8x1xf32>
    %cst_453 = arith.constant 1.000000e+00 : f32
    %1290 = vector.broadcast %cst_453 : f32 to vector<8x1xf32>
    %1291 = arith.divf %1290, %1287 : vector<8x1xf32>
    %1292 = vector.shape_cast %1289 : vector<8x1xf32> to vector<8x1xf32>
    %1293 = vector.broadcast %1292 : vector<8x1xf32> to vector<8x88xf32>
    %1294 = vector.shape_cast %1291 : vector<8x1xf32> to vector<8x1xf32>
    %1295 = vector.broadcast %1294 : vector<8x1xf32> to vector<8x88xf32>
    %1296 = arith.select %705, %1293, %1295 : vector<8x88xi1>, vector<8x88xf32>
    %1297 = arith.mulf %1267, %1296 : vector<8x88xf32>
    %cst_454 = arith.constant dense<0.000000e+00> : vector<8x8xf32>
    %1298 = tpu.matmul %1297, %1275, %cst_454 {dimension_numbers = #tpu.dot_dimension_numbers<[1], [1], [0], [0], [0, 0, 1, 0], [], []>} : vector<8x88xf32>, vector<8x88xf32>, vector<8x8xf32> -> vector<8x8xf32>
    %cst_455 = arith.constant 5.000000e-01 : f32
    %1299 = vector.broadcast %cst_455 : f32 to vector<8x8xf32>
    %1300 = arith.mulf %1298, %1299 : vector<8x8xf32>
    %1301 = arith.addf %973, %1300 : vector<8x8xf32>
    %cst_456 = arith.constant 5.000000e-01 : f32
    %1302 = vector.broadcast %cst_456 : f32 to vector<8x8xf32>
    %1303 = arith.mulf %1301, %1302 : vector<8x8xf32>
    %c0_457 = arith.constant 0 : index
    %c0_458 = arith.constant 0 : index
    %1304 = vector.load %arg4[%c0_457, %c0_458] : memref<8x8xf32, #tpu.memory_space<vmem>>, vector<8x8xf32>
    tpu.vector_store %arg4[%c0_457, %c0_458], %1303 {strides = array<i32>} : memref<8x8xf32, #tpu.memory_space<vmem>>, vector<8x8xf32>,
    %c1280 = arith.constant 1280 : index
    %c0_459 = arith.constant 0 : index
    %1305 = vector.load %arg2[%c1280, %c0_459] : memref<1352x128xf32, #tpu.memory_space<vmem>>, vector<16x8xf32>
    %cst_460 = arith.constant dense<0.000000e+00> : vector<16x8xf32>
    %1306 = tpu.matmul %685, %1305, %cst_460 {dimension_numbers = #tpu.dot_dimension_numbers<[1], [0], [0], [1], [0, 0, 1, 1], [], []>} : vector<16x16xf32>, vector<16x8xf32>, vector<16x8xf32> -> vector<16x8xf32>
    %c1304 = arith.constant 1304 : index
    %c0_461 = arith.constant 0 : index
    %1307 = vector.load %arg2[%c1304, %c0_461] : memref<1352x128xf32, #tpu.memory_space<vmem>>, vector<1x8xf32>
    %1308 = vector.broadcast %1307 : vector<1x8xf32> to vector<16x8xf32>
    %1309 = arith.addf %1306, %1308 : vector<16x8xf32>
    %cst_462 = arith.constant 0.000000e+00 : f32
    %1310 = vector.broadcast %cst_462 : f32 to vector<16x8xf32>
    %1311 = arith.maximumf %1309, %1310 : vector<16x8xf32>
    %c1320 = arith.constant 1320 : index
    %c0_463 = arith.constant 0 : index
    %1312 = vector.load %arg2[%c1320, %c0_463] : memref<1352x128xf32, #tpu.memory_space<vmem>>, vector<8x8xf32>
    %cst_464 = arith.constant dense<0.000000e+00> : vector<16x8xf32>
    %1313 = tpu.matmul %1311, %1312, %cst_464 {dimension_numbers = #tpu.dot_dimension_numbers<[1], [0], [0], [1], [0, 0, 1, 1], [], []>} : vector<16x8xf32>, vector<8x8xf32>, vector<16x8xf32> -> vector<16x8xf32>
    %c1336 = arith.constant 1336 : index
    %c0_465 = arith.constant 0 : index
    %1314 = vector.load %arg2[%c1336, %c0_465] : memref<1352x128xf32, #tpu.memory_space<vmem>>, vector<1x8xf32>
    %1315 = vector.broadcast %1314 : vector<1x8xf32> to vector<16x8xf32>
    %1316 = arith.addf %1313, %1315 : vector<16x8xf32>
    %cst_466 = arith.constant 0.000000e+00 : f32
    %1317 = vector.broadcast %cst_466 : f32 to vector<16x8xf32>
    %1318 = arith.maximumf %1316, %1317 : vector<16x8xf32>
    %cst_467 = arith.constant dense<0.000000e+00> : vector<16x8xf32>
    %1319 = tpu.matmul %1318, %1303, %cst_467 {dimension_numbers = #tpu.dot_dimension_numbers<[1], [0], [0], [1], [0, 0, 1, 1], [], []>} : vector<16x8xf32>, vector<8x8xf32>, vector<16x8xf32> -> vector<16x8xf32>
    %c0_468 = arith.constant 0 : index
    %c0_469 = arith.constant 0 : index
    %1320 = vector.load %arg5[%c0_468, %c0_469] : memref<16x8xf32, #tpu.memory_space<vmem>>, vector<16x8xf32>
    tpu.vector_store %arg5[%c0_468, %c0_469], %1319 {strides = array<i32>} : memref<16x8xf32, #tpu.memory_space<vmem>>, vector<16x8xf32>,
    return
  }
}

</mosaic_0001>

<bundles_post_ra>
// kernel: forward.1
= control target key start
LH: loop header
LB: loop body
LE: loop exit
PB: predicated region body
PF: predicated region fallthrough
CT: control target
= control target key end

     0   :  { %11 = vsyncpa [#allocation3], 0  ;;  %vm110_vm0 = vcmask 261120   ;;  %s9861_s0 = inlined_call_operand.vmem [shape: f32[16,32], index: 0, kind: input, shape index: {}]   ;;  %s9862_s1 = inlined_call_operand.vmem [shape: f32[8,32], index: 1, kind: input, shape index: {}]   ;;  %s9863_s2 = inlined_call_operand.vmem [shape: f32[1352,128], index: 2, kind: input, shape index: {}]   ;;  %s9864_s3 = inlined_call_operand.hbm [shape: f32[16,16], index: 3, kind: output, shape index: {0}]   ;;  %s9865_s4 = inlined_call_operand.hbm [shape: f32[8,8], index: 4, kind: output, shape index: {1}]   ;;  %s9866_s5 = inlined_call_operand.vmem [shape: f32[16,8], index: 5, kind: output, shape index: {2}]  }
   0x1   :  { %v8071_v0 = vld [vmem:[%s9861_s0] sm:$0xff]  ;;  %v8076_v1 = vld [vmem:[%s9861_s0 + $0x8] sm:$0xff] }
   0x2   :  { %12 = vsyncpa [#allocation5], 0  ;;  %v111_v2 = vsel %vm110_vm0, %v8071_v0, 0.0  ;;  %v114_v3 = vsel %vm110_vm0, %v8076_v1, 0.0  ;;  %v72_v14 = vld [vmem:[%s9863_s2 + $0x10] sm:$0xff]  ;;  %v73_v15 = vld [vmem:[%s9863_s2 + $0x18] sm:$0xff]  ;;  %v19_v57 = vlaneseq }
   0x3   :  { %112 = vadd.xlane.f32.xlu0 %v111_v2  ;;  %v74_v16 = vld [vmem:[%s9863_s2 + $0x20] sm:$0xff]  ;;  %v8095_v17 = vpack.c.bf16 %v73_v15, %v72_v14  ;;  %v75_v18 = vld [vmem:[%s9863_s2 + $0x28] sm:$0xff]  ;;  %v84_v39 = vld [vmem:[%s9863_s2 + $0x70] sm:$0xff]  ;;  %s8026_s18 = smov 96   ;;  %vm453_vm1 = vcmask 719872   ;;  %s8027_s19 = smov 64  }
   0x4   :  { %v8100_v19 = vpack.c.bf16 %v75_v18, %v74_v16  ;;  %v82_v20 = vld [vmem:[%s9863_s2 + $0x60] sm:$0xff]  ;;  %v83_v21 = vld [vmem:[%s9863_s2 + $0x68] sm:$0xff]  ;;  %v85_v40 = vld [vmem:[%s9863_s2 + $0x78] sm:$0xff]  ;;  %v8169_v58 = vand.u32 127, %v19_v57  ;;  %vm8029_vm4 = vmmov 0   ;;  %vm584_vm5 = vcmask 130048  }
   0x5   :  { %7384 = vmatprep.subr.bf16.mxu0 %v8095_v17  ;;  %v8112_v22 = vpack.c.bf16 %v83_v21, %v82_v20  ;;  %v8120_v30 = vld [vmem:[%s9863_s2] ss:$0 sm:$0xff]  ;;  %v8125_v32 = vld [vmem:[%s9863_s2 + $0x8] ss:$0 sm:$0xff]  ;;  %v8140_v41 = vpack.c.bf16 %v85_v40, %v84_v39  ;;  %v8149_v42 = vld [vmem:[%s9863_s2 + $0x30] ss:$0 sm:$0xff] }
   0x6   :  { %7386 = vmatpush3.bf16.msra.mxu0 %v8095_v17  ;;  %vm44_vm2 = vcmp.lt.s32.totalorder %v8169_v58, 16  ;;  %vm69_vm3 = vcmp.lt.s32.totalorder %v8169_v58, 44  ;;  %vm8031_vm6 = vmmov 1   ;;  %v6284_v58 = vld [vmem:[%s9863_s2 + $0x538] ss:$0 sm:$0xff]  ;;  %s8034_s17 = smov [#allocation2]  }
   0x7   :  { %115 = vadd.xlane.f32.xlu0 %v114_v3  ;;  %7388 = vmatprep.subr.bf16.mxu0 %v8100_v19  ;;  %vm45_vm7 = vmxor %vm8031_vm6, %vm44_vm2  ;;  %s6069_s20 = sshll.u32 %s8034_s17, 4  ;;  %s8035_s21 = smov [#allocation4]   ;;  %s6070_s20 = int_to_ptr.vmem [resolvable:$true] %s6069_s20 }
   0x8   :  { %7392 = vmatprep.subr.bf16.mxu1 %v8112_v22  ;;  %vm8313_vm8 = vmxor %vm45_vm7, %vm8031_vm6  ;;  %s7978_s0 = scalar_lea.vmem %s6070_s20, 256  ;;  %p7983_p1 = scmp.lt.s32.totalorder %s6070_s20, %s6070_s20 }
   0x9   :  { %7394 = vmatpush3.bf16.msra.mxu1 %v8112_v22  ;;  %vm8321_vm9 = vmpackc.low %vm8313_vm8, %vm8313_vm8  ;;  %p7979_p0 = scmp.ne.s32.totalorder %s6070_s20, %s7978_s0  ;;  %p7984_p2 = scmp.lt.s32.totalorder %s7978_s0, %s7978_s0 }
   0xa   :  { %7390 = vmatpush3.bf16.msra.mxu0 %v8100_v19  ;;  %7396 = vmatprep.subr.bf16.mxu1 %v8140_v41  ;;  %vm8349_vm14 = vmxor %vm44_vm2, %vm8031_vm6 }
   0xb   :  { %7400 = vmatprep.subr.bf16.mxu0 %v8112_v22  ;;  %vm8356_vm15 = vmpackc.low %vm8349_vm14, %vm8349_vm14  ;;  %p7985_p3 = por %p7984_p2, %p7983_p1 }
   0xd   :  { %7398 = vmatpush3.bf16.msra.mxu1 %v8140_v41  ;;  %p7986_p4 = pnand %p7985_p3, %p7979_p0 }
  0x90   :  { %v113_v4 = vpop.xlane.xlu0 %112 }
  0x91   :  { %v118_v5 = vmul.f32 0.03125, %v113_v4 }
  0x93   :  { %v120_v6 = vsub.f32 %v8071_v0, %v118_v5 }
  0x94   :  { %v116_v7 = vpop.xlane.xlu0 %115 }
  0x95   :  { %v119_v8 = vmul.f32 0.03125, %v116_v7  ;;  %v122_v9 = vmul.f32 %v120_v6, %v120_v6 }
  0x97   :  { %v121_v10 = vsub.f32 %v8076_v1, %v119_v8  ;;  %v124_v11 = vsel %vm110_vm0, %v122_v9, 0.0 }
  0x98   :  { %125 = vadd.xlane.f32.xlu1 %v124_v11 }
  0x99   :  { %v123_v12 = vmul.f32 %v121_v10, %v121_v10 }
  0x9b   :  { %v127_v13 = vsel %vm110_vm0, %v123_v12, 0.0 }
  0x9c   :  { %128 = vadd.xlane.f32.xlu1 %v127_v13 }
 0x125   :  { %v126_v23 = vpop.xlane.xlu1 %125 }
 0x126   :  { %v130_v24 = vmul.f32 0.03125, %v126_v23 }
 0x128   :  { %v132_v25 = vadd.f32 1e-05, %v130_v24 }
 0x129   :  { %v129_v26 = vpop.xlane.xlu1 %128 }
 0x12a   :  { %7838 = vrsqrt.f32 %v132_v25  ;;  %v131_v27 = vmul.f32 0.03125, %v129_v26 }
 0x12c   :  { %v133_v28 = vadd.f32 1e-05, %v131_v27 }
 0x12e   :  { %7840 = vrsqrt.f32 %v133_v28  ;;  %v8030_v28 = vmov 0.0  }
 0x134   :  { %v7839_v29 = vpop.eup %7838 }
 0x135   :  { %v136_v31 = vmul.f32 %v7839_v29, %v120_v6 }
 0x137   :  { %v142_v33 = vmul.f32 %v8120_v30, %v136_v31 }
 0x138   :  { %v7841_v34 = vpop.eup %7840 }
 0x139   :  { %v148_v35 = vadd.f32 %v8125_v32, %v142_v33  ;;  %v137_v36 = vmul.f32 %v7841_v34, %v121_v10  ;;  %v8028_v10 = vmov 0.0|0.0  }
 0x13a   :  { %7407 = vmatprep.subr.bf16.mxu1 %v8028_v10 }
 0x13b   :  { %6648 = vmatprep.mubr.msk.f32.mxu0 %vm110_vm0, %v148_v35  ;;  %v143_v37 = vmul.f32 %v8120_v30, %v137_v36 }
 0x13d   :  { %v149_v38 = vadd.f32 %v8125_v32, %v143_v37 }
 0x13f   :  { %6649 = vmatmul.mubr.msk.f32.vlgmr.msra.gmra.mrb[0].mxu0 %vm110_vm0, %v149_v38 }
 0x140   :  { %7402 = vmatpush3.bf16.msra.mxu0 %v8112_v22 }
 0x141   :  { %7404 = vmatprep.subr.bf16.mxu0 %v8140_v41 }
 0x144   :  { %7406 = vmatpush3.bf16.msra.mxu0 %v8140_v41 }
 0x212   :  { %v6650_v43 = vpop.f32.mrb[0].mxu0 }
 0x213   :  { %v232_v44 = vadd.f32 %v6650_v43, %v8149_v42  ;;  %v226_v45 = vpop.f32.mrb[1].mxu0 }
 0x214   :  { %v227_v46 = vadd.f32 %v8149_v42, %v226_v45 }
 0x215   :  { %v236_v47 = vmul.f32 0.5, %v232_v44  ;;  %v8158_v51 = vmul.f32 %v232_v44, %v232_v44 }
 0x216   :  { %v235_v48 = vmul.f32 0.5, %v227_v46  ;;  %v7826_v49 = vpack.i.bf16 %v232_v44, %v227_v46  ;;  %v401_v50 = vmul.f32 %v227_v46, %v227_v46 }
 0x217   :  { %320 = vrot.lane.b32.xlu1 %v236_v47, %s8026_s18  ;;  %v412_v15 = vsel %vm44_vm2, 0.0, %v8158_v51 }
 0x218   :  { %318 = vrot.lane.b32.xlu0 %v235_v48, %s8026_s18  ;;  %6659 = vmatprep.mubr.msk.f32.mxu1 %vm110_vm0, %v235_v48  ;;  %v403_v11 = vsel %vm44_vm2, %v401_v50, 0.0  ;;  %v411_v13 = vsel %vm44_vm2, 0.0, %v401_v50  ;;  %v416_v16 = vsel %vm110_vm0, %v412_v15, 0.0 }
 0x219   :  { %6660 = vmatmul.mubr.msk.f32.vlgmr.msra.gmra.mrb[0].mxu1 %vm110_vm0, %v236_v47  ;;  %v405_v12 = vsel %vm110_vm0, %v403_v11, 0.0  ;;  %v413_v14 = vsel %vm110_vm0, %v411_v13, 0.0 }
 0x21a   :  { %6677 = vmatprep.mubr.msk.f32.mxu1 %vm8029_vm4, %v8030_v28 }
 0x21b   :  { %425 = vrot.lane.b32.xlu1 %v401_v50, %s8026_s18 }
 0x21f   :  { %427 = vrot.lane.b32.xlu1 %v8158_v51, %s8026_s18 }
 0x289   :  { %v321_v53 = vpop.permute.xlu1 %320 }
 0x28a   :  { %v319_v52 = vpop.permute.xlu0 %318 }
 0x28b   :  { %6670 = vmatprep.mubr.msk.f32.mxu0 %vm110_vm0, %v319_v52 }
 0x28c   :  { %6671 = vmatmul.mubr.msk.f32.vlgmr.msra.gmra.mrb[2].mxu0 %vm110_vm0, %v321_v53 }
 0x28d   :  { %v426_v56 = vpop.permute.xlu1 %425 }
 0x28e   :  { %v431_v3 = vsel %vm44_vm2, %v426_v56, 0.0  ;;  %v439_v6 = vsel %vm44_vm2, 0.0, %v426_v56 }
 0x28f   :  { %v433_v5 = vsel %vm110_vm0, %v431_v3, 0.0  ;;  %v441_v7 = vsel %vm110_vm0, %v439_v6, 0.0 }
 0x291   :  { %v428_v59 = vpop.permute.xlu1 %427 }
 0x292   :  { %v440_v2 = vsel %vm44_vm2, 0.0, %v428_v59  ;;  %v432_v8 = vsel %vm44_vm2, %v428_v59, 0.0 }
 0x293   :  { %v444_v4 = vsel %vm110_vm0, %v440_v2, 0.0  ;;  %v436_v9 = vsel %vm110_vm0, %v432_v8, 0.0 }
 0x2ec   :  { %v8164_v54 = vpop.f32.mrb[0].mxu1 }
 0x2ed   :  { %v8166_v55 = vpop.f32.mrb[1].mxu1  ;;  %v452_v24 = vsel %vm69_vm3, %v8164_v54, -1e+30  ;;  %v461_v26 = vsel %vm69_vm3, -1e+30, %v8164_v54 }
 0x2ee   :  { %v451_v18 = vsel %vm69_vm3, %v8166_v55, -1e+30  ;;  %v460_v21 = vsel %vm69_vm3, -1e+30, %v8166_v55  ;;  %v457_v25 = vsel %vm453_vm1, %v452_v24, -inf  ;;  %v465_v27 = vsel %vm453_vm1, %v461_v26, -inf }
 0x2ef   :  { %v454_v20 = vsel %vm453_vm1, %v451_v18, -inf  ;;  %v462_v23 = vsel %vm453_vm1, %v460_v21, -inf }
 0x35f   :  { %v8171_v60 = vpop.f32.mrb[2].mxu0 }
 0x360   :  { %v8173_v61 = vpop.f32.mrb[3].mxu0  ;;  %v473_v62 = vsel %vm453_vm1, %v8171_v60, -inf }
 0x361   :  { %474 = vmax.xlane.f32.xlu1 %v473_v62  ;;  %v470_v63 = vsel %vm453_vm1, %v8173_v61, -inf }
 0x362   :  { %471 = vmax.xlane.f32.xlu0 %v470_v63 }
 0x365   :  { %445 = vadd.xlane.f32.xlu1 %v444_v4 }
 0x366   :  { %434 = vadd.xlane.f32.xlu0 %v433_v5 }
 0x36a   :  { %442 = vadd.xlane.f32.xlu0 %v441_v7 }
 0x36e   :  { %437 = vadd.xlane.f32.xlu0 %v436_v9 }
 0x384   :  { %7827 = vrot.lane.b32.xlu0 %v7826_v49, %s8027_s19 }
 0x3a3   :  { %406 = vadd.xlane.f32.xlu0 %v405_v12 }
 0x3a7   :  { %414 = vadd.xlane.f32.xlu0 %v413_v14 }
 0x3ab   :  { %417 = vadd.xlane.f32.xlu0 %v416_v16 }
 0x3af   :  { %455 = vmax.xlane.f32.xlu0 %v454_v20 }
 0x3b3   :  { %463 = vmax.xlane.f32.xlu0 %v462_v23 }
 0x3b7   :  { %458 = vmax.xlane.f32.xlu0 %v457_v25 }
 0x3bb   :  { %466 = vmax.xlane.f32.xlu0 %v465_v27 }
 0x3ee   :  { %v475_v29 = vpop.xlane.xlu1 %474 }
 0x3ef   :  { %v472_v31 = vpop.xlane.xlu0 %471 }
 0x3f0   :  { %v476_v33 = vmax.f32 %v472_v31, %v475_v29 }
 0x3f2   :  { %v477_v34 = vrot.slane %v476_v33, 4  ;;  %v446_v45 = vpop.xlane.xlu1 %445 }
 0x3f3   :  { %v435_v35 = vpop.xlane.xlu0 %434 }
 0x3f4   :  { %v478_v36 = vmax.f32 %v476_v33, %v477_v34 }
 0x3f6   :  { %v479_v37 = vrot.slane %v478_v36, 2 }
 0x3f7   :  { %v443_v38 = vpop.xlane.xlu0 %442 }
 0x3f8   :  { %v480_v39 = vmax.f32 %v478_v36, %v479_v37  ;;  %v447_v40 = vsel %vm69_vm3, %v435_v35, %v443_v38 }
 0x3f9   :  { %v449_v43 = vmul.f32 0.125, %v447_v40 }
 0x3fa   :  { %v481_v44 = vrot.slane %v480_v39, 1 }
 0x3fb   :  { %v495_v46 = vsub.f32 %v8173_v61, %v449_v43  ;;  %v438_v47 = vpop.xlane.xlu0 %437 }
 0x3fc   :  { %v482_v48 = vmax.f32 %v480_v39, %v481_v44  ;;  %v448_v49 = vsel %vm69_vm3, %v438_v47, %v446_v45  ;;  %v404_v45 = vsel %vm44_vm2, %v8158_v51, 0.0 }
 0x3fd   :  { %v450_v50 = vmul.f32 0.125, %v448_v49 }
 0x3fe   :  { %v497_v52 = vsub.f32 %v495_v46, %v482_v48  ;;  %v408_v46 = vsel %vm110_vm0, %v404_v45, 0.0 }
 0x3ff   :  { %v496_v53 = vsub.f32 %v8171_v60, %v450_v50  ;;  %v7828_v56 = vpop.permute.xlu0 %7827 }
 0x400   :  { %v7830_v59 = vunpack.i.h.bf16 %v7828_v56  ;;  %v7829_v62 = vunpack.i.l.bf16 %v7828_v56  ;;  %v499_v63 = vmul.f32 1.442695, %v497_v52 }
 0x401   :  { %v498_v2 = vsub.f32 %v496_v53, %v482_v48 }
 0x402   :  { %v7408_v3 = vpack.c.bf16 %v7830_v59, %v7829_v62  ;;  %7842 = vpow2.f32 %v499_v63 }
 0x403   :  { %v501_v4 = vmul.f32 1.442695, %v498_v2 }
 0x404   :  { %7409 = vmatpush3.bf16.msra.mxu1 %v7408_v3 }
 0x405   :  { %7844 = vpow2.f32 %v501_v4  ;;  %7457 = vmatprep.subr.bf16.mxu1 %v8112_v22 }
 0x40c   :  { %v7843_v61 = vpop.eup %7842 }
 0x40d   :  { %v503_v5 = vadd.f32 0.0001, %v7843_v61 }
 0x40f   :  { %v7845_v6 = vpop.eup %7844  ;;  %v505_v7 = vmul.f32 0.15075567, %v503_v5 }
 0x410   :  { %v504_v8 = vadd.f32 0.0001, %v7845_v6 }
 0x411   :  { %544 = vxpose.xlu1.b32.start [1/2] (short) (narrow) %v505_v7, 88  ;;  %v507_v60 = vsel %vm453_vm1, %v505_v7, 0.0 }
 0x412   :  { %v506_v9 = vmul.f32 0.15075567, %v504_v8 }
 0x414   :  { %v508_v11 = vsel %vm453_vm1, %v506_v9, 0.0 }
 0x415   :  { %545 = vxpose.xlu1.b32.end [2/2] (short) (narrow) %v506_v9, 88  ;;  %v509_v12 = vadd.f32 %v508_v11, %v507_v60 }
 0x417   :  { %v510_v21 = vrot.slane %v509_v12, 4 }
 0x419   :  { %v511_v27 = vadd.f32 %v510_v21, %v509_v12 }
 0x41b   :  { %v512_v31 = vrot.slane %v511_v27, 2 }
 0x41d   :  { %v513_v33 = vadd.f32 %v512_v31, %v511_v27  ;;  %v20_v31 = vshrl.u32 %v19_v57, 7 }
 0x41f   :  { %v514_v34 = vrot.slane %v513_v33, 1 }
 0x421   :  { %v8241_v38 = vadd.f32 %v514_v34, %v513_v33 }
 0x430   :  { %v407_v13 = vpop.xlane.xlu0 %406 }
 0x434   :  { %v415_v14 = vpop.xlane.xlu0 %414 }
 0x435   :  { %v419_v16 = vsel %vm69_vm3, %v407_v13, %v415_v14 }
 0x436   :  { %v421_v18 = vmul.f32 0.125, %v419_v16 }
 0x438   :  { %v8232_v15 = vpop.xlane.xlu0 %417  ;;  %v483_v23 = vsub.f32 %v8166_v55, %v421_v18 }
 0x43c   :  { %v456_v20 = vpop.xlane.xlu0 %455 }
 0x440   :  { %v464_v24 = vpop.xlane.xlu0 %463 }
 0x441   :  { %v468_v25 = vsel %vm69_vm3, %v456_v20, %v464_v24 }
 0x442   :  { %v485_v26 = vsub.f32 %v483_v23, %v468_v25 }
 0x444   :  { %v487_v29 = vmul.f32 1.442695, %v485_v26  ;;  %v459_v2 = vpop.xlane.xlu0 %458 }
 0x446   :  { %7846 = vpow2.f32 %v487_v29 }
 0x448   :  { %v467_v3 = vpop.xlane.xlu0 %466 }
 0x449   :  { %v469_v9 = vsel %vm69_vm3, %v459_v2, %v467_v3 }
 0x450   :  { %v7847_v35 = vpop.eup %7846 }
 0x451   :  { %v491_v36 = vadd.f32 0.0001, %v7847_v35 }
 0x453   :  { %v8239_v37 = vmul.f32 0.15075567, %v491_v36 }
 0x455   :  { %v516_v55 = vmul.f32 %v8241_v38, %v8239_v37 }
 0x457   :  { %v518_v39 = vsel %vm69_vm3, %v516_v55, 0.0  ;;  %v526_v43 = vsel %vm69_vm3, 0.0, %v516_v55 }
 0x458   :  { %v520_v40 = vsel %vm453_vm1, %v518_v39, 0.0  ;;  %v528_v44 = vsel %vm453_vm1, %v526_v43, 0.0 }
 0x459   :  { %521 = vadd.xlane.f32.xlu0 %v520_v40 }
 0x45d   :  { %529 = vadd.xlane.f32.xlu0 %v528_v44 }
 0x460   :  { %409 = vadd.xlane.f32.xlu1 %v408_v46 }
 0x491   :  { %v560_v47 = vpop.trf.xlu1 }
 0x492   :  { %6678 = vmatmul.mubr.msk.f32.vlgmr.msra.gmra.mrb[2].mxu1 %vm584_vm5, %v560_v47 }
 0x493   :  { %6680 = vmatprep.mubr.msk.f32.mxu1 %vm8029_vm4, %v8030_v28  ;;  %7459 = vmatpush3.bf16.msra.mxu1 %v8112_v22 }
 0x494   :  { %7461 = vmatprep.subr.bf16.mxu1 %v8140_v41 }
 0x495   :  { %v561_v48 = vpop.trf.xlu1 }
 0x496   :  { %6681 = vmatmul.mubr.msk.f32.gmra.mrb[4].mxu1 %vm584_vm5, %v561_v48 }
 0x497   :  { %6683 = vmatprep.mubr.msk.f32.mxu1 %vm8029_vm4, %v8030_v28  ;;  %7463 = vmatpush3.bf16.msra.mxu1 %v8140_v41 }
 0x499   :  { %v562_v51 = vpop.trf.xlu1 }
 0x49a   :  { %6684 = vmatmul.mubr.msk.f32.gmra.mrb[6].mxu1 %vm584_vm5, %v562_v51 }
 0x49b   :  { %6686 = vmatprep.mubr.msk.f32.mxu1 %vm8029_vm4, %v8030_v28 }
 0x49d   :  { %v563_v49 = vpop.trf.xlu1 }
 0x49e   :  { %6687 = vmatmul.mubr.msk.f32.gmra.mrb[8].mxu1 %vm584_vm5, %v563_v49 }
 0x49f   :  { %6689 = vmatprep.mubr.msk.f32.mxu1 %vm8029_vm4, %v8030_v28 }
 0x4a1   :  { %v564_v50 = vpop.trf.xlu1 }
 0x4a2   :  { %6690 = vmatmul.mubr.msk.f32.gmra.mrb[10].mxu1 %vm584_vm5, %v564_v50 }
 0x4a3   :  { %6692 = vmatprep.mubr.msk.f32.mxu1 %vm8029_vm4, %v8030_v28 }
 0x4a5   :  { %v565_v52 = vpop.trf.xlu1 }
 0x4a6   :  { %6693 = vmatmul.mubr.msk.f32.gmra.mrb[12].mxu1 %vm584_vm5, %v565_v52 }
 0x4a7   :  { %6695 = vmatprep.mubr.msk.f32.mxu1 %vm8029_vm4, %v8030_v28 }
 0x4a9   :  { %v566_v53 = vpop.trf.xlu1 }
 0x4aa   :  { %6696 = vmatmul.mubr.msk.f32.gmra.mrb[14].mxu1 %vm584_vm5, %v566_v53  ;;  %v4725_v53 = vld [vmem:[%s9863_s2 + $0x400] sm:$0xff] }
 0x4ab   :  { %6698 = vmatprep.mubr.msk.f32.mxu1 %vm8029_vm4, %v8030_v28 }
 0x4ad   :  { %v567_v56 = vpop.trf.xlu1 }
 0x4ae   :  { %6699 = vmatmul.mubr.msk.f32.gmra.mrb[16].mxu1 %vm584_vm5, %v567_v56 }
 0x4af   :  { %6701 = vmatprep.mubr.msk.f32.mxu1 %vm8029_vm4, %v8030_v28 }
 0x4b1   :  { %v568_v59 = vpop.trf.xlu1 }
 0x4b2   :  { %6702 = vmatmul.mubr.msk.f32.gmra.mrb[18].mxu1 %vm584_vm5, %v568_v59 }
 0x4b3   :  { %6704 = vmatprep.mubr.msk.f32.mxu1 %vm8029_vm4, %v8030_v28 }
 0x4b5   :  { %v569_v62 = vpop.trf.xlu1 }
 0x4b6   :  { %6705 = vmatmul.mubr.msk.f32.gmra.mrb[20].mxu1 %vm584_vm5, %v569_v62 }
 0x4b7   :  { %6707 = vmatprep.mubr.msk.f32.mxu1 %vm8029_vm4, %v8030_v28 }
 0x4b9   :  { %v570_v63 = vpop.trf.xlu1 }
 0x4ba   :  { %6708 = vmatmul.mubr.msk.f32.gmra.mrb[22].mxu1 %vm584_vm5, %v570_v63 }
 0x4e6   :  { %v522_v4 = vpop.xlane.xlu0 %521 }
 0x4e7   :  { %7848 = vrcp.f32 %v522_v4 }
 0x4ea   :  { %v530_v61 = vpop.xlane.xlu0 %529 }
 0x4eb   :  { %7850 = vrcp.f32 %v530_v61  ;;  %v77_v61 = vld [vmem:[%s9863_s2 + $0x38] sm:$0xff] }
 0x4ed   :  { %v410_v5 = vpop.xlane.xlu1 %409 }
 0x4ee   :  { %v420_v6 = vsel %vm69_vm3, %v410_v5, %v8232_v15  ;;  %v78_v5 = vld [vmem:[%s9863_s2 + $0x40] sm:$0xff] }
 0x4ef   :  { %v422_v7 = vmul.f32 0.125, %v420_v6 }
 0x4f1   :  { %v484_v8 = vsub.f32 %v8164_v54, %v422_v7  ;;  %v7849_v11 = vpop.eup %7848 }
 0x4f3   :  { %v486_v60 = vsub.f32 %v484_v8, %v469_v9  ;;  %v7440_v8 = vpack.c.bf16 %v78_v5, %v77_v61 }
 0x4f5   :  { %v7851_v12 = vpop.eup %7850  ;;  %v489_v13 = vmul.f32 1.442695, %v486_v60 }
 0x4f6   :  { %v542_v14 = vsel %vm69_vm3, %v7849_v11, %v7851_v12  ;;  %v79_v12 = vld [vmem:[%s9863_s2 + $0x48] sm:$0xff] }
 0x4f7   :  { %7852 = vpow2.f32 %v489_v13  ;;  %v749_v16 = vmul.f32 %v542_v14, %v8239_v37  ;;  %v25_v37 = vadd.s32 40, %v20_v31  ;;  %v80_v13 = vld [vmem:[%s9863_s2 + $0x50] sm:$0xff] }
 0x4f9   :  { %6732 = vmatprep.mubr.msk.f32.mxu0 %vm453_vm1, %v749_v16  ;;  %vm38_vm10 = vcmp.lt.s32.totalorder %v25_v37, 44 }
 0x4fa   :  { %vm50_vm11 = vmxor %vm38_vm10, %vm44_vm2 }
 0x4fb   :  { %vm61_vm12 = vmxor %vm50_vm11, %vm8031_vm6 }
 0x4fc   :  { %vm8338_vm13 = vmpackc.low %vm61_vm12, %vm8313_vm8  ;;  %vm3344_vm12 = vcmask 64512  }
 0x4fd   :  { %vm8521_vm6 = vmpackc.low %vm453_vm1, %vm453_vm1 }
 0x501   :  { %v7853_v18 = vpop.eup %7852 }
 0x502   :  { %v492_v15 = vadd.f32 0.0001, %v7853_v18 }
 0x504   :  { %v8299_v20 = vmul.f32 0.15075567, %v492_v15  ;;  %v7444_v15 = vpack.c.bf16 %v80_v13, %v79_v12 }
 0x506   :  { %v517_v54 = vmul.f32 %v8241_v38, %v8299_v20 }
 0x508   :  { %v519_v21 = vsel %vm69_vm3, %v517_v54, 0.0  ;;  %v527_v24 = vsel %vm69_vm3, 0.0, %v517_v54 }
 0x509   :  { %v523_v23 = vsel %vm453_vm1, %v519_v21, 0.0  ;;  %v531_v25 = vsel %vm453_vm1, %v527_v24, 0.0 }
 0x50a   :  { %524 = vadd.xlane.f32.xlu0 %v523_v23 }
 0x50e   :  { %532 = vadd.xlane.f32.xlu0 %v531_v25 }
 0x565   :  { %v684_v26 = vpop.f32.mrb[2].mxu1 }
 0x566   :  { %v6679_v27 = vpop.f32.mrb[3].mxu1 }
 0x569   :  { %v689_v33 = vpop.f32.mrb[4].mxu1 }
 0x56a   :  { %v7410_v35 = vpack.c.bf16 %v689_v33, %v684_v26  ;;  %v6682_v36 = vpop.f32.mrb[5].mxu1 }
 0x56c   :  { %7412 = vmatprep.subr.msk.bf16.mxu0 %vm8321_vm9, %v7410_v35 }
 0x56d   :  { %7415 = vmatpush3.bf16.msk.msra.mxu0 %vm8321_vm9, %v7410_v35  ;;  %v694_v38 = vpop.f32.mrb[6].mxu1 }
 0x56e   :  { %v6685_v55 = vpop.f32.mrb[7].mxu1 }
 0x571   :  { %v699_v57 = vpop.f32.mrb[8].mxu1 }
 0x572   :  { %v7416_v39 = vpack.c.bf16 %v699_v57, %v694_v38  ;;  %v6688_v40 = vpop.f32.mrb[9].mxu1 }
 0x574   :  { %7418 = vmatprep.subr.msk.bf16.mxu0 %vm8321_vm9, %v7416_v39 }
 0x575   :  { %7421 = vmatpush3.bf16.msk.msra.mxu0 %vm8321_vm9, %v7416_v39  ;;  %v704_v43 = vpop.f32.mrb[10].mxu1 }
 0x576   :  { %v6691_v44 = vpop.f32.mrb[11].mxu1 }
 0x579   :  { %v709_v45 = vpop.f32.mrb[12].mxu1 }
 0x57a   :  { %v7422_v47 = vpack.c.bf16 %v709_v45, %v704_v43  ;;  %v6694_v48 = vpop.f32.mrb[13].mxu1 }
 0x57c   :  { %7424 = vmatprep.subr.msk.bf16.mxu0 %vm8338_vm13, %v7422_v47 }
 0x57d   :  { %7427 = vmatpush3.bf16.msk.msra.mxu0 %vm8338_vm13, %v7422_v47  ;;  %v714_v51 = vpop.f32.mrb[14].mxu1 }
 0x57e   :  { %v6697_v50 = vpop.f32.mrb[15].mxu1 }
 0x581   :  { %v719_v52 = vpop.f32.mrb[16].mxu1 }
 0x582   :  { %v7428_v56 = vpack.c.bf16 %v719_v52, %v714_v51  ;;  %v6700_v59 = vpop.f32.mrb[17].mxu1 }
 0x584   :  { %7430 = vmatprep.subr.msk.bf16.mxu0 %vm8356_vm15, %v7428_v56 }
 0x585   :  { %7433 = vmatpush3.bf16.msk.msra.mxu0 %vm8356_vm15, %v7428_v56  ;;  %v724_v62 = vpop.f32.mrb[18].mxu1 }
 0x586   :  { %v6703_v63 = vpop.f32.mrb[19].mxu1 }
 0x589   :  { %v729_v2 = vpop.f32.mrb[20].mxu1 }
 0x58a   :  { %v7434_v3 = vpack.c.bf16 %v729_v2, %v724_v62  ;;  %v6706_v4 = vpop.f32.mrb[21].mxu1  ;;  %v88_v2 = vld [vmem:[%s9863_s2 + $0x90] sm:$0xff] }
 0x58c   :  { %7436 = vmatprep.subr.msk.bf16.mxu0 %vm8356_vm15, %v7434_v3 }
 0x58d   :  { %7439 = vmatpush3.bf16.msk.msra.mxu0 %vm8356_vm15, %v7434_v3  ;;  %v734_v6 = vpop.f32.mrb[22].mxu1  ;;  %v89_v3 = vld [vmem:[%s9863_s2 + $0x98] sm:$0xff] }
 0x58e   :  { %v6709_v7 = vpop.f32.mrb[23].mxu1  ;;  %6730 = vmatprep.subr.msk.mxu0 %vm8349_vm14, %v734_v6  ;;  %v7478_v4 = vpack.c.bf16 %v89_v3, %v88_v2 }
 0x591   :  { %6731 = vmatpush3.msk.msra.mxu0 %vm8349_vm14, %v734_v6 }
 0x592   :  { %7441 = vmatprep.subr.bf16.mxu0 %v7440_v8 }
 0x597   :  { %v525_v9 = vpop.xlane.xlu0 %524 }
 0x598   :  { %7854 = vrcp.f32 %v525_v9  ;;  %v90_v9 = vld [vmem:[%s9863_s2 + $0xa0] sm:$0xff] }
 0x59b   :  { %v533_v60 = vpop.xlane.xlu0 %532 }
 0x59c   :  { %7856 = vrcp.f32 %v533_v60  ;;  %v91_v60 = vld [vmem:[%s9863_s2 + $0xa8] sm:$0xff] }
 0x59d   :  { %v7482_v13 = vpack.c.bf16 %v91_v60, %v90_v9 }
 0x5a2   :  { %v7855_v11 = vpop.eup %7854 }
 0x5a6   :  { %v7857_v14 = vpop.eup %7856 }
 0x5a7   :  { %v543_v16 = vsel %vm69_vm3, %v7855_v11, %v7857_v14  ;;  %v6145_v11 = vld [vmem:[%s9863_s2 + $0x88] ss:$0 sm:$0xff] }
 0x5a8   :  { %v750_v18 = vmul.f32 %v543_v16, %v8299_v20  ;;  %v6131_v20 = vld [vmem:[%s9863_s2 + $0x58] ss:$0 sm:$0xff] }
 0x5aa   :  { %6733 = vmatmul.mubr.msk.f32.vlgmr.msra.gmra.mrb[4].mxu0 %vm453_vm1, %v750_v18 }
 0x5ab   :  { %7443 = vmatpush3.bf16.msra.mxu0 %v7440_v8 }
 0x5ac   :  { %7445 = vmatprep.subr.bf16.mxu0 %v7444_v15 }
 0x5af   :  { %7447 = vmatpush3.bf16.msra.mxu0 %v7444_v15 }
 0x5b0   :  { %7449 = vmatprep.subr.bf16.mxu0 %v8095_v17 }
 0x67d   :  { %v6734_v54 = vpop.f32.mrb[4].mxu0 }
 0x67e   :  { %v823_v21 = vpop.f32.mrb[5].mxu0 }
 0x67f   :  { %6743 = vmatprep.mubr.msk.f32.mxu0 %vm110_vm0, %v823_v21 }
 0x680   :  { %6744 = vmatmul.mubr.msk.f32.vlgmr.msra.gmra.mrb[6].mxu0 %vm110_vm0, %v6734_v54 }
 0x681   :  { %7451 = vmatpush3.bf16.msra.mxu0 %v8095_v17 }
 0x682   :  { %7453 = vmatprep.subr.bf16.mxu0 %v8100_v19 }
 0x685   :  { %7455 = vmatpush3.bf16.msra.mxu0 %v8100_v19 }
 0x686   :  { %7465 = vmatprep.subr.bf16.mxu0 %v8112_v22 }
 0x753   :  { %v6745_v23 = vpop.f32.mrb[6].mxu0 }
 0x754   :  { %v908_v24 = vpop.f32.mrb[7].mxu0  ;;  %v914_v25 = vadd.f32 %v6745_v23, %v6131_v20 }
 0x755   :  { %v909_v26 = vadd.f32 %v6131_v20, %v908_v24 }
 0x756   :  { %v8402_v29 = vadd.f32 %v914_v25, %v8076_v1 }
 0x757   :  { %v8399_v27 = vadd.f32 %v909_v26, %v8071_v0 }
 0x758   :  { %v922_v19 = vsel %vm110_vm0, %v8402_v29, 0.0 }
 0x759   :  { %v919_v17 = vsel %vm110_vm0, %v8399_v27, 0.0 }
 0x75a   :  { %920 = vadd.xlane.f32.xlu0 %v919_v17 }
 0x75e   :  { %923 = vadd.xlane.f32.xlu0 %v922_v19 }
 0x7e7   :  { %v921_v31 = vpop.xlane.xlu0 %920 }
 0x7e8   :  { %v925_v33 = vmul.f32 0.03125, %v921_v31 }
 0x7ea   :  { %v927_v35 = vsub.f32 %v8399_v27, %v925_v33 }
 0x7eb   :  { %v924_v36 = vpop.xlane.xlu0 %923 }
 0x7ec   :  { %v926_v37 = vmul.f32 0.03125, %v924_v36  ;;  %v929_v38 = vmul.f32 %v927_v35, %v927_v35 }
 0x7ee   :  { %v928_v0 = vsub.f32 %v8402_v29, %v926_v37  ;;  %v931_v1 = vsel %vm110_vm0, %v929_v38, 0.0 }
 0x7ef   :  { %932 = vadd.xlane.f32.xlu0 %v931_v1 }
 0x7f0   :  { %v930_v55 = vmul.f32 %v928_v0, %v928_v0 }
 0x7f2   :  { %v934_v57 = vsel %vm110_vm0, %v930_v55, 0.0 }
 0x7f3   :  { %935 = vadd.xlane.f32.xlu0 %v934_v57 }
 0x87c   :  { %v933_v39 = vpop.xlane.xlu0 %932 }
 0x87d   :  { %v937_v40 = vmul.f32 0.03125, %v933_v39 }
 0x87f   :  { %v939_v43 = vadd.f32 1e-05, %v937_v40 }
 0x880   :  { %v936_v44 = vpop.xlane.xlu0 %935 }
 0x881   :  { %7858 = vrsqrt.f32 %v939_v43  ;;  %v938_v45 = vmul.f32 0.03125, %v936_v44 }
 0x883   :  { %v940_v47 = vadd.f32 1e-05, %v938_v45 }
 0x885   :  { %7860 = vrsqrt.f32 %v940_v47 }
 0x88b   :  { %v7859_v48 = vpop.eup %7858 }
 0x88c   :  { %v943_v51 = vmul.f32 %v7859_v48, %v927_v35 }
 0x88e   :  { %v945_v50 = vmul.f32 %v8120_v30, %v943_v51 }
 0x88f   :  { %v7861_v52 = vpop.eup %7860 }
 0x890   :  { %v944_v56 = vmul.f32 %v7861_v52, %v928_v0  ;;  %v947_v59 = vadd.f32 %v8125_v32, %v945_v50 }
 0x892   :  { %6754 = vmatprep.mubr.msk.f32.mxu0 %vm110_vm0, %v947_v59  ;;  %v946_v62 = vmul.f32 %v8120_v30, %v944_v56 }
 0x894   :  { %v948_v63 = vadd.f32 %v8125_v32, %v946_v62 }
 0x896   :  { %6755 = vmatmul.mubr.msk.f32.vlgmr.msra.gmra.mrb[8].mxu0 %vm110_vm0, %v948_v63 }
 0x897   :  { %7467 = vmatpush3.bf16.msra.mxu0 %v8112_v22 }
 0x898   :  { %7469 = vmatprep.subr.bf16.mxu0 %v8140_v41 }
 0x89b   :  { %7471 = vmatpush3.bf16.msra.mxu0 %v8140_v41 }
 0x89c   :  { %7479 = vmatprep.subr.bf16.mxu0 %v7478_v4 }
 0x969   :  { %v6756_v30 = vpop.f32.mrb[8].mxu0 }
 0x96a   :  { %v1027_v32 = vadd.f32 %v6756_v30, %v8149_v42  ;;  %v1021_v61 = vpop.f32.mrb[9].mxu0 }
 0x96b   :  { %v1022_v22 = vadd.f32 %v8149_v42, %v1021_v61  ;;  %v6144_v42 = vld [vmem:[%s9863_s2 + $0x80] ss:$0 sm:$0xff] }
 0x96c   :  { %v1031_v5 = vmul.f32 0.5, %v1027_v32  ;;  %v1197_v7 = vmul.f32 %v1027_v32, %v1027_v32  ;;  %v1435_v8 = vmul.f32 %v6144_v42, %v943_v51  ;;  %v1436_v18 = vmul.f32 %v6144_v42, %v944_v56 }
 0x96d   :  { %v1030_v6 = vmul.f32 0.5, %v1022_v22  ;;  %v1196_v41 = vmul.f32 %v1022_v22, %v1022_v22 }
 0x96e   :  { %1115 = vrot.lane.b32.xlu1 %v1031_v5, %s8026_s18  ;;  %v1441_v16 = vadd.f32 %v6145_v11, %v1435_v8  ;;  %v1442_v20 = vadd.f32 %v6145_v11, %v1436_v18  ;;  %v1199_v38 = vsel %vm44_vm2, %v1197_v7, 0.0  ;;  %v1207_v52 = vsel %vm44_vm2, 0.0, %v1197_v7 }
 0x96f   :  { %1113 = vrot.lane.b32.xlu0 %v1030_v6, %s8026_s18  ;;  %6765 = vmatprep.mubr.msk.f32.mxu1 %vm110_vm0, %v1030_v6  ;;  %v1198_v33 = vsel %vm44_vm2, %v1196_v41, 0.0  ;;  %v1203_v57 = vsel %vm110_vm0, %v1199_v38, 0.0  ;;  %v1206_v48 = vsel %vm44_vm2, 0.0, %v1196_v41  ;;  %v1211_v56 = vsel %vm110_vm0, %v1207_v52, 0.0 }
 0x970   :  { %6766 = vmatmul.mubr.msk.f32.vlgmr.msra.gmra.mrb[24].mxu1 %vm110_vm0, %v1031_v5  ;;  %v1200_v36 = vsel %vm110_vm0, %v1198_v33, 0.0  ;;  %v1208_v50 = vsel %vm110_vm0, %v1206_v48, 0.0 }
 0x973   :  { %1220 = vrot.lane.b32.xlu0 %v1196_v41, %s8026_s18 }
 0x977   :  { %1222 = vrot.lane.b32.xlu0 %v1197_v7, %s8026_s18 }
 0x9e0   :  { %v1116_v14 = vpop.permute.xlu1 %1115 }
 0x9e1   :  { %v1114_v12 = vpop.permute.xlu0 %1113 }
 0x9e2   :  { %6776 = vmatprep.mubr.msk.f32.mxu0 %vm110_vm0, %v1114_v12 }
 0x9e3   :  { %6777 = vmatmul.mubr.msk.f32.vlgmr.msra.gmra.mrb[10].mxu0 %vm110_vm0, %v1116_v14 }
 0x9e4   :  { %7481 = vmatpush3.bf16.msra.mxu0 %v7478_v4  ;;  %6794 = vmatprep.mubr.msk.f32.mxu0 %vm110_vm0, %v1441_v16 }
 0x9e5   :  { %v1221_v15 = vpop.permute.xlu0 %1220  ;;  %7483 = vmatprep.subr.bf16.mxu0 %v7482_v13 }
 0x9e6   :  { %v1226_v54 = vsel %vm44_vm2, %v1221_v15, 0.0  ;;  %v1234_v0 = vsel %vm44_vm2, 0.0, %v1221_v15 }
 0x9e7   :  { %v1228_v21 = vsel %vm110_vm0, %v1226_v54, 0.0  ;;  %v1236_v39 = vsel %vm110_vm0, %v1234_v0, 0.0 }
 0x9e8   :  { %7485 = vmatpush3.bf16.msra.mxu0 %v7482_v13  ;;  %1229 = vadd.xlane.f32.xlu0 %v1228_v21 }
 0x9e9   :  { %v1223_v25 = vpop.permute.xlu0 %1222 }
 0x9ea   :  { %v1227_v35 = vsel %vm44_vm2, %v1223_v25, 0.0  ;;  %v1235_v43 = vsel %vm44_vm2, 0.0, %v1223_v25 }
 0x9eb   :  { %6795 = vmatmul.mubr.msk.f32.vlgmr.msra.gmra.mrb[12].mxu0 %vm110_vm0, %v1442_v20  ;;  %v1231_v37 = vsel %vm110_vm0, %v1227_v35, 0.0  ;;  %v1239_v45 = vsel %vm110_vm0, %v1235_v43, 0.0 }
 0xa43   :  { %v8454_v23 = vpop.f32.mrb[24].mxu1 }
 0xa44   :  { %v8456_v24 = vpop.f32.mrb[25].mxu1  ;;  %v1247_v47 = vsel %vm69_vm3, %v8454_v23, -1e+30  ;;  %v1255_v63 = vsel %vm69_vm3, -1e+30, %v8454_v23 }
 0xa45   :  { %v1246_v40 = vsel %vm69_vm3, %v8456_v24, -1e+30  ;;  %v1251_v51 = vsel %vm453_vm1, %v1247_v47, -inf  ;;  %v1254_v59 = vsel %vm69_vm3, -1e+30, %v8456_v24  ;;  %v1259_v2 = vsel %vm453_vm1, %v1255_v63, -inf }
 0xa46   :  { %v1248_v44 = vsel %vm453_vm1, %v1246_v40, -inf  ;;  %v1256_v62 = vsel %vm453_vm1, %v1254_v59, -inf }
 0xa75   :  { %v1230_v3 = vpop.xlane.xlu0 %1229 }
 0xab6   :  { %v8458_v26 = vpop.f32.mrb[10].mxu0 }
 0xab7   :  { %v1187_v17 = vpop.f32.mrb[11].mxu0  ;;  %v1267_v19 = vsel %vm453_vm1, %v8458_v26, -inf }
 0xab8   :  { %1268 = vmax.xlane.f32.xlu1 %v1267_v19  ;;  %v1264_v31 = vsel %vm453_vm1, %v1187_v17, -inf }
 0xab9   :  { %1265 = vmax.xlane.f32.xlu0 %v1264_v31 }
 0xabc   :  { %1201 = vadd.xlane.f32.xlu1 %v1200_v36 }
 0xabd   :  { %1232 = vadd.xlane.f32.xlu0 %v1231_v37 }
 0xabe   :  { %v8473_v1 = vpop.f32.mrb[12].mxu0 }
 0xabf   :  { %v8475_v55 = vpop.f32.mrb[13].mxu0 }
 0xac0   :  { %1204 = vadd.xlane.f32.xlu1 %v1203_v57 }
 0xac1   :  { %1237 = vadd.xlane.f32.xlu0 %v1236_v39 }
 0xac4   :  { %1249 = vmax.xlane.f32.xlu1 %v1248_v44 }
 0xac5   :  { %1240 = vadd.xlane.f32.xlu0 %v1239_v45 }
 0xac8   :  { %1252 = vmax.xlane.f32.xlu1 %v1251_v51 }
 0xac9   :  { %1209 = vadd.xlane.f32.xlu0 %v1208_v50 }
 0xacd   :  { %1212 = vadd.xlane.f32.xlu0 %v1211_v56 }
 0xad1   :  { %1257 = vmax.xlane.f32.xlu0 %v1256_v62 }
 0xad5   :  { %1260 = vmax.xlane.f32.xlu0 %v1259_v2 }
 0xb45   :  { %v1269_v4 = vpop.xlane.xlu1 %1268 }
 0xb46   :  { %v1266_v30 = vpop.xlane.xlu0 %1265 }
 0xb47   :  { %v1270_v32 = vmax.f32 %v1266_v30, %v1269_v4 }
 0xb49   :  { %v1271_v61 = vrot.slane %v1270_v32, 4  ;;  %v1202_v8 = vpop.xlane.xlu1 %1201 }
 0xb4a   :  { %v1233_v22 = vpop.xlane.xlu0 %1232 }
 0xb4b   :  { %v1272_v5 = vmax.f32 %v1270_v32, %v1271_v61 }
 0xb4d   :  { %v1273_v6 = vrot.slane %v1272_v5, 2  ;;  %v1205_v15 = vpop.xlane.xlu1 %1204 }
 0xb4e   :  { %v1238_v41 = vpop.xlane.xlu0 %1237 }
 0xb4f   :  { %v1274_v7 = vmax.f32 %v1272_v5, %v1273_v6  ;;  %v1242_v42 = vsel %vm69_vm3, %v1230_v3, %v1238_v41 }
 0xb50   :  { %v1244_v9 = vmul.f32 0.125, %v1242_v42 }
 0xb51   :  { %v1275_v60 = vrot.slane %v1274_v7, 1  ;;  %v1250_v36 = vpop.xlane.xlu1 %1249 }
 0xb52   :  { %v1289_v11 = vsub.f32 %v1187_v17, %v1244_v9  ;;  %v1241_v12 = vpop.xlane.xlu0 %1240 }
 0xb53   :  { %v1276_v13 = vmax.f32 %v1274_v7, %v1275_v60  ;;  %v1243_v14 = vsel %vm69_vm3, %v1233_v22, %v1241_v12 }
 0xb54   :  { %v1245_v16 = vmul.f32 0.125, %v1243_v14 }
 0xb55   :  { %v1291_v18 = vsub.f32 %v1289_v11, %v1276_v13  ;;  %v1253_v39 = vpop.xlane.xlu1 %1252 }
 0xb56   :  { %v1290_v54 = vsub.f32 %v8458_v26, %v1245_v16  ;;  %v1210_v21 = vpop.xlane.xlu0 %1209 }
 0xb57   :  { %v1293_v20 = vmul.f32 1.442695, %v1291_v18  ;;  %v1214_v25 = vsel %vm69_vm3, %v1202_v8, %v1210_v21 }
 0xb58   :  { %v1292_v19 = vsub.f32 %v1290_v54, %v1276_v13  ;;  %v1216_v33 = vmul.f32 0.125, %v1214_v25  ;;  %v94_v25 = vld [vmem:[%s9863_s2 + $0xc0] sm:$0xff] }
 0xb59   :  { %7862 = vpow2.f32 %v1293_v20  ;;  %v93_v20 = vld [vmem:[%s9863_s2 + $0xb8] sm:$0xff] }
 0xb5a   :  { %v1295_v31 = vmul.f32 1.442695, %v1292_v19  ;;  %v1213_v17 = vpop.xlane.xlu0 %1212  ;;  %v1277_v37 = vsub.f32 %v8456_v24, %v1216_v33  ;;  %v8555_v19 = vpack.c.bf16 %v94_v25, %v93_v20  ;;  %v96_v20 = vld [vmem:[%s9863_s2 + $0xd0] sm:$0xff] }
 0xb5b   :  { %v1215_v35 = vsel %vm69_vm3, %v1205_v15, %v1213_v17 }
 0xb5c   :  { %7864 = vpow2.f32 %v1295_v31  ;;  %v1217_v38 = vmul.f32 0.125, %v1215_v35  ;;  %v6146_v31 = vld [vmem:[%s9863_s2 + $0xb0] ss:$0 sm:$0xff] }
 0xb5d   :  { %v1520_v33 = vadd.f32 %v6146_v31, %v8475_v55 }
 0xb5e   :  { %v1258_v0 = vpop.xlane.xlu0 %1257  ;;  %v1278_v40 = vsub.f32 %v8454_v23, %v1217_v38 }
 0xb5f   :  { %v1262_v26 = vsel %vm69_vm3, %v1250_v36, %v1258_v0  ;;  %v1530_v17 = vmul.f32 0.70710677, %v1520_v33  ;;  %v8563_v0 = vadd.f32 %v8473_v1, %v6146_v31  ;;  %v1528_v31 = vmul.f32 0.5, %v1520_v33 }
 0xb60   :  { %v1279_v57 = vsub.f32 %v1277_v37, %v1262_v26 }
 0xb61   :  { %v1536_v35 = vand.u32 2147483647, %v1530_v17  ;;  %vm1532_vm7 = vcmp.ge.f32.partialorder %v1530_v17, 0.0 }
 0xb62   :  { %v1261_v43 = vpop.xlane.xlu0 %1260  ;;  %v1281_v45 = vmul.f32 1.442695, %v1279_v57  ;;  %v8566_v57 = vmul.f32 0.70710677, %v8563_v0 }
 0xb63   :  { %v7863_v44 = vpop.eup %7862  ;;  %v1263_v47 = vsel %vm69_vm3, %v1253_v39, %v1261_v43  ;;  %v1538_v36 = vmul.f32 0.3275911, %v1536_v35  ;;  %v1564_v55 = vsub.f32 0.0, %v1536_v35 }
 0xb64   :  { %v1297_v48 = vadd.f32 0.0001, %v7863_v44  ;;  %v1280_v51 = vsub.f32 %v1278_v40, %v1263_v47  ;;  %7866 = vpow2.f32 %v1281_v45  ;;  %v1537_v40 = vand.u32 2147483647, %v8566_v57 }
 0xb65   :  { %v1540_v37 = vadd.f32 1.0, %v1538_v36  ;;  %vm1533_vm8 = vcmp.ge.f32.partialorder %v8566_v57, 0.0  ;;  %v1529_v57 = vmul.f32 0.5, %v8563_v0 }
 0xb66   :  { %v7865_v50 = vpop.eup %7864  ;;  %v1283_v52 = vmul.f32 1.442695, %v1280_v51  ;;  %v1299_v56 = vmul.f32 0.15075567, %v1297_v48  ;;  %v1539_v44 = vmul.f32 0.3275911, %v1537_v40  ;;  %v1566_v51 = vmul.f32 %v1564_v55, %v1536_v35 }
 0xb67   :  { %v1298_v24 = vadd.f32 0.0001, %v7865_v50  ;;  %v102_v55 = vld [vmem:[%s9863_s2 + $0x100] sm:$0xff] }
 0xb68   :  { %7868 = vpow2.f32 %v1283_v52  ;;  %v1301_v23 = vsel %vm453_vm1, %v1299_v56, 0.0  ;;  %v1541_v47 = vadd.f32 1.0, %v1539_v44  ;;  %v1568_v52 = vmul.f32 1.442695, %v1566_v51  ;;  %v103_v51 = vld [vmem:[%s9863_s2 + $0x108] sm:$0xff] }
 0xb69   :  { %v1300_v59 = vmul.f32 0.15075567, %v1298_v24  ;;  %7870 = vrcp.f32 %v1540_v37 }
 0xb6a   :  { %7872 = vrcp.f32 %v1541_v47 }
 0xb6b   :  { %v1302_v63 = vsel %vm453_vm1, %v1300_v59, 0.0  ;;  %v7472_v2 = vpack.c.bf16 %v1300_v59, %v1299_v56  ;;  %7874 = vpow2.f32 %v1568_v52 }
 0xb6c   :  { %v1303_v3 = vadd.f32 %v1302_v63, %v1301_v23 }
 0xb6d   :  { %7474 = vmatprep.subr.msk.bf16.mxu1 %vm8521_vm6, %v7472_v2 }
 0xb6e   :  { %7477 = vmatpush3.bf16.xpose.msk.msra.mxu1 %vm8521_vm6, %v7472_v2  ;;  %v1304_v4 = vrot.slane %v1303_v3, 4  ;;  %v7867_v32 = vpop.eup %7866 }
 0xb6f   :  { %v1285_v5 = vadd.f32 0.0001, %v7867_v32  ;;  %7487 = vmatprep.subr.bf16.mxu1 %v8555_v19 }
 0xb70   :  { %v1305_v30 = vadd.f32 %v1304_v4, %v1303_v3 }
 0xb71   :  { %v8531_v42 = vmul.f32 0.15075567, %v1285_v5 }
 0xb72   :  { %v7869_v61 = vpop.eup %7868  ;;  %v1306_v22 = vrot.slane %v1305_v30, 2 }
 0xb73   :  { %v1286_v41 = vadd.f32 0.0001, %v7869_v61  ;;  %v7871_v38 = vpop.eup %7870 }
 0xb74   :  { %v1307_v6 = vadd.f32 %v1306_v22, %v1305_v30  ;;  %v1546_v26 = vmul.f32 1.0614054, %v7871_v38  ;;  %v7873_v1 = vpop.eup %7872 }
 0xb75   :  { %v8533_v9 = vmul.f32 0.15075567, %v1286_v41  ;;  %v1547_v59 = vmul.f32 1.0614054, %v7873_v1  ;;  %v7875_v3 = vpop.eup %7874  ;;  %v8032_v41 = vmov -1.0  }
 0xb76   :  { %v1308_v7 = vrot.slane %v1307_v6, 1  ;;  %v1548_v39 = vadd.f32 -1.4531521, %v1546_v26  ;;  %v97_v26 = vld [vmem:[%s9863_s2 + $0xd8] sm:$0xff] }
 0xb77   :  { %v1549_v4 = vadd.f32 -1.4531521, %v1547_v59  ;;  %v105_v59 = vld [vmem:[%s9863_s2 + $0x118] sm:$0xff] }
 0xb78   :  { %v1309_v8 = vadd.f32 %v1308_v7, %v1307_v6  ;;  %v1550_v43 = vmul.f32 %v7871_v38, %v1548_v39  ;;  %v1534_v7 = vsel %vm1532_vm7, 1.0, %v8032_v41  ;;  %v98_v39 = vld [vmem:[%s9863_s2 + $0xe0] sm:$0xff] }
 0xb79   :  { %v1551_v22 = vmul.f32 %v7873_v1, %v1549_v4  ;;  %v1535_v4 = vsel %vm1533_vm8, 1.0, %v8032_v41 }
 0xb7a   :  { %v1310_v60 = vmul.f32 %v1309_v8, %v8531_v42  ;;  %v1311_v11 = vmul.f32 %v1309_v8, %v8533_v9  ;;  %v1552_v45 = vadd.f32 1.4214138, %v1550_v43  ;;  %v100_v43 = vld [vmem:[%s9863_s2 + $0xf0] sm:$0xff] }
 0xb7b   :  { %v1553_v6 = vadd.f32 1.4214138, %v1551_v22 }
 0xb7c   :  { %v1320_v12 = vsel %vm69_vm3, 0.0, %v1310_v60  ;;  %v1312_v13 = vsel %vm69_vm3, %v1310_v60, 0.0  ;;  %v1321_v18 = vsel %vm69_vm3, 0.0, %v1311_v11  ;;  %v1313_v15 = vsel %vm69_vm3, %v1311_v11, 0.0 }
 0xb7d   :  { %v1322_v14 = vsel %vm453_vm1, %v1320_v12, 0.0  ;;  %v1314_v16 = vsel %vm453_vm1, %v1312_v13, 0.0  ;;  %v1325_v54 = vsel %vm453_vm1, %v1321_v18, 0.0  ;;  %v1317_v21 = vsel %vm453_vm1, %v1313_v15, 0.0 }
 0xb7e   :  { %1323 = vadd.xlane.f32.xlu0 %v1322_v14  ;;  %1315 = vadd.xlane.f32.xlu1 %v1314_v16  ;;  %v1554_v48 = vmul.f32 %v7871_v38, %v1552_v45  ;;  %v1565_v60 = vsub.f32 0.0, %v1537_v40  ;;  %v1555_v14 = vmul.f32 %v7873_v1, %v1553_v6 }
 0xb80   :  { %v1556_v50 = vadd.f32 -0.28449672, %v1554_v48  ;;  %v1567_v15 = vmul.f32 %v1565_v60, %v1537_v40  ;;  %v1557_v35 = vadd.f32 -0.28449672, %v1555_v14  ;;  %v7494_v40 = vpack.c.bf16 %v98_v39, %v97_v26  ;;  %v1675_v39 = vld [vmem:[%s9863_s2 + $0x1a0] sm:$0xff] }
 0xb82   :  { %1326 = vadd.xlane.f32.xlu0 %v1325_v54  ;;  %1318 = vadd.xlane.f32.xlu1 %v1317_v21  ;;  %v1558_v24 = vmul.f32 %v7871_v38, %v1556_v50  ;;  %v95_v21 = vld [vmem:[%s9863_s2 + $0xc8] sm:$0xff]  ;;  %v1570_v37 = vmul.f32 1.442695, %v1567_v15  ;;  %v1559_v33 = vmul.f32 %v7873_v1, %v1557_v35  ;;  %v104_v50 = vld [vmem:[%s9863_s2 + $0x110] sm:$0xff] }
 0xb83   :  { %v7490_v36 = vpack.c.bf16 %v96_v20, %v95_v21  ;;  %v1665_v35 = vld [vmem:[%s9863_s2 + $0x150] sm:$0xff] }
 0xb84   :  { %v1560_v56 = vadd.f32 0.2548296, %v1558_v24  ;;  %v1561_v44 = vadd.f32 0.2548296, %v1559_v33  ;;  %v1676_v33 = vld [vmem:[%s9863_s2 + $0x1a8] sm:$0xff] }
 0xb86   :  { %v1562_v23 = vmul.f32 %v7871_v38, %v1560_v56  ;;  %v1563_v47 = vmul.f32 %v7873_v1, %v1561_v44  ;;  %v7506_v56 = vpack.c.bf16 %v104_v50, %v103_v51  ;;  %v106_v1 = vld [vmem:[%s9863_s2 + $0x120] sm:$0xff] }
 0xb88   :  { %v1572_v30 = vmul.f32 %v7875_v3, %v1562_v23  ;;  %v108_v3 = vld [vmem:[%s9863_s2 + $0x130] sm:$0xff] }
 0xb8a   :  { %v1574_v5 = vsub.f32 1.0, %v1572_v30 }
 0xb8c   :  { %v1576_v11 = vmul.f32 %v1574_v5, %v1534_v7  ;;  %v6149_v7 = vld [vmem:[%s9863_s2 + $0x138] ss:$0 sm:$0xff] }
 0xb8e   :  { %v1578_v54 = vadd.f32 1.0, %v1576_v11 }
 0xb90   :  { %v1580_v38 = vmul.f32 %v1578_v54, %v1528_v31 }
 0xc0b   :  { %v1324_v63 = vpop.xlane.xlu0 %1323  ;;  %v1316_v2 = vpop.xlane.xlu1 %1315 }
 0xc0c   :  { %7876 = vrcp.f32 %v1324_v63  ;;  %v7510_v63 = vpack.c.bf16 %v106_v1, %v105_v59 }
 0xc0d   :  { %7878 = vrcp.f32 %v1316_v2  ;;  %v107_v2 = vld [vmem:[%s9863_s2 + $0x128] sm:$0xff] }
 0xc0f   :  { %v1327_v32 = vpop.xlane.xlu0 %1326  ;;  %v1319_v61 = vpop.xlane.xlu1 %1318 }
 0xc10   :  { %7880 = vrcp.f32 %v1327_v32  ;;  %v7514_v32 = vpack.c.bf16 %v108_v3, %v107_v2  ;;  %v1678_v2 = vld [vmem:[%s9863_s2 + $0x1b8] sm:$0xff] }
 0xc11   :  { %7882 = vrcp.f32 %v1319_v61 }
 0xc12   :  { %7884 = vpow2.f32 %v1570_v37  ;;  %v1667_v37 = vld [vmem:[%s9863_s2 + $0x160] sm:$0xff] }
 0xc16   :  { %v7877_v8 = vpop.eup %7876 }
 0xc17   :  { %v7879_v12 = vpop.eup %7878 }
 0xc18   :  { %v1336_v13 = vsel %vm69_vm3, %v7879_v12, %v7877_v8 }
 0xc19   :  { %v1338_v16 = vmul.f32 %v1336_v13, %v8531_v42 }
 0xc1a   :  { %v7881_v18 = vpop.eup %7880 }
 0xc1b   :  { %v7883_v25 = vpop.eup %7882  ;;  %6783 = vmatprep.mubr.msk.f32.mxu1 %vm453_vm1, %v1338_v16 }
 0xc1c   :  { %v1337_v17 = vsel %vm69_vm3, %v7883_v25, %v7881_v18  ;;  %v7885_v52 = vpop.eup %7884 }
 0xc1d   :  { %v1339_v42 = vmul.f32 %v1337_v17, %v8533_v9  ;;  %v99_v9 = vld [vmem:[%s9863_s2 + $0xe8] sm:$0xff]  ;;  %v1573_v24 = vmul.f32 %v7885_v52, %v1563_v47 }
 0xc1e   :  { %v7498_v45 = vpack.c.bf16 %v100_v43, %v99_v9 }
 0xc1f   :  { %6784 = vmatmul.mubr.msk.f32.vlgmr.msra.gmra.mrb[26].mxu1 %vm453_vm1, %v1339_v42  ;;  %v1575_v23 = vsub.f32 1.0, %v1573_v24  ;;  %v1666_v42 = vld [vmem:[%s9863_s2 + $0x158] sm:$0xff]  ;;  %v8682_v24 = vld [vmem:[%s9863_s2 + $0x148] ss:$0 sm:$0xff] }
 0xc20   :  { %7489 = vmatpush3.bf16.msra.mxu1 %v8555_v19  ;;  %6829 = vmatprep.mubr.f32.mxu1 %v1580_v38  ;;  %v101_v19 = vld [vmem:[%s9863_s2 + $0xf8] sm:$0xff]  ;;  %v1668_v38 = vld [vmem:[%s9863_s2 + $0x168] sm:$0xff] }
 0xc21   :  { %7491 = vmatprep.subr.bf16.mxu1 %v7490_v36  ;;  %v7502_v48 = vpack.c.bf16 %v102_v55, %v101_v19  ;;  %v1577_v30 = vmul.f32 %v1575_v23, %v1535_v4  ;;  %v8661_v26 = vpack.c.bf16 %v1668_v38, %v1667_v37  ;;  %v8705_v4 = vld [vmem:[%s9863_s2 + $0x170] ss:$0 sm:$0xff] }
 0xc23   :  { %v1579_v61 = vadd.f32 1.0, %v1577_v30 }
 0xc24   :  { %7493 = vmatpush3.bf16.msra.mxu1 %v7490_v36  ;;  %v8651_v36 = vpack.c.bf16 %v1666_v42, %v1665_v35 }
 0xc25   :  { %7495 = vmatprep.subr.bf16.mxu1 %v7494_v40  ;;  %v1581_v22 = vmul.f32 %v1579_v61, %v1529_v57 }
 0xc26   :  { %7519 = vmatprep.subr.bf16.mxu0 %v8651_v36 }
 0xc27   :  { %7521 = vmatpush3.bf16.msra.mxu0 %v8651_v36 }
 0xc28   :  { %7497 = vmatpush3.bf16.msra.mxu1 %v7494_v40  ;;  %7523 = vmatprep.subr.bf16.mxu0 %v8661_v26  ;;  %v8671_v40 = vpack.c.bf16 %v1676_v33, %v1675_v39 }
 0xc29   :  { %7499 = vmatprep.subr.bf16.mxu1 %v7498_v45 }
 0xc2b   :  { %7525 = vmatpush3.bf16.msra.mxu0 %v8661_v26 }
 0xc2c   :  { %7501 = vmatpush3.bf16.msra.mxu1 %v7498_v45  ;;  %7527 = vmatprep.subr.bf16.mxu0 %v8671_v40 }
 0xc2d   :  { %7503 = vmatprep.subr.bf16.mxu1 %v7502_v48 }
 0xc30   :  { %7505 = vmatpush3.bf16.msra.mxu1 %v7502_v48  ;;  %v8677_v48 = vld [vmem:[%s9863_s2 + $0x140] ss:$0 sm:$0xff] }
 0xc31   :  { %7507 = vmatprep.subr.bf16.mxu1 %v7506_v56 }
 0xc34   :  { %7509 = vmatpush3.bf16.msra.mxu1 %v7506_v56 }
 0xc35   :  { %7511 = vmatprep.subr.bf16.mxu1 %v7510_v63 }
 0xc38   :  { %7513 = vmatpush3.bf16.msra.mxu1 %v7510_v63  ;;  %v1677_v63 = vld [vmem:[%s9863_s2 + $0x1b0] sm:$0xff] }
 0xc39   :  { %7515 = vmatprep.subr.bf16.mxu1 %v7514_v32  ;;  %v8697_v3 = vpack.c.bf16 %v1678_v2, %v1677_v63 }
 0xc3c   :  { %7517 = vmatpush3.bf16.msra.mxu1 %v7514_v32 }
 0xc3f   :  { %6830 = vmatmul.mubr.f32.vlgmr.msra.gmra.mrb[28].mxu1 %v1581_v22 }
 0xcf2   :  { %v8624_v5 = vpop.f32.mrb[26].mxu1 }
 0xcf3   :  { %v8626_v6 = vpop.f32.mrb[27].mxu1 }
 0xd12   :  { %v6831_v8 = vpop.f32.mrb[28].mxu1 }
 0xd13   :  { %v1658_v60 = vadd.f32 %v6831_v8, %v6149_v7  ;;  %v1652_v11 = vpop.f32.mrb[29].mxu1 }
 0xd14   :  { %v1653_v12 = vadd.f32 %v6149_v7, %v1652_v11 }
 0xd15   :  { %v8632_v13 = vadd.f32 %v1658_v60, %v8402_v29 }
 0xd16   :  { %v8635_v0 = vadd.f32 %v1653_v12, %v8399_v27 }
 0xd17   :  { %v1706_v14 = vsel %vm110_vm0, %v8632_v13, 0.0 }
 0xd18   :  { %1707 = vadd.xlane.f32.xlu0 %v1706_v14  ;;  %v1703_v16 = vsel %vm110_vm0, %v8635_v0, 0.0 }
 0xd19   :  { %1704 = vadd.xlane.f32.xlu1 %v1703_v16 }
 0xda5   :  { %v1708_v18 = vpop.xlane.xlu0 %1707 }
 0xda6   :  { %v1710_v15 = vmul.f32 0.03125, %v1708_v18  ;;  %v1705_v54 = vpop.xlane.xlu1 %1704 }
 0xda7   :  { %v1709_v21 = vmul.f32 0.03125, %v1705_v54 }
 0xda8   :  { %v1712_v20 = vsub.f32 %v8632_v13, %v1710_v15 }
 0xda9   :  { %v1711_v29 = vsub.f32 %v8635_v0, %v1709_v21 }
 0xdaa   :  { %v1714_v25 = vmul.f32 %v1712_v20, %v1712_v20 }
 0xdab   :  { %v1713_v31 = vmul.f32 %v1711_v29, %v1711_v29 }
 0xdac   :  { %v1718_v27 = vsel %vm110_vm0, %v1714_v25, 0.0 }
 0xdad   :  { %1719 = vadd.xlane.f32.xlu0 %v1718_v27  ;;  %v1715_v17 = vsel %vm110_vm0, %v1713_v31, 0.0 }
 0xdae   :  { %1716 = vadd.xlane.f32.xlu1 %v1715_v17 }
 0xe3a   :  { %v1720_v9 = vpop.xlane.xlu0 %1719 }
 0xe3b   :  { %v1722_v43 = vmul.f32 0.03125, %v1720_v9  ;;  %v1717_v44 = vpop.xlane.xlu1 %1716 }
 0xe3c   :  { %v1721_v45 = vmul.f32 0.03125, %v1717_v44 }
 0xe3d   :  { %v1724_v19 = vadd.f32 1e-05, %v1722_v43 }
 0xe3e   :  { %v1723_v55 = vadd.f32 1e-05, %v1721_v45 }
 0xe3f   :  { %7886 = vrsqrt.f32 %v1724_v19 }
 0xe40   :  { %7888 = vrsqrt.f32 %v1723_v55 }
 0xe49   :  { %v7887_v47 = vpop.eup %7886 }
 0xe4a   :  { %v7889_v51 = vpop.eup %7888  ;;  %v1728_v50 = vmul.f32 %v7887_v47, %v1712_v20 }
 0xe4b   :  { %v1727_v52 = vmul.f32 %v7889_v51, %v1711_v29 }
 0xe4c   :  { %v1734_v56 = vmul.f32 %v8677_v48, %v1728_v50 }
 0xe4d   :  { %v1733_v59 = vmul.f32 %v8677_v48, %v1727_v52 }
 0xe4e   :  { %v1740_v23 = vadd.f32 %v8682_v24, %v1734_v56 }
 0xe4f   :  { %v1739_v1 = vadd.f32 %v8682_v24, %v1733_v59 }
 0xe51   :  { %6840 = vmatprep.mubr.msk.f32.mxu0 %vm110_vm0, %v1739_v1 }
 0xe52   :  { %6841 = vmatmul.mubr.msk.f32.vlgmr.msra.gmra.mrb[14].mxu0 %vm110_vm0, %v1740_v23 }
 0xe53   :  { %7529 = vmatpush3.bf16.msra.mxu0 %v8671_v40 }
 0xe54   :  { %7531 = vmatprep.subr.bf16.mxu0 %v8697_v3 }
 0xe57   :  { %7533 = vmatpush3.bf16.msra.mxu0 %v8697_v3 }
 0xe58   :  { %7535 = vmatprep.subr.bf16.mxu0 %v8671_v40 }
 0xf25   :  { %v6842_v30 = vpop.f32.mrb[14].mxu0 }
 0xf26   :  { %v1823_v32 = vadd.f32 %v6842_v30, %v8705_v4  ;;  %v1817_v61 = vpop.f32.mrb[15].mxu0 }
 0xf27   :  { %v1818_v57 = vadd.f32 %v8705_v4, %v1817_v61 }
 0xf28   :  { %v1827_v22 = vmul.f32 0.5, %v1823_v32  ;;  %v1993_v11 = vmul.f32 %v1823_v32, %v1823_v32 }
 0xf29   :  { %v1826_v7 = vmul.f32 0.5, %v1818_v57  ;;  %v7831_v8 = vpack.i.bf16 %v1823_v32, %v1818_v57  ;;  %v8713_v60 = vmul.f32 %v1818_v57, %v1818_v57 }
 0xf2a   :  { %1911 = vrot.lane.b32.xlu0 %v1827_v22, %s8026_s18  ;;  %v1995_v43 = vsel %vm44_vm2, %v1993_v11, 0.0  ;;  %v2003_v45 = vsel %vm44_vm2, 0.0, %v1993_v11 }
 0xf2b   :  { %1909 = vrot.lane.b32.xlu1 %v1826_v7, %s8026_s18  ;;  %6851 = vmatprep.mubr.msk.f32.mxu0 %vm110_vm0, %v1826_v7  ;;  %v1994_v33 = vsel %vm44_vm2, %v8713_v60, 0.0  ;;  %v1999_v44 = vsel %vm110_vm0, %v1995_v43, 0.0  ;;  %v2007_v19 = vsel %vm110_vm0, %v2003_v45, 0.0 }
 0xf2c   :  { %6852 = vmatmul.mubr.msk.f32.vlgmr.msra.gmra.mrb[16].mxu0 %vm110_vm0, %v1827_v22  ;;  %v1996_v9 = vsel %vm110_vm0, %v1994_v33, 0.0 }
 0xf2d   :  { %7537 = vmatpush3.bf16.msra.mxu0 %v8671_v40 }
 0xf2e   :  { %7539 = vmatprep.subr.bf16.mxu0 %v8697_v3 }
 0xf2f   :  { %2016 = vrot.lane.b32.xlu1 %v8713_v60, %s8026_s18 }
 0xf31   :  { %7541 = vmatpush3.bf16.msra.mxu0 %v8697_v3 }
 0xf32   :  { %7542 = vmatprep.subr.bf16.mxu0 %v8028_v10 }
 0xf33   :  { %2018 = vrot.lane.b32.xlu1 %v1993_v11, %s8026_s18 }
 0xf9c   :  { %v1912_v14 = vpop.permute.xlu0 %1911 }
 0xf9d   :  { %v1910_v12 = vpop.permute.xlu1 %1909 }
 0xf9e   :  { %6862 = vmatprep.mubr.msk.f32.mxu0 %vm110_vm0, %v1910_v12 }
 0xf9f   :  { %6863 = vmatmul.mubr.msk.f32.vlgmr.msra.gmra.mrb[18].mxu0 %vm110_vm0, %v1912_v14 }
 0xfa0   :  { %6869 = vmatprep.mubr.msk.f32.mxu0 %vm8029_vm4, %v8030_v28 }
 0xfa1   :  { %v2017_v15 = vpop.permute.xlu1 %2016 }
 0xfa2   :  { %v2022_v27 = vsel %vm44_vm2, %v2017_v15, 0.0  ;;  %v2030_v42 = vsel %vm44_vm2, 0.0, %v2017_v15 }
 0xfa3   :  { %v2024_v35 = vsel %vm110_vm0, %v2022_v27, 0.0  ;;  %v2032_v37 = vsel %vm110_vm0, %v2030_v42, 0.0 }
 0xfa5   :  { %v2019_v54 = vpop.permute.xlu1 %2018 }
 0xfa6   :  { %v2023_v31 = vsel %vm44_vm2, %v2019_v54, 0.0  ;;  %v2031_v38 = vsel %vm44_vm2, 0.0, %v2019_v54 }
 0xfa7   :  { %v2027_v17 = vsel %vm110_vm0, %v2023_v31, 0.0  ;;  %v2035_v39 = vsel %vm110_vm0, %v2031_v38, 0.0 }
 0xfff   :  { %v8726_v16 = vpop.f32.mrb[16].mxu0 }
0x1000   :  { %v8728_v18 = vpop.f32.mrb[17].mxu0  ;;  %v2043_v52 = vsel %vm69_vm3, %v8726_v16, -1e+30  ;;  %v2051_v59 = vsel %vm69_vm3, -1e+30, %v8726_v16 }
0x1001   :  { %v2042_v55 = vsel %vm69_vm3, %v8728_v18, -1e+30  ;;  %v2050_v51 = vsel %vm69_vm3, -1e+30, %v8728_v18  ;;  %v2047_v56 = vsel %vm453_vm1, %v2043_v52, -inf  ;;  %v2055_v1 = vsel %vm453_vm1, %v2051_v59, -inf }
0x1002   :  { %v2044_v47 = vsel %vm453_vm1, %v2042_v55, -inf  ;;  %v2052_v50 = vsel %vm453_vm1, %v2050_v51, -inf }
0x1072   :  { %v8730_v21 = vpop.f32.mrb[18].mxu0 }
0x1073   :  { %v8732_v20 = vpop.f32.mrb[19].mxu0  ;;  %v2063_v29 = vsel %vm453_vm1, %v8730_v21, -inf }
0x1074   :  { %2064 = vmax.xlane.f32.xlu1 %v2063_v29  ;;  %v2060_v25 = vsel %vm453_vm1, %v8732_v20, -inf }
0x1075   :  { %2061 = vmax.xlane.f32.xlu0 %v2060_v25 }
0x1078   :  { %2028 = vadd.xlane.f32.xlu1 %v2027_v17 }
0x1079   :  { %2025 = vadd.xlane.f32.xlu0 %v2024_v35 }
0x107d   :  { %2033 = vadd.xlane.f32.xlu0 %v2032_v37 }
0x1081   :  { %2036 = vadd.xlane.f32.xlu0 %v2035_v39 }
0x1089   :  { %7832 = vrot.lane.b32.xlu1 %v7831_v8, %s8027_s19 }
0x10ad   :  { %1997 = vadd.xlane.f32.xlu1 %v1996_v9 }
0x10b1   :  { %2000 = vadd.xlane.f32.xlu1 %v1999_v44 }
0x10b5   :  { %2008 = vadd.xlane.f32.xlu1 %v2007_v19 }
0x10b9   :  { %2045 = vmax.xlane.f32.xlu1 %v2044_v47 }
0x10bd   :  { %2053 = vmax.xlane.f32.xlu1 %v2052_v50 }
0x10c1   :  { %2048 = vmax.xlane.f32.xlu1 %v2047_v56 }
0x10c5   :  { %2056 = vmax.xlane.f32.xlu1 %v2055_v1 }
0x1101   :  { %v2065_v23 = vpop.xlane.xlu1 %2064 }
0x1102   :  { %v2062_v63 = vpop.xlane.xlu0 %2061 }
0x1103   :  { %v2066_v2 = vmax.f32 %v2062_v63, %v2065_v23 }
0x1105   :  { %v2067_v30 = vrot.slane %v2066_v2, 4  ;;  %v2029_v32 = vpop.xlane.xlu1 %2028 }
0x1106   :  { %v2026_v61 = vpop.xlane.xlu0 %2025 }
0x1107   :  { %v2068_v57 = vmax.f32 %v2066_v2, %v2067_v30 }
0x1109   :  { %v2069_v22 = vrot.slane %v2068_v57, 2  ;;  %v7833_v7 = vpop.permute.xlu1 %7832 }
0x110a   :  { %v7835_v8 = vunpack.i.h.bf16 %v7833_v7  ;;  %v7834_v11 = vunpack.i.l.bf16 %v7833_v7  ;;  %v2034_v12 = vpop.xlane.xlu0 %2033 }
0x110b   :  { %v2070_v14 = vmax.f32 %v2068_v57, %v2069_v22  ;;  %v2038_v15 = vsel %vm69_vm3, %v2026_v61, %v2034_v12 }
0x110c   :  { %v7543_v54 = vpack.c.bf16 %v7835_v8, %v7834_v11  ;;  %v2040_v29 = vmul.f32 0.125, %v2038_v15 }
0x110d   :  { %v2071_v25 = vrot.slane %v2070_v14, 1 }
0x110e   :  { %v2085_v31 = vsub.f32 %v8732_v20, %v2040_v29  ;;  %7544 = vmatpush3.bf16.msra.mxu0 %v7543_v54  ;;  %v2037_v27 = vpop.xlane.xlu0 %2036 }
0x110f   :  { %v2072_v17 = vmax.f32 %v2070_v14, %v2071_v25  ;;  %v2039_v35 = vsel %vm69_vm3, %v2029_v32, %v2037_v27  ;;  %7592 = vmatprep.subr.bf16.mxu0 %v8671_v40 }
0x1110   :  { %v2041_v42 = vmul.f32 0.125, %v2039_v35 }
0x1111   :  { %v2087_v37 = vsub.f32 %v2085_v31, %v2072_v17 }
0x1112   :  { %v2086_v38 = vsub.f32 %v8730_v21, %v2041_v42  ;;  %v2002_v21 = vsel %vm44_vm2, 0.0, %v8713_v60 }
0x1113   :  { %v2089_v39 = vmul.f32 1.442695, %v2087_v37  ;;  %v2004_v52 = vsel %vm110_vm0, %v2002_v21, 0.0 }
0x1114   :  { %v2088_v33 = vsub.f32 %v2086_v38, %v2072_v17 }
0x1115   :  { %7890 = vpow2.f32 %v2089_v39 }
0x1116   :  { %v2091_v9 = vmul.f32 1.442695, %v2088_v33 }
0x1118   :  { %7892 = vpow2.f32 %v2091_v9 }
0x111f   :  { %v7891_v43 = vpop.eup %7890 }
0x1120   :  { %v2093_v44 = vadd.f32 0.0001, %v7891_v43 }
0x1122   :  { %v7893_v20 = vpop.eup %7892  ;;  %v2095_v45 = vmul.f32 0.15075567, %v2093_v44 }
0x1123   :  { %v2094_v19 = vadd.f32 0.0001, %v7893_v20 }
0x1124   :  { %2134 = vxpose.xlu0.b32.start [1/2] (short) (narrow) %v2095_v45, 88  ;;  %v2097_v47 = vsel %vm453_vm1, %v2095_v45, 0.0 }
0x1125   :  { %v2096_v55 = vmul.f32 0.15075567, %v2094_v19 }
0x1127   :  { %v2098_v51 = vsel %vm453_vm1, %v2096_v55, 0.0 }
0x1128   :  { %2135 = vxpose.xlu0.b32.end [2/2] (short) (narrow) %v2096_v55, 88  ;;  %v2099_v50 = vadd.f32 %v2098_v51, %v2097_v47 }
0x112a   :  { %v2100_v37 = vrot.slane %v2099_v50, 4 }
0x112c   :  { %v2101_v43 = vadd.f32 %v2100_v37, %v2099_v50 }
0x112e   :  { %v2102_v20 = vrot.slane %v2101_v43, 2 }
0x113a   :  { %v1998_v22 = vpop.xlane.xlu1 %1997 }
0x113e   :  { %v2001_v7 = vpop.xlane.xlu1 %2000 }
0x1142   :  { %v2009_v8 = vpop.xlane.xlu1 %2008 }
0x1143   :  { %v2011_v15 = vsel %vm69_vm3, %v2001_v7, %v2009_v8 }
0x1144   :  { %v2013_v54 = vmul.f32 0.125, %v2011_v15 }
0x1146   :  { %v2046_v11 = vpop.xlane.xlu1 %2045  ;;  %v2074_v31 = vsub.f32 %v8726_v16, %v2013_v54  ;;  %v2103_v16 = vadd.f32 %v2102_v20, %v2101_v43 }
0x1148   :  { %v2104_v19 = vrot.slane %v2103_v16, 1 }
0x114a   :  { %v2054_v12 = vpop.xlane.xlu1 %2053 }
0x114b   :  { %v2058_v33 = vsel %vm69_vm3, %v2046_v11, %v2054_v12 }
0x114e   :  { %v2049_v14 = vpop.xlane.xlu1 %2048 }
0x1152   :  { %v2057_v29 = vpop.xlane.xlu1 %2056 }
0x1153   :  { %v2059_v25 = vsel %vm69_vm3, %v2049_v14, %v2057_v29 }
0x1154   :  { %v2076_v27 = vsub.f32 %v2074_v31, %v2059_v25 }
0x1156   :  { %v2079_v38 = vmul.f32 1.442695, %v2076_v27 }
0x1158   :  { %7894 = vpow2.f32 %v2079_v38 }
0x1162   :  { %v7895_v45 = vpop.eup %7894 }
0x1163   :  { %v2082_v51 = vadd.f32 0.0001, %v7895_v45  ;;  %v1671_v45 = vld [vmem:[%s9863_s2 + $0x180] sm:$0xff] }
0x1179   :  { %2005 = vadd.xlane.f32.xlu0 %v2004_v52  ;;  %v2105_v52 = vadd.f32 %v2104_v19, %v2103_v16  ;;  %v1670_v16 = vld [vmem:[%s9863_s2 + $0x178] sm:$0xff] }
0x11a4   :  { %v2150_v56 = vpop.trf.xlu0 }
0x11a5   :  { %6870 = vmatmul.mubr.msk.f32.vlgmr.msra.gmra.mrb[20].mxu0 %vm584_vm5, %v2150_v56  ;;  %v8837_v56 = vmul.f32 0.15075567, %v2082_v51 }
0x11a6   :  { %6872 = vmatprep.mubr.msk.f32.mxu0 %vm8029_vm4, %v8030_v28  ;;  %7594 = vmatpush3.bf16.msra.mxu0 %v8671_v40 }
0x11a7   :  { %7596 = vmatprep.subr.bf16.mxu0 %v8697_v3 }
0x11a8   :  { %v2151_v59 = vpop.trf.xlu0 }
0x11a9   :  { %6873 = vmatmul.mubr.msk.f32.gmra.mrb[22].mxu0 %vm584_vm5, %v2151_v59 }
0x11aa   :  { %6875 = vmatprep.mubr.msk.f32.mxu0 %vm8029_vm4, %v8030_v28  ;;  %7598 = vmatpush3.bf16.msra.mxu0 %v8697_v3 }
0x11ac   :  { %v2152_v60 = vpop.trf.xlu0 }
0x11ad   :  { %6876 = vmatmul.mubr.msk.f32.gmra.mrb[24].mxu0 %vm584_vm5, %v2152_v60 }
0x11ae   :  { %6878 = vmatprep.mubr.msk.f32.mxu0 %vm8029_vm4, %v8030_v28 }
0x11b0   :  { %v2153_v1 = vpop.trf.xlu0 }
0x11b1   :  { %6879 = vmatmul.mubr.msk.f32.gmra.mrb[26].mxu0 %vm584_vm5, %v2153_v1  ;;  %v2107_v1 = vmul.f32 %v2105_v52, %v8837_v56 }
0x11b2   :  { %6881 = vmatprep.mubr.msk.f32.mxu0 %vm8029_vm4, %v8030_v28 }
0x11b4   :  { %v2154_v23 = vpop.trf.xlu0 }
0x11b5   :  { %6882 = vmatmul.mubr.msk.f32.gmra.mrb[28].mxu0 %vm584_vm5, %v2154_v23 }
0x11b6   :  { %6884 = vmatprep.mubr.msk.f32.mxu0 %vm8029_vm4, %v8030_v28 }
0x11b8   :  { %v2155_v63 = vpop.trf.xlu0 }
0x11b9   :  { %6885 = vmatmul.mubr.msk.f32.gmra.mrb[30].mxu0 %vm584_vm5, %v2155_v63  ;;  %v2109_v63 = vsel %vm69_vm3, %v2107_v1, 0.0 }
0x11ba   :  { %6887 = vmatprep.mubr.msk.f32.mxu0 %vm8029_vm4, %v8030_v28 }
0x11bc   :  { %v2156_v2 = vpop.trf.xlu0 }
0x11bd   :  { %6888 = vmatmul.mubr.msk.f32.gmra.mrb[32].mxu0 %vm584_vm5, %v2156_v2  ;;  %v2113_v2 = vsel %vm453_vm1, %v2109_v63, 0.0 }
0x11be   :  { %6890 = vmatprep.mubr.msk.f32.mxu0 %vm8029_vm4, %v8030_v28 }
0x11c0   :  { %v2157_v30 = vpop.trf.xlu0 }
0x11c1   :  { %6891 = vmatmul.mubr.msk.f32.gmra.mrb[34].mxu0 %vm584_vm5, %v2157_v30  ;;  %v2117_v30 = vsel %vm69_vm3, 0.0, %v2107_v1 }
0x11c2   :  { %6893 = vmatprep.mubr.msk.f32.mxu0 %vm8029_vm4, %v8030_v28 }
0x11c4   :  { %v2158_v32 = vpop.trf.xlu0 }
0x11c5   :  { %6894 = vmatmul.mubr.msk.f32.gmra.mrb[36].mxu0 %vm584_vm5, %v2158_v32  ;;  %v2121_v32 = vsel %vm453_vm1, %v2117_v30, 0.0  ;;  %v1673_v30 = vld [vmem:[%s9863_s2 + $0x190] sm:$0xff] }
0x11c6   :  { %6896 = vmatprep.mubr.msk.f32.mxu0 %vm8029_vm4, %v8030_v28 }
0x11c8   :  { %v2159_v61 = vpop.trf.xlu0 }
0x11c9   :  { %6897 = vmatmul.mubr.msk.f32.gmra.mrb[38].mxu0 %vm584_vm5, %v2159_v61 }
0x11ca   :  { %6899 = vmatprep.mubr.msk.f32.mxu0 %vm8029_vm4, %v8030_v28 }
0x11cc   :  { %v2160_v57 = vpop.trf.xlu0 }
0x11cd   :  { %6900 = vmatmul.mubr.msk.f32.gmra.mrb[40].mxu0 %vm584_vm5, %v2160_v57 }
0x1206   :  { %v2006_v17 = vpop.xlane.xlu0 %2005 }
0x1207   :  { %v2010_v35 = vsel %vm69_vm3, %v1998_v22, %v2006_v17 }
0x1208   :  { %v2012_v42 = vmul.f32 0.125, %v2010_v35 }
0x120a   :  { %v2073_v39 = vsub.f32 %v8728_v18, %v2012_v42 }
0x120c   :  { %v2075_v9 = vsub.f32 %v2073_v39, %v2058_v33 }
0x120e   :  { %v2077_v44 = vmul.f32 1.442695, %v2075_v9 }
0x1210   :  { %7896 = vpow2.f32 %v2077_v44 }
0x121a   :  { %v7897_v55 = vpop.eup %7896 }
0x121b   :  { %v2081_v47 = vadd.f32 0.0001, %v7897_v55 }
0x121d   :  { %v8834_v21 = vmul.f32 0.15075567, %v2081_v47  ;;  %v7575_v47 = vpack.c.bf16 %v1671_v45, %v1670_v16 }
0x121f   :  { %v2106_v18 = vmul.f32 %v2105_v52, %v8834_v21 }
0x1221   :  { %v2108_v50 = vsel %vm69_vm3, %v2106_v18, 0.0  ;;  %v2116_v60 = vsel %vm69_vm3, 0.0, %v2106_v18 }
0x1222   :  { %v2110_v59 = vsel %vm453_vm1, %v2108_v50, 0.0  ;;  %v2118_v23 = vsel %vm453_vm1, %v2116_v60, 0.0 }
0x1223   :  { %2111 = vadd.xlane.f32.xlu1 %v2110_v59 }
0x1227   :  { %2119 = vadd.xlane.f32.xlu1 %v2118_v23 }
0x122b   :  { %2114 = vadd.xlane.f32.xlu1 %v2113_v2  ;;  %v1672_v2 = vld [vmem:[%s9863_s2 + $0x188] sm:$0xff] }
0x122f   :  { %2122 = vadd.xlane.f32.xlu1 %v2121_v32 }
0x1278   :  { %v2273_v61 = vpop.f32.mrb[20].mxu0 }
0x1279   :  { %v6871_v57 = vpop.f32.mrb[21].mxu0 }
0x127c   :  { %v2278_v22 = vpop.f32.mrb[22].mxu0 }
0x127d   :  { %v7545_v7 = vpack.c.bf16 %v2278_v22, %v2273_v61  ;;  %v6874_v8 = vpop.f32.mrb[23].mxu0  ;;  %v7579_v22 = vpack.c.bf16 %v1673_v30, %v1672_v2 }
0x127f   :  { %7547 = vmatprep.subr.msk.bf16.mxu1 %vm8321_vm9, %v7545_v7 }
0x1280   :  { %7550 = vmatpush3.bf16.msk.msra.mxu1 %vm8321_vm9, %v7545_v7  ;;  %v2283_v11 = vpop.f32.mrb[24].mxu0 }
0x1281   :  { %v6877_v12 = vpop.f32.mrb[25].mxu0 }
0x1284   :  { %v2288_v14 = vpop.f32.mrb[26].mxu0 }
0x1285   :  { %v7551_v15 = vpack.c.bf16 %v2288_v14, %v2283_v11  ;;  %v6880_v54 = vpop.f32.mrb[27].mxu0 }
0x1287   :  { %7553 = vmatprep.subr.msk.bf16.mxu1 %vm8321_vm9, %v7551_v15 }
0x1288   :  { %7556 = vmatpush3.bf16.msk.msra.mxu1 %vm8321_vm9, %v7551_v15  ;;  %v2293_v29 = vpop.f32.mrb[28].mxu0 }
0x1289   :  { %v6883_v25 = vpop.f32.mrb[29].mxu0 }
0x128c   :  { %v2298_v31 = vpop.f32.mrb[30].mxu0 }
0x128d   :  { %v7557_v27 = vpack.c.bf16 %v2298_v31, %v2293_v29  ;;  %v6886_v17 = vpop.f32.mrb[31].mxu0 }
0x128f   :  { %7559 = vmatprep.subr.msk.bf16.mxu1 %vm8338_vm13, %v7557_v27 }
0x1290   :  { %7562 = vmatpush3.bf16.msk.msra.mxu1 %vm8338_vm13, %v7557_v27  ;;  %v2303_v35 = vpop.f32.mrb[32].mxu0 }
0x1291   :  { %v6889_v42 = vpop.f32.mrb[33].mxu0 }
0x1294   :  { %v2308_v37 = vpop.f32.mrb[34].mxu0 }
0x1295   :  { %v7563_v38 = vpack.c.bf16 %v2308_v37, %v2303_v35  ;;  %v6892_v39 = vpop.f32.mrb[35].mxu0 }
0x1297   :  { %7565 = vmatprep.subr.msk.bf16.mxu1 %vm8356_vm15, %v7563_v38 }
0x1298   :  { %7568 = vmatpush3.bf16.msk.msra.mxu1 %vm8356_vm15, %v7563_v38  ;;  %v2313_v33 = vpop.f32.mrb[36].mxu0 }
0x1299   :  { %v6895_v9 = vpop.f32.mrb[37].mxu0 }
0x129c   :  { %v2318_v43 = vpop.f32.mrb[38].mxu0 }
0x129d   :  { %v7569_v44 = vpack.c.bf16 %v2318_v43, %v2313_v33  ;;  %v6898_v20 = vpop.f32.mrb[39].mxu0 }
0x129f   :  { %7571 = vmatprep.subr.msk.bf16.mxu1 %vm8356_vm15, %v7569_v44 }
0x12a0   :  { %7574 = vmatpush3.bf16.msk.msra.mxu1 %vm8356_vm15, %v7569_v44  ;;  %v2323_v19 = vpop.f32.mrb[40].mxu0 }
0x12a1   :  { %v6901_v55 = vpop.f32.mrb[41].mxu0  ;;  %6922 = vmatprep.subr.msk.mxu1 %vm8349_vm14, %v2323_v19 }
0x12a4   :  { %6923 = vmatpush3.msk.msra.mxu1 %vm8349_vm14, %v2323_v19 }
0x12a5   :  { %7576 = vmatprep.subr.bf16.mxu1 %v7575_v47 }
0x12b0   :  { %v2112_v51 = vpop.xlane.xlu1 %2111 }
0x12b1   :  { %7898 = vrcp.f32 %v2112_v51 }
0x12b4   :  { %v2120_v52 = vpop.xlane.xlu1 %2119 }
0x12b5   :  { %7900 = vrcp.f32 %v2120_v52 }
0x12b8   :  { %v2115_v18 = vpop.xlane.xlu1 %2114 }
0x12b9   :  { %7902 = vrcp.f32 %v2115_v18  ;;  %v1681_v18 = vld [vmem:[%s9863_s2 + $0x1d0] sm:$0xff] }
0x12bb   :  { %v7899_v59 = vpop.eup %7898 }
0x12bc   :  { %v2123_v50 = vpop.xlane.xlu1 %2122 }
0x12bd   :  { %7904 = vrcp.f32 %v2123_v50  ;;  %v1682_v50 = vld [vmem:[%s9863_s2 + $0x1d8] sm:$0xff] }
0x12bf   :  { %v7901_v60 = vpop.eup %7900 }
0x12c0   :  { %v2132_v1 = vsel %vm69_vm3, %v7899_v59, %v7901_v60  ;;  %v7613_v59 = vpack.c.bf16 %v1682_v50, %v1681_v18 }
0x12c1   :  { %v2338_v23 = vmul.f32 %v2132_v1, %v8834_v21 }
0x12c3   :  { %6924 = vmatprep.mubr.msk.f32.mxu1 %vm453_vm1, %v2338_v23  ;;  %v7903_v63 = vpop.eup %7902 }
0x12c7   :  { %v7905_v32 = vpop.eup %7904 }
0x12c8   :  { %v2133_v61 = vsel %vm69_vm3, %v7903_v63, %v7905_v32  ;;  %v1683_v32 = vld [vmem:[%s9863_s2 + $0x1e0] sm:$0xff] }
0x12c9   :  { %v2339_v57 = vmul.f32 %v2133_v61, %v8837_v56  ;;  %v6183_v56 = vld [vmem:[%s9863_s2 + $0x198] ss:$0 sm:$0xff]  ;;  %v1684_v61 = vld [vmem:[%s9863_s2 + $0x1e8] sm:$0xff] }
0x12cb   :  { %6925 = vmatmul.mubr.msk.f32.vlgmr.msra.gmra.mrb[30].mxu1 %vm453_vm1, %v2339_v57  ;;  %v6197_v57 = vld [vmem:[%s9863_s2 + $0x1c8] ss:$0 sm:$0xff] }
0x12cc   :  { %7578 = vmatpush3.bf16.msra.mxu1 %v7575_v47 }
0x12cd   :  { %7580 = vmatprep.subr.bf16.mxu1 %v7579_v22 }
0x12d0   :  { %7582 = vmatpush3.bf16.msra.mxu1 %v7579_v22  ;;  %v7617_v22 = vpack.c.bf16 %v1684_v61, %v1683_v32 }
0x12d1   :  { %7584 = vmatprep.subr.bf16.mxu1 %v8651_v36 }
0x139e   :  { %v6926_v21 = vpop.f32.mrb[30].mxu1 }
0x139f   :  { %v2412_v7 = vpop.f32.mrb[31].mxu1 }
0x13a0   :  { %6935 = vmatprep.mubr.msk.f32.mxu1 %vm110_vm0, %v2412_v7 }
0x13a1   :  { %6936 = vmatmul.mubr.msk.f32.vlgmr.msra.gmra.mrb[32].mxu1 %vm110_vm0, %v6926_v21 }
0x13a2   :  { %7586 = vmatpush3.bf16.msra.mxu1 %v8651_v36 }
0x13a3   :  { %7588 = vmatprep.subr.bf16.mxu1 %v8661_v26 }
0x13a6   :  { %7590 = vmatpush3.bf16.msra.mxu1 %v8661_v26 }
0x13a7   :  { %7600 = vmatprep.subr.bf16.mxu1 %v8671_v40 }
0x1474   :  { %v6937_v8 = vpop.f32.mrb[32].mxu1 }
0x1475   :  { %v2497_v11 = vpop.f32.mrb[33].mxu1  ;;  %v2503_v12 = vadd.f32 %v6937_v8, %v6183_v56 }
0x1476   :  { %v2498_v14 = vadd.f32 %v6183_v56, %v2497_v11 }
0x1477   :  { %v8910_v54 = vadd.f32 %v2503_v12, %v8632_v13 }
0x1478   :  { %v8907_v15 = vadd.f32 %v2498_v14, %v8635_v0 }
0x1479   :  { %v2511_v26 = vsel %vm110_vm0, %v8910_v54, 0.0 }
0x147a   :  { %v2508_v36 = vsel %vm110_vm0, %v8907_v15, 0.0 }
0x147b   :  { %2509 = vadd.xlane.f32.xlu1 %v2508_v36 }
0x147f   :  { %2512 = vadd.xlane.f32.xlu1 %v2511_v26 }
0x1508   :  { %v2510_v29 = vpop.xlane.xlu1 %2509 }
0x1509   :  { %v2514_v25 = vmul.f32 0.03125, %v2510_v29 }
0x150b   :  { %v2516_v31 = vsub.f32 %v8907_v15, %v2514_v25 }
0x150c   :  { %v2513_v27 = vpop.xlane.xlu1 %2512 }
0x150d   :  { %v2515_v17 = vmul.f32 0.03125, %v2513_v27  ;;  %v2518_v35 = vmul.f32 %v2516_v31, %v2516_v31 }
0x150f   :  { %v2517_v0 = vsub.f32 %v8910_v54, %v2515_v17  ;;  %v2520_v13 = vsel %vm110_vm0, %v2518_v35, 0.0 }
0x1510   :  { %2521 = vadd.xlane.f32.xlu1 %v2520_v13 }
0x1511   :  { %v2519_v42 = vmul.f32 %v2517_v0, %v2517_v0 }
0x1513   :  { %v2523_v37 = vsel %vm110_vm0, %v2519_v42, 0.0 }
0x1514   :  { %2524 = vadd.xlane.f32.xlu1 %v2523_v37 }
0x159d   :  { %v2522_v38 = vpop.xlane.xlu1 %2521 }
0x159e   :  { %v2526_v39 = vmul.f32 0.03125, %v2522_v38 }
0x15a0   :  { %v2528_v33 = vadd.f32 1e-05, %v2526_v39 }
0x15a1   :  { %v2525_v9 = vpop.xlane.xlu1 %2524 }
0x15a2   :  { %7906 = vrsqrt.f32 %v2528_v33  ;;  %v2527_v43 = vmul.f32 0.03125, %v2525_v9 }
0x15a4   :  { %v2529_v44 = vadd.f32 1e-05, %v2527_v43 }
0x15a6   :  { %7908 = vrsqrt.f32 %v2529_v44 }
0x15ac   :  { %v7907_v20 = vpop.eup %7906 }
0x15ad   :  { %v2532_v16 = vmul.f32 %v7907_v20, %v2516_v31 }
0x15af   :  { %v2534_v45 = vmul.f32 %v8677_v48, %v2532_v16 }
0x15b0   :  { %v7909_v19 = vpop.eup %7908 }
0x15b1   :  { %v2533_v55 = vmul.f32 %v7909_v19, %v2517_v0  ;;  %v2536_v47 = vadd.f32 %v8682_v24, %v2534_v45 }
0x15b3   :  { %6946 = vmatprep.mubr.msk.f32.mxu1 %vm110_vm0, %v2536_v47  ;;  %v2535_v51 = vmul.f32 %v8677_v48, %v2533_v55 }
0x15b5   :  { %v2537_v52 = vadd.f32 %v8682_v24, %v2535_v51 }
0x15b7   :  { %6947 = vmatmul.mubr.msk.f32.vlgmr.msra.gmra.mrb[34].mxu1 %vm110_vm0, %v2537_v52 }
0x15b8   :  { %7602 = vmatpush3.bf16.msra.mxu1 %v8671_v40 }
0x15b9   :  { %7604 = vmatprep.subr.bf16.mxu1 %v8697_v3 }
0x15bc   :  { %7606 = vmatpush3.bf16.msra.mxu1 %v8697_v3 }
0x15bd   :  { %7614 = vmatprep.subr.bf16.mxu1 %v7613_v59 }
0x168a   :  { %v6948_v48 = vpop.f32.mrb[34].mxu1 }
0x168b   :  { %v2616_v24 = vadd.f32 %v6948_v48, %v8705_v4  ;;  %v2610_v60 = vpop.f32.mrb[35].mxu1 }
0x168c   :  { %v2611_v40 = vadd.f32 %v8705_v4, %v2610_v60  ;;  %v6196_v4 = vld [vmem:[%s9863_s2 + $0x1c0] ss:$0 sm:$0xff] }
0x168d   :  { %v8937_v1 = vmul.f32 %v2616_v24, %v2616_v24  ;;  %v2620_v3 = vmul.f32 0.5, %v2616_v24  ;;  %v3024_v30 = vmul.f32 %v6196_v4, %v2532_v16  ;;  %v3025_v56 = vmul.f32 %v6196_v4, %v2533_v55 }
0x168e   :  { %v2619_v23 = vmul.f32 0.5, %v2611_v40  ;;  %v2785_v63 = vmul.f32 %v2611_v40, %v2611_v40 }
0x168f   :  { %2811 = vrot.lane.b32.xlu0 %v8937_v1, %s8026_s18  ;;  %v3030_v7 = vadd.f32 %v6197_v57, %v3024_v30  ;;  %v3031_v14 = vadd.f32 %v6197_v57, %v3025_v56  ;;  %v2788_v37 = vsel %vm44_vm2, %v8937_v1, 0.0  ;;  %v2796_v52 = vsel %vm44_vm2, 0.0, %v8937_v1 }
0x1690   :  { %2702 = vrot.lane.b32.xlu1 %v2619_v23, %s8026_s18  ;;  %6957 = vmatprep.mubr.msk.f32.mxu0 %vm110_vm0, %v2619_v23  ;;  %v2787_v35 = vsel %vm44_vm2, %v2785_v63, 0.0  ;;  %v2792_v9 = vsel %vm110_vm0, %v2788_v37, 0.0  ;;  %v2795_v55 = vsel %vm44_vm2, 0.0, %v2785_v63  ;;  %v2800_v18 = vsel %vm110_vm0, %v2796_v52, 0.0 }
0x1691   :  { %6958 = vmatmul.mubr.msk.f32.vlgmr.msra.gmra.mrb[42].mxu0 %vm110_vm0, %v2620_v3  ;;  %v2789_v13 = vsel %vm110_vm0, %v2787_v35, 0.0  ;;  %v2797_v51 = vsel %vm110_vm0, %v2795_v55, 0.0 }
0x1694   :  { %2704 = vrot.lane.b32.xlu1 %v2620_v3, %s8026_s18 }
0x1698   :  { %2809 = vrot.lane.b32.xlu1 %v2785_v63, %s8026_s18 }
0x1701   :  { %v2812_v29 = vpop.permute.xlu0 %2811 }
0x1702   :  { %v2703_v2 = vpop.permute.xlu1 %2702  ;;  %v2816_v0 = vsel %vm44_vm2, %v2812_v29, 0.0  ;;  %v2824_v20 = vsel %vm44_vm2, 0.0, %v2812_v29 }
0x1703   :  { %6968 = vmatprep.mubr.msk.f32.mxu1 %vm110_vm0, %v2703_v2  ;;  %v2820_v42 = vsel %vm110_vm0, %v2816_v0, 0.0  ;;  %v2828_v45 = vsel %vm110_vm0, %v2824_v20, 0.0 }
0x1706   :  { %v2705_v21 = vpop.permute.xlu1 %2704 }
0x1707   :  { %6969 = vmatmul.mubr.msk.f32.vlgmr.msra.gmra.mrb[36].mxu1 %vm110_vm0, %v2705_v21 }
0x1708   :  { %7616 = vmatpush3.bf16.msra.mxu1 %v7613_v59  ;;  %6986 = vmatprep.mubr.msk.f32.mxu1 %vm110_vm0, %v3030_v7 }
0x1709   :  { %7618 = vmatprep.subr.bf16.mxu1 %v7617_v22 }
0x170a   :  { %v2810_v8 = vpop.permute.xlu1 %2809 }
0x170b   :  { %v2815_v11 = vsel %vm44_vm2, %v2810_v8, 0.0  ;;  %v2823_v38 = vsel %vm44_vm2, 0.0, %v2810_v8 }
0x170c   :  { %7620 = vmatpush3.bf16.msra.mxu1 %v7617_v22  ;;  %v2817_v12 = vsel %vm110_vm0, %v2815_v11, 0.0  ;;  %v2825_v43 = vsel %vm110_vm0, %v2823_v38, 0.0 }
0x170d   :  { %2818 = vadd.xlane.f32.xlu1 %v2817_v12  ;;  %7653 = vmatprep.subr.bf16.mxu1 %v8028_v10 }
0x170f   :  { %6987 = vmatmul.mubr.msk.f32.vlgmr.msra.gmra.mrb[38].mxu1 %vm110_vm0, %v3031_v14 }
0x1710   :  { %7028 = vmatprep.mubr.msk.f32.mxu1 %vm8029_vm4, %v8030_v28 }
0x1764   :  { %v8968_v36 = vpop.f32.mrb[42].mxu0 }
0x1765   :  { %v8970_v26 = vpop.f32.mrb[43].mxu0  ;;  %v2836_v19 = vsel %vm69_vm3, %v8968_v36, -1e+30  ;;  %v2844_v48 = vsel %vm69_vm3, -1e+30, %v8968_v36 }
0x1766   :  { %v2835_v44 = vsel %vm69_vm3, %v8970_v26, -1e+30  ;;  %v2840_v47 = vsel %vm453_vm1, %v2836_v19, -inf  ;;  %v2843_v50 = vsel %vm69_vm3, -1e+30, %v8970_v26  ;;  %v2848_v24 = vsel %vm453_vm1, %v2844_v48, -inf }
0x1767   :  { %v2837_v16 = vsel %vm453_vm1, %v2835_v44, -inf  ;;  %v2845_v59 = vsel %vm453_vm1, %v2843_v50, -inf }
0x179a   :  { %v2819_v60 = vpop.xlane.xlu1 %2818 }
0x17da   :  { %v8972_v25 = vpop.f32.mrb[36].mxu1 }
0x17db   :  { %v2776_v31 = vpop.f32.mrb[37].mxu1  ;;  %v2856_v27 = vsel %vm453_vm1, %v8972_v25, -inf }
0x17dc   :  { %2857 = vmax.xlane.f32.xlu0 %v2856_v27  ;;  %v2853_v17 = vsel %vm453_vm1, %v2776_v31, -inf }
0x17dd   :  { %2854 = vmax.xlane.f32.xlu1 %v2853_v17 }
0x17e0   :  { %2790 = vadd.xlane.f32.xlu0 %v2789_v13 }
0x17e1   :  { %2821 = vadd.xlane.f32.xlu1 %v2820_v42 }
0x17e2   :  { %v8988_v39 = vpop.f32.mrb[38].mxu1 }
0x17e3   :  { %v8990_v33 = vpop.f32.mrb[39].mxu1 }
0x17e4   :  { %2793 = vadd.xlane.f32.xlu0 %v2792_v9 }
0x17e5   :  { %2826 = vadd.xlane.f32.xlu1 %v2825_v43 }
0x17e8   :  { %2838 = vmax.xlane.f32.xlu0 %v2837_v16 }
0x17e9   :  { %2829 = vadd.xlane.f32.xlu1 %v2828_v45 }
0x17ec   :  { %2841 = vmax.xlane.f32.xlu0 %v2840_v47 }
0x17ed   :  { %2798 = vadd.xlane.f32.xlu1 %v2797_v51 }
0x17f1   :  { %2801 = vadd.xlane.f32.xlu1 %v2800_v18 }
0x17f5   :  { %2846 = vmax.xlane.f32.xlu1 %v2845_v59 }
0x17f9   :  { %2849 = vmax.xlane.f32.xlu1 %v2848_v24 }
0x1869   :  { %v2858_v40 = vpop.xlane.xlu0 %2857 }
0x186a   :  { %v2855_v1 = vpop.xlane.xlu1 %2854 }
0x186b   :  { %v2859_v23 = vmax.f32 %v2855_v1, %v2858_v40 }
0x186d   :  { %v2860_v3 = vrot.slane %v2859_v23, 4  ;;  %v2791_v57 = vpop.xlane.xlu0 %2790 }
0x186e   :  { %v2822_v63 = vpop.xlane.xlu1 %2821 }
0x186f   :  { %v2861_v4 = vmax.f32 %v2859_v23, %v2860_v3 }
0x1871   :  { %v2862_v2 = vrot.slane %v2861_v4, 2  ;;  %v2794_v29 = vpop.xlane.xlu0 %2793 }
0x1872   :  { %v2827_v30 = vpop.xlane.xlu1 %2826 }
0x1873   :  { %v2863_v32 = vmax.f32 %v2861_v4, %v2862_v2  ;;  %v2831_v61 = vsel %vm69_vm3, %v2819_v60, %v2827_v30 }
0x1874   :  { %v2833_v22 = vmul.f32 0.125, %v2831_v61 }
0x1875   :  { %v2864_v21 = vrot.slane %v2863_v32, 1  ;;  %v2839_v9 = vpop.xlane.xlu0 %2838 }
0x1876   :  { %v2878_v7 = vsub.f32 %v2776_v31, %v2833_v22  ;;  %v2830_v56 = vpop.xlane.xlu1 %2829 }
0x1877   :  { %v2865_v8 = vmax.f32 %v2863_v32, %v2864_v21  ;;  %v2832_v11 = vsel %vm69_vm3, %v2822_v63, %v2830_v56 }
0x1878   :  { %v2834_v12 = vmul.f32 0.125, %v2832_v11 }
0x1879   :  { %v2880_v14 = vsub.f32 %v2878_v7, %v2865_v8  ;;  %v2842_v45 = vpop.xlane.xlu0 %2841 }
0x187a   :  { %v2879_v27 = vsub.f32 %v8972_v25, %v2834_v12  ;;  %v2799_v17 = vpop.xlane.xlu1 %2798 }
0x187b   :  { %v2882_v35 = vmul.f32 1.442695, %v2880_v14  ;;  %v2803_v0 = vsel %vm69_vm3, %v2791_v57, %v2799_v17 }
0x187c   :  { %v2881_v13 = vsub.f32 %v2879_v27, %v2865_v8  ;;  %v2805_v37 = vmul.f32 0.125, %v2803_v0 }
0x187d   :  { %7910 = vpow2.f32 %v2882_v35 }
0x187e   :  { %v2884_v42 = vmul.f32 1.442695, %v2881_v13  ;;  %v2802_v31 = vpop.xlane.xlu1 %2801  ;;  %v2866_v43 = vsub.f32 %v8970_v26, %v2805_v37  ;;  %v1686_v13 = vld [vmem:[%s9863_s2 + $0x1f8] sm:$0xff] }
0x187f   :  { %v2804_v38 = vsel %vm69_vm3, %v2794_v29, %v2802_v31  ;;  %v6198_v31 = vld [vmem:[%s9863_s2 + $0x1f0] ss:$0 sm:$0xff] }
0x1880   :  { %7912 = vpow2.f32 %v2884_v42  ;;  %v2806_v44 = vmul.f32 0.125, %v2804_v38  ;;  %v1687_v42 = vld [vmem:[%s9863_s2 + $0x200] sm:$0xff]  ;;  %v3109_v38 = vadd.f32 %v6198_v31, %v8990_v33 }
0x1881   :  { %v9065_v37 = vpack.c.bf16 %v1687_v42, %v1686_v13  ;;  %v1688_v13 = vld [vmem:[%s9863_s2 + $0x208] sm:$0xff]  ;;  %v1689_v42 = vld [vmem:[%s9863_s2 + $0x210] sm:$0xff] }
0x1882   :  { %v2847_v20 = vpop.xlane.xlu1 %2846  ;;  %v2867_v19 = vsub.f32 %v8968_v36, %v2806_v44 }
0x1883   :  { %v2851_v25 = vsel %vm69_vm3, %v2839_v9, %v2847_v20  ;;  %v3119_v9 = vmul.f32 0.70710677, %v3109_v38 }
0x1884   :  { %v2868_v16 = vsub.f32 %v2866_v43, %v2851_v25 }
0x1885   :  { %v3125_v43 = vand.u32 2147483647, %v3119_v9  ;;  %vm3121_vm10 = vcmp.ge.f32.partialorder %v3119_v9, 0.0  ;;  %v3117_v9 = vmul.f32 0.5, %v3109_v38 }
0x1886   :  { %v2850_v55 = vpop.xlane.xlu1 %2849  ;;  %v2870_v51 = vmul.f32 1.442695, %v2868_v16  ;;  %v9073_v16 = vadd.f32 %v8988_v39, %v6198_v31 }
0x1887   :  { %v7911_v47 = vpop.eup %7910  ;;  %v2852_v52 = vsel %vm69_vm3, %v2842_v45, %v2850_v55  ;;  %v3127_v44 = vmul.f32 0.3275911, %v3125_v43  ;;  %v3153_v33 = vsub.f32 0.0, %v3125_v43 }
0x1888   :  { %v2886_v18 = vadd.f32 0.0001, %v7911_v47  ;;  %v2869_v50 = vsub.f32 %v2867_v19, %v2852_v52  ;;  %7914 = vpow2.f32 %v2870_v51  ;;  %v9076_v19 = vmul.f32 0.70710677, %v9073_v16 }
0x1889   :  { %v3129_v20 = vadd.f32 1.0, %v3127_v44 }
0x188a   :  { %v7913_v59 = vpop.eup %7912  ;;  %v2872_v48 = vmul.f32 1.442695, %v2869_v50  ;;  %v2888_v24 = vmul.f32 0.15075567, %v2886_v18  ;;  %v3126_v47 = vand.u32 2147483647, %v9076_v19 }
0x188b   :  { %v2887_v26 = vadd.f32 0.0001, %v7913_v59  ;;  %vm3122_vm11 = vcmp.ge.f32.partialorder %v9076_v19, 0.0  ;;  %v3118_v19 = vmul.f32 0.5, %v9073_v16 }
0x188c   :  { %7916 = vpow2.f32 %v2872_v48  ;;  %v2890_v40 = vsel %vm453_vm1, %v2888_v24, 0.0  ;;  %v3128_v52 = vmul.f32 0.3275911, %v3126_v47  ;;  %v3155_v48 = vmul.f32 %v3153_v33, %v3125_v43 }
0x188d   :  { %v2889_v60 = vmul.f32 0.15075567, %v2887_v26  ;;  %7918 = vrcp.f32 %v3129_v20  ;;  %v7625_v20 = vpack.c.bf16 %v1689_v42, %v1688_v13 }
0x188e   :  { %v3130_v50 = vadd.f32 1.0, %v3128_v52  ;;  %v1693_v52 = vld [vmem:[%s9863_s2 + $0x230] sm:$0xff] }
0x188f   :  { %v2891_v1 = vsel %vm453_vm1, %v2889_v60, 0.0  ;;  %v7607_v36 = vpack.c.bf16 %v2889_v60, %v2888_v24  ;;  %v3157_v24 = vmul.f32 1.442695, %v3155_v48 }
0x1890   :  { %v2892_v23 = vadd.f32 %v2891_v1, %v2890_v40  ;;  %7920 = vrcp.f32 %v3130_v50  ;;  %v1695_v50 = vld [vmem:[%s9863_s2 + $0x240] sm:$0xff] }
0x1891   :  { %7609 = vmatprep.subr.msk.bf16.mxu0 %vm8521_vm6, %v7607_v36  ;;  %7922 = vpow2.f32 %v3157_v24  ;;  %v1697_v24 = vld [vmem:[%s9863_s2 + $0x250] sm:$0xff] }
0x1892   :  { %7612 = vmatpush3.bf16.xpose.msk.msra.mxu0 %vm8521_vm6, %v7607_v36  ;;  %v2893_v3 = vrot.slane %v2892_v23, 4  ;;  %v7915_v4 = vpop.eup %7914 }
0x1893   :  { %v2874_v32 = vadd.f32 0.0001, %v7915_v4  ;;  %7622 = vmatprep.subr.bf16.mxu0 %v9065_v37 }
0x1894   :  { %v2894_v63 = vadd.f32 %v2893_v3, %v2892_v23 }
0x1895   :  { %v9041_v21 = vmul.f32 0.15075567, %v2874_v32 }
0x1896   :  { %v7917_v2 = vpop.eup %7916  ;;  %v2895_v30 = vrot.slane %v2894_v63, 2 }
0x1897   :  { %v2875_v61 = vadd.f32 0.0001, %v7917_v2  ;;  %v7919_v25 = vpop.eup %7918 }
0x1898   :  { %v2896_v57 = vadd.f32 %v2895_v30, %v2894_v63  ;;  %v3135_v45 = vmul.f32 1.0614054, %v7919_v25 }
0x1899   :  { %v9043_v56 = vmul.f32 0.15075567, %v2875_v61 }
0x189a   :  { %v2897_v22 = vrot.slane %v2896_v57, 1  ;;  %v3137_v55 = vadd.f32 -1.4531521, %v3135_v45  ;;  %v7921_v39 = vpop.eup %7920 }
0x189b   :  { %v3136_v1 = vmul.f32 1.0614054, %v7921_v39  ;;  %v7923_v63 = vpop.eup %7922 }
0x189c   :  { %v2898_v7 = vadd.f32 %v2897_v22, %v2896_v57  ;;  %v3139_v51 = vmul.f32 %v7919_v25, %v3137_v55  ;;  %v1690_v55 = vld [vmem:[%s9863_s2 + $0x218] sm:$0xff] }
0x189d   :  { %v3138_v4 = vadd.f32 -1.4531521, %v3136_v1 }
0x189e   :  { %v2899_v8 = vmul.f32 %v2898_v7, %v9041_v21  ;;  %v2900_v11 = vmul.f32 %v2898_v7, %v9043_v56  ;;  %v3141_v18 = vadd.f32 1.4214138, %v3139_v51  ;;  %v3123_v7 = vsel %vm3121_vm10, 1.0, %v8032_v41 }
0x189f   :  { %v3140_v61 = vmul.f32 %v7921_v39, %v3138_v4  ;;  %v1701_v4 = vld [vmem:[%s9863_s2 + $0x270] sm:$0xff] }
0x18a0   :  { %v2909_v62 = vsel %vm69_vm3, 0.0, %v2899_v8  ;;  %v2901_v12 = vsel %vm69_vm3, %v2899_v8, 0.0  ;;  %v2910_v27 = vsel %vm69_vm3, 0.0, %v2900_v11  ;;  %v2902_v17 = vsel %vm69_vm3, %v2900_v11, 0.0 }
0x18a1   :  { %v2911_v14 = vsel %vm453_vm1, %v2909_v62, 0.0  ;;  %v2903_v29 = vsel %vm453_vm1, %v2901_v12, 0.0  ;;  %v2914_v35 = vsel %vm453_vm1, %v2910_v27, 0.0  ;;  %v2906_v0 = vsel %vm453_vm1, %v2902_v17, 0.0 }
0x18a2   :  { %2912 = vadd.xlane.f32.xlu1 %v2911_v14  ;;  %2904 = vadd.xlane.f32.xlu0 %v2903_v29  ;;  %v3143_v59 = vmul.f32 %v7919_v25, %v3141_v18  ;;  %v3142_v22 = vadd.f32 1.4214138, %v3140_v61  ;;  %v3154_v11 = vsub.f32 0.0, %v3126_v47 }
0x18a4   :  { %v3145_v26 = vadd.f32 -0.28449672, %v3143_v59  ;;  %v3144_v29 = vmul.f32 %v7921_v39, %v3142_v22  ;;  %v3257_v22 = vld [vmem:[%s9863_s2 + $0x520] sm:$0xff] }
0x18a6   :  { %2915 = vadd.xlane.f32.xlu1 %v2914_v35  ;;  %2907 = vadd.xlane.f32.xlu0 %v2906_v0  ;;  %v3147_v60 = vmul.f32 %v7919_v25, %v3145_v26  ;;  %v3156_v35 = vmul.f32 %v3154_v11, %v3126_v47  ;;  %v3146_v44 = vadd.f32 -0.28449672, %v3144_v29  ;;  %v1691_v47 = vld [vmem:[%s9863_s2 + $0x220] sm:$0xff]  ;;  %v1696_v26 = vld [vmem:[%s9863_s2 + $0x248] sm:$0xff]  ;;  %v1428_v11 = vmul.f32 0.5, %v8624_v5 }
0x18a7   :  { %v7629_v51 = vpack.c.bf16 %v1691_v47, %v1690_v55  ;;  %v7641_v1 = vpack.c.bf16 %v1697_v24, %v1696_v26  ;;  %v6201_v5 = vld [vmem:[%s9863_s2 + $0x278] ss:$0 sm:$0xff]  ;;  %v3337_v55 = vld [vmem:[%s9863_s2 + $0x530] sm:$0xff] }
0x18a8   :  { %v3149_v40 = vadd.f32 0.2548296, %v3147_v60  ;;  %v3148_v38 = vmul.f32 %v7921_v39, %v3146_v44  ;;  %v3256_v44 = vld [vmem:[%s9863_s2 + $0x510] sm:$0xff] }
0x18aa   :  { %v3151_v36 = vmul.f32 %v7919_v25, %v3149_v40  ;;  %v3159_v25 = vmul.f32 1.442695, %v3156_v35  ;;  %v3150_v18 = vadd.f32 0.2548296, %v3148_v38 }
0x18ac   :  { %v3161_v2 = vmul.f32 %v7923_v63, %v3151_v36  ;;  %v3152_v59 = vmul.f32 %v7921_v39, %v3150_v18  ;;  %v1698_v36 = vld [vmem:[%s9863_s2 + $0x258] sm:$0xff]  ;;  %v1699_v39 = vld [vmem:[%s9863_s2 + $0x260] sm:$0xff]  ;;  %v1700_v63 = vld [vmem:[%s9863_s2 + $0x268] sm:$0xff] }
0x18ae   :  { %v3163_v57 = vsub.f32 1.0, %v3161_v2  ;;  %v3124_v2 = vsel %vm3122_vm11, 1.0, %v8032_v41 }
0x18b0   :  { %v3165_v62 = vmul.f32 %v3163_v57, %v3123_v7  ;;  %v8033_v7 = vmov 0  }
0x18b1   :  { %7836 = vset.pattern.permute.xlu0 %v8033_v7  ;;  %7837 = vset.pattern.permute.xlu1 %v8033_v7 }
0x18b2   :  { %v3167_v0 = vadd.f32 1.0, %v3165_v62 }
0x18b4   :  { %v3169_v45 = vmul.f32 %v3167_v0, %v3117_v9 }
0x18bc   :  { %3260 = vperm.xlu0 %7836, %v3257_v22  }
0x192f   :  { %v2913_v23 = vpop.xlane.xlu1 %2912  ;;  %v2905_v3 = vpop.xlane.xlu0 %2904 }
0x1930   :  { %7924 = vrcp.f32 %v2913_v23 }
0x1931   :  { %7926 = vrcp.f32 %v2905_v3  ;;  %v7645_v3 = vpack.c.bf16 %v1699_v39, %v1698_v36  ;;  %v3425_v36 = vld [vmem:[%s9863_s2 + $0x2a0] sm:$0xff]  ;;  %v3426_v39 = vld [vmem:[%s9863_s2 + $0x2a8] sm:$0xff] }
0x1933   :  { %v2916_v30 = vpop.xlane.xlu1 %2915  ;;  %v2908_v32 = vpop.xlane.xlu0 %2907 }
0x1934   :  { %7928 = vrcp.f32 %v2916_v30 }
0x1935   :  { %7930 = vrcp.f32 %v2908_v32  ;;  %v7649_v32 = vpack.c.bf16 %v1701_v4, %v1700_v63 }
0x1936   :  { %7932 = vpow2.f32 %v3159_v25 }
0x193a   :  { %v7925_v8 = vpop.eup %7924 }
0x193b   :  { %v7927_v12 = vpop.eup %7926 }
0x193c   :  { %v2925_v14 = vsel %vm69_vm3, %v7927_v12, %v7925_v8  ;;  %v1427_v12 = vmul.f32 0.5, %v8626_v6 }
0x193d   :  { %v2927_v27 = vmul.f32 %v2925_v14, %v9041_v21 }
0x193e   :  { %v7929_v17 = vpop.eup %7928 }
0x193f   :  { %v7931_v31 = vpop.eup %7930  ;;  %6975 = vmatprep.mubr.msk.f32.mxu0 %vm453_vm1, %v2927_v27 }
0x1940   :  { %v2926_v43 = vsel %vm69_vm3, %v7931_v31, %v7929_v17  ;;  %v7933_v60 = vpop.eup %7932 }
0x1941   :  { %v2928_v21 = vmul.f32 %v2926_v43, %v9043_v56  ;;  %v1692_v56 = vld [vmem:[%s9863_s2 + $0x228] sm:$0xff]  ;;  %v3162_v40 = vmul.f32 %v7933_v60, %v3152_v59  ;;  %v3423_v60 = vld [vmem:[%s9863_s2 + $0x290] sm:$0xff] }
0x1942   :  { %v7633_v33 = vpack.c.bf16 %v1693_v52, %v1692_v56  ;;  %v3419_v52 = vld [vmem:[%s9862_s1] sm:$0xff] }
0x1943   :  { %6976 = vmatmul.mubr.msk.f32.vlgmr.msra.gmra.mrb[44].mxu0 %vm453_vm1, %v2928_v21  ;;  %v3164_v23 = vsub.f32 1.0, %v3162_v40  ;;  %v3338_v21 = vld [vmem:[%s9863_s2 + $0x540] sm:$0xff]  ;;  %v3424_v40 = vld [vmem:[%s9863_s2 + $0x298] sm:$0xff] }
0x1944   :  { %7624 = vmatpush3.bf16.msra.mxu0 %v9065_v37  ;;  %7021 = vmatprep.mubr.f32.mxu0 %v3169_v45  ;;  %v1694_v37 = vld [vmem:[%s9863_s2 + $0x238] sm:$0xff] }
0x1945   :  { %7626 = vmatprep.subr.bf16.mxu0 %v7625_v20  ;;  %v7637_v48 = vpack.c.bf16 %v1695_v50, %v1694_v37  ;;  %v3166_v30 = vmul.f32 %v3164_v23, %v3124_v2  ;;  %3341 = vperm.xlu1 %7837, %v3338_v21   ;;  %v9197_v23 = vpack.c.bf16 %v3426_v39, %v3425_v36 }
0x1947   :  { %v3168_v61 = vadd.f32 1.0, %v3166_v30  ;;  %v9204_v30 = vld [vmem:[%s9863_s2 + $0x280] ss:$0 sm:$0xff] }
0x1948   :  { %7628 = vmatpush3.bf16.msra.mxu0 %v7625_v20 }
0x1949   :  { %7630 = vmatprep.subr.bf16.mxu0 %v7629_v51  ;;  %v3170_v57 = vmul.f32 %v3168_v61, %v3118_v19  ;;  %v3433_v61 = vld [vmem:[%s9863_s2 + $0x2e0] sm:$0xff]  ;;  %v3434_v19 = vld [vmem:[%s9863_s2 + $0x2e8] sm:$0xff] }
0x194a   :  { %v9218_v7 = vpack.c.bf16 %v3434_v19, %v3433_v61 }
0x194c   :  { %7632 = vmatpush3.bf16.msra.mxu0 %v7629_v51 }
0x194d   :  { %7634 = vmatprep.subr.bf16.mxu0 %v7633_v33 }
0x1950   :  { %7636 = vmatpush3.bf16.msra.mxu0 %v7633_v33 }
0x1951   :  { %7638 = vmatprep.subr.bf16.mxu0 %v7637_v48 }
0x1954   :  { %7640 = vmatpush3.bf16.msra.mxu0 %v7637_v48 }
0x1955   :  { %7642 = vmatprep.subr.bf16.mxu0 %v7641_v1 }
0x1958   :  { %7644 = vmatpush3.bf16.msra.mxu0 %v7641_v1  ;;  %v9187_v1 = vpack.c.bf16 %v3424_v40, %v3423_v60 }
0x1959   :  { %7646 = vmatprep.subr.bf16.mxu0 %v7645_v3 }
0x195c   :  { %7648 = vmatpush3.bf16.msra.mxu0 %v7645_v3 }
0x195d   :  { %7650 = vmatprep.subr.bf16.mxu0 %v7649_v32 }
0x1960   :  { %7652 = vmatpush3.bf16.msra.mxu0 %v7649_v32 }
0x1961   :  { %7069 = vmatprep.subr.mxu0 %v8030_v28 }
0x1963   :  { %7022 = vmatmul.mubr.f32.vlgmr.msra.gmra.mrb[46].mxu0 %v3170_v57  ;;  %v9215_v57 = vld [vmem:[%s9863_s2 + $0x288] ss:$0 sm:$0xff] }
0x1964   :  { %7071 = vmatprep.mubr.msk.f32.mxu0 %vm8029_vm4, %v8030_v28 }
0x19c4   :  { %v3342_v47 = vpop.permute.xlu1 %3341 }
0x1a16   :  { %v6977_v8 = vpop.f32.mrb[44].mxu0 }
0x1a17   :  { %v3017_v16 = vmul.f32 0.5, %v6977_v8  ;;  %v3007_v62 = vpop.f32.mrb[45].mxu0 }
0x1a18   :  { %v3016_v14 = vmul.f32 0.5, %v3007_v62 }
0x1a19   :  { %v3019_v29 = vadd.f32 %v3017_v16, %v1428_v11  ;;  %v3435_v11 = vld [vmem:[%s9863_s2 + $0x2f0] sm:$0xff]  ;;  %v3436_v16 = vld [vmem:[%s9863_s2 + $0x2f8] sm:$0xff] }
0x1a1a   :  { %v3018_v27 = vadd.f32 %v3016_v14, %v1427_v12  ;;  %v9232_v62 = vpack.c.bf16 %v3436_v16, %v3435_v11  ;;  %v9239_v12 = vld [vmem:[%s9863_s2 + $0x2b0] ss:$0 sm:$0xff] }
0x1a1b   :  { %v9142_v17 = vmul.f32 0.5, %v3019_v29 }
0x1a1c   :  { %v9144_v35 = vmul.f32 0.5, %v3018_v27 }
0x1a1d   :  { %3255 = vst.msk [vmem:[#allocation2 + $0x8] sm:$0xff] %vm584_vm5, %v9142_v17 }
0x1a1e   :  { %3254 = vst.msk [vmem:[#allocation2] sm:$0xff] %vm584_vm5, %v9144_v35 }
0x1a36   :  { %v7023_v0 = vpop.f32.mrb[46].mxu0 }
0x1a37   :  { %v3247_v13 = vadd.f32 %v7023_v0, %v6201_v5  ;;  %v3241_v6 = vpop.f32.mrb[47].mxu0 }
0x1a38   :  { %v3242_v42 = vadd.f32 %v6201_v5, %v3241_v6 }
0x1a39   :  { %v3251_v31 = vadd.f32 %v3247_v13, %v8910_v54  ;;  %v3261_v54 = vpop.permute.xlu0 %3260 }
0x1a3a   :  { %v3250_v9 = vadd.f32 %v3242_v42, %v8907_v15 }
0x1a3c   :  { %v7654_v43 = vpack.c.bf16 %v3251_v31, %v3250_v9 }
0x1a3e   :  { %7655 = vmatpush3.bf16.msra.mxu1 %v7654_v43 }
0x1a3f   :  { %7031 = vmatprep.subr.mxu1 %v8030_v28 }
0x1a41   :  { %7029 = vmatmul.mubr.msk.f32.vlgmr.msra.gmra.mrb[40].mxu1 %vm584_vm5, %v3256_v44 }
0x1a42   :  { %7033 = vmatprep.mubr.msk.f32.mxu1 %vm8029_vm4, %v8030_v28 }
0x1b14   :  { %v3332_v15 = vpop.f32.mrb[40].mxu1 }
0x1b15   :  { %v3333_v20 = vadd.f32 %v3332_v15, %v3261_v54  ;;  %v7030_v25 = vpop.f32.mrb[41].mxu1 }
0x1b17   :  { %v3336_v45 = vmax.f32 %v3333_v20, 0.0 }
0x1b19   :  { %7032 = vmatpush3.msra.mxu1 %v3336_v45 }
0x1b1a   :  { %7034 = vmatmul.mubr.msk.f32.vlgmr.msra.gmra.mrb[42].mxu1 %vm3344_vm12, %v3337_v55  ;;  %7656 = vmatprep.subr.bf16.mxu1 %v8028_v10 }
0x1b1b   :  { %7044 = vmatprep.mubr.msk.f32.mxu1 %vm8029_vm4, %v8030_v28  ;;  %7658 = vmatpush3.bf16.msra.mxu1 %v9187_v1 }
0x1b1c   :  { %7659 = vmatprep.subr.bf16.mxu1 %v8028_v10 }
0x1b1f   :  { %7661 = vmatpush3.bf16.msra.mxu1 %v9197_v23 }
0x1b20   :  { %7662 = vmatprep.subr.bf16.mxu1 %v8028_v10 }
0x1bed   :  { %v3414_v38 = vpop.f32.mrb[42].mxu1 }
0x1bee   :  { %v3415_v51 = vadd.f32 %v3414_v38, %v3342_v47  ;;  %v7035_v56 = vpop.f32.mrb[43].mxu1 }
0x1bf0   :  { %v3418_v18 = vmax.f32 %v3415_v51, 0.0 }
0x1bf2   :  { %v9175_v33 = vadd.f32 %v3419_v52, %v3418_v18 }
0x1bf4   :  { %v3461_v37 = vsel %vm110_vm0, %v9175_v33, 0.0 }
0x1bf5   :  { %3462 = vadd.xlane.f32.xlu1 %v3461_v37 }
0x1c82   :  { %v3463_v50 = vpop.xlane.xlu1 %3462 }
0x1c83   :  { %v3464_v59 = vmul.f32 0.03125, %v3463_v50 }
0x1c85   :  { %v3465_v48 = vsub.f32 %v9175_v33, %v3464_v59 }
0x1c87   :  { %v3466_v26 = vmul.f32 %v3465_v48, %v3465_v48 }
0x1c89   :  { %v3467_v24 = vsel %vm110_vm0, %v3466_v26, 0.0 }
0x1c8a   :  { %3468 = vadd.xlane.f32.xlu0 %v3467_v24 }
0x1d17   :  { %v3469_v3 = vpop.xlane.xlu0 %3468 }
0x1d18   :  { %v3470_v63 = vmul.f32 0.03125, %v3469_v3 }
0x1d1a   :  { %v3471_v4 = vadd.f32 1e-05, %v3470_v63 }
0x1d1c   :  { %7934 = vrsqrt.f32 %v3471_v4 }
0x1d26   :  { %v7935_v2 = vpop.eup %7934 }
0x1d27   :  { %v3473_v32 = vmul.f32 %v7935_v2, %v3465_v48 }
0x1d29   :  { %v3478_v22 = vmul.f32 %v9204_v30, %v3473_v32 }
0x1d2b   :  { %v3483_v8 = vadd.f32 %v9215_v57, %v3478_v22 }
0x1d2d   :  { %7045 = vmatmul.mubr.msk.f32.vlgmr.msra.gmra.mrb[44].mxu1 %vm110_vm0, %v3483_v8 }
0x1d2e   :  { %7664 = vmatpush3.bf16.msra.mxu1 %v9218_v7  ;;  %7055 = vmatprep.mubr.msk.f32.mxu1 %vm8029_vm4, %v8030_v28 }
0x1d2f   :  { %7665 = vmatprep.subr.bf16.mxu1 %v8028_v10 }
0x1d32   :  { %7667 = vmatpush3.bf16.msra.mxu1 %v9232_v62 }
0x1d33   :  { %7668 = vmatprep.subr.bf16.mxu1 %v8028_v10 }
0x1e00   :  { %v3557_v14 = vpop.f32.mrb[44].mxu1 }
0x1e01   :  { %v3558_v29 = vadd.f32 %v9239_v12, %v3557_v14  ;;  %v7046_v27 = vpop.f32.mrb[45].mxu1 }
0x1e03   :  { %v3561_v5 = vmul.f32 0.5, %v3558_v29  ;;  %v3709_v0 = vmul.f32 %v3558_v29, %v3558_v29 }
0x1e05   :  { %3635 = vrot.lane.b32.xlu1 %v3561_v5, %s8026_s18  ;;  %7056 = vmatmul.mubr.msk.f32.vlgmr.msra.gmra.mrb[46].mxu1 %vm110_vm0, %v3561_v5  ;;  %v3710_v56 = vsel %vm44_vm2, %v3709_v0, 0.0  ;;  %v3714_v18 = vsel %vm44_vm2, 0.0, %v3709_v0 }
0x1e06   :  { %7670 = vmatpush3.bf16.msra.mxu1 %v9218_v7  ;;  %7066 = vmatprep.mubr.msk.f32.mxu1 %vm8029_vm4, %v8030_v28  ;;  %v3711_v52 = vsel %vm110_vm0, %v3710_v56, 0.0  ;;  %v3715_v37 = vsel %vm110_vm0, %v3714_v18, 0.0 }
0x1e07   :  { %7671 = vmatprep.subr.bf16.mxu1 %v8028_v10 }
0x1e09   :  { %3721 = vrot.lane.b32.xlu1 %v3709_v0, %s8026_s18 }
0x1e0a   :  { %7673 = vmatpush3.bf16.msra.mxu1 %v9232_v62 }
0x1e0b   :  { %7674 = vmatprep.subr.bf16.mxu1 %v8028_v10 }
0x1e77   :  { %v3636_v13 = vpop.permute.xlu1 %3635 }
0x1e78   :  { %7067 = vmatmul.mubr.msk.f32.vlgmr.msra.gmra.mrb[48].mxu1 %vm110_vm0, %v3636_v13 }
0x1e79   :  { %7126 = vmatprep.mubr.msk.f32.mxu1 %vm8029_vm4, %v8030_v28 }
0x1e7b   :  { %v3722_v6 = vpop.permute.xlu1 %3721 }
0x1e7c   :  { %v3724_v42 = vsel %vm44_vm2, %v3722_v6, 0.0  ;;  %v3728_v9 = vsel %vm44_vm2, 0.0, %v3722_v6 }
0x1e7d   :  { %v3725_v31 = vsel %vm110_vm0, %v3724_v42, 0.0  ;;  %v3729_v43 = vsel %vm110_vm0, %v3728_v9, 0.0 }
0x1e7e   :  { %3726 = vadd.xlane.f32.xlu0 %v3725_v31 }
0x1e82   :  { %3730 = vadd.xlane.f32.xlu0 %v3729_v43 }
0x1e98   :  { %3818 = vrot.lane.b32.xlu0 %v3558_v29, %s8027_s19 }
0x1ed8   :  { %v3631_v44 = vpop.f32.mrb[46].mxu1 }
0x1ed9   :  { %v7057_v21 = vpop.f32.mrb[47].mxu1  ;;  %v3734_v50 = vsel %vm69_vm3, %v3631_v44, -1e+30  ;;  %v3738_v48 = vsel %vm69_vm3, -1e+30, %v3631_v44 }
0x1eda   :  { %v3735_v59 = vsel %vm453_vm1, %v3734_v50, -inf  ;;  %v3739_v26 = vsel %vm453_vm1, %v3738_v48, -inf }
0x1f0b   :  { %v3727_v54 = vpop.xlane.xlu0 %3726 }
0x1f0f   :  { %v3731_v15 = vpop.xlane.xlu0 %3730 }
0x1f10   :  { %v3732_v20 = vsel %vm69_vm3, %v3727_v54, %v3731_v15 }
0x1f11   :  { %v3733_v45 = vmul.f32 0.125, %v3732_v20 }
0x1f13   :  { %v3819_v25 = vpop.permute.xlu0 %3818 }
0x1f14   :  { %7070 = vmatpush3.msra.mxu0 %v3819_v25 }
0x1f15   :  { %7712 = vmatprep.subr.bf16.mxu0 %v8028_v10 }
0x1f4b   :  { %v3705_v55 = vpop.f32.mrb[48].mxu1 }
0x1f4c   :  { %v3758_v47 = vsub.f32 %v3705_v55, %v3733_v45  ;;  %v7068_v38 = vpop.f32.mrb[49].mxu1  ;;  %v3743_v51 = vsel %vm453_vm1, %v3705_v55, -inf }
0x1f4d   :  { %3744 = vmax.xlane.f32.xlu1 %v3743_v51 }
0x1f51   :  { %3712 = vadd.xlane.f32.xlu1 %v3711_v52 }
0x1f55   :  { %3716 = vadd.xlane.f32.xlu1 %v3715_v37 }
0x1f59   :  { %3736 = vmax.xlane.f32.xlu1 %v3735_v59 }
0x1f5d   :  { %3740 = vmax.xlane.f32.xlu1 %v3739_v26 }
0x1fda   :  { %v3745_v24 = vpop.xlane.xlu1 %3744 }
0x1fdb   :  { %v3746_v60 = vrot.slane %v3745_v24, 4 }
0x1fdd   :  { %v3747_v40 = vmax.f32 %v3745_v24, %v3746_v60 }
0x1fde   :  { %v3713_v36 = vpop.xlane.xlu1 %3712 }
0x1fdf   :  { %v3748_v39 = vrot.slane %v3747_v40, 2 }
0x1fe1   :  { %v3749_v3 = vmax.f32 %v3747_v40, %v3748_v39 }
0x1fe2   :  { %v3717_v63 = vpop.xlane.xlu1 %3716 }
0x1fe3   :  { %v3750_v4 = vrot.slane %v3749_v3, 1  ;;  %v3718_v2 = vsel %vm69_vm3, %v3713_v36, %v3717_v63 }
0x1fe4   :  { %v3719_v61 = vmul.f32 0.125, %v3718_v2 }
0x1fe5   :  { %v3751_v32 = vmax.f32 %v3749_v3, %v3750_v4 }
0x1fe6   :  { %v3737_v19 = vpop.xlane.xlu1 %3736  ;;  %v3752_v11 = vsub.f32 %v3631_v44, %v3719_v61 }
0x1fe7   :  { %v3759_v22 = vsub.f32 %v3758_v47, %v3751_v32 }
0x1fe9   :  { %v3760_v8 = vmul.f32 1.442695, %v3759_v22 }
0x1fea   :  { %v3741_v16 = vpop.xlane.xlu1 %3740 }
0x1feb   :  { %7936 = vpow2.f32 %v3760_v8  ;;  %v3742_v14 = vsel %vm69_vm3, %v3737_v19, %v3741_v16 }
0x1fec   :  { %v3753_v29 = vsub.f32 %v3752_v11, %v3742_v14 }
0x1fee   :  { %v3754_v27 = vmul.f32 1.442695, %v3753_v29 }
0x1ff0   :  { %7938 = vpow2.f32 %v3754_v27 }
0x1ff5   :  { %v7937_v5 = vpop.eup %7936 }
0x1ff6   :  { %v3762_v0 = vadd.f32 0.0001, %v7937_v5 }
0x1ff8   :  { %v3763_v13 = vmul.f32 0.15075567, %v3762_v0 }
0x1ffa   :  { %3785 = vxpose.xlu0.b32.start.end [1/1] (short) (narrow) %v3763_v13, 88  ;;  %v3764_v6 = vsel %vm453_vm1, %v3763_v13, 0.0  ;;  %v7939_v9 = vpop.eup %7938 }
0x1ffb   :  { %v3765_v42 = vrot.slane %v3764_v6, 4  ;;  %v3756_v21 = vadd.f32 0.0001, %v7939_v9 }
0x1ffd   :  { %v3766_v31 = vadd.f32 %v3765_v42, %v3764_v6  ;;  %v9282_v15 = vmul.f32 0.15075567, %v3756_v21 }
0x1fff   :  { %v3767_v43 = vrot.slane %v3766_v31, 2 }
0x2001   :  { %v3768_v44 = vadd.f32 %v3767_v43, %v3766_v31 }
0x2003   :  { %v3769_v54 = vrot.slane %v3768_v44, 1 }
0x2005   :  { %v3770_v20 = vadd.f32 %v3769_v54, %v3768_v44 }
0x2007   :  { %v3771_v25 = vmul.f32 %v3770_v20, %v9282_v15 }
0x2009   :  { %v3772_v45 = vsel %vm69_vm3, %v3771_v25, 0.0  ;;  %v3776_v47 = vsel %vm69_vm3, 0.0, %v3771_v25  ;;  %v3428_v25 = vld [vmem:[%s9863_s2 + $0x2b8] sm:$0xff] }
0x200a   :  { %v3773_v55 = vsel %vm453_vm1, %v3772_v45, 0.0  ;;  %v3777_v38 = vsel %vm453_vm1, %v3776_v47, 0.0  ;;  %v3429_v45 = vld [vmem:[%s9863_s2 + $0x2c0] sm:$0xff] }
0x200b   :  { %3774 = vadd.xlane.f32.xlu1 %v3773_v55 }
0x200f   :  { %3778 = vadd.xlane.f32.xlu1 %v3777_v38 }
0x207a   :  { %v3801_v51 = vpop.trf.xlu0 }
0x207b   :  { %7072 = vmatmul.mubr.msk.f32.vlgmr.msra.gmra.mrb[48].mxu0 %vm3344_vm12, %v3801_v51  ;;  %v7695_v51 = vpack.c.bf16 %v3429_v45, %v3428_v25 }
0x207c   :  { %7074 = vmatprep.mubr.msk.f32.mxu0 %vm8029_vm4, %v8030_v28  ;;  %7714 = vmatpush3.bf16.msra.mxu0 %v9218_v7 }
0x207d   :  { %7715 = vmatprep.subr.bf16.mxu0 %v8028_v10 }
0x207e   :  { %v3802_v56 = vpop.trf.xlu0 }
0x207f   :  { %7075 = vmatmul.mubr.msk.f32.gmra.mrb[50].mxu0 %vm3344_vm12, %v3802_v56 }
0x2080   :  { %7077 = vmatprep.mubr.msk.f32.mxu0 %vm8029_vm4, %v8030_v28  ;;  %7717 = vmatpush3.bf16.msra.mxu0 %v9232_v62 }
0x2081   :  { %7718 = vmatprep.subr.bf16.mxu0 %v8028_v10 }
0x2082   :  { %v3803_v52 = vpop.trf.xlu0 }
0x2083   :  { %7078 = vmatmul.mubr.msk.f32.gmra.mrb[52].mxu0 %vm3344_vm12, %v3803_v52  ;;  %v3430_v52 = vld [vmem:[%s9863_s2 + $0x2c8] sm:$0xff] }
0x2084   :  { %7080 = vmatprep.mubr.msk.f32.mxu0 %vm8029_vm4, %v8030_v28 }
0x2086   :  { %v3804_v18 = vpop.trf.xlu0 }
0x2087   :  { %7081 = vmatmul.mubr.msk.f32.gmra.mrb[54].mxu0 %vm3344_vm12, %v3804_v18  ;;  %v3431_v18 = vld [vmem:[%s9863_s2 + $0x2d0] sm:$0xff] }
0x2088   :  { %7083 = vmatprep.mubr.msk.f32.mxu0 %vm8029_vm4, %v8030_v28 }
0x208a   :  { %v3805_v37 = vpop.trf.xlu0 }
0x208b   :  { %7084 = vmatmul.mubr.msk.f32.gmra.mrb[56].mxu0 %vm3344_vm12, %v3805_v37  ;;  %v7698_v37 = vpack.c.bf16 %v3431_v18, %v3430_v52 }
0x208c   :  { %7086 = vmatprep.mubr.msk.f32.mxu0 %vm8029_vm4, %v8030_v28 }
0x208e   :  { %v3806_v50 = vpop.trf.xlu0 }
0x208f   :  { %7087 = vmatmul.mubr.msk.f32.gmra.mrb[58].mxu0 %vm3344_vm12, %v3806_v50 }
0x2090   :  { %7089 = vmatprep.mubr.msk.f32.mxu0 %vm8029_vm4, %v8030_v28 }
0x2092   :  { %v3807_v59 = vpop.trf.xlu0 }
0x2093   :  { %7090 = vmatmul.mubr.msk.f32.gmra.mrb[60].mxu0 %vm3344_vm12, %v3807_v59  ;;  %v6233_v59 = vld [vmem:[%s9863_s2 + $0x2d8] ss:$0 sm:$0xff] }
0x2094   :  { %7092 = vmatprep.mubr.msk.f32.mxu0 %vm8029_vm4, %v8030_v28 }
0x2096   :  { %v3808_v48 = vpop.trf.xlu0 }
0x2097   :  { %7093 = vmatmul.mubr.msk.f32.gmra.mrb[62].mxu0 %vm3344_vm12, %v3808_v48 }
0x2098   :  { %7095 = vmatprep.mubr.msk.f32.mxu0 %vm8029_vm4, %v8030_v28  ;;  %v3775_v8 = vpop.xlane.xlu1 %3774 }
0x209a   :  { %v3809_v26 = vpop.trf.xlu0 }
0x209b   :  { %7096 = vmatmul.mubr.msk.f32.gmra.mrb[64].mxu0 %vm3344_vm12, %v3809_v26 }
0x209c   :  { %7098 = vmatprep.mubr.msk.f32.mxu0 %vm8029_vm4, %v8030_v28  ;;  %v3779_v27 = vpop.xlane.xlu1 %3778 }
0x209d   :  { %7940 = vrcp.f32 %v3779_v27  ;;  %v6240_v27 = vld [vmem:[%s9863_s2 + $0x300] ss:$0 sm:$0xff] }
0x209e   :  { %v3810_v24 = vpop.trf.xlu0  ;;  %7942 = vrcp.f32 %v3775_v8 }
0x209f   :  { %7099 = vmatmul.mubr.msk.f32.gmra.mrb[66].mxu0 %vm3344_vm12, %v3810_v24 }
0x20a0   :  { %7101 = vmatprep.mubr.msk.f32.mxu0 %vm8029_vm4, %v8030_v28 }
0x20a2   :  { %v3811_v60 = vpop.trf.xlu0 }
0x20a3   :  { %7102 = vmatmul.mubr.msk.f32.gmra.mrb[68].mxu0 %vm3344_vm12, %v3811_v60 }
0x20a4   :  { %7170 = vmatprep.mubr.msk.f32.mxu0 %vm8029_vm4, %v8030_v28 }
0x20a7   :  { %v7941_v43 = vpop.eup %7940 }
0x20a8   :  { %v7943_v20 = vpop.eup %7942 }
0x20a9   :  { %v3784_v55 = vsel %vm69_vm3, %v7943_v20, %v7941_v43 }
0x20aa   :  { %v3985_v56 = vmul.f32 %v3784_v55, %v9282_v15 }
0x214e   :  { %v3920_v40 = vpop.f32.mrb[48].mxu0 }
0x214f   :  { %v7073_v36 = vpop.f32.mrb[49].mxu0 }
0x2152   :  { %v3925_v39 = vpop.f32.mrb[50].mxu0 }
0x2153   :  { %v7675_v3 = vpack.c.bf16 %v3925_v39, %v3920_v40  ;;  %v7076_v63 = vpop.f32.mrb[51].mxu0 }
0x2155   :  { %7677 = vmatpush3.bf16.msk.msra.mxu1 %vm8321_vm9, %v7675_v3 }
0x2156   :  { %v3930_v4 = vpop.f32.mrb[52].mxu0  ;;  %7678 = vmatprep.subr.bf16.mxu1 %v8028_v10 }
0x2157   :  { %v7079_v2 = vpop.f32.mrb[53].mxu0 }
0x215a   :  { %v3935_v32 = vpop.f32.mrb[54].mxu0 }
0x215b   :  { %v7679_v61 = vpack.c.bf16 %v3935_v32, %v3930_v4  ;;  %v7082_v19 = vpop.f32.mrb[55].mxu0 }
0x215d   :  { %7681 = vmatpush3.bf16.msk.msra.mxu1 %vm8321_vm9, %v7679_v61 }
0x215e   :  { %v3940_v22 = vpop.f32.mrb[56].mxu0  ;;  %7682 = vmatprep.subr.bf16.mxu1 %v8028_v10 }
0x215f   :  { %v7085_v11 = vpop.f32.mrb[57].mxu0 }
0x2162   :  { %v3945_v16 = vpop.f32.mrb[58].mxu0 }
0x2163   :  { %v7683_v14 = vpack.c.bf16 %v3945_v16, %v3940_v22  ;;  %v7088_v29 = vpop.f32.mrb[59].mxu0  ;;  %v3441_v16 = vld [vmem:[%s9863_s2 + $0x320] sm:$0xff] }
0x2165   :  { %7685 = vmatpush3.bf16.msk.msra.mxu1 %vm8338_vm13, %v7683_v14  ;;  %v3442_v14 = vld [vmem:[%s9863_s2 + $0x328] sm:$0xff] }
0x2166   :  { %v3950_v5 = vpop.f32.mrb[60].mxu0  ;;  %7686 = vmatprep.subr.bf16.mxu1 %v8028_v10 }
0x2167   :  { %v7091_v0 = vpop.f32.mrb[61].mxu0 }
0x216a   :  { %v3955_v13 = vpop.f32.mrb[62].mxu0 }
0x216b   :  { %v7687_v6 = vpack.c.bf16 %v3955_v13, %v3950_v5  ;;  %v7094_v42 = vpop.f32.mrb[63].mxu0  ;;  %v7722_v5 = vpack.c.bf16 %v3442_v14, %v3441_v16  ;;  %v6241_v13 = vld [vmem:[%s9863_s2 + $0x308] ss:$0 sm:$0xff] }
0x216d   :  { %7689 = vmatpush3.bf16.msk.msra.mxu1 %vm8356_vm15, %v7687_v6 }
0x216e   :  { %v3960_v31 = vpop.f32.mrb[64].mxu0  ;;  %7690 = vmatprep.subr.bf16.mxu1 %v8028_v10 }
0x216f   :  { %v7097_v9 = vpop.f32.mrb[65].mxu0 }
0x2172   :  { %v3965_v21 = vpop.f32.mrb[66].mxu0 }
0x2173   :  { %v7691_v44 = vpack.c.bf16 %v3965_v21, %v3960_v31  ;;  %v7100_v54 = vpop.f32.mrb[67].mxu0 }
0x2175   :  { %7693 = vmatpush3.bf16.msk.msra.mxu1 %vm8356_vm15, %v7691_v44 }
0x2176   :  { %v3970_v47 = vpop.f32.mrb[68].mxu0  ;;  %7124 = vmatprep.subr.mxu1 %v8030_v28 }
0x2177   :  { %v7103_v38 = vpop.f32.mrb[69].mxu0 }
0x2179   :  { %7125 = vmatpush3.msk.msra.mxu1 %vm8349_vm14, %v3970_v47 }
0x217a   :  { %7127 = vmatmul.mubr.msk.f32.vlgmr.msra.gmra.mrb[50].mxu1 %vm453_vm1, %v3985_v56  ;;  %7694 = vmatprep.subr.bf16.mxu1 %v8028_v10 }
0x217b   :  { %7696 = vmatpush3.bf16.msra.mxu1 %v7695_v51  ;;  %7137 = vmatprep.mubr.msk.f32.mxu1 %vm8029_vm4, %v8030_v28 }
0x217c   :  { %7697 = vmatprep.subr.bf16.mxu1 %v8028_v10 }
0x217f   :  { %7699 = vmatpush3.bf16.msra.mxu1 %v7698_v37 }
0x2180   :  { %7700 = vmatprep.subr.bf16.mxu1 %v8028_v10 }
0x224d   :  { %v4055_v15 = vpop.f32.mrb[50].mxu1 }
0x224e   :  { %v7128_v50 = vpop.f32.mrb[51].mxu1  ;;  %7138 = vmatmul.mubr.msk.f32.vlgmr.msra.gmra.mrb[52].mxu1 %vm110_vm0, %v4055_v15 }
0x224f   :  { %7702 = vmatpush3.bf16.msra.mxu1 %v9187_v1  ;;  %7148 = vmatprep.mubr.msk.f32.mxu1 %vm8029_vm4, %v8030_v28 }
0x2250   :  { %7703 = vmatprep.subr.bf16.mxu1 %v8028_v10 }
0x2253   :  { %7705 = vmatpush3.bf16.msra.mxu1 %v9197_v23 }
0x2254   :  { %7706 = vmatprep.subr.bf16.mxu1 %v8028_v10 }
0x2321   :  { %v4132_v48 = vpop.f32.mrb[52].mxu1 }
0x2322   :  { %v4133_v26 = vadd.f32 %v6233_v59, %v4132_v48  ;;  %v7139_v24 = vpop.f32.mrb[53].mxu1 }
0x2324   :  { %v9377_v60 = vadd.f32 %v4133_v26, %v9175_v33 }
0x2326   :  { %v4137_v1 = vsel %vm110_vm0, %v9377_v60, 0.0 }
0x2327   :  { %4138 = vadd.xlane.f32.xlu1 %v4137_v1 }
0x23b4   :  { %v4139_v40 = vpop.xlane.xlu1 %4138 }
0x23b5   :  { %v4140_v36 = vmul.f32 0.03125, %v4139_v40 }
0x23b7   :  { %v4141_v23 = vsub.f32 %v9377_v60, %v4140_v36 }
0x23b9   :  { %v4142_v39 = vmul.f32 %v4141_v23, %v4141_v23 }
0x23bb   :  { %v4143_v3 = vsel %vm110_vm0, %v4142_v39, 0.0 }
0x23bc   :  { %4144 = vadd.xlane.f32.xlu0 %v4143_v3 }
0x2449   :  { %v4145_v63 = vpop.xlane.xlu0 %4144 }
0x244a   :  { %v4146_v4 = vmul.f32 0.03125, %v4145_v63 }
0x244c   :  { %v4147_v2 = vadd.f32 1e-05, %v4146_v4 }
0x244e   :  { %7944 = vrsqrt.f32 %v4147_v2 }
0x2458   :  { %v7945_v32 = vpop.eup %7944 }
0x2459   :  { %v4149_v61 = vmul.f32 %v7945_v32, %v4141_v23 }
0x245b   :  { %v4150_v33 = vmul.f32 %v9204_v30, %v4149_v61  ;;  %v4532_v0 = vmul.f32 %v6240_v27, %v4149_v61 }
0x245d   :  { %v4151_v19 = vadd.f32 %v9215_v57, %v4150_v33  ;;  %v4537_v6 = vadd.f32 %v6241_v13, %v4532_v0 }
0x245f   :  { %7149 = vmatmul.mubr.msk.f32.vlgmr.msra.gmra.mrb[54].mxu1 %vm110_vm0, %v4151_v19 }
0x2460   :  { %7708 = vmatpush3.bf16.msra.mxu1 %v9218_v7  ;;  %7159 = vmatprep.mubr.msk.f32.mxu1 %vm8029_vm4, %v8030_v28  ;;  %v3439_v7 = vld [vmem:[%s9863_s2 + $0x310] sm:$0xff] }
0x2461   :  { %7709 = vmatprep.subr.bf16.mxu1 %v8028_v10 }
0x2464   :  { %7711 = vmatpush3.bf16.msra.mxu1 %v9232_v62  ;;  %v3440_v62 = vld [vmem:[%s9863_s2 + $0x318] sm:$0xff] }
0x2465   :  { %7173 = vmatprep.subr.mxu1 %v8030_v28 }
0x2532   :  { %v4221_v22 = vpop.f32.mrb[54].mxu1 }
0x2533   :  { %v4222_v8 = vadd.f32 %v9239_v12, %v4221_v22  ;;  %v7150_v11 = vpop.f32.mrb[55].mxu1  ;;  %v7719_v12 = vpack.c.bf16 %v3440_v62, %v3439_v7 }
0x2535   :  { %v4225_v30 = vmul.f32 0.5, %v4222_v8  ;;  %v4373_v57 = vmul.f32 %v4222_v8, %v4222_v8 }
0x2537   :  { %4299 = vrot.lane.b32.xlu1 %v4225_v30, %s8026_s18  ;;  %7160 = vmatmul.mubr.msk.f32.vlgmr.msra.gmra.mrb[56].mxu1 %vm110_vm0, %v4225_v30  ;;  %v4374_v38 = vsel %vm44_vm2, %v4373_v57, 0.0  ;;  %v4378_v56 = vsel %vm44_vm2, 0.0, %v4373_v57 }
0x2538   :  { %7175 = vmatprep.mubr.msk.f32.mxu1 %vm8029_vm4, %v8030_v28  ;;  %v4375_v51 = vsel %vm110_vm0, %v4374_v38, 0.0  ;;  %v4379_v52 = vsel %vm110_vm0, %v4378_v56, 0.0 }
0x253b   :  { %4385 = vrot.lane.b32.xlu1 %v4373_v57, %s8026_s18 }
0x25a9   :  { %v4300_v29 = vpop.permute.xlu1 %4299 }
0x25aa   :  { %7171 = vmatmul.mubr.msk.f32.vlgmr.msra.gmra.mrb[70].mxu0 %vm110_vm0, %v4300_v29 }
0x25ab   :  { %7720 = vmatpush3.bf16.msra.mxu0 %v7719_v12  ;;  %7186 = vmatprep.mubr.msk.f32.mxu0 %vm8029_vm4, %v8030_v28 }
0x25ac   :  { %7721 = vmatprep.subr.bf16.mxu0 %v8028_v10 }
0x25ad   :  { %v4386_v9 = vpop.permute.xlu1 %4385 }
0x25ae   :  { %v4388_v54 = vsel %vm44_vm2, %v4386_v9, 0.0  ;;  %v4392_v25 = vsel %vm44_vm2, 0.0, %v4386_v9 }
0x25af   :  { %7723 = vmatpush3.bf16.msra.mxu0 %v7722_v5  ;;  %v4389_v20 = vsel %vm110_vm0, %v4388_v54, 0.0  ;;  %v4393_v47 = vsel %vm110_vm0, %v4392_v25, 0.0 }
0x25b0   :  { %7748 = vmatprep.subr.bf16.mxu0 %v8028_v10 }
0x25b2   :  { %7187 = vmatmul.mubr.msk.f32.vlgmr.msra.gmra.mrb[72].mxu0 %vm110_vm0, %v4537_v6 }
0x25b3   :  { %7232 = vmatprep.mubr.msk.f32.mxu0 %vm8029_vm4, %v8030_v28 }
0x260a   :  { %v4295_v42 = vpop.f32.mrb[56].mxu1 }
0x260b   :  { %v7161_v31 = vpop.f32.mrb[57].mxu1  ;;  %v4398_v18 = vsel %vm69_vm3, %v4295_v42, -1e+30  ;;  %v4402_v15 = vsel %vm69_vm3, -1e+30, %v4295_v42 }
0x260c   :  { %v4399_v37 = vsel %vm453_vm1, %v4398_v18, -inf  ;;  %v4403_v50 = vsel %vm453_vm1, %v4402_v15, -inf }
0x267d   :  { %v4369_v43 = vpop.f32.mrb[70].mxu0 }
0x267e   :  { %v7172_v21 = vpop.f32.mrb[71].mxu0  ;;  %v4407_v44 = vsel %vm453_vm1, %v4369_v43, -inf }
0x267f   :  { %4408 = vmax.xlane.f32.xlu1 %v4407_v44 }
0x2683   :  { %4390 = vadd.xlane.f32.xlu1 %v4389_v20 }
0x2685   :  { %v9430_v45 = vpop.f32.mrb[72].mxu0 }
0x2686   :  { %v7188_v55 = vpop.f32.mrb[73].mxu0 }
0x2687   :  { %4394 = vadd.xlane.f32.xlu1 %v4393_v47  ;;  %v6242_v55 = vld [vmem:[%s9863_s2 + $0x330] ss:$0 sm:$0xff] }
0x2688   :  { %v9464_v47 = vadd.f32 %v6242_v55, %v9430_v45 }
0x268a   :  { %v9467_v38 = vmul.f32 0.70710677, %v9464_v47 }
0x268b   :  { %4376 = vadd.xlane.f32.xlu1 %v4375_v51 }
0x268c   :  { %v4619_v51 = vand.u32 2147483647, %v9467_v38  ;;  %vm4617_vm6 = vcmp.ge.f32.partialorder %v9467_v38, 0.0 }
0x268e   :  { %v4620_v56 = vmul.f32 0.3275911, %v4619_v51 }
0x268f   :  { %4380 = vadd.xlane.f32.xlu1 %v4379_v52 }
0x2690   :  { %v4621_v52 = vadd.f32 1.0, %v4620_v56 }
0x2693   :  { %4400 = vmax.xlane.f32.xlu1 %v4399_v37 }
0x2697   :  { %4404 = vmax.xlane.f32.xlu1 %v4403_v50 }
0x270c   :  { %v4409_v59 = vpop.xlane.xlu1 %4408 }
0x270d   :  { %v4410_v48 = vrot.slane %v4409_v59, 4 }
0x270f   :  { %v4411_v26 = vmax.f32 %v4409_v59, %v4410_v48 }
0x2710   :  { %v4391_v24 = vpop.xlane.xlu1 %4390 }
0x2711   :  { %v4412_v1 = vrot.slane %v4411_v26, 2 }
0x2713   :  { %v4413_v40 = vmax.f32 %v4411_v26, %v4412_v1  ;;  %v3444_v1 = vld [vmem:[%s9863_s2 + $0x338] sm:$0xff] }
0x2714   :  { %v4395_v36 = vpop.xlane.xlu1 %4394 }
0x2715   :  { %v4414_v23 = vrot.slane %v4413_v40, 1  ;;  %v4396_v39 = vsel %vm69_vm3, %v4391_v24, %v4395_v36  ;;  %v4633_v24 = vsub.f32 0.0, %v4619_v51 }
0x2716   :  { %v4397_v3 = vmul.f32 0.125, %v4396_v39 }
0x2717   :  { %v4415_v63 = vmax.f32 %v4413_v40, %v4414_v23  ;;  %v3445_v40 = vld [vmem:[%s9863_s2 + $0x340] sm:$0xff]  ;;  %v4634_v23 = vmul.f32 %v4633_v24, %v4619_v51 }
0x2718   :  { %v4422_v4 = vsub.f32 %v4369_v43, %v4397_v3  ;;  %v4377_v2 = vpop.xlane.xlu1 %4376 }
0x271a   :  { %v4423_v32 = vsub.f32 %v4422_v4, %v4415_v63  ;;  %v7725_v63 = vpack.c.bf16 %v3445_v40, %v3444_v1  ;;  %v4719_v40 = vld [vmem:[%s9863_s2 + $0x3d0] sm:$0xff] }
0x271c   :  { %v4424_v61 = vmul.f32 1.442695, %v4423_v32  ;;  %v4381_v33 = vpop.xlane.xlu1 %4380  ;;  %v3446_v32 = vld [vmem:[%s9863_s2 + $0x348] sm:$0xff] }
0x271d   :  { %v4382_v19 = vsel %vm69_vm3, %v4377_v2, %v4381_v33  ;;  %v4635_v33 = vmul.f32 1.442695, %v4634_v23  ;;  %v4721_v23 = vld [vmem:[%s9863_s2 + $0x3e0] sm:$0xff] }
0x271e   :  { %7946 = vpow2.f32 %v4424_v61  ;;  %v4383_v22 = vmul.f32 0.125, %v4382_v19  ;;  %v3447_v61 = vld [vmem:[%s9863_s2 + $0x350] sm:$0xff] }
0x271f   :  { %v7728_v19 = vpack.c.bf16 %v3447_v61, %v3446_v32  ;;  %v9571_v61 = vld [vmem:[%s9863_s2 + $0x3c0] ss:$0 sm:$0xff] }
0x2720   :  { %v4401_v8 = vpop.xlane.xlu1 %4400  ;;  %v4416_v11 = vsub.f32 %v4295_v42, %v4383_v22 }
0x2724   :  { %v4405_v30 = vpop.xlane.xlu1 %4404 }
0x2725   :  { %v4406_v57 = vsel %vm69_vm3, %v4401_v8, %v4405_v30  ;;  %v3448_v8 = vld [vmem:[%s9863_s2 + $0x358] sm:$0xff] }
0x2726   :  { %v4417_v7 = vsub.f32 %v4416_v11, %v4406_v57  ;;  %v3449_v11 = vld [vmem:[%s9863_s2 + $0x360] sm:$0xff] }
0x2727   :  { %v7731_v30 = vpack.c.bf16 %v3449_v11, %v3448_v8  ;;  %v9582_v8 = vld [vmem:[%s9863_s2 + $0x3c8] ss:$0 sm:$0xff] }
0x2728   :  { %v7947_v62 = vpop.eup %7946  ;;  %v4418_v12 = vmul.f32 1.442695, %v4417_v7  ;;  %v3450_v7 = vld [vmem:[%s9863_s2 + $0x368] sm:$0xff] }
0x2729   :  { %v4426_v16 = vadd.f32 0.0001, %v7947_v62  ;;  %v3451_v62 = vld [vmem:[%s9863_s2 + $0x370] sm:$0xff] }
0x272a   :  { %7948 = vpow2.f32 %v4418_v12  ;;  %v7734_v12 = vpack.c.bf16 %v3451_v62, %v3450_v7  ;;  %v4731_v7 = vld [vmem:[%s9863_s2 + $0x430] sm:$0xff]  ;;  %v4732_v62 = vld [vmem:[%s9863_s2 + $0x438] sm:$0xff] }
0x272b   :  { %v4427_v14 = vmul.f32 0.15075567, %v4426_v16  ;;  %7950 = vrcp.f32 %v4621_v52 }
0x272d   :  { %7174 = vmatpush3.xpose.msk.msra.mxu1 %vm453_vm1, %v4427_v14  ;;  %v4428_v29 = vsel %vm453_vm1, %v4427_v14, 0.0  ;;  %v3452_v14 = vld [vmem:[%s9863_s2 + $0x378] sm:$0xff] }
0x272e   :  { %v4429_v27 = vrot.slane %v4428_v29, 4  ;;  %7724 = vmatprep.subr.bf16.mxu1 %v8028_v10 }
0x2730   :  { %v4430_v5 = vadd.f32 %v4429_v27, %v4428_v29  ;;  %v3453_v29 = vld [vmem:[%s9863_s2 + $0x380] sm:$0xff] }
0x2732   :  { %v4431_v0 = vrot.slane %v4430_v5, 2 }
0x2734   :  { %v7949_v13 = vpop.eup %7948  ;;  %v4432_v6 = vadd.f32 %v4431_v0, %v4430_v5  ;;  %v7737_v5 = vpack.c.bf16 %v3453_v29, %v3452_v14 }
0x2735   :  { %v4420_v42 = vadd.f32 0.0001, %v7949_v13  ;;  %v7951_v18 = vpop.eup %7950  ;;  %v3454_v13 = vld [vmem:[%s9863_s2 + $0x388] sm:$0xff] }
0x2736   :  { %v4433_v31 = vrot.slane %v4432_v6, 1  ;;  %v4624_v37 = vmul.f32 1.0614054, %v7951_v18 }
0x2737   :  { %v4421_v9 = vmul.f32 0.15075567, %v4420_v42 }
0x2738   :  { %v4434_v43 = vadd.f32 %v4433_v31, %v4432_v6  ;;  %v4625_v15 = vadd.f32 -1.4531521, %v4624_v37  ;;  %v3455_v6 = vld [vmem:[%s9863_s2 + $0x390] sm:$0xff] }
0x2739   :  { %v7740_v42 = vpack.c.bf16 %v3455_v6, %v3454_v13 }
0x273a   :  { %v4435_v21 = vmul.f32 %v4434_v43, %v4421_v9  ;;  %v4626_v48 = vmul.f32 %v7951_v18, %v4625_v15  ;;  %v3457_v43 = vld [vmem:[%s9863_s2 + $0x3a0] sm:$0xff] }
0x273c   :  { %v4440_v44 = vsel %vm69_vm3, 0.0, %v4435_v21  ;;  %v4436_v54 = vsel %vm69_vm3, %v4435_v21, 0.0  ;;  %v4627_v26 = vadd.f32 1.4214138, %v4626_v48  ;;  %v4618_v21 = vsel %vm4617_vm6, 1.0, %v8032_v41 }
0x273d   :  { %v4441_v20 = vsel %vm453_vm1, %v4440_v44, 0.0  ;;  %v4437_v25 = vsel %vm453_vm1, %v4436_v54, 0.0  ;;  %v4615_v41 = vmul.f32 0.5, %v9464_v47 }
0x273e   :  { %4442 = vadd.xlane.f32.xlu0 %v4441_v20  ;;  %4438 = vadd.xlane.f32.xlu1 %v4437_v25  ;;  %v4628_v45 = vmul.f32 %v7951_v18, %v4627_v26  ;;  %v3458_v20 = vld [vmem:[%s9863_s2 + $0x3a8] sm:$0xff]  ;;  %v3459_v25 = vld [vmem:[%s9863_s2 + $0x3b0] sm:$0xff] }
0x273f   :  { %v7746_v55 = vpack.c.bf16 %v3459_v25, %v3458_v20 }
0x2740   :  { %v4629_v4 = vadd.f32 -0.28449672, %v4628_v45 }
0x2742   :  { %v4630_v22 = vmul.f32 %v7951_v18, %v4629_v4 }
0x2744   :  { %v4631_v57 = vadd.f32 0.2548296, %v4630_v22  ;;  %v4730_v22 = vld [vmem:[%s9863_s2 + $0x428] sm:$0xff] }
0x2746   :  { %v4632_v16 = vmul.f32 %v7951_v18, %v4631_v57  ;;  %v6244_v18 = vld [vmem:[%s9863_s2 + $0x3b8] ss:$0 sm:$0xff] }
0x27cb   :  { %v4443_v50 = vpop.xlane.xlu0 %4442  ;;  %v4439_v59 = vpop.xlane.xlu1 %4438 }
0x27cc   :  { %7952 = vrcp.f32 %v4443_v50 }
0x27cd   :  { %7954 = vrcp.f32 %v4439_v59 }
0x27ce   :  { %7956 = vpow2.f32 %v4635_v33 }
0x27d6   :  { %v7953_v36 = vpop.eup %7952 }
0x27d7   :  { %v7955_v39 = vpop.eup %7954 }
0x27d8   :  { %v4448_v3 = vsel %vm69_vm3, %v7955_v39, %v7953_v36  ;;  %v7957_v27 = vpop.eup %7956  ;;  %v4722_v39 = vld [vmem:[%s9863_s2 + $0x3e8] sm:$0xff] }
0x27d9   :  { %v4449_v2 = vmul.f32 %v4448_v3, %v4421_v9  ;;  %v4637_v0 = vmul.f32 %v7957_v27, %v4632_v16  ;;  %v3456_v9 = vld [vmem:[%s9863_s2 + $0x398] sm:$0xff]  ;;  %v9564_v3 = vpack.c.bf16 %v4722_v39, %v4721_v23  ;;  %v9606_v16 = vld [vmem:[%s9863_s2 + $0x3f0] ss:$0 sm:$0xff] }
0x27da   :  { %v7743_v44 = vpack.c.bf16 %v3457_v43, %v3456_v9 }
0x27db   :  { %7176 = vmatmul.mubr.msk.f32.vlgmr.msra.gmra.mrb[58].mxu1 %vm453_vm1, %v4449_v2  ;;  %v4638_v31 = vsub.f32 1.0, %v4637_v0 }
0x27dc   :  { %7726 = vmatpush3.bf16.msra.mxu1 %v7725_v63  ;;  %7221 = vmatprep.mubr.msk.f32.mxu1 %vm8029_vm4, %v8030_v28 }
0x27dd   :  { %7727 = vmatprep.subr.bf16.mxu1 %v8028_v10  ;;  %v4639_v54 = vmul.f32 %v4638_v31, %v4618_v21 }
0x27df   :  { %v4640_v38 = vadd.f32 1.0, %v4639_v54 }
0x27e0   :  { %7729 = vmatpush3.bf16.msra.mxu1 %v7728_v19  ;;  %v4729_v19 = vld [vmem:[%s9863_s2 + $0x420] sm:$0xff] }
0x27e1   :  { %7730 = vmatprep.subr.bf16.mxu1 %v8028_v10  ;;  %v4641_v51 = vmul.f32 %v4640_v38, %v4615_v41 }
0x27e4   :  { %7732 = vmatpush3.bf16.msra.mxu1 %v7731_v30  ;;  %v9585_v30 = vpack.c.bf16 %v4730_v22, %v4729_v19 }
0x27e5   :  { %7733 = vmatprep.subr.bf16.mxu1 %v8028_v10 }
0x27e8   :  { %7735 = vmatpush3.bf16.msra.mxu1 %v7734_v12  ;;  %v9599_v12 = vpack.c.bf16 %v4732_v62, %v4731_v7 }
0x27e9   :  { %7736 = vmatprep.subr.bf16.mxu1 %v8028_v10 }
0x27ec   :  { %7738 = vmatpush3.bf16.msra.mxu1 %v7737_v5 }
0x27ed   :  { %7739 = vmatprep.subr.bf16.mxu1 %v8028_v10 }
0x27f0   :  { %7741 = vmatpush3.bf16.msra.mxu1 %v7740_v42 }
0x27f1   :  { %7742 = vmatprep.subr.bf16.mxu1 %v8028_v10 }
0x27f4   :  { %7744 = vmatpush3.bf16.msra.mxu1 %v7743_v44 }
0x27f5   :  { %7745 = vmatprep.subr.bf16.mxu1 %v8028_v10 }
0x27f8   :  { %7747 = vmatpush3.bf16.msra.mxu1 %v7746_v55 }
0x27f9   :  { %7766 = vmatprep.subr.bf16.mxu1 %v8028_v10 }
0x27fb   :  { %7222 = vmatmul.mubr.f32.vlgmr.msra.gmra.mrb[60].mxu1 %v4641_v51 }
0x27fc   :  { %7314 = vmatprep.mubr.msk.f32.mxu1 %vm8029_vm4, %v8030_v28 }
0x28ae   :  { %v9536_v56 = vpop.f32.mrb[58].mxu1 }
0x28af   :  { %v7177_v52 = vpop.f32.mrb[59].mxu1 }
0x28ce   :  { %v4712_v37 = vpop.f32.mrb[60].mxu1 }
0x28cf   :  { %v4713_v15 = vadd.f32 %v6244_v18, %v4712_v37  ;;  %v7223_v50 = vpop.f32.mrb[61].mxu1 }
0x28d1   :  { %v9542_v47 = vadd.f32 %v4713_v15, %v9377_v60  ;;  %v4720_v60 = vld [vmem:[%s9863_s2 + $0x3d8] sm:$0xff] }
0x28d2   :  { %v9554_v36 = vpack.c.bf16 %v4720_v60, %v4719_v40 }
0x28d3   :  { %v4733_v59 = vsel %vm110_vm0, %v9542_v47, 0.0 }
0x28d4   :  { %4734 = vadd.xlane.f32.xlu1 %v4733_v59  ;;  %7750 = vmatpush3.bf16.msra.mxu0 %v9554_v36 }
0x28d5   :  { %7751 = vmatprep.subr.bf16.mxu0 %v8028_v10 }
0x28d8   :  { %7753 = vmatpush3.bf16.msra.mxu0 %v9564_v3 }
0x28d9   :  { %7754 = vmatprep.subr.bf16.mxu0 %v8028_v10 }
0x2961   :  { %v4735_v48 = vpop.xlane.xlu1 %4734 }
0x2962   :  { %v4736_v26 = vmul.f32 0.03125, %v4735_v48 }
0x2964   :  { %v4737_v24 = vsub.f32 %v9542_v47, %v4736_v26 }
0x2966   :  { %v4738_v45 = vmul.f32 %v4737_v24, %v4737_v24 }
0x2968   :  { %v4739_v1 = vsel %vm110_vm0, %v4738_v45, 0.0 }
0x2969   :  { %4740 = vadd.xlane.f32.xlu0 %v4739_v1 }
0x29f6   :  { %v4741_v63 = vpop.xlane.xlu0 %4740 }
0x29f7   :  { %v4742_v4 = vmul.f32 0.03125, %v4741_v63 }
0x29f9   :  { %v4743_v2 = vadd.f32 1e-05, %v4742_v4 }
0x29fb   :  { %7958 = vrsqrt.f32 %v4743_v2 }
0x2a05   :  { %v7959_v32 = vpop.eup %7958 }
0x2a06   :  { %v4745_v33 = vmul.f32 %v7959_v32, %v4737_v24 }
0x2a08   :  { %v4750_v11 = vmul.f32 %v9571_v61, %v4745_v33 }
0x2a0a   :  { %v4755_v57 = vadd.f32 %v9582_v8, %v4750_v11 }
0x2a0c   :  { %7233 = vmatmul.mubr.msk.f32.vlgmr.msra.gmra.mrb[74].mxu0 %vm110_vm0, %v4755_v57 }
0x2a0d   :  { %7756 = vmatpush3.bf16.msra.mxu0 %v9585_v30  ;;  %7243 = vmatprep.mubr.msk.f32.mxu0 %vm8029_vm4, %v8030_v28 }
0x2a0e   :  { %7757 = vmatprep.subr.bf16.mxu0 %v8028_v10 }
0x2a11   :  { %7759 = vmatpush3.bf16.msra.mxu0 %v9599_v12 }
0x2a12   :  { %7760 = vmatprep.subr.bf16.mxu0 %v8028_v10 }
0x2adf   :  { %v4829_v14 = vpop.f32.mrb[74].mxu0 }
0x2ae0   :  { %v4830_v29 = vadd.f32 %v9606_v16, %v4829_v14  ;;  %v7234_v27 = vpop.f32.mrb[75].mxu0 }
0x2ae2   :  { %v4833_v5 = vmul.f32 0.5, %v4830_v29  ;;  %v4981_v0 = vmul.f32 %v4830_v29, %v4830_v29 }
0x2ae4   :  { %4993 = vrot.lane.b32.xlu0 %v4981_v0, %s8026_s18  ;;  %4907 = vrot.lane.b32.xlu1 %v4833_v5, %s8026_s18  ;;  %v4982_v9 = vsel %vm44_vm2, %v4981_v0, 0.0  ;;  %v4986_v21 = vsel %vm44_vm2, 0.0, %v4981_v0 }
0x2ae5   :  { %7244 = vmatmul.mubr.msk.f32.vlgmr.msra.gmra.mrb[76].mxu0 %vm110_vm0, %v4833_v5  ;;  %v4983_v43 = vsel %vm110_vm0, %v4982_v9, 0.0  ;;  %v4987_v44 = vsel %vm110_vm0, %v4986_v21, 0.0 }
0x2ae6   :  { %7762 = vmatpush3.bf16.msra.mxu0 %v9585_v30  ;;  %7254 = vmatprep.mubr.msk.f32.mxu0 %vm8029_vm4, %v8030_v28 }
0x2ae7   :  { %7763 = vmatprep.subr.bf16.mxu0 %v8028_v10 }
0x2aea   :  { %7765 = vmatpush3.bf16.msra.mxu0 %v9599_v12 }
0x2aeb   :  { %7257 = vmatprep.subr.mxu0 %v8030_v28 }
0x2b56   :  { %v4994_v13 = vpop.permute.xlu0 %4993  ;;  %v4908_v6 = vpop.permute.xlu1 %4907 }
0x2b57   :  { %v4996_v42 = vsel %vm44_vm2, %v4994_v13, 0.0  ;;  %7255 = vmatmul.mubr.msk.f32.vlgmr.msra.gmra.mrb[78].mxu0 %vm110_vm0, %v4908_v6  ;;  %v5000_v37 = vsel %vm44_vm2, 0.0, %v4994_v13 }
0x2b58   :  { %v4997_v31 = vsel %vm110_vm0, %v4996_v42, 0.0  ;;  %7259 = vmatprep.mubr.msk.f32.mxu0 %vm8029_vm4, %v8030_v28  ;;  %v5001_v15 = vsel %vm110_vm0, %v5000_v37, 0.0 }
0x2b59   :  { %4998 = vadd.xlane.f32.xlu0 %v4997_v31 }
0x2b6f   :  { %5090 = vrot.lane.b32.xlu0 %v4830_v29, %s8027_s19 }
0x2b8e   :  { %4984 = vadd.xlane.f32.xlu0 %v4983_v43 }
0x2b92   :  { %4988 = vadd.xlane.f32.xlu0 %v4987_v44 }
0x2bb8   :  { %v9631_v54 = vpop.f32.mrb[76].mxu0 }
0x2bb9   :  { %v7245_v20 = vpop.f32.mrb[77].mxu0  ;;  %v5010_v25 = vsel %vm69_vm3, -1e+30, %v9631_v54  ;;  %v5006_v19 = vsel %vm69_vm3, %v9631_v54, -1e+30 }
0x2bba   :  { %v5011_v55 = vsel %vm453_vm1, %v5010_v25, -inf  ;;  %v5007_v22 = vsel %vm453_vm1, %v5006_v19, -inf }
0x2bbb   :  { %5012 = vmax.xlane.f32.xlu0 %v5011_v55 }
0x2be6   :  { %v4999_v38 = vpop.xlane.xlu0 %4998 }
0x2bea   :  { %v5091_v41 = vpop.permute.xlu0 %5090 }
0x2beb   :  { %7258 = vmatpush3.msra.mxu0 %v5091_v41 }
0x2bec   :  { %7798 = vmatprep.subr.bf16.mxu0 %v8028_v10 }
0x2c1b   :  { %v4985_v42 = vpop.xlane.xlu0 %4984 }
0x2c1f   :  { %v4989_v31 = vpop.xlane.xlu0 %4988 }
0x2c20   :  { %v4990_v9 = vsel %vm69_vm3, %v4985_v42, %v4989_v31 }
0x2c21   :  { %v4991_v43 = vmul.f32 0.125, %v4990_v9 }
0x2c23   :  { %v5024_v20 = vsub.f32 %v9631_v54, %v4991_v43 }
0x2c2a   :  { %v4977_v51 = vpop.f32.mrb[78].mxu0 }
0x2c2b   :  { %v7256_v52 = vpop.f32.mrb[79].mxu0  ;;  %v5015_v18 = vsel %vm453_vm1, %v4977_v51, -inf }
0x2c2c   :  { %5016 = vmax.xlane.f32.xlu1 %v5015_v18 }
0x2c30   :  { %5002 = vadd.xlane.f32.xlu1 %v5001_v15 }
0x2c48   :  { %v5013_v25 = vpop.xlane.xlu0 %5012 }
0x2cb9   :  { %v5017_v50 = vpop.xlane.xlu1 %5016 }
0x2cba   :  { %v5018_v59 = vrot.slane %v5017_v50, 4 }
0x2cbc   :  { %v5019_v48 = vmax.f32 %v5017_v50, %v5018_v59 }
0x2cbd   :  { %v5003_v26 = vpop.xlane.xlu1 %5002 }
0x2cbe   :  { %v5020_v24 = vrot.slane %v5019_v48, 2  ;;  %v5004_v45 = vsel %vm69_vm3, %v4999_v38, %v5003_v26 }
0x2cbf   :  { %v5005_v40 = vmul.f32 0.125, %v5004_v45 }
0x2cc0   :  { %v5021_v1 = vmax.f32 %v5019_v48, %v5020_v24 }
0x2cc1   :  { %v5030_v39 = vsub.f32 %v4977_v51, %v5005_v40 }
0x2cc2   :  { %v5022_v60 = vrot.slane %v5021_v1, 1 }
0x2cc4   :  { %v5023_v23 = vmax.f32 %v5021_v1, %v5022_v60 }
0x2cc6   :  { %v5031_v63 = vsub.f32 %v5030_v39, %v5023_v23 }
0x2cc8   :  { %v5032_v4 = vmul.f32 1.442695, %v5031_v63 }
0x2cca   :  { %7960 = vpow2.f32 %v5032_v4 }
0x2cd4   :  { %v7961_v2 = vpop.eup %7960 }
0x2cd5   :  { %v5034_v32 = vadd.f32 0.0001, %v7961_v2 }
0x2cd7   :  { %v5035_v33 = vmul.f32 0.15075567, %v5034_v32 }
0x2cd9   :  { %5057 = vxpose.xlu1.b32.start.end [1/1] (short) (narrow) %v5035_v33, 88  ;;  %v5036_v21 = vsel %vm453_vm1, %v5035_v33, 0.0 }
0x2cda   :  { %v5037_v44 = vrot.slane %v5036_v21, 4 }
0x2cdc   :  { %v5038_v51 = vadd.f32 %v5037_v44, %v5036_v21 }
0x2cde   :  { %v5039_v18 = vrot.slane %v5038_v51, 2 }
0x2ce0   :  { %v5040_v37 = vadd.f32 %v5039_v18, %v5038_v51  ;;  %v4726_v51 = vld [vmem:[%s9863_s2 + $0x408] sm:$0xff] }
0x2ce2   :  { %v5041_v15 = vrot.slane %v5040_v37, 1 }
0x2ce4   :  { %v5042_v26 = vadd.f32 %v5041_v15, %v5040_v37 }
0x2d28   :  { %5008 = vmax.xlane.f32.xlu1 %v5007_v22 }
0x2d59   :  { %v5073_v11 = vpop.trf.xlu1 }
0x2d5a   :  { %7260 = vmatmul.mubr.msk.f32.vlgmr.msra.gmra.mrb[80].mxu0 %vm3344_vm12, %v5073_v11 }
0x2d5b   :  { %7262 = vmatprep.mubr.msk.f32.mxu0 %vm8029_vm4, %v8030_v28  ;;  %7800 = vmatpush3.bf16.msra.mxu0 %v9585_v30 }
0x2d5c   :  { %7801 = vmatprep.subr.bf16.mxu0 %v8028_v10 }
0x2d5d   :  { %v5074_v57 = vpop.trf.xlu1 }
0x2d5e   :  { %7263 = vmatmul.mubr.msk.f32.gmra.mrb[82].mxu0 %vm3344_vm12, %v5074_v57 }
0x2d5f   :  { %7265 = vmatprep.mubr.msk.f32.mxu0 %vm8029_vm4, %v8030_v28  ;;  %7803 = vmatpush3.bf16.msra.mxu0 %v9599_v12 }
0x2d60   :  { %7361 = vmatprep.subr.mxu0 %v8030_v28 }
0x2d61   :  { %v5075_v7 = vpop.trf.xlu1 }
0x2d62   :  { %7266 = vmatmul.mubr.msk.f32.gmra.mrb[84].mxu0 %vm3344_vm12, %v5075_v7 }
0x2d63   :  { %7268 = vmatprep.mubr.msk.f32.mxu0 %vm8029_vm4, %v8030_v28 }
0x2d65   :  { %v5076_v62 = vpop.trf.xlu1 }
0x2d66   :  { %7269 = vmatmul.mubr.msk.f32.gmra.mrb[86].mxu0 %vm3344_vm12, %v5076_v62 }
0x2d67   :  { %7271 = vmatprep.mubr.msk.f32.mxu0 %vm8029_vm4, %v8030_v28 }
0x2d69   :  { %v5077_v14 = vpop.trf.xlu1 }
0x2d6a   :  { %7272 = vmatmul.mubr.msk.f32.gmra.mrb[88].mxu0 %vm3344_vm12, %v5077_v14 }
0x2d6b   :  { %7274 = vmatprep.mubr.msk.f32.mxu0 %vm8029_vm4, %v8030_v28 }
0x2d6d   :  { %v5078_v29 = vpop.trf.xlu1 }
0x2d6e   :  { %7275 = vmatmul.mubr.msk.f32.gmra.mrb[90].mxu0 %vm3344_vm12, %v5078_v29 }
0x2d6f   :  { %7277 = vmatprep.mubr.msk.f32.mxu0 %vm8029_vm4, %v8030_v28 }
0x2d71   :  { %v5079_v27 = vpop.trf.xlu1 }
0x2d72   :  { %7278 = vmatmul.mubr.msk.f32.gmra.mrb[92].mxu0 %vm3344_vm12, %v5079_v27 }
0x2d73   :  { %7280 = vmatprep.mubr.msk.f32.mxu0 %vm8029_vm4, %v8030_v28 }
0x2d75   :  { %v5080_v5 = vpop.trf.xlu1 }
0x2d76   :  { %7281 = vmatmul.mubr.msk.f32.gmra.mrb[94].mxu0 %vm3344_vm12, %v5080_v5 }
0x2d77   :  { %7283 = vmatprep.mubr.msk.f32.mxu0 %vm8029_vm4, %v8030_v28 }
0x2d79   :  { %v5081_v0 = vpop.trf.xlu1 }
0x2d7a   :  { %7284 = vmatmul.mubr.msk.f32.gmra.mrb[96].mxu0 %vm3344_vm12, %v5081_v0 }
0x2d7b   :  { %7286 = vmatprep.mubr.msk.f32.mxu0 %vm8029_vm4, %v8030_v28 }
0x2d7d   :  { %v5082_v13 = vpop.trf.xlu1 }
0x2d7e   :  { %7287 = vmatmul.mubr.msk.f32.gmra.mrb[98].mxu0 %vm3344_vm12, %v5082_v13 }
0x2d7f   :  { %7289 = vmatprep.mubr.msk.f32.mxu0 %vm8029_vm4, %v8030_v28 }
0x2d81   :  { %v5083_v6 = vpop.trf.xlu1 }
0x2d82   :  { %7290 = vmatmul.mubr.msk.f32.gmra.mrb[100].mxu0 %vm3344_vm12, %v5083_v6 }
0x2d83   :  { %7347 = vmatprep.mubr.msk.f32.mxu0 %vm8029_vm4, %v8030_v28 }
0x2db5   :  { %v5009_v55 = vpop.xlane.xlu1 %5008 }
0x2db6   :  { %v5014_v38 = vsel %vm69_vm3, %v5009_v55, %v5013_v25 }
0x2db7   :  { %v5025_v41 = vsub.f32 %v5024_v20, %v5014_v38  ;;  %v4724_v20 = vld [vmem:[%s9863_s2 + $0x3f8] sm:$0xff] }
0x2db8   :  { %v7787_v38 = vpack.c.bf16 %v4725_v53, %v4724_v20 }
0x2db9   :  { %v5026_v52 = vmul.f32 1.442695, %v5025_v41 }
0x2dbb   :  { %7962 = vpow2.f32 %v5026_v52  ;;  %v4727_v52 = vld [vmem:[%s9863_s2 + $0x410] sm:$0xff] }
0x2dbc   :  { %v7790_v18 = vpack.c.bf16 %v4727_v52, %v4726_v51 }
0x2dc5   :  { %v7963_v50 = vpop.eup %7962 }
0x2dc6   :  { %v5028_v59 = vadd.f32 0.0001, %v7963_v50  ;;  %v6274_v50 = vld [vmem:[%s9863_s2 + $0x418] ss:$0 sm:$0xff] }
0x2dc8   :  { %v5029_v48 = vmul.f32 0.15075567, %v5028_v59 }
0x2dca   :  { %v5043_v24 = vmul.f32 %v5042_v26, %v5029_v48 }
0x2dcc   :  { %v5044_v54 = vsel %vm69_vm3, %v5043_v24, 0.0  ;;  %v5048_v1 = vsel %vm69_vm3, 0.0, %v5043_v24 }
0x2dcd   :  { %v5045_v45 = vsel %vm453_vm1, %v5044_v54, 0.0  ;;  %v5049_v40 = vsel %vm453_vm1, %v5048_v1, 0.0 }
0x2dce   :  { %5046 = vadd.xlane.f32.xlu0 %v5045_v45 }
0x2dd2   :  { %5050 = vadd.xlane.f32.xlu0 %v5049_v40 }
0x2e2d   :  { %v5192_v60 = vpop.f32.mrb[80].mxu0 }
0x2e2e   :  { %v7261_v23 = vpop.f32.mrb[81].mxu0 }
0x2e31   :  { %v5197_v39 = vpop.f32.mrb[82].mxu0 }
0x2e32   :  { %v7767_v63 = vpack.c.bf16 %v5197_v39, %v5192_v60  ;;  %v7264_v4 = vpop.f32.mrb[83].mxu0 }
0x2e34   :  { %7769 = vmatpush3.bf16.msk.msra.mxu1 %vm8321_vm9, %v7767_v63 }
0x2e35   :  { %v5202_v2 = vpop.f32.mrb[84].mxu0  ;;  %7770 = vmatprep.subr.bf16.mxu1 %v8028_v10 }
0x2e36   :  { %v7267_v32 = vpop.f32.mrb[85].mxu0 }
0x2e37   :  { %v5802_v32 = vld [vmem:[%s9863_s2 + $0x500] sm:$0xff] }
0x2e39   :  { %v5207_v33 = vpop.f32.mrb[86].mxu0 }
0x2e3a   :  { %v7771_v19 = vpack.c.bf16 %v5207_v33, %v5202_v2  ;;  %v7270_v22 = vpop.f32.mrb[87].mxu0 }
0x2e3c   :  { %7773 = vmatpush3.bf16.msk.msra.mxu1 %vm8321_vm9, %v7771_v19 }
0x2e3d   :  { %v5212_v11 = vpop.f32.mrb[88].mxu0  ;;  %7774 = vmatprep.subr.bf16.mxu1 %v8028_v10 }
0x2e3e   :  { %v7273_v57 = vpop.f32.mrb[89].mxu0 }
0x2e41   :  { %v5217_v7 = vpop.f32.mrb[90].mxu0 }
0x2e42   :  { %v7775_v62 = vpack.c.bf16 %v5217_v7, %v5212_v11  ;;  %v7276_v14 = vpop.f32.mrb[91].mxu0 }
0x2e44   :  { %7777 = vmatpush3.bf16.msk.msra.mxu1 %vm8338_vm13, %v7775_v62 }
0x2e45   :  { %v5222_v29 = vpop.f32.mrb[92].mxu0  ;;  %7778 = vmatprep.subr.bf16.mxu1 %v8028_v10 }
0x2e46   :  { %v7279_v27 = vpop.f32.mrb[93].mxu0 }
0x2e49   :  { %v5227_v5 = vpop.f32.mrb[94].mxu0 }
0x2e4a   :  { %v7779_v0 = vpack.c.bf16 %v5227_v5, %v5222_v29  ;;  %v7282_v13 = vpop.f32.mrb[95].mxu0 }
0x2e4c   :  { %7781 = vmatpush3.bf16.msk.msra.mxu1 %vm8356_vm15, %v7779_v0 }
0x2e4d   :  { %v5232_v34 = vpop.f32.mrb[96].mxu0  ;;  %7782 = vmatprep.subr.bf16.mxu1 %v8028_v10 }
0x2e4e   :  { %v7285_v6 = vpop.f32.mrb[97].mxu0 }
0x2e51   :  { %v5237_v42 = vpop.f32.mrb[98].mxu0 }
0x2e52   :  { %v7783_v31 = vpack.c.bf16 %v5237_v42, %v5232_v34  ;;  %v7288_v9 = vpop.f32.mrb[99].mxu0 }
0x2e54   :  { %7785 = vmatpush3.bf16.msk.msra.mxu1 %vm8356_vm15, %v7783_v31 }
0x2e55   :  { %v5242_v46 = vpop.f32.mrb[100].mxu0  ;;  %7312 = vmatprep.subr.mxu1 %v8030_v28 }
0x2e56   :  { %v7291_v43 = vpop.f32.mrb[101].mxu0 }
0x2e58   :  { %7313 = vmatpush3.msk.msra.mxu1 %vm8349_vm14, %v5242_v46 }
0x2e59   :  { %7786 = vmatprep.subr.bf16.mxu1 %v8028_v10 }
0x2e5b   :  { %v5047_v21 = vpop.xlane.xlu0 %5046 }
0x2e5c   :  { %7964 = vrcp.f32 %v5047_v21 }
0x2e5f   :  { %v5051_v44 = vpop.xlane.xlu0 %5050 }
0x2e60   :  { %7966 = vrcp.f32 %v5051_v44 }
0x2e66   :  { %v7965_v25 = vpop.eup %7964 }
0x2e6a   :  { %v7967_v55 = vpop.eup %7966 }
0x2e6b   :  { %v5056_v49 = vsel %vm69_vm3, %v7965_v25, %v7967_v55 }
0x2e6c   :  { %v5257_v41 = vmul.f32 %v5056_v49, %v5029_v48 }
0x2e6e   :  { %7315 = vmatmul.mubr.msk.f32.vlgmr.msra.gmra.mrb[62].mxu1 %vm453_vm1, %v5257_v41 }
0x2e6f   :  { %7788 = vmatpush3.bf16.msra.mxu1 %v7787_v38  ;;  %7325 = vmatprep.mubr.msk.f32.mxu1 %vm8029_vm4, %v8030_v28 }
0x2e70   :  { %7789 = vmatprep.subr.bf16.mxu1 %v8028_v10 }
0x2e73   :  { %7791 = vmatpush3.bf16.msra.mxu1 %v7790_v18 }
0x2e74   :  { %7792 = vmatprep.subr.bf16.mxu1 %v8028_v10 }
0x2f41   :  { %v5327_v37 = vpop.f32.mrb[62].mxu1 }
0x2f42   :  { %v7316_v15 = vpop.f32.mrb[63].mxu1  ;;  %7326 = vmatmul.mubr.msk.f32.vlgmr.msra.gmra.mrb[64].mxu1 %vm110_vm0, %v5327_v37 }
0x2f43   :  { %7794 = vmatpush3.bf16.msra.mxu1 %v9554_v36  ;;  %7336 = vmatprep.mubr.msk.f32.mxu1 %vm8029_vm4, %v8030_v28 }
0x2f44   :  { %7795 = vmatprep.subr.bf16.mxu1 %v8028_v10 }
0x2f47   :  { %7797 = vmatpush3.bf16.msra.mxu1 %v9564_v3 }
0x2f48   :  { %7804 = vmatprep.subr.bf16.mxu1 %v8028_v10 }
0x3015   :  { %v5404_v59 = vpop.f32.mrb[64].mxu1 }
0x3016   :  { %v5405_v48 = vadd.f32 %v6274_v50, %v5404_v59  ;;  %v7327_v26 = vpop.f32.mrb[65].mxu1 }
0x3018   :  { %v5408_v24 = vadd.f32 %v5405_v48, %v9542_v47 }
0x301a   :  { %v5409_v36 = vsel %vm110_vm0, %v5408_v24, 0.0 }
0x301b   :  { %5410 = vadd.xlane.f32.xlu0 %v5409_v36 }
0x30a8   :  { %v5411_v54 = vpop.xlane.xlu0 %5410 }
0x30a9   :  { %v5412_v45 = vmul.f32 0.03125, %v5411_v54 }
0x30ab   :  { %v5413_v1 = vsub.f32 %v5408_v24, %v5412_v45 }
0x30ad   :  { %v5414_v40 = vmul.f32 %v5413_v1, %v5413_v1 }
0x30af   :  { %v5415_v3 = vsel %vm110_vm0, %v5414_v40, 0.0 }
0x30b0   :  { %5416 = vadd.xlane.f32.xlu0 %v5415_v3 }
0x313d   :  { %v5417_v60 = vpop.xlane.xlu0 %5416 }
0x313e   :  { %v5418_v23 = vmul.f32 0.03125, %v5417_v60 }
0x3140   :  { %v5419_v39 = vadd.f32 1e-05, %v5418_v23 }
0x3142   :  { %7968 = vrsqrt.f32 %v5419_v39 }
0x314c   :  { %v7969_v63 = vpop.eup %7968 }
0x314d   :  { %v5421_v4 = vmul.f32 %v7969_v63, %v5413_v1 }
0x314f   :  { %v5422_v2 = vmul.f32 %v9571_v61, %v5421_v4  ;;  %v5803_v61 = vld [vmem:[%s9863_s2 + $0x508] sm:$0xff] }
0x3151   :  { %v5423_v47 = vadd.f32 %v9582_v8, %v5422_v2  ;;  %v7810_v8 = vpack.c.bf16 %v5803_v61, %v5802_v32 }
0x3153   :  { %7337 = vmatmul.mubr.msk.f32.vlgmr.msra.gmra.mrb[66].mxu1 %vm110_vm0, %v5423_v47 }
0x3154   :  { %7806 = vmatpush3.bf16.msra.mxu1 %v9585_v30  ;;  %7358 = vmatprep.mubr.msk.f32.mxu1 %vm8029_vm4, %v8030_v28 }
0x3155   :  { %7807 = vmatprep.subr.bf16.mxu1 %v8028_v10 }
0x3158   :  { %7809 = vmatpush3.bf16.msra.mxu1 %v9599_v12 }
0x3159   :  { %7811 = vmatprep.subr.bf16.mxu1 %v7810_v8 }
0x3226   :  { %v5493_v33 = vpop.f32.mrb[66].mxu1 }
0x3227   :  { %v5494_v30 = vadd.f32 %v9606_v16, %v5493_v33  ;;  %v7338_v19 = vpop.f32.mrb[67].mxu1 }
0x3229   :  { %v5497_v22 = vmul.f32 0.5, %v5494_v30  ;;  %v5645_v10 = vmul.f32 %v5494_v30, %v5494_v30 }
0x322b   :  { %5571 = vrot.lane.b32.xlu0 %v5497_v22, %s8026_s18  ;;  %7348 = vmatmul.mubr.msk.f32.vlgmr.msra.gmra.mrb[102].mxu0 %vm110_vm0, %v5497_v22  ;;  %v5650_v42 = vsel %vm44_vm2, 0.0, %v5645_v10 }
0x322c   :  { %7363 = vmatprep.mubr.msk.f32.mxu0 %vm8029_vm4, %v8030_v28  ;;  %v5646_v28 = vsel %vm44_vm2, %v5645_v10, 0.0  ;;  %v5651_v31 = vsel %vm110_vm0, %v5650_v42, 0.0 }
0x322d   :  { %v5647_v7 = vsel %vm110_vm0, %v5646_v28, 0.0  ;;  %v6281_v28 = vld [vmem:[%s9863_s2 + $0x518] ss:$0 sm:$0xff] }
0x322f   :  { %5657 = vrot.lane.b32.xlu0 %v5645_v10, %s8026_s18 }
0x329d   :  { %v5572_v12 = vpop.permute.xlu0 %5571 }
0x329e   :  { %7359 = vmatmul.mubr.msk.f32.vlgmr.msra.gmra.mrb[68].mxu1 %vm110_vm0, %v5572_v12 }
0x329f   :  { %7813 = vmatpush3.bf16.msra.mxu1 %v7810_v8  ;;  %7370 = vmatprep.mubr.msk.f32.mxu1 %vm584_vm5, %v9144_v35 }
0x32a1   :  { %v5658_v16 = vpop.permute.xlu0 %5657 }
0x32a2   :  { %v5660_v11 = vsel %vm44_vm2, %v5658_v16, 0.0  ;;  %7371 = vmatmul.mubr.msk.f32.vlgmr.msra.gmra.mrb[70].mxu1 %vm584_vm5, %v9142_v17  ;;  %v5664_v0 = vsel %vm44_vm2, 0.0, %v5658_v16  ;;  %v5892_v16 = vld [vmem:[%s9863_s2 + $0x528] sm:$0xff]  ;;  %s6082_s2 = sshll.u32 %s8035_s21, 4  ;;  %s6083_s2 = int_to_ptr.vmem [resolvable:$true] %s6082_s2 }
0x32a3   :  { %v5661_v57 = vsel %vm110_vm0, %v5660_v11, 0.0  ;;  %v5665_v6 = vsel %vm110_vm0, %v5664_v0, 0.0 }
0x32a4   :  { %5662 = vadd.xlane.f32.xlu1 %v5661_v57 }
0x32a8   :  { %5648 = vadd.xlane.f32.xlu1 %v5647_v7 }
0x32fe   :  { %v5567_v62 = vpop.f32.mrb[102].mxu0 }
0x32ff   :  { %v7349_v14 = vpop.f32.mrb[103].mxu0  ;;  %v5670_v35 = vsel %vm69_vm3, %v5567_v62, -1e+30  ;;  %v5674_v9 = vsel %vm69_vm3, -1e+30, %v5567_v62 }
0x3300   :  { %v5671_v29 = vsel %vm453_vm1, %v5670_v35, -inf  ;;  %v5675_v46 = vsel %vm453_vm1, %v5674_v9, -inf }
0x3301   :  { %5672 = vmax.xlane.f32.xlu1 %v5671_v29 }
0x3331   :  { %v5663_v44 = vpop.xlane.xlu1 %5662 }
0x3335   :  { %v5649_v41 = vpop.xlane.xlu1 %5648 }
0x3371   :  { %v5641_v27 = vpop.f32.mrb[68].mxu1 }
0x3372   :  { %v7360_v5 = vpop.f32.mrb[69].mxu1  ;;  %v5679_v17 = vsel %vm453_vm1, %v5641_v27, -inf }
0x3373   :  { %5680 = vmax.xlane.f32.xlu0 %v5679_v17 }
0x3375   :  { %v9784_v13 = vpop.f32.mrb[70].mxu1 }
0x3376   :  { %v9786_v34 = vpop.f32.mrb[71].mxu1  ;;  %v5887_v29 = vadd.f32 %v9784_v13, %v6281_v28 }
0x3377   :  { %5666 = vadd.xlane.f32.xlu0 %v5665_v6  ;;  %v4526_v6 = vmul.f32 0.5, %v9536_v56 }
0x3378   :  { %v5891_v17 = vmax.f32 %v5887_v29, 0.0 }
0x337b   :  { %5652 = vadd.xlane.f32.xlu0 %v5651_v31 }
0x337f   :  { %5676 = vmax.xlane.f32.xlu0 %v5675_v46 }
0x338e   :  { %v5673_v26 = vpop.xlane.xlu1 %5672 }
0x3400   :  { %v5681_v43 = vpop.xlane.xlu0 %5680 }
0x3401   :  { %v5682_v21 = vrot.slane %v5681_v43, 4 }
0x3403   :  { %v5683_v20 = vmax.f32 %v5681_v43, %v5682_v21 }
0x3404   :  { %v5667_v53 = vpop.xlane.xlu0 %5666 }
0x3405   :  { %v5684_v25 = vrot.slane %v5683_v20, 2  ;;  %v5668_v55 = vsel %vm69_vm3, %v5663_v44, %v5667_v53 }
0x3406   :  { %v5669_v38 = vmul.f32 0.125, %v5668_v55 }
0x3407   :  { %v5685_v49 = vmax.f32 %v5683_v20, %v5684_v25 }
0x3408   :  { %v5653_v51 = vpop.xlane.xlu0 %5652  ;;  %v5694_v50 = vsub.f32 %v5641_v27, %v5669_v38 }
0x3409   :  { %v5686_v52 = vrot.slane %v5685_v49, 1  ;;  %v5654_v18 = vsel %vm69_vm3, %v5649_v41, %v5653_v51 }
0x340a   :  { %v5655_v37 = vmul.f32 0.125, %v5654_v18 }
0x340b   :  { %v5687_v15 = vmax.f32 %v5685_v49, %v5686_v52 }
0x340c   :  { %v5677_v59 = vpop.xlane.xlu0 %5676  ;;  %v5688_v24 = vsub.f32 %v5567_v62, %v5655_v37  ;;  %v5882_v62 = vadd.f32 %v6281_v28, %v9786_v34 }
0x340d   :  { %v5695_v48 = vsub.f32 %v5694_v50, %v5687_v15  ;;  %v5678_v54 = vsel %vm69_vm3, %v5673_v26, %v5677_v59 }
0x340e   :  { %v5689_v45 = vsub.f32 %v5688_v24, %v5678_v54  ;;  %v5890_v5 = vmax.f32 %v5882_v62, 0.0 }
0x340f   :  { %v5696_v36 = vmul.f32 1.442695, %v5695_v48 }
0x3410   :  { %v5690_v1 = vmul.f32 1.442695, %v5689_v45 }
0x3411   :  { %7970 = vpow2.f32 %v5696_v36 }
0x3412   :  { %7972 = vpow2.f32 %v5690_v1 }
0x341b   :  { %v7971_v40 = vpop.eup %7970 }
0x341c   :  { %v5698_v3 = vadd.f32 0.0001, %v7971_v40  ;;  %v7973_v4 = vpop.eup %7972 }
0x341d   :  { %v5692_v47 = vadd.f32 0.0001, %v7973_v4 }
0x341e   :  { %v5699_v60 = vmul.f32 0.15075567, %v5698_v3 }
0x341f   :  { %v5693_v8 = vmul.f32 0.15075567, %v5692_v47 }
0x3420   :  { %7362 = vmatpush3.xpose.msk.msra.mxu0 %vm453_vm1, %v5699_v60  ;;  %v5700_v23 = vsel %vm453_vm1, %v5699_v60, 0.0 }
0x3421   :  { %v5701_v39 = vrot.slane %v5700_v23, 4  ;;  %7373 = vmatprep.subr.mxu0 %v5892_v16 }
0x3423   :  { %v5702_v63 = vadd.f32 %v5701_v39, %v5700_v23 }
0x3425   :  { %v5703_v2 = vrot.slane %v5702_v63, 2 }
0x3427   :  { %v5704_v32 = vadd.f32 %v5703_v2, %v5702_v63 }
0x3429   :  { %v5705_v61 = vrot.slane %v5704_v32, 1 }
0x342b   :  { %v5706_v33 = vadd.f32 %v5705_v61, %v5704_v32 }
0x342d   :  { %v5707_v30 = vmul.f32 %v5706_v33, %v5693_v8 }
0x342f   :  { %v5712_v19 = vsel %vm69_vm3, 0.0, %v5707_v30  ;;  %v5708_v22 = vsel %vm69_vm3, %v5707_v30, 0.0 }
0x3430   :  { %v5713_v10 = vsel %vm453_vm1, %v5712_v19, 0.0  ;;  %v5709_v12 = vsel %vm453_vm1, %v5708_v22, 0.0 }
0x3431   :  { %5714 = vadd.xlane.f32.xlu0 %v5713_v10  ;;  %5710 = vadd.xlane.f32.xlu1 %v5709_v12 }
0x34be   :  { %v5715_v11 = vpop.xlane.xlu0 %5714  ;;  %v5711_v57 = vpop.xlane.xlu1 %5710 }
0x34bf   :  { %7974 = vrcp.f32 %v5715_v11 }
0x34c0   :  { %7976 = vrcp.f32 %v5711_v57 }
0x34c9   :  { %v7975_v7 = vpop.eup %7974 }
0x34ca   :  { %v7977_v14 = vpop.eup %7976 }
0x34cb   :  { %v5720_v35 = vsel %vm69_vm3, %v7977_v14, %v7975_v7 }
0x34cc   :  { %v5721_v27 = vmul.f32 %v5720_v35, %v5693_v8 }
0x34ce   :  { %7364 = vmatmul.mubr.msk.f32.vlgmr.msra.gmra.mrb[104].mxu0 %vm453_vm1, %v5721_v27 }
0x34cf   :  { %7375 = vmatprep.mubr.msk.f32.mxu0 %vm3344_vm12, %v5890_v5  ;;  %7374 = vmatpush3.msra.mxu0 %v5892_v16 }
0x34d2   :  { %7376 = vmatmul.mubr.msk.f32.vlgmr.msra.gmra.mrb[106].mxu0 %vm3344_vm12, %v5891_v17 }
0x35a1   :  { %v5794_v0 = vpop.f32.mrb[104].mxu0 }
0x35a2   :  { %v5798_v34 = vmul.f32 0.5, %v5794_v0  ;;  %v7365_v42 = vpop.f32.mrb[105].mxu0 }
0x35a4   :  { %v5799_v13 = vadd.f32 %v5798_v34, %v4526_v6 }
0x35a5   :  { %v7377_v31 = vpop.f32.mrb[106].mxu0 }
0x35a6   :  { %v5800_v9 = vmul.f32 0.5, %v5799_v13  ;;  %v5976_v46 = vadd.f32 %v7377_v31, %v6284_v58  ;;  %v5970_v43 = vpop.f32.mrb[107].mxu0 }
0x35a7   :  { %v5971_v21 = vadd.f32 %v6284_v58, %v5970_v43 }
0x35a8   :  { %5801 = vst.msk [vmem:[#allocation4] sm:$0xff] %vm3344_vm12, %v5800_v9  ;;  %7378 = vmatprep.subr.mxu1 %v5800_v9  ;;  %v5980_v20 = vmax.f32 %v5976_v46, 0.0 }
0x35a9   :  { %v5979_v44 = vmax.f32 %v5971_v21, 0.0  ;;  %7379 = vmatpush3.msra.mxu1 %v5800_v9 }
0x35ab   :  { %7380 = vmatprep.mubr.msk.f32.mxu1 %vm3344_vm12, %v5979_v44 }
0x35ac   :  { %7381 = vmatmul.mubr.msk.f32.vlgmr.msra.gmra.mrb[72].mxu1 %vm3344_vm12, %v5980_v20 }
0x35ad   :  { %7989 = shalt.err (!%p7986_p4)
}
0x35ae   :  { %s7990_s24 = scalar_lea.hbm %s9864_s3, 256 }
0x35af   :  { %p7991_p5 = scmp.ne.s32.totalorder %s9864_s3, %s7990_s24  ;;  %p7994_p6 = scmp.lt.u32.totalorder %s7990_s24, %s9864_s3 }
0x35b1   :  { %p7996_p7 = pnand %p7994_p6, %p7991_p5 }
0x35b3   :  { %7999 = shalt.err (!%p7996_p7)
}
0x35b4   :  { %s8036_s27 = smov 128   ;;  %s8037_s28 = smov 8  }
0x35b5   :  { %6075 = dma.vmem_to_hbm [thread:$0]  %s6070_s20, 256, %s9864_s3, [#allocation3], %s8036_s27, %s8036_s27, %s8037_s28  }
0x35b6   :  { %s8000_s6 = scalar_lea.vmem %s6083_s2, 128  ;;  %p8005_p9 = scmp.lt.s32.totalorder %s6083_s2, %s6083_s2 }
0x35b7   :  { %p8001_p8 = scmp.ne.s32.totalorder %s6083_s2, %s8000_s6  ;;  %p8006_p10 = scmp.lt.s32.totalorder %s8000_s6, %s8000_s6 }
0x35b9   :  { %p8007_p11 = por %p8006_p10, %p8005_p9 }
0x35bb   :  { %p8008_p12 = pnand %p8007_p11, %p8001_p8 }
0x35bd   :  { %8011 = shalt.err (!%p8008_p12)
}
0x35be   :  { %s8012_s9 = scalar_lea.hbm %s9865_s4, 128 }
0x35bf   :  { %p8013_p13 = scmp.ne.s32.totalorder %s9865_s4, %s8012_s9  ;;  %p8016_p0 = scmp.lt.u32.totalorder %s8012_s9, %s9865_s4 }
0x35c1   :  { %p8018_p1 = pnand %p8016_p0, %p8013_p13 }
0x35c3   :  { %8021 = shalt.err (!%p8018_p1)
}
0x35c4   :  { %6085 = dma.vmem_to_hbm [thread:$0]  %s6083_s2, 128, %s9865_s4, [#allocation5]  }
0x367f   :  { %v7382_v56 = vpop.f32.mrb[72].mxu1 }
0x3680   :  { %6063 = vst.msk [vmem:[%s9866_s5 + $0x8] sm:$0xff] %vm3344_vm12, %v7382_v56  ;;  %v6053_v53 = vpop.f32.mrb[73].mxu1 }
0x3681   :  { %6062 = vst.msk [vmem:[%s9866_s5] sm:$0xff] %vm3344_vm12, %v6053_v53 }
0x3682   :  { %8022 = dma.done.wait [#allocation3], 256  }
0x3683   :  { %8023 = vsyncadd [#allocation3], 4294967040 }
0x3684   :  { %8024 = dma.done.wait [#allocation5], 128  }
0x3685   :  { %8025 = vsyncadd [#allocation5], 4294967168 }
0x3686   :  { %6096 = vsyncpa [#allocation3], 1 }
0x3687   :  { %6097 = vsyncpa [#allocation5], 1 }

</bundles_post_ra>
